<compile_context>
chip_gen: v7x
topology: tpu7x:2x2x1
jax: 0.10.0
libtpu: 0.0.40
codegen_flags: <defaults>
</compile_context>

<pallas_src>
import jax
import jax.numpy as jnp
from jax.experimental import pallas as pl
from jax.experimental.pallas import tpu as pltpu


# ---------------------------------------------------------------------------
# Pallas kernels
# ---------------------------------------------------------------------------
def _conv_pool_kernel(p00_ref, p01_ref, p10_ref, p11_ref, w_ref, b_ref, o_ref):
    """Fused conv (as im2col matmul) + bias + ReLU + 2x2 max-pool, one row tile.

    The four p*_refs hold the im2col patch rows of the four 2x2 pooling
    corners for the SAME pooled output rows, so
        out = max_corner relu(patches_corner @ W + b)
    which equals maxpool2x2(relu(conv(x))) row-for-row (max and ReLU commute).
    """
    w = w_ref[...]
    b = b_ref[...]

    def corner(p_ref):
        y = jnp.dot(p_ref[...], w, preferred_element_type=jnp.float32) + b
        return jnp.maximum(y, 0.0)

    acc = corner(p00_ref)
    acc = jnp.maximum(acc, corner(p01_ref))
    acc = jnp.maximum(acc, corner(p10_ref))
    acc = jnp.maximum(acc, corner(p11_ref))
    o_ref[...] = acc.astype(o_ref.dtype)


def _fc_head_kernel(x_ref, w1_ref, b1_ref, w2_ref, b2_ref, w3_ref, b3_ref,
                    o_ref, acc_ref):
    """Fused fc1(+ReLU) -> fc2(+ReLU) -> fc3.  Grid axis = fc1 K reduction."""
    k = pl.program_id(0)

    @pl.when(k == 0)
    def _():
        acc_ref[...] = jnp.zeros_like(acc_ref)

    acc_ref[...] += jnp.dot(x_ref[...], w1_ref[...],
                            preferred_element_type=jnp.float32)

    @pl.when(k == pl.num_programs(0) - 1)
    def _():
        h = jnp.maximum(acc_ref[...] + b1_ref[...], 0.0)            # fc1 + ReLU
        h = jnp.maximum(jnp.dot(h, w2_ref[...],
                                preferred_element_type=jnp.float32)
                        + b2_ref[...], 0.0)                         # fc2 + ReLU
        o_ref[...] = (jnp.dot(h, w3_ref[...],
                              preferred_element_type=jnp.float32)
                      + b3_ref[...]).astype(o_ref.dtype)            # fc3


# ---------------------------------------------------------------------------
# Kernel wrappers
# ---------------------------------------------------------------------------
def _round_up(x, m):
    return (x + m - 1) // m * m


def _conv_row_tile(m_rows, k_cols):
    """Row tile so the 4 double-buffered f32 patch blocks stay around <=4 MiB
    per grid step (fits every generation's default scoped-VMEM budget)."""
    budget_rows = (4 * 1024 * 1024) // (4 * 2 * 4 * k_cols)
    tm = max(8, min(128, (budget_rows // 8) * 8))
    return min(tm, _round_up(m_rows, 8))


def conv_relu_pool(x, w_mat, b_row, k):
    """Fused valid conv (stride 1) + bias + ReLU + 2x2 max-pool.

    x: [B, H, W, Cin] channels-last.
    w_mat: [Kp, Np] with rows = (kh, kw, cin) flatten zero-padded to Kp and
    Np a multiple of 128.  Returns [B, (H-k+1)//2, (W-k+1)//2, Np].
    """
    B, H, W, Cin = x.shape
    Ho, Wo = H - k + 1, W - k + 1
    assert Ho % 2 == 0 and Wo % 2 == 0
    Hp, Wp = Ho // 2, Wo // 2
    Kp, Np = w_mat.shape

    # im2col, channels-last flatten order (kh, kw, cin); zero-pad K to Kp.
    cols = [x[:, kh:kh + Ho, kw:kw + Wo, :]
            for kh in range(k) for kw in range(k)]
    patches = jnp.concatenate(cols, axis=-1)            # [B, Ho, Wo, k*k*Cin]
    if Kp > k * k * Cin:
        patches = jnp.pad(
            patches, ((0, 0), (0, 0), (0, 0), (0, Kp - k * k * Cin)))

    # Patch rows of the four 2x2 pooling corners, rows ordered (b, hp, wp).
    corners = [patches[:, dh::2, dw::2, :].reshape(B * Hp * Wp, Kp)
               for dh in (0, 1) for dw in (0, 1)]

    mq = B * Hp * Wp
    tm = _conv_row_tile(mq, Kp)
    m_pad = _round_up(mq, tm)
    if m_pad > mq:
        corners = [jnp.pad(c, ((0, m_pad - mq), (0, 0))) for c in corners]

    patch_spec = pl.BlockSpec((tm, Kp), lambda i: (i, 0))
    out = pl.pallas_call(
        _conv_pool_kernel,
        out_shape=jax.ShapeDtypeStruct((m_pad, Np), jnp.float32),
        grid=(m_pad // tm,),
        in_specs=[patch_spec] * 4 + [
            pl.BlockSpec((Kp, Np), lambda i: (0, 0)),   # weights: resident
            pl.BlockSpec((1, Np), lambda i: (0, 0)),    # bias: resident
        ],
        out_specs=pl.BlockSpec((tm, Np), lambda i: (i, 0)),
        compiler_params=pltpu.CompilerParams(
            dimension_semantics=("parallel",)),
    )(*corners, w_mat, b_row)
    return out[:mq].reshape(B, Hp, Wp, Np)


def _fc_k_tile(k_total, max_tile=2048):
    best = k_total
    t = 128
    while t <= min(k_total, max_tile):
        if k_total % t == 0:
            best = t
        t += 128
    return best


def fc_head(x, w1, b1, w2, b2, w3, b3):
    """Single pallas_call for the whole FC head (fc1+ReLU, fc2+ReLU, fc3)."""
    B, K1 = x.shape
    N1, N2, N3 = w1.shape[1], w2.shape[1], w3.shape[1]
    tk = _fc_k_tile(K1)

    return pl.pallas_call(
        _fc_head_kernel,
        out_shape=jax.ShapeDtypeStruct((B, N3), jnp.float32),
        grid=(K1 // tk,),
        in_specs=[
            pl.BlockSpec((B, tk), lambda i: (0, i)),    # x, tiled along K
            pl.BlockSpec((tk, N1), lambda i: (i, 0)),   # fc1 weight, K-tiled
            pl.BlockSpec((1, N1), lambda i: (0, 0)),    # resident
            pl.BlockSpec((N1, N2), lambda i: (0, 0)),   # resident
            pl.BlockSpec((1, N2), lambda i: (0, 0)),    # resident
            pl.BlockSpec((N2, N3), lambda i: (0, 0)),   # resident
            pl.BlockSpec((1, N3), lambda i: (0, 0)),    # resident
        ],
        out_specs=pl.BlockSpec((B, N3), lambda i: (0, 0)),
        scratch_shapes=[pltpu.VMEM((B, N1), jnp.float32)],
        compiler_params=pltpu.CompilerParams(
            dimension_semantics=("arbitrary",)),
    )(x, w1, b1, w2, b2, w3, b3)


# ---------------------------------------------------------------------------
# Parameters (PyTorch-shaped raw params + one-time kernel-ready transforms)
# ---------------------------------------------------------------------------
def init_params(key):
    """Deterministic init mirroring nn.Conv2d / nn.Linear default shapes."""
    ks = jax.random.split(key, 10)

    def u(k, shape, fan_in):
        bound = 1.0 / jnp.sqrt(float(fan_in))
        return jax.random.uniform(k, shape, jnp.float32, -bound, bound)

    return {
        "conv1_w": u(ks[0], (100, 3, 5, 5), 3 * 25),
        "conv1_b": u(ks[1], (100,), 3 * 25),
        "conv2_w": u(ks[2], (200, 100, 5, 5), 100 * 25),
        "conv2_b": u(ks[3], (200,), 100 * 25),
        "fc1_w":   u(ks[4], (500, 200 * 5 * 5), 200 * 5 * 5),
        "fc1_b":   u(ks[5], (500,), 200 * 5 * 5),
        "fc2_w":   u(ks[6], (250, 500), 500),
        "fc2_b":   u(ks[7], (250,), 500),
        "fc3_w":   u(ks[8], (10, 250), 250),
        "fc3_b":   u(ks[9], (10,), 250),
    }


def _pad_to(a, shape):
    return jnp.pad(a, [(0, s - d) for d, s in zip(a.shape, shape)])


def prepare_params(p):
    """One-time (outside jit hot path) weight transforms: channels-last
    (kh, kw, cin) flattening + MXU/lane-friendly zero padding."""
    # conv1: patches flatten over cin=3; K padded 75 -> 128, N 100 -> 128.
    w1 = jnp.transpose(p["conv1_w"], (2, 3, 1, 0)).reshape(75, 100)
    w1 = _pad_to(w1, (128, 128))
    b1 = _pad_to(p["conv1_b"].reshape(1, 100), (1, 128))

    # conv2: its input (conv1 output) carries 128 zero-padded channels, so
    # flatten over cin_pad=128 (padded rows are zero).  N 200 -> 256.
    w2 = jnp.transpose(p["conv2_w"], (2, 3, 1, 0))           # [5, 5, 100, 200]
    w2 = _pad_to(w2, (5, 5, 128, 256)).reshape(5 * 5 * 128, 256)
    b2 = _pad_to(p["conv2_b"].reshape(1, 200), (1, 256))

    # fc1: PyTorch flattens NCHW as (c, h, w); our activations flatten as
    # (h, w, c_pad=256) -> permute + pad weight rows to match.  N 500 -> 512.
    f1 = p["fc1_w"].reshape(500, 200, 5, 5)
    f1 = jnp.transpose(f1, (2, 3, 1, 0))                     # [5, 5, 200, 500]
    f1 = _pad_to(f1, (5, 5, 256, 512)).reshape(5 * 5 * 256, 512)
    fb1 = _pad_to(p["fc1_b"].reshape(1, 500), (1, 512))

    f2 = _pad_to(p["fc2_w"].T, (512, 256))
    fb2 = _pad_to(p["fc2_b"].reshape(1, 250), (1, 256))
    f3 = _pad_to(p["fc3_w"].T, (256, 128))
    fb3 = _pad_to(p["fc3_b"].reshape(1, 10), (1, 128))

    return {"w1": w1, "b1": b1, "w2": w2, "b2": b2,
            "fc1_w": f1, "fc1_b": fb1, "fc2_w": f2, "fc2_b": fb2,
            "fc3_w": f3, "fc3_b": fb3}


# ---------------------------------------------------------------------------
# Forward pass
# ---------------------------------------------------------------------------
@jax.jit
def convnet_forward(prep, x_nchw):
    # Single layout change at the boundary; channels-last from here on.
    x = jnp.transpose(x_nchw, (0, 2, 3, 1))                   # [B, 32, 32, 3]
    x = conv_relu_pool(x, prep["w1"], prep["b1"], 5)          # [B, 14, 14, 128]
    x = conv_relu_pool(x, prep["w2"], prep["b2"], 5)          # [B, 5, 5, 256]
    x = x.reshape(x.shape[0], 5 * 5 * 256)                    # (h, w, c) flatten
    out = fc_head(x, prep["fc1_w"], prep["fc1_b"],
                  prep["fc2_w"], prep["fc2_b"],
                  prep["fc3_w"], prep["fc3_b"])               # [B, 128]
    return out[:, :10]


def reference_forward(p, x):
    """Pure-JAX (XLA) reference with the PyTorch module's semantics."""
    hi = jax.lax.Precision.HIGHEST

    def conv(x, w, b):
        y = jax.lax.conv_general_dilated(
            x, w, window_strides=(1, 1), padding="VALID",
            dimension_numbers=("NCHW", "OIHW", "NCHW"), precision=hi)
        return y + b.reshape(1, -1, 1, 1)

    def pool(x):
        return jax.lax.reduce_window(x, -jnp.inf, jax.lax.max,
                                     (1, 1, 2, 2), (1, 1, 2, 2), "VALID")

    x = pool(jax.nn.relu(conv(x, p["conv1_w"], p["conv1_b"])))
    x = pool(jax.nn.relu(conv(x, p["conv2_w"], p["conv2_b"])))
    x = x.reshape(x.shape[0], -1)
    x = jax.nn.relu(jnp.dot(x, p["fc1_w"].T, precision=hi) + p["fc1_b"])
    x = jax.nn.relu(jnp.dot(x, p["fc2_w"].T, precision=hi) + p["fc2_b"])
    return jnp.dot(x, p["fc3_w"].T, precision=hi) + p["fc3_b"]


if __name__ == "__main__":
    key = jax.random.PRNGKey(0)
    pkey, xkey = jax.random.split(key)
    raw = init_params(pkey)
    prep = prepare_params(raw)
    x = jax.random.normal(xkey, (2, 3, 32, 32), dtype=jnp.float32)

    out = jax.block_until_ready(convnet_forward(prep, x))
    assert out.shape == (2, 10), out.shape

    ref = jax.block_until_ready(reference_forward(raw, x))
    assert jnp.allclose(out, ref, rtol=5e-2, atol=5e-3), \
        float(jnp.max(jnp.abs(out - ref)))

    print("KERNEL_OK")
</pallas_src>

<mosaic_0001>
module attributes {stable_mosaic.version = 11 : i64} {
  func.func @_conv_pool_kernel(%arg0: i32, %arg1: memref<128x128xf32, #tpu.memory_space<vmem>>, %arg2: memref<128x128xf32, #tpu.memory_space<vmem>>, %arg3: memref<128x128xf32, #tpu.memory_space<vmem>>, %arg4: memref<128x128xf32, #tpu.memory_space<vmem>>, %arg5: memref<128x128xf32, #tpu.memory_space<vmem>>, %arg6: memref<1x128xf32, #tpu.memory_space<vmem>>, %arg7: memref<128x128xf32, #tpu.memory_space<vmem>>) attributes {dimension_semantics = [#tpu.dimension_semantics<parallel>], iteration_bounds = array<i64: 4>, scalar_prefetch = 0 : i64, scratch_operands = 0 : i64, tpu.core_type = #tpu.core_type<tc>, window_params = [{transform_indices = @transform_0, window_bounds = array<i64: 128, 128>}, {transform_indices = @transform_1, window_bounds = array<i64: 128, 128>}, {transform_indices = @transform_2, window_bounds = array<i64: 128, 128>}, {transform_indices = @transform_3, window_bounds = array<i64: 128, 128>}, {pipeline_mode = #tpu.pipeline_mode<synchronous>, transform_indices = @transform_4, window_bounds = array<i64: 128, 128>}, {pipeline_mode = #tpu.pipeline_mode<synchronous>, transform_indices = @transform_5, window_bounds = array<i64: 1, 128>}, {transform_indices = @transform_6, window_bounds = array<i64: 128, 128>}]} {
    %c0 = arith.constant 0 : index
    %c0_0 = arith.constant 0 : index
    %0 = vector.load %arg5[%c0, %c0_0] : memref<128x128xf32, #tpu.memory_space<vmem>>, vector<128x128xf32>
    %c0_1 = arith.constant 0 : index
    %c0_2 = arith.constant 0 : index
    %1 = vector.load %arg6[%c0_1, %c0_2] : memref<1x128xf32, #tpu.memory_space<vmem>>, vector<1x128xf32>
    %c0_3 = arith.constant 0 : index
    %c0_4 = arith.constant 0 : index
    %2 = vector.load %arg1[%c0_3, %c0_4] : memref<128x128xf32, #tpu.memory_space<vmem>>, vector<128x128xf32>
    %cst = arith.constant dense<0.000000e+00> : vector<128x128xf32>
    %3 = tpu.matmul %2, %0, %cst {dimension_numbers = #tpu.dot_dimension_numbers<[1], [0], [0], [1], [0, 0, 1, 1], [], []>} : vector<128x128xf32>, vector<128x128xf32>, vector<128x128xf32> -> vector<128x128xf32>
    %4 = vector.broadcast %1 : vector<1x128xf32> to vector<128x128xf32>
    %5 = arith.addf %3, %4 : vector<128x128xf32>
    %cst_5 = arith.constant 0.000000e+00 : f32
    %6 = vector.broadcast %cst_5 : f32 to vector<128x128xf32>
    %7 = arith.maximumf %5, %6 : vector<128x128xf32>
    %c0_6 = arith.constant 0 : index
    %c0_7 = arith.constant 0 : index
    %8 = vector.load %arg2[%c0_6, %c0_7] : memref<128x128xf32, #tpu.memory_space<vmem>>, vector<128x128xf32>
    %cst_8 = arith.constant dense<0.000000e+00> : vector<128x128xf32>
    %9 = tpu.matmul %8, %0, %cst_8 {dimension_numbers = #tpu.dot_dimension_numbers<[1], [0], [0], [1], [0, 0, 1, 1], [], []>} : vector<128x128xf32>, vector<128x128xf32>, vector<128x128xf32> -> vector<128x128xf32>
    %10 = vector.broadcast %1 : vector<1x128xf32> to vector<128x128xf32>
    %11 = arith.addf %9, %10 : vector<128x128xf32>
    %cst_9 = arith.constant 0.000000e+00 : f32
    %12 = vector.broadcast %cst_9 : f32 to vector<128x128xf32>
    %13 = arith.maximumf %11, %12 : vector<128x128xf32>
    %14 = arith.maximumf %7, %13 : vector<128x128xf32>
    %c0_10 = arith.constant 0 : index
    %c0_11 = arith.constant 0 : index
    %15 = vector.load %arg3[%c0_10, %c0_11] : memref<128x128xf32, #tpu.memory_space<vmem>>, vector<128x128xf32>
    %cst_12 = arith.constant dense<0.000000e+00> : vector<128x128xf32>
    %16 = tpu.matmul %15, %0, %cst_12 {dimension_numbers = #tpu.dot_dimension_numbers<[1], [0], [0], [1], [0, 0, 1, 1], [], []>} : vector<128x128xf32>, vector<128x128xf32>, vector<128x128xf32> -> vector<128x128xf32>
    %17 = vector.broadcast %1 : vector<1x128xf32> to vector<128x128xf32>
    %18 = arith.addf %16, %17 : vector<128x128xf32>
    %cst_13 = arith.constant 0.000000e+00 : f32
    %19 = vector.broadcast %cst_13 : f32 to vector<128x128xf32>
    %20 = arith.maximumf %18, %19 : vector<128x128xf32>
    %21 = arith.maximumf %14, %20 : vector<128x128xf32>
    %c0_14 = arith.constant 0 : index
    %c0_15 = arith.constant 0 : index
    %22 = vector.load %arg4[%c0_14, %c0_15] : memref<128x128xf32, #tpu.memory_space<vmem>>, vector<128x128xf32>
    %cst_16 = arith.constant dense<0.000000e+00> : vector<128x128xf32>
    %23 = tpu.matmul %22, %0, %cst_16 {dimension_numbers = #tpu.dot_dimension_numbers<[1], [0], [0], [1], [0, 0, 1, 1], [], []>} : vector<128x128xf32>, vector<128x128xf32>, vector<128x128xf32> -> vector<128x128xf32>
    %24 = vector.broadcast %1 : vector<1x128xf32> to vector<128x128xf32>
    %25 = arith.addf %23, %24 : vector<128x128xf32>
    %cst_17 = arith.constant 0.000000e+00 : f32
    %26 = vector.broadcast %cst_17 : f32 to vector<128x128xf32>
    %27 = arith.maximumf %25, %26 : vector<128x128xf32>
    %28 = arith.maximumf %21, %27 : vector<128x128xf32>
    %c0_18 = arith.constant 0 : index
    %c0_19 = arith.constant 0 : index
    %29 = vector.load %arg7[%c0_18, %c0_19] : memref<128x128xf32, #tpu.memory_space<vmem>>, vector<128x128xf32>
    tpu.vector_store %arg7[%c0_18, %c0_19], %28 {strides = array<i32>} : memref<128x128xf32, #tpu.memory_space<vmem>>, vector<128x128xf32>,
    return
  }
  func.func @transform_0(%arg0: i32) -> (i32, i32) {
    %c0_i32 = arith.constant 0 : i32
    %c0_i32_0 = arith.constant 0 : i32
    return %arg0, %c0_i32 : i32, i32
  }
  func.func @transform_1(%arg0: i32) -> (i32, i32) {
    %c0_i32 = arith.constant 0 : i32
    %c0_i32_0 = arith.constant 0 : i32
    return %arg0, %c0_i32 : i32, i32
  }
  func.func @transform_2(%arg0: i32) -> (i32, i32) {
    %c0_i32 = arith.constant 0 : i32
    %c0_i32_0 = arith.constant 0 : i32
    return %arg0, %c0_i32 : i32, i32
  }
  func.func @transform_3(%arg0: i32) -> (i32, i32) {
    %c0_i32 = arith.constant 0 : i32
    %c0_i32_0 = arith.constant 0 : i32
    return %arg0, %c0_i32 : i32, i32
  }
  func.func @transform_4(%arg0: i32) -> (i32, i32) {
    %c0_i32 = arith.constant 0 : i32
    %c0_i32_0 = arith.constant 0 : i32
    %c0_i32_1 = arith.constant 0 : i32
    return %c0_i32, %c0_i32_0 : i32, i32
  }
  func.func @transform_5(%arg0: i32) -> (i32, i32) {
    %c0_i32 = arith.constant 0 : i32
    %c0_i32_0 = arith.constant 0 : i32
    %c0_i32_1 = arith.constant 0 : i32
    return %c0_i32, %c0_i32_0 : i32, i32
  }
  func.func @transform_6(%arg0: i32) -> (i32, i32) {
    %c0_i32 = arith.constant 0 : i32
    %c0_i32_0 = arith.constant 0 : i32
    return %arg0, %c0_i32 : i32, i32
  }
}

module attributes {stable_mosaic.version = 11 : i64} {
  func.func @_conv_pool_kernel(%arg0: i32, %arg1: memref<40x3200xf32, #tpu.memory_space<vmem>>, %arg2: memref<40x3200xf32, #tpu.memory_space<vmem>>, %arg3: memref<40x3200xf32, #tpu.memory_space<vmem>>, %arg4: memref<40x3200xf32, #tpu.memory_space<vmem>>, %arg5: memref<3200x256xf32, #tpu.memory_space<vmem>>, %arg6: memref<1x256xf32, #tpu.memory_space<vmem>>, %arg7: memref<40x256xf32, #tpu.memory_space<vmem>>) attributes {dimension_semantics = [#tpu.dimension_semantics<parallel>], iteration_bounds = array<i64: 2>, scalar_prefetch = 0 : i64, scratch_operands = 0 : i64, tpu.core_type = #tpu.core_type<tc>, window_params = [{transform_indices = @transform_0, window_bounds = array<i64: 40, 3200>}, {transform_indices = @transform_1, window_bounds = array<i64: 40, 3200>}, {transform_indices = @transform_2, window_bounds = array<i64: 40, 3200>}, {transform_indices = @transform_3, window_bounds = array<i64: 40, 3200>}, {pipeline_mode = #tpu.pipeline_mode<synchronous>, transform_indices = @transform_4, window_bounds = array<i64: 3200, 256>}, {pipeline_mode = #tpu.pipeline_mode<synchronous>, transform_indices = @transform_5, window_bounds = array<i64: 1, 256>}, {transform_indices = @transform_6, window_bounds = array<i64: 40, 256>}]} {
    %c0 = arith.constant 0 : index
    %c0_0 = arith.constant 0 : index
    %0 = vector.load %arg5[%c0, %c0_0] : memref<3200x256xf32, #tpu.memory_space<vmem>>, vector<3200x256xf32>
    %c0_1 = arith.constant 0 : index
    %c0_2 = arith.constant 0 : index
    %1 = vector.load %arg6[%c0_1, %c0_2] : memref<1x256xf32, #tpu.memory_space<vmem>>, vector<1x256xf32>
    %c0_3 = arith.constant 0 : index
    %c0_4 = arith.constant 0 : index
    %2 = vector.load %arg1[%c0_3, %c0_4] : memref<40x3200xf32, #tpu.memory_space<vmem>>, vector<40x3200xf32>
    %cst = arith.constant dense<0.000000e+00> : vector<40x256xf32>
    %3 = tpu.matmul %2, %0, %cst {dimension_numbers = #tpu.dot_dimension_numbers<[1], [0], [0], [1], [0, 0, 1, 1], [], []>} : vector<40x3200xf32>, vector<3200x256xf32>, vector<40x256xf32> -> vector<40x256xf32>
    %4 = vector.broadcast %1 : vector<1x256xf32> to vector<40x256xf32>
    %5 = arith.addf %3, %4 : vector<40x256xf32>
    %cst_5 = arith.constant 0.000000e+00 : f32
    %6 = vector.broadcast %cst_5 : f32 to vector<40x256xf32>
    %7 = arith.maximumf %5, %6 : vector<40x256xf32>
    %c0_6 = arith.constant 0 : index
    %c0_7 = arith.constant 0 : index
    %8 = vector.load %arg2[%c0_6, %c0_7] : memref<40x3200xf32, #tpu.memory_space<vmem>>, vector<40x3200xf32>
    %cst_8 = arith.constant dense<0.000000e+00> : vector<40x256xf32>
    %9 = tpu.matmul %8, %0, %cst_8 {dimension_numbers = #tpu.dot_dimension_numbers<[1], [0], [0], [1], [0, 0, 1, 1], [], []>} : vector<40x3200xf32>, vector<3200x256xf32>, vector<40x256xf32> -> vector<40x256xf32>
    %10 = vector.broadcast %1 : vector<1x256xf32> to vector<40x256xf32>
    %11 = arith.addf %9, %10 : vector<40x256xf32>
    %cst_9 = arith.constant 0.000000e+00 : f32
    %12 = vector.broadcast %cst_9 : f32 to vector<40x256xf32>
    %13 = arith.maximumf %11, %12 : vector<40x256xf32>
    %14 = arith.maximumf %7, %13 : vector<40x256xf32>
    %c0_10 = arith.constant 0 : index
    %c0_11 = arith.constant 0 : index
    %15 = vector.load %arg3[%c0_10, %c0_11] : memref<40x3200xf32, #tpu.memory_space<vmem>>, vector<40x3200xf32>
    %cst_12 = arith.constant dense<0.000000e+00> : vector<40x256xf32>
    %16 = tpu.matmul %15, %0, %cst_12 {dimension_numbers = #tpu.dot_dimension_numbers<[1], [0], [0], [1], [0, 0, 1, 1], [], []>} : vector<40x3200xf32>, vector<3200x256xf32>, vector<40x256xf32> -> vector<40x256xf32>
    %17 = vector.broadcast %1 : vector<1x256xf32> to vector<40x256xf32>
    %18 = arith.addf %16, %17 : vector<40x256xf32>
    %cst_13 = arith.constant 0.000000e+00 : f32
    %19 = vector.broadcast %cst_13 : f32 to vector<40x256xf32>
    %20 = arith.maximumf %18, %19 : vector<40x256xf32>
    %21 = arith.maximumf %14, %20 : vector<40x256xf32>
    %c0_14 = arith.constant 0 : index
    %c0_15 = arith.constant 0 : index
    %22 = vector.load %arg4[%c0_14, %c0_15] : memref<40x3200xf32, #tpu.memory_space<vmem>>, vector<40x3200xf32>
    %cst_16 = arith.constant dense<0.000000e+00> : vector<40x256xf32>
    %23 = tpu.matmul %22, %0, %cst_16 {dimension_numbers = #tpu.dot_dimension_numbers<[1], [0], [0], [1], [0, 0, 1, 1], [], []>} : vector<40x3200xf32>, vector<3200x256xf32>, vector<40x256xf32> -> vector<40x256xf32>
    %24 = vector.broadcast %1 : vector<1x256xf32> to vector<40x256xf32>
    %25 = arith.addf %23, %24 : vector<40x256xf32>
    %cst_17 = arith.constant 0.000000e+00 : f32
    %26 = vector.broadcast %cst_17 : f32 to vector<40x256xf32>
    %27 = arith.maximumf %25, %26 : vector<40x256xf32>
    %28 = arith.maximumf %21, %27 : vector<40x256xf32>
    %c0_18 = arith.constant 0 : index
    %c0_19 = arith.constant 0 : index
    %29 = vector.load %arg7[%c0_18, %c0_19] : memref<40x256xf32, #tpu.memory_space<vmem>>, vector<40x256xf32>
    tpu.vector_store %arg7[%c0_18, %c0_19], %28 {strides = array<i32>} : memref<40x256xf32, #tpu.memory_space<vmem>>, vector<40x256xf32>,
    return
  }
  func.func @transform_0(%arg0: i32) -> (i32, i32) {
    %c0_i32 = arith.constant 0 : i32
    %c0_i32_0 = arith.constant 0 : i32
    return %arg0, %c0_i32 : i32, i32
  }
  func.func @transform_1(%arg0: i32) -> (i32, i32) {
    %c0_i32 = arith.constant 0 : i32
    %c0_i32_0 = arith.constant 0 : i32
    return %arg0, %c0_i32 : i32, i32
  }
  func.func @transform_2(%arg0: i32) -> (i32, i32) {
    %c0_i32 = arith.constant 0 : i32
    %c0_i32_0 = arith.constant 0 : i32
    return %arg0, %c0_i32 : i32, i32
  }
  func.func @transform_3(%arg0: i32) -> (i32, i32) {
    %c0_i32 = arith.constant 0 : i32
    %c0_i32_0 = arith.constant 0 : i32
    return %arg0, %c0_i32 : i32, i32
  }
  func.func @transform_4(%arg0: i32) -> (i32, i32) {
    %c0_i32 = arith.constant 0 : i32
    %c0_i32_0 = arith.constant 0 : i32
    %c0_i32_1 = arith.constant 0 : i32
    return %c0_i32, %c0_i32_0 : i32, i32
  }
  func.func @transform_5(%arg0: i32) -> (i32, i32) {
    %c0_i32 = arith.constant 0 : i32
    %c0_i32_0 = arith.constant 0 : i32
    %c0_i32_1 = arith.constant 0 : i32
    return %c0_i32, %c0_i32_0 : i32, i32
  }
  func.func @transform_6(%arg0: i32) -> (i32, i32) {
    %c0_i32 = arith.constant 0 : i32
    %c0_i32_0 = arith.constant 0 : i32
    return %arg0, %c0_i32 : i32, i32
  }
}

module attributes {stable_mosaic.version = 11 : i64} {
  func.func @_fc_head_kernel(%arg0: i32, %arg1: memref<2x1280xf32, #tpu.memory_space<vmem>>, %arg2: memref<1280x512xf32, #tpu.memory_space<vmem>>, %arg3: memref<1x512xf32, #tpu.memory_space<vmem>>, %arg4: memref<512x256xf32, #tpu.memory_space<vmem>>, %arg5: memref<1x256xf32, #tpu.memory_space<vmem>>, %arg6: memref<256x128xf32, #tpu.memory_space<vmem>>, %arg7: memref<1x128xf32, #tpu.memory_space<vmem>>, %arg8: memref<2x128xf32, #tpu.memory_space<vmem>>, %arg9: memref<2x512xf32, #tpu.memory_space<vmem>>) attributes {dimension_semantics = [#tpu.dimension_semantics<arbitrary>], iteration_bounds = array<i64: 5>, scalar_prefetch = 0 : i64, scratch_operands = 1 : i64, tpu.core_type = #tpu.core_type<tc>, window_params = [{transform_indices = @transform_0, window_bounds = array<i64: 2, 1280>}, {transform_indices = @transform_1, window_bounds = array<i64: 1280, 512>}, {pipeline_mode = #tpu.pipeline_mode<synchronous>, transform_indices = @transform_2, window_bounds = array<i64: 1, 512>}, {pipeline_mode = #tpu.pipeline_mode<synchronous>, transform_indices = @transform_3, window_bounds = array<i64: 512, 256>}, {pipeline_mode = #tpu.pipeline_mode<synchronous>, transform_indices = @transform_4, window_bounds = array<i64: 1, 256>}, {pipeline_mode = #tpu.pipeline_mode<synchronous>, transform_indices = @transform_5, window_bounds = array<i64: 256, 128>}, {pipeline_mode = #tpu.pipeline_mode<synchronous>, transform_indices = @transform_6, window_bounds = array<i64: 1, 128>}, {pipeline_mode = #tpu.pipeline_mode<synchronous>, transform_indices = @transform_7, window_bounds = array<i64: 2, 128>}]} {
    %c0_i32 = arith.constant 0 : i32
    %0 = arith.cmpi eq, %arg0, %c0_i32 : i32
    %1 = arith.extui %0 : i1 to i32
    %c0_i32_0 = arith.constant 0 : i32
    %2 = arith.cmpi ne, %1, %c0_i32_0 : i32
    scf.if %2 {
      %cst_9 = arith.constant 0.000000e+00 : f32
      %12 = vector.broadcast %cst_9 : f32 to vector<2x512xf32>
      %c0_10 = arith.constant 0 : index
      %c0_11 = arith.constant 0 : index
      %13 = vector.load %arg9[%c0_10, %c0_11] : memref<2x512xf32, #tpu.memory_space<vmem>>, vector<2x512xf32>
      tpu.vector_store %arg9[%c0_10, %c0_11], %12 {strides = array<i32>} : memref<2x512xf32, #tpu.memory_space<vmem>>, vector<2x512xf32>,
    } else {
    }
    %c0 = arith.constant 0 : index
    %c0_1 = arith.constant 0 : index
    %3 = vector.load %arg9[%c0, %c0_1] : memref<2x512xf32, #tpu.memory_space<vmem>>, vector<2x512xf32>
    %c0_2 = arith.constant 0 : index
    %c0_3 = arith.constant 0 : index
    %4 = vector.load %arg1[%c0_2, %c0_3] : memref<2x1280xf32, #tpu.memory_space<vmem>>, vector<2x1280xf32>
    %c0_4 = arith.constant 0 : index
    %c0_5 = arith.constant 0 : index
    %5 = vector.load %arg2[%c0_4, %c0_5] : memref<1280x512xf32, #tpu.memory_space<vmem>>, vector<1280x512xf32>
    %cst = arith.constant dense<0.000000e+00> : vector<2x512xf32>
    %6 = tpu.matmul %4, %5, %cst {dimension_numbers = #tpu.dot_dimension_numbers<[1], [0], [0], [1], [0, 0, 1, 1], [], []>} : vector<2x1280xf32>, vector<1280x512xf32>, vector<2x512xf32> -> vector<2x512xf32>
    %7 = arith.addf %3, %6 : vector<2x512xf32>
    %c0_6 = arith.constant 0 : index
    %c0_7 = arith.constant 0 : index
    %8 = vector.load %arg9[%c0_6, %c0_7] : memref<2x512xf32, #tpu.memory_space<vmem>>, vector<2x512xf32>
    tpu.vector_store %arg9[%c0_6, %c0_7], %7 {strides = array<i32>} : memref<2x512xf32, #tpu.memory_space<vmem>>, vector<2x512xf32>,
    %c4_i32 = arith.constant 4 : i32
    %9 = arith.cmpi eq, %arg0, %c4_i32 : i32
    %10 = arith.extui %9 : i1 to i32
    %c0_i32_8 = arith.constant 0 : i32
    %11 = arith.cmpi ne, %10, %c0_i32_8 : i32
    scf.if %11 {
      %c0_9 = arith.constant 0 : index
      %c0_10 = arith.constant 0 : index
      %12 = vector.load %arg9[%c0_9, %c0_10] : memref<2x512xf32, #tpu.memory_space<vmem>>, vector<2x512xf32>
      %c0_11 = arith.constant 0 : index
      %c0_12 = arith.constant 0 : index
      %13 = vector.load %arg3[%c0_11, %c0_12] : memref<1x512xf32, #tpu.memory_space<vmem>>, vector<1x512xf32>
      %14 = vector.broadcast %13 : vector<1x512xf32> to vector<2x512xf32>
      %15 = arith.addf %12, %14 : vector<2x512xf32>
      %cst_13 = arith.constant 0.000000e+00 : f32
      %16 = vector.broadcast %cst_13 : f32 to vector<2x512xf32>
      %17 = arith.maximumf %15, %16 : vector<2x512xf32>
      %c0_14 = arith.constant 0 : index
      %c0_15 = arith.constant 0 : index
      %18 = vector.load %arg4[%c0_14, %c0_15] : memref<512x256xf32, #tpu.memory_space<vmem>>, vector<512x256xf32>
      %cst_16 = arith.constant dense<0.000000e+00> : vector<2x256xf32>
      %19 = tpu.matmul %17, %18, %cst_16 {dimension_numbers = #tpu.dot_dimension_numbers<[1], [0], [0], [1], [0, 0, 1, 1], [], []>} : vector<2x512xf32>, vector<512x256xf32>, vector<2x256xf32> -> vector<2x256xf32>
      %c0_17 = arith.constant 0 : index
      %c0_18 = arith.constant 0 : index
      %20 = vector.load %arg5[%c0_17, %c0_18] : memref<1x256xf32, #tpu.memory_space<vmem>>, vector<1x256xf32>
      %21 = vector.broadcast %20 : vector<1x256xf32> to vector<2x256xf32>
      %22 = arith.addf %19, %21 : vector<2x256xf32>
      %cst_19 = arith.constant 0.000000e+00 : f32
      %23 = vector.broadcast %cst_19 : f32 to vector<2x256xf32>
      %24 = arith.maximumf %22, %23 : vector<2x256xf32>
      %c0_20 = arith.constant 0 : index
      %c0_21 = arith.constant 0 : index
      %25 = vector.load %arg6[%c0_20, %c0_21] : memref<256x128xf32, #tpu.memory_space<vmem>>, vector<256x128xf32>
      %cst_22 = arith.constant dense<0.000000e+00> : vector<2x128xf32>
      %26 = tpu.matmul %24, %25, %cst_22 {dimension_numbers = #tpu.dot_dimension_numbers<[1], [0], [0], [1], [0, 0, 1, 1], [], []>} : vector<2x256xf32>, vector<256x128xf32>, vector<2x128xf32> -> vector<2x128xf32>
      %c0_23 = arith.constant 0 : index
      %c0_24 = arith.constant 0 : index
      %27 = vector.load %arg7[%c0_23, %c0_24] : memref<1x128xf32, #tpu.memory_space<vmem>>, vector<1x128xf32>
      %28 = vector.broadcast %27 : vector<1x128xf32> to vector<2x128xf32>
      %29 = arith.addf %26, %28 : vector<2x128xf32>
      %c0_25 = arith.constant 0 : index
      %c0_26 = arith.constant 0 : index
      %30 = vector.load %arg8[%c0_25, %c0_26] : memref<2x128xf32, #tpu.memory_space<vmem>>, vector<2x128xf32>
      tpu.vector_store %arg8[%c0_25, %c0_26], %29 {strides = array<i32>} : memref<2x128xf32, #tpu.memory_space<vmem>>, vector<2x128xf32>,
    } else {
    }
    return
  }
  func.func @transform_0(%arg0: i32) -> (i32, i32) {
    %c0_i32 = arith.constant 0 : i32
    %c0_i32_0 = arith.constant 0 : i32
    return %c0_i32, %arg0 : i32, i32
  }
  func.func @transform_1(%arg0: i32) -> (i32, i32) {
    %c0_i32 = arith.constant 0 : i32
    %c0_i32_0 = arith.constant 0 : i32
    return %arg0, %c0_i32 : i32, i32
  }
  func.func @transform_2(%arg0: i32) -> (i32, i32) {
    %c0_i32 = arith.constant 0 : i32
    %c0_i32_0 = arith.constant 0 : i32
    %c0_i32_1 = arith.constant 0 : i32
    return %c0_i32, %c0_i32_0 : i32, i32
  }
  func.func @transform_3(%arg0: i32) -> (i32, i32) {
    %c0_i32 = arith.constant 0 : i32
    %c0_i32_0 = arith.constant 0 : i32
    %c0_i32_1 = arith.constant 0 : i32
    return %c0_i32, %c0_i32_0 : i32, i32
  }
  func.func @transform_4(%arg0: i32) -> (i32, i32) {
    %c0_i32 = arith.constant 0 : i32
    %c0_i32_0 = arith.constant 0 : i32
    %c0_i32_1 = arith.constant 0 : i32
    return %c0_i32, %c0_i32_0 : i32, i32
  }
  func.func @transform_5(%arg0: i32) -> (i32, i32) {
    %c0_i32 = arith.constant 0 : i32
    %c0_i32_0 = arith.constant 0 : i32
    %c0_i32_1 = arith.constant 0 : i32
    return %c0_i32, %c0_i32_0 : i32, i32
  }
  func.func @transform_6(%arg0: i32) -> (i32, i32) {
    %c0_i32 = arith.constant 0 : i32
    %c0_i32_0 = arith.constant 0 : i32
    %c0_i32_1 = arith.constant 0 : i32
    return %c0_i32, %c0_i32_0 : i32, i32
  }
  func.func @transform_7(%arg0: i32) -> (i32, i32) {
    %c0_i32 = arith.constant 0 : i32
    %c0_i32_0 = arith.constant 0 : i32
    %c0_i32_1 = arith.constant 0 : i32
    return %c0_i32, %c0_i32_0 : i32, i32
  }
}

</mosaic_0001>

<bundles_post_ra>
// kernel: convnet_forward.3
= control target key start
LH: loop header
LB: loop body
LE: loop exit
PB: predicated region body
PF: predicated region fallthrough
CT: control target
= control target key end

     0   :  { %s1757_s21 = smov 0   ;;  %s2125_s0 = inlined_call_operand.vmem [shape: f32[512,128], index: 0, kind: input, shape index: {}]   ;;  %s2126_s1 = inlined_call_operand.vmem [shape: f32[512,128], index: 1, kind: input, shape index: {}]   ;;  %s2127_s2 = inlined_call_operand.vmem [shape: f32[512,128], index: 2, kind: input, shape index: {}]   ;;  %s2128_s3 = inlined_call_operand.vmem [shape: f32[512,128], index: 3, kind: input, shape index: {}]   ;;  %s2129_s4 = inlined_call_operand.vmem [shape: f32[128,128], index: 4, kind: input, shape index: {}]   ;;  %s2130_s5 = inlined_call_operand.vmem [shape: f32[1,128], index: 5, kind: input, shape index: {}]   ;;  %s2131_s6 = inlined_call_operand.vmem [shape: f32[512,128], index: 6, kind: output, shape index: {}]  }
   0x1 LB: > { %s1208_s22 = sadd.s32 4294967295, %s1720_s21   ;;  %p1212_p0 = scmp.ge.s32.totalorder %s1720_s21, 1  ;;  %s1720_s21 = sphi %s1757_s21, %s16_s21  }
   0x2   : > { %p246_p1 = scmp.lt.s32.totalorder %s1720_s21, 5 }
   0x4   : > { %p247_p2 = pnand %p1212_p0, %p246_p1 }
   0x5   : > { %v321_v0 = vld [vmem:[%s2129_s4] sm:$0xff] (!%p247_p2)  ;;  %v322_v1 = vld [vmem:[%s2129_s4 + $0x8] sm:$0xff] (!%p247_p2)  ;;  %v323_v2 = vld [vmem:[%s2129_s4 + $0x10] sm:$0xff] (!%p247_p2)  ;;  %s1213_s29 = sshll.u32 (!%p247_p2), %s1208_s22, 4 }
   0x6   : > { %250 = sbr.rel (%p247_p2) target bundleno = 322 (0x142), region = 44  ;;  %v1774_v3 = vpack.c.bf16 (!%p247_p2), %v322_v1, %v321_v0  ;;  %v324_v4 = vld [vmem:[%s2129_s4 + $0x18] sm:$0xff] (!%p247_p2)  ;;  %p292_p3 = scmp.lt.s32.totalorder (!%p247_p2), %s1213_s29, 63  ;;  %v325_v6 = vld [vmem:[%s2129_s4 + $0x20] sm:$0xff] (!%p247_p2)  ;;  %v326_v7 = vld [vmem:[%s2129_s4 + $0x28] sm:$0xff] (!%p247_p2) }
   0x7   : > { %v1779_v5 = vpack.c.bf16 (!%p247_p2), %v324_v4, %v323_v2  ;;  %v1793_v8 = vpack.c.bf16 (!%p247_p2), %v326_v7, %v325_v6  ;;  %v327_v9 = vld [vmem:[%s2129_s4 + $0x30] sm:$0xff] (!%p247_p2)  ;;  %v328_v10 = vld [vmem:[%s2129_s4 + $0x38] sm:$0xff] (!%p247_p2)  ;;  %v329_v14 = vld [vmem:[%s2129_s4 + $0x40] sm:$0xff] (!%p247_p2) }
   0x8   : > { %1579 = vmatprep.subr.bf16.mxu0 (!%p247_p2), %v1774_v3  ;;  %1611 = vmatprep.subr.bf16.mxu1 (!%p247_p2), %v1774_v3  ;;  %v1821_v13 = vpack.c.bf16 (!%p247_p2), %v328_v10, %v327_v9  ;;  %v330_v15 = vld [vmem:[%s2129_s4 + $0x48] sm:$0xff] (!%p247_p2)  ;;  %v331_v17 = vld [vmem:[%s2129_s4 + $0x50] sm:$0xff] (!%p247_p2)  ;;  %v332_v18 = vld [vmem:[%s2129_s4 + $0x58] sm:$0xff] (!%p247_p2) }
   0x9   : > { %1581 = vmatpush3.bf16.msra.mxu0 (!%p247_p2), %v1774_v3  ;;  %1613 = vmatpush3.bf16.msra.mxu1 (!%p247_p2), %v1774_v3  ;;  %v1833_v16 = vpack.c.bf16 (!%p247_p2), %v330_v15, %v329_v14  ;;  %v1845_v19 = vpack.c.bf16 (!%p247_p2), %v332_v18, %v331_v17  ;;  %v333_v20 = vld [vmem:[%s2129_s4 + $0x60] sm:$0xff] (!%p247_p2)  ;;  %v334_v21 = vld [vmem:[%s2129_s4 + $0x68] sm:$0xff] (!%p247_p2)  ;;  %v335_v23 = vld [vmem:[%s2129_s4 + $0x70] sm:$0xff] (!%p247_p2) }
   0xa   : > { %1583 = vmatprep.subr.bf16.mxu0 (!%p247_p2), %v1779_v5  ;;  %1615 = vmatprep.subr.bf16.mxu1 (!%p247_p2), %v1779_v5  ;;  %v1857_v22 = vpack.c.bf16 (!%p247_p2), %v334_v21, %v333_v20  ;;  %v336_v24 = vld [vmem:[%s2129_s4 + $0x78] sm:$0xff] (!%p247_p2) }
   0xb   : > { %v1869_v25 = vpack.c.bf16 (!%p247_p2), %v336_v24, %v335_v23  ;;  %v1986_v24 = vld [vmem:[%s2130_s5] ss:$0 sm:$0xff] (!%p247_p2) }
   0xd   : > { %s2133_s29 = smov (!%p292_p3, %s1213_s29), 63  ;;  %1585 = vmatpush3.bf16.msra.mxu0 %v1779_v5  ;;  %1617 = vmatpush3.bf16.msra.mxu1 %v1779_v5 }
   0xe   : > { %s1795_s12 = sshll.u32 %s2133_s29, 3  ;;  %1587 = vmatprep.subr.bf16.mxu0 %v1793_v8  ;;  %1619 = vmatprep.subr.bf16.mxu1 %v1793_v8 }
   0xf   : > { %s1807_s19 = scalar_lea.vmem %s2125_s0, %s1795_s12  ;;  %s1813_s23 = scalar_lea.vmem %s2126_s1, %s1795_s12 }
  0x10   : > { %v338_v11 = vld [vmem:[%s1807_s19] sm:$0xff]  ;;  %v339_v26 = vld [vmem:[%s1807_s19 + $0x8] sm:$0xff]  ;;  %v340_v28 = vld [vmem:[%s1807_s19 + $0x10] sm:$0xff]  ;;  %s1935_s20 = scalar_lea.vmem %s2127_s2, %s1795_s12  ;;  %s1941_s25 = scalar_lea.vmem %s2128_s3, %s1795_s12 }
  0x11   : > { %v521_v12 = vld [vmem:[%s1813_s23] sm:$0xff]  ;;  %1386 = vmatprep.mubr.f32.mxu0 %v338_v11  ;;  %1589 = vmatpush3.bf16.msra.mxu0 %v1793_v8  ;;  %v522_v27 = vld [vmem:[%s1813_s23 + $0x8] sm:$0xff]  ;;  %v523_v29 = vld [vmem:[%s1813_s23 + $0x10] sm:$0xff]  ;;  %s2063_s28 = scalar_lea.vmem %s2131_s6, %s1795_s12 }
  0x12   : > { %1442 = vmatprep.mubr.f32.mxu1 %v521_v12  ;;  %1621 = vmatpush3.bf16.msra.mxu1 %v1793_v8  ;;  %v341_v30 = vld [vmem:[%s1807_s19 + $0x18] sm:$0xff]  ;;  %v342_v32 = vld [vmem:[%s1807_s19 + $0x20] sm:$0xff]  ;;  %v343_v34 = vld [vmem:[%s1807_s19 + $0x28] sm:$0xff] }
  0x13   : > { %1591 = vmatprep.subr.bf16.mxu0 %v1821_v13  ;;  %1623 = vmatprep.subr.bf16.mxu1 %v1821_v13  ;;  %v524_v31 = vld [vmem:[%s1813_s23 + $0x18] sm:$0xff]  ;;  %v525_v33 = vld [vmem:[%s1813_s23 + $0x20] sm:$0xff]  ;;  %v526_v35 = vld [vmem:[%s1813_s23 + $0x28] sm:$0xff] }
  0x14   : > { %v344_v36 = vld [vmem:[%s1807_s19 + $0x30] sm:$0xff]  ;;  %v345_v38 = vld [vmem:[%s1807_s19 + $0x38] sm:$0xff]  ;;  %v346_v40 = vld [vmem:[%s1807_s19 + $0x40] sm:$0xff] }
  0x15   : > { %1593 = vmatpush3.bf16.msra.mxu0 %v1821_v13  ;;  %v527_v37 = vld [vmem:[%s1813_s23 + $0x30] sm:$0xff]  ;;  %v528_v39 = vld [vmem:[%s1813_s23 + $0x38] sm:$0xff]  ;;  %v529_v41 = vld [vmem:[%s1813_s23 + $0x40] sm:$0xff] }
  0x16   : > { %1625 = vmatpush3.bf16.msra.mxu1 %v1821_v13  ;;  %1595 = vmatprep.subr.bf16.mxu0 %v1833_v16  ;;  %v347_v42 = vld [vmem:[%s1807_s19 + $0x48] sm:$0xff]  ;;  %v348_v44 = vld [vmem:[%s1807_s19 + $0x50] sm:$0xff]  ;;  %v349_v46 = vld [vmem:[%s1807_s19 + $0x58] sm:$0xff] }
  0x17   : > { %1627 = vmatprep.subr.bf16.mxu1 %v1833_v16  ;;  %v530_v43 = vld [vmem:[%s1813_s23 + $0x48] sm:$0xff]  ;;  %v531_v45 = vld [vmem:[%s1813_s23 + $0x50] sm:$0xff]  ;;  %v532_v47 = vld [vmem:[%s1813_s23 + $0x58] sm:$0xff] }
  0x18   : > { %v350_v48 = vld [vmem:[%s1807_s19 + $0x60] sm:$0xff]  ;;  %v351_v50 = vld [vmem:[%s1807_s19 + $0x68] sm:$0xff]  ;;  %v352_v52 = vld [vmem:[%s1807_s19 + $0x70] sm:$0xff] }
  0x19   : > { %1597 = vmatpush3.bf16.msra.mxu0 %v1833_v16  ;;  %v533_v49 = vld [vmem:[%s1813_s23 + $0x60] sm:$0xff]  ;;  %v534_v51 = vld [vmem:[%s1813_s23 + $0x68] sm:$0xff]  ;;  %v535_v53 = vld [vmem:[%s1813_s23 + $0x70] sm:$0xff] }
  0x1a   : > { %1629 = vmatpush3.bf16.msra.mxu1 %v1833_v16  ;;  %1599 = vmatprep.subr.bf16.mxu0 %v1845_v19  ;;  %v353_v54 = vld [vmem:[%s1807_s19 + $0x78] sm:$0xff]  ;;  %v714_v56 = vld [vmem:[%s1935_s20] sm:$0xff]  ;;  %v715_v58 = vld [vmem:[%s1935_s20 + $0x8] sm:$0xff] }
  0x1b   : > { %1631 = vmatprep.subr.bf16.mxu1 %v1845_v19  ;;  %v536_v55 = vld [vmem:[%s1813_s23 + $0x78] sm:$0xff]  ;;  %v907_v57 = vld [vmem:[%s1941_s25] sm:$0xff]  ;;  %v908_v59 = vld [vmem:[%s1941_s25 + $0x8] sm:$0xff] }
  0x1c   : > { %v716_v60 = vld [vmem:[%s1935_s20 + $0x10] sm:$0xff]  ;;  %v717_v62 = vld [vmem:[%s1935_s20 + $0x18] sm:$0xff]  ;;  %v718_v0 = vld [vmem:[%s1935_s20 + $0x20] sm:$0xff] }
  0x1d   : > { %1601 = vmatpush3.bf16.msra.mxu0 %v1845_v19  ;;  %v909_v61 = vld [vmem:[%s1941_s25 + $0x10] sm:$0xff]  ;;  %v910_v63 = vld [vmem:[%s1941_s25 + $0x18] sm:$0xff]  ;;  %v911_v1 = vld [vmem:[%s1941_s25 + $0x20] sm:$0xff] }
  0x1e   : > { %1633 = vmatpush3.bf16.msra.mxu1 %v1845_v19  ;;  %1603 = vmatprep.subr.bf16.mxu0 %v1857_v22  ;;  %v719_v2 = vld [vmem:[%s1935_s20 + $0x28] sm:$0xff]  ;;  %v720_v4 = vld [vmem:[%s1935_s20 + $0x30] sm:$0xff]  ;;  %v721_v6 = vld [vmem:[%s1935_s20 + $0x38] sm:$0xff] }
  0x1f   : > { %1635 = vmatprep.subr.bf16.mxu1 %v1857_v22  ;;  %v914_v7 = vld [vmem:[%s1941_s25 + $0x38] sm:$0xff]  ;;  %v915_v9 = vld [vmem:[%s1941_s25 + $0x40] sm:$0xff]  ;;  %v723_v10 = vld [vmem:[%s1935_s20 + $0x48] sm:$0xff] }
  0x20   : > { %v916_v11 = vld [vmem:[%s1941_s25 + $0x48] sm:$0xff]  ;;  %v724_v12 = vld [vmem:[%s1935_s20 + $0x50] sm:$0xff]  ;;  %v725_v14 = vld [vmem:[%s1935_s20 + $0x58] sm:$0xff] }
  0x21   : > { %1605 = vmatpush3.bf16.msra.mxu0 %v1857_v22  ;;  %v918_v15 = vld [vmem:[%s1941_s25 + $0x58] sm:$0xff]  ;;  %v919_v17 = vld [vmem:[%s1941_s25 + $0x60] sm:$0xff]  ;;  %v727_v18 = vld [vmem:[%s1935_s20 + $0x68] sm:$0xff] }
  0x22   : > { %1637 = vmatpush3.bf16.msra.mxu1 %v1857_v22  ;;  %1607 = vmatprep.subr.bf16.mxu0 %v1869_v25  ;;  %v728_v20 = vld [vmem:[%s1935_s20 + $0x70] sm:$0xff]  ;;  %v922_v23 = vld [vmem:[%s1941_s25 + $0x78] sm:$0xff] }
  0x23   : > { %1639 = vmatprep.subr.bf16.mxu1 %v1869_v25  ;;  %v921_v21 = vld [vmem:[%s1941_s25 + $0x70] sm:$0xff] }
  0x25   : > { %1609 = vmatpush3.bf16.msra.mxu0 %v1869_v25 }
  0x26   : > { %1641 = vmatpush3.bf16.msra.mxu1 %v1869_v25  ;;  %1643 = vmatprep.subr.bf16.mxu0 %v1774_v3 }
  0x27   : > { %1675 = vmatprep.subr.bf16.mxu1 %v1774_v3 }
  0x28   : > { %1387 = vmatmul.mubr.f32.vlgmr.msra.gmra.mrb[0].mxu0 %v339_v26 }
  0x29   : > { %1443 = vmatmul.mubr.f32.vlgmr.msra.gmra.mrb[0].mxu1 %v522_v27  ;;  %1645 = vmatpush3.bf16.msra.mxu0 %v1774_v3 }
  0x2a   : > { %1389 = vmatprep.mubr.f32.mxu0 %v340_v28  ;;  %1445 = vmatprep.mubr.f32.mxu1 %v523_v29 }
  0x2b   : > { %1677 = vmatpush3.bf16.msra.mxu1 %v1774_v3  ;;  %1647 = vmatprep.subr.bf16.mxu0 %v1779_v5  ;;  %v912_v3 = vld [vmem:[%s1941_s25 + $0x28] sm:$0xff] }
  0x2c   : > { %1679 = vmatprep.subr.bf16.mxu1 %v1779_v5  ;;  %1390 = vmatmul.mubr.f32.gmra.mrb[2].mxu0 %v341_v30 }
  0x2d   : > { %1446 = vmatmul.mubr.f32.gmra.mrb[2].mxu1 %v524_v31  ;;  %1649 = vmatpush3.bf16.msra.mxu0 %v1779_v5 }
  0x2e   : > { %1392 = vmatprep.mubr.f32.mxu0 %v342_v32  ;;  %1448 = vmatprep.mubr.f32.mxu1 %v525_v33 }
  0x2f   : > { %1681 = vmatpush3.bf16.msra.mxu1 %v1779_v5  ;;  %1651 = vmatprep.subr.bf16.mxu0 %v1793_v8  ;;  %v913_v5 = vld [vmem:[%s1941_s25 + $0x30] sm:$0xff] }
  0x30   : > { %1683 = vmatprep.subr.bf16.mxu1 %v1793_v8  ;;  %1393 = vmatmul.mubr.f32.gmra.mrb[4].mxu0 %v343_v34 }
  0x31   : > { %1449 = vmatmul.mubr.f32.gmra.mrb[4].mxu1 %v526_v35  ;;  %1653 = vmatpush3.bf16.msra.mxu0 %v1793_v8 }
  0x32   : > { %1395 = vmatprep.mubr.f32.mxu0 %v344_v36  ;;  %1451 = vmatprep.mubr.f32.mxu1 %v527_v37 }
  0x33   : > { %1685 = vmatpush3.bf16.msra.mxu1 %v1793_v8  ;;  %1655 = vmatprep.subr.bf16.mxu0 %v1821_v13  ;;  %v722_v8 = vld [vmem:[%s1935_s20 + $0x40] sm:$0xff] }
  0x34   : > { %1687 = vmatprep.subr.bf16.mxu1 %v1821_v13  ;;  %1396 = vmatmul.mubr.f32.gmra.mrb[6].mxu0 %v345_v38 }
  0x35   : > { %1452 = vmatmul.mubr.f32.gmra.mrb[6].mxu1 %v528_v39  ;;  %1657 = vmatpush3.bf16.msra.mxu0 %v1821_v13 }
  0x36   : > { %1398 = vmatprep.mubr.f32.mxu0 %v346_v40  ;;  %1454 = vmatprep.mubr.f32.mxu1 %v529_v41 }
  0x37   : > { %1689 = vmatpush3.bf16.msra.mxu1 %v1821_v13  ;;  %1659 = vmatprep.subr.bf16.mxu0 %v1833_v16  ;;  %v917_v13 = vld [vmem:[%s1941_s25 + $0x50] sm:$0xff] }
  0x38   : > { %1691 = vmatprep.subr.bf16.mxu1 %v1833_v16  ;;  %1399 = vmatmul.mubr.f32.gmra.mrb[8].mxu0 %v347_v42 }
  0x39   : > { %1455 = vmatmul.mubr.f32.gmra.mrb[8].mxu1 %v530_v43  ;;  %1661 = vmatpush3.bf16.msra.mxu0 %v1833_v16 }
  0x3a   : > { %1401 = vmatprep.mubr.f32.mxu0 %v348_v44  ;;  %1457 = vmatprep.mubr.f32.mxu1 %v531_v45 }
  0x3b   : > { %1693 = vmatpush3.bf16.msra.mxu1 %v1833_v16  ;;  %1663 = vmatprep.subr.bf16.mxu0 %v1845_v19  ;;  %v726_v16 = vld [vmem:[%s1935_s20 + $0x60] sm:$0xff] }
  0x3c   : > { %1695 = vmatprep.subr.bf16.mxu1 %v1845_v19  ;;  %1402 = vmatmul.mubr.f32.gmra.mrb[10].mxu0 %v349_v46 }
  0x3d   : > { %1458 = vmatmul.mubr.f32.gmra.mrb[10].mxu1 %v532_v47  ;;  %1665 = vmatpush3.bf16.msra.mxu0 %v1845_v19 }
  0x3e   : > { %1404 = vmatprep.mubr.f32.mxu0 %v350_v48  ;;  %1460 = vmatprep.mubr.f32.mxu1 %v533_v49 }
  0x3f   : > { %1697 = vmatpush3.bf16.msra.mxu1 %v1845_v19  ;;  %1667 = vmatprep.subr.bf16.mxu0 %v1857_v22  ;;  %v920_v19 = vld [vmem:[%s1941_s25 + $0x68] sm:$0xff] }
  0x40   : > { %1699 = vmatprep.subr.bf16.mxu1 %v1857_v22  ;;  %1405 = vmatmul.mubr.f32.gmra.mrb[12].mxu0 %v351_v50 }
  0x41   : > { %1461 = vmatmul.mubr.f32.gmra.mrb[12].mxu1 %v534_v51  ;;  %1669 = vmatpush3.bf16.msra.mxu0 %v1857_v22 }
  0x42   : > { %1407 = vmatprep.mubr.f32.mxu0 %v352_v52  ;;  %1463 = vmatprep.mubr.f32.mxu1 %v535_v53 }
  0x43   : > { %1701 = vmatpush3.bf16.msra.mxu1 %v1857_v22  ;;  %1671 = vmatprep.subr.bf16.mxu0 %v1869_v25  ;;  %v729_v22 = vld [vmem:[%s1935_s20 + $0x78] sm:$0xff] }
  0x44   : > { %1703 = vmatprep.subr.bf16.mxu1 %v1869_v25  ;;  %1408 = vmatmul.mubr.f32.gmra.mrb[14].mxu0 %v353_v54 }
  0x45   : > { %1464 = vmatmul.mubr.f32.gmra.mrb[14].mxu1 %v536_v55  ;;  %1673 = vmatpush3.bf16.msra.mxu0 %v1869_v25 }
  0x46   : > { %1498 = vmatprep.mubr.f32.mxu0 %v714_v56  ;;  %1554 = vmatprep.mubr.f32.mxu1 %v907_v57 }
  0x47   : > { %1705 = vmatpush3.bf16.msra.mxu1 %v1869_v25 }
  0x48   : > { %1499 = vmatmul.mubr.f32.vlgmr.msra.gmra.mrb[16].mxu0 %v715_v58 }
  0x49   : > { %1501 = vmatprep.mubr.f32.mxu0 %v716_v60 }
  0x4a   : > { %1555 = vmatmul.mubr.f32.vlgmr.msra.gmra.mrb[16].mxu1 %v908_v59 }
  0x4b   : > { %1557 = vmatprep.mubr.f32.mxu1 %v909_v61 }
  0x4c   : > { %1502 = vmatmul.mubr.f32.gmra.mrb[18].mxu0 %v717_v62 }
  0x4d   : > { %1504 = vmatprep.mubr.f32.mxu0 %v718_v0 }
  0x4e   : > { %1558 = vmatmul.mubr.f32.gmra.mrb[18].mxu1 %v910_v63 }
  0x4f   : > { %1560 = vmatprep.mubr.f32.mxu1 %v911_v1 }
  0x50   : > { %1505 = vmatmul.mubr.f32.gmra.mrb[20].mxu0 %v719_v2 }
  0x51   : > { %1507 = vmatprep.mubr.f32.mxu0 %v720_v4 }
  0x52   : > { %1561 = vmatmul.mubr.f32.gmra.mrb[20].mxu1 %v912_v3 }
  0x53   : > { %1563 = vmatprep.mubr.f32.mxu1 %v913_v5 }
  0x54   : > { %1508 = vmatmul.mubr.f32.gmra.mrb[22].mxu0 %v721_v6 }
  0x55   : > { %1510 = vmatprep.mubr.f32.mxu0 %v722_v8 }
  0x56   : > { %1564 = vmatmul.mubr.f32.gmra.mrb[22].mxu1 %v914_v7 }
  0x57   : > { %1566 = vmatprep.mubr.f32.mxu1 %v915_v9 }
  0x58   : > { %1511 = vmatmul.mubr.f32.gmra.mrb[24].mxu0 %v723_v10 }
  0x59   : > { %1513 = vmatprep.mubr.f32.mxu0 %v724_v12 }
  0x5a   : > { %1567 = vmatmul.mubr.f32.gmra.mrb[24].mxu1 %v916_v11 }
  0x5b   : > { %1569 = vmatprep.mubr.f32.mxu1 %v917_v13 }
  0x5c   : > { %1514 = vmatmul.mubr.f32.gmra.mrb[26].mxu0 %v725_v14 }
  0x5d   : > { %1516 = vmatprep.mubr.f32.mxu0 %v726_v16 }
  0x5e   : > { %1570 = vmatmul.mubr.f32.gmra.mrb[26].mxu1 %v918_v15 }
  0x5f   : > { %1572 = vmatprep.mubr.f32.mxu1 %v919_v17 }
  0x60   : > { %1517 = vmatmul.mubr.f32.gmra.mrb[28].mxu0 %v727_v18 }
  0x61   : > { %1519 = vmatprep.mubr.f32.mxu0 %v728_v20 }
  0x62   : > { %1573 = vmatmul.mubr.f32.gmra.mrb[28].mxu1 %v920_v19 }
  0x63   : > { %1575 = vmatprep.mubr.f32.mxu1 %v921_v21 }
  0x64   : > { %1520 = vmatmul.mubr.f32.gmra.mrb[30].mxu0 %v729_v22 }
  0x66   : > { %1576 = vmatmul.mubr.f32.gmra.mrb[30].mxu1 %v922_v23 }
  0xfb   : > { %v1388_v25 = vpop.f32.mrb[0].mxu0 }
  0xfc   : > { %v1444_v26 = vpop.f32.mrb[0].mxu1  ;;  %v432_v27 = vadd.f32 %v1388_v25, %v1986_v24  ;;  %v426_v29 = vpop.f32.mrb[1].mxu0 }
  0xfd   : > { %v609_v28 = vadd.f32 %v1444_v26, %v1986_v24  ;;  %v603_v30 = vpop.f32.mrb[1].mxu1  ;;  %v427_v31 = vadd.f32 %v1986_v24, %v426_v29 }
  0xfe   : > { %v604_v32 = vadd.f32 %v1986_v24, %v603_v30  ;;  %v506_v33 = vmax.f32 %v432_v27, 0.0 }
  0xff   : > { %v683_v34 = vmax.f32 %v609_v28, 0.0  ;;  %v505_v35 = vmax.f32 %v427_v31, 0.0  ;;  %v1391_v37 = vpop.f32.mrb[2].mxu0 }
 0x100   : > { %v682_v36 = vmax.f32 %v604_v32, 0.0  ;;  %v1447_v38 = vpop.f32.mrb[2].mxu1  ;;  %v442_v40 = vadd.f32 %v1391_v37, %v1986_v24  ;;  %v436_v42 = vpop.f32.mrb[3].mxu0 }
 0x101   : > { %v1992_v39 = vmax.f32 %v506_v33, %v683_v34  ;;  %v619_v41 = vadd.f32 %v1447_v38, %v1986_v24  ;;  %v613_v43 = vpop.f32.mrb[3].mxu1  ;;  %v437_v45 = vadd.f32 %v1986_v24, %v436_v42 }
 0x102   : > { %v1996_v44 = vmax.f32 %v505_v35, %v682_v36  ;;  %v614_v46 = vadd.f32 %v1986_v24, %v613_v43  ;;  %v508_v47 = vmax.f32 %v442_v40, 0.0 }
 0x103   : > { %v685_v48 = vmax.f32 %v619_v41, 0.0  ;;  %v507_v49 = vmax.f32 %v437_v45, 0.0  ;;  %v1394_v51 = vpop.f32.mrb[4].mxu0 }
 0x104   : > { %v684_v50 = vmax.f32 %v614_v46, 0.0  ;;  %v1450_v52 = vpop.f32.mrb[4].mxu1  ;;  %v452_v54 = vadd.f32 %v1394_v51, %v1986_v24  ;;  %v446_v56 = vpop.f32.mrb[5].mxu0 }
 0x105   : > { %v2000_v53 = vmax.f32 %v508_v47, %v685_v48  ;;  %v629_v55 = vadd.f32 %v1450_v52, %v1986_v24  ;;  %v623_v57 = vpop.f32.mrb[5].mxu1  ;;  %v447_v59 = vadd.f32 %v1986_v24, %v446_v56 }
 0x106   : > { %v2004_v58 = vmax.f32 %v507_v49, %v684_v50  ;;  %v624_v60 = vadd.f32 %v1986_v24, %v623_v57  ;;  %v510_v61 = vmax.f32 %v452_v54, 0.0 }
 0x107   : > { %v687_v62 = vmax.f32 %v629_v55, 0.0  ;;  %v509_v63 = vmax.f32 %v447_v59, 0.0  ;;  %v1397_v1 = vpop.f32.mrb[6].mxu0 }
 0x108   : > { %v686_v0 = vmax.f32 %v624_v60, 0.0  ;;  %v1453_v2 = vpop.f32.mrb[6].mxu1  ;;  %v462_v4 = vadd.f32 %v1397_v1, %v1986_v24  ;;  %v456_v6 = vpop.f32.mrb[7].mxu0 }
 0x109   : > { %v2008_v3 = vmax.f32 %v510_v61, %v687_v62  ;;  %v639_v5 = vadd.f32 %v1453_v2, %v1986_v24  ;;  %v633_v7 = vpop.f32.mrb[7].mxu1  ;;  %v457_v9 = vadd.f32 %v1986_v24, %v456_v6 }
 0x10a   : > { %v2012_v8 = vmax.f32 %v509_v63, %v686_v0  ;;  %v634_v10 = vadd.f32 %v1986_v24, %v633_v7  ;;  %v512_v11 = vmax.f32 %v462_v4, 0.0 }
 0x10b   : > { %v689_v12 = vmax.f32 %v639_v5, 0.0  ;;  %v511_v13 = vmax.f32 %v457_v9, 0.0  ;;  %v1400_v15 = vpop.f32.mrb[8].mxu0 }
 0x10c   : > { %v688_v14 = vmax.f32 %v634_v10, 0.0  ;;  %v1456_v16 = vpop.f32.mrb[8].mxu1  ;;  %v472_v18 = vadd.f32 %v1400_v15, %v1986_v24  ;;  %v466_v20 = vpop.f32.mrb[9].mxu0 }
 0x10d   : > { %v2016_v17 = vmax.f32 %v512_v11, %v689_v12  ;;  %v649_v19 = vadd.f32 %v1456_v16, %v1986_v24  ;;  %v643_v21 = vpop.f32.mrb[9].mxu1  ;;  %v467_v23 = vadd.f32 %v1986_v24, %v466_v20 }
 0x10e   : > { %v2020_v22 = vmax.f32 %v511_v13, %v688_v14  ;;  %v644_v25 = vadd.f32 %v1986_v24, %v643_v21  ;;  %v514_v26 = vmax.f32 %v472_v18, 0.0 }
 0x10f   : > { %v691_v27 = vmax.f32 %v649_v19, 0.0  ;;  %v513_v28 = vmax.f32 %v467_v23, 0.0  ;;  %v1403_v30 = vpop.f32.mrb[10].mxu0 }
 0x110   : > { %v690_v29 = vmax.f32 %v644_v25, 0.0  ;;  %v1459_v31 = vpop.f32.mrb[10].mxu1  ;;  %v482_v33 = vadd.f32 %v1403_v30, %v1986_v24  ;;  %v476_v35 = vpop.f32.mrb[11].mxu0 }
 0x111   : > { %v2024_v32 = vmax.f32 %v514_v26, %v691_v27  ;;  %v659_v34 = vadd.f32 %v1459_v31, %v1986_v24  ;;  %v653_v36 = vpop.f32.mrb[11].mxu1  ;;  %v477_v38 = vadd.f32 %v1986_v24, %v476_v35 }
 0x112   : > { %v2028_v37 = vmax.f32 %v513_v28, %v690_v29  ;;  %v654_v40 = vadd.f32 %v1986_v24, %v653_v36  ;;  %v516_v41 = vmax.f32 %v482_v33, 0.0 }
 0x113   : > { %v693_v42 = vmax.f32 %v659_v34, 0.0  ;;  %v515_v43 = vmax.f32 %v477_v38, 0.0  ;;  %v1406_v46 = vpop.f32.mrb[12].mxu0 }
 0x114   : > { %v692_v45 = vmax.f32 %v654_v40, 0.0  ;;  %v1462_v47 = vpop.f32.mrb[12].mxu1  ;;  %v492_v49 = vadd.f32 %v1406_v46, %v1986_v24  ;;  %v486_v51 = vpop.f32.mrb[13].mxu0 }
 0x115   : > { %v2032_v48 = vmax.f32 %v516_v41, %v693_v42  ;;  %v669_v50 = vadd.f32 %v1462_v47, %v1986_v24  ;;  %v663_v52 = vpop.f32.mrb[13].mxu1  ;;  %v487_v55 = vadd.f32 %v1986_v24, %v486_v51 }
 0x116   : > { %v2036_v54 = vmax.f32 %v515_v43, %v692_v45  ;;  %v664_v56 = vadd.f32 %v1986_v24, %v663_v52  ;;  %v518_v57 = vmax.f32 %v492_v49, 0.0 }
 0x117   : > { %v695_v59 = vmax.f32 %v669_v50, 0.0  ;;  %v517_v60 = vmax.f32 %v487_v55, 0.0  ;;  %v1409_v62 = vpop.f32.mrb[14].mxu0 }
 0x118   : > { %v694_v61 = vmax.f32 %v664_v56, 0.0  ;;  %v1465_v63 = vpop.f32.mrb[14].mxu1  ;;  %v502_v1 = vadd.f32 %v1409_v62, %v1986_v24  ;;  %v496_v4 = vpop.f32.mrb[15].mxu0 }
 0x119   : > { %v2040_v0 = vmax.f32 %v518_v57, %v695_v59  ;;  %v679_v2 = vadd.f32 %v1465_v63, %v1986_v24  ;;  %v673_v5 = vpop.f32.mrb[15].mxu1  ;;  %v497_v7 = vadd.f32 %v1986_v24, %v496_v4 }
 0x11a   : > { %v2044_v6 = vmax.f32 %v517_v60, %v694_v61  ;;  %v674_v9 = vadd.f32 %v1986_v24, %v673_v5  ;;  %v520_v10 = vmax.f32 %v502_v1, 0.0 }
 0x11b   : > { %v697_v11 = vmax.f32 %v679_v2, 0.0  ;;  %v519_v12 = vmax.f32 %v497_v7, 0.0  ;;  %v1500_v14 = vpop.f32.mrb[16].mxu0 }
 0x11c   : > { %v696_v13 = vmax.f32 %v674_v9, 0.0  ;;  %v802_v16 = vadd.f32 %v1500_v14, %v1986_v24  ;;  %v796_v18 = vpop.f32.mrb[17].mxu0 }
 0x11d   : > { %v2048_v15 = vmax.f32 %v520_v10, %v697_v11  ;;  %v1556_v19 = vpop.f32.mrb[16].mxu1  ;;  %v797_v21 = vadd.f32 %v1986_v24, %v796_v18 }
 0x11e   : > { %v2051_v20 = vmax.f32 %v519_v12, %v696_v13  ;;  %v995_v23 = vadd.f32 %v1556_v19, %v1986_v24  ;;  %v989_v25 = vpop.f32.mrb[17].mxu1  ;;  %v876_v26 = vmax.f32 %v802_v16, 0.0 }
 0x11f   : > { %v990_v27 = vadd.f32 %v1986_v24, %v989_v25  ;;  %v875_v28 = vmax.f32 %v797_v21, 0.0  ;;  %v1503_v30 = vpop.f32.mrb[18].mxu0 }
 0x120   : > { %v1069_v29 = vmax.f32 %v995_v23, 0.0  ;;  %v892_v31 = vmax.f32 %v1992_v39, %v876_v26  ;;  %v812_v34 = vadd.f32 %v1503_v30, %v1986_v24  ;;  %v806_v35 = vpop.f32.mrb[19].mxu0 }
 0x121   : > { %v1068_v33 = vmax.f32 %v990_v27, 0.0  ;;  %v1559_v36 = vpop.f32.mrb[18].mxu1  ;;  %v891_v38 = vmax.f32 %v1996_v44, %v875_v28  ;;  %v807_v40 = vadd.f32 %v1986_v24, %v806_v35 }
 0x122   : > { %v1005_v41 = vadd.f32 %v1559_v36, %v1986_v24  ;;  %v999_v42 = vpop.f32.mrb[19].mxu1  ;;  %v1085_v39 = vmax.f32 %v892_v31, %v1069_v29  ;;  %v878_v43 = vmax.f32 %v812_v34, 0.0 }
 0x123   : > { %v1000_v45 = vadd.f32 %v1986_v24, %v999_v42  ;;  %v1084_v46 = vmax.f32 %v891_v38, %v1068_v33  ;;  %v877_v47 = vmax.f32 %v807_v40, 0.0  ;;  %v1506_v44 = vpop.f32.mrb[20].mxu0 }
 0x124   : > { %v1071_v49 = vmax.f32 %v1005_v41, 0.0  ;;  %1101 = vst [vmem:[%s2063_s28 + $0x8] sm:$0xff] %v1085_v39  ;;  %v894_v50 = vmax.f32 %v2000_v53, %v878_v43  ;;  %v822_v52 = vadd.f32 %v1506_v44, %v1986_v24  ;;  %v816_v55 = vpop.f32.mrb[21].mxu0 }
 0x125   : > { %v1070_v51 = vmax.f32 %v1000_v45, 0.0  ;;  %v1562_v56 = vpop.f32.mrb[20].mxu1  ;;  %1100 = vst [vmem:[%s2063_s28] sm:$0xff] %v1084_v46  ;;  %v893_v57 = vmax.f32 %v2004_v58, %v877_v47  ;;  %v817_v59 = vadd.f32 %v1986_v24, %v816_v55 }
 0x126   : > { %v1015_v60 = vadd.f32 %v1562_v56, %v1986_v24  ;;  %v1009_v61 = vpop.f32.mrb[21].mxu1  ;;  %v1087_v62 = vmax.f32 %v894_v50, %v1071_v49  ;;  %v880_v63 = vmax.f32 %v822_v52, 0.0 }
 0x127   : > { %v1010_v1 = vadd.f32 %v1986_v24, %v1009_v61  ;;  %v1086_v53 = vmax.f32 %v893_v57, %v1070_v51  ;;  %v879_v2 = vmax.f32 %v817_v59, 0.0  ;;  %v1509_v5 = vpop.f32.mrb[22].mxu0 }
 0x128   : > { %v1073_v4 = vmax.f32 %v1015_v60, 0.0  ;;  %1103 = vst [vmem:[%s2063_s28 + $0x18] sm:$0xff] %v1087_v62  ;;  %v896_v7 = vmax.f32 %v2008_v3, %v880_v63  ;;  %v832_v58 = vadd.f32 %v1509_v5, %v1986_v24  ;;  %v826_v10 = vpop.f32.mrb[23].mxu0 }
 0x129   : > { %v1072_v9 = vmax.f32 %v1010_v1, 0.0  ;;  %v1565_v11 = vpop.f32.mrb[22].mxu1  ;;  %1102 = vst [vmem:[%s2063_s28 + $0x10] sm:$0xff] %v1086_v53  ;;  %v895_v12 = vmax.f32 %v2012_v8, %v879_v2  ;;  %v827_v13 = vadd.f32 %v1986_v24, %v826_v10 }
 0x12a   : > { %v1025_v14 = vadd.f32 %v1565_v11, %v1986_v24  ;;  %v1019_v16 = vpop.f32.mrb[23].mxu1  ;;  %v1089_v18 = vmax.f32 %v896_v7, %v1073_v4  ;;  %v882_v19 = vmax.f32 %v832_v58, 0.0 }
 0x12b   : > { %v1020_v21 = vadd.f32 %v1986_v24, %v1019_v16  ;;  %v1088_v3 = vmax.f32 %v895_v12, %v1072_v9  ;;  %v881_v23 = vmax.f32 %v827_v13, 0.0  ;;  %v1512_v26 = vpop.f32.mrb[24].mxu0 }
 0x12c   : > { %v1075_v25 = vmax.f32 %v1025_v14, 0.0  ;;  %1105 = vst [vmem:[%s2063_s28 + $0x28] sm:$0xff] %v1089_v18  ;;  %v898_v27 = vmax.f32 %v2016_v17, %v882_v19  ;;  %v842_v8 = vadd.f32 %v1512_v26, %v1986_v24  ;;  %v836_v29 = vpop.f32.mrb[25].mxu0 }
 0x12d   : > { %v1074_v28 = vmax.f32 %v1020_v21, 0.0  ;;  %v1568_v30 = vpop.f32.mrb[24].mxu1  ;;  %1104 = vst [vmem:[%s2063_s28 + $0x20] sm:$0xff] %v1088_v3  ;;  %v897_v31 = vmax.f32 %v2020_v22, %v881_v23  ;;  %v837_v33 = vadd.f32 %v1986_v24, %v836_v29 }
 0x12e   : > { %v1035_v34 = vadd.f32 %v1568_v30, %v1986_v24  ;;  %v1029_v35 = vpop.f32.mrb[25].mxu1  ;;  %v1091_v36 = vmax.f32 %v898_v27, %v1075_v25  ;;  %v884_v38 = vmax.f32 %v842_v8, 0.0 }
 0x12f   : > { %v1030_v40 = vadd.f32 %v1986_v24, %v1029_v35  ;;  %v1090_v17 = vmax.f32 %v897_v31, %v1074_v28  ;;  %v883_v41 = vmax.f32 %v837_v33, 0.0  ;;  %v1515_v39 = vpop.f32.mrb[26].mxu0 }
 0x130   : > { %v1077_v42 = vmax.f32 %v1035_v34, 0.0  ;;  %1107 = vst [vmem:[%s2063_s28 + $0x38] sm:$0xff] %v1091_v36  ;;  %v900_v43 = vmax.f32 %v2024_v32, %v884_v38  ;;  %v852_v22 = vadd.f32 %v1515_v39, %v1986_v24  ;;  %v846_v46 = vpop.f32.mrb[27].mxu0 }
 0x131   : > { %v1076_v45 = vmax.f32 %v1030_v40, 0.0  ;;  %v1571_v47 = vpop.f32.mrb[26].mxu1  ;;  %1106 = vst [vmem:[%s2063_s28 + $0x30] sm:$0xff] %v1090_v17  ;;  %v899_v49 = vmax.f32 %v2028_v37, %v883_v41  ;;  %v847_v44 = vadd.f32 %v1986_v24, %v846_v46 }
 0x132   : > { %v1045_v50 = vadd.f32 %v1571_v47, %v1986_v24  ;;  %v1039_v51 = vpop.f32.mrb[27].mxu1  ;;  %v1093_v52 = vmax.f32 %v900_v43, %v1077_v42  ;;  %v886_v55 = vmax.f32 %v852_v22, 0.0 }
 0x133   : > { %v1040_v56 = vadd.f32 %v1986_v24, %v1039_v51  ;;  %v1092_v32 = vmax.f32 %v899_v49, %v1076_v45  ;;  %v885_v57 = vmax.f32 %v847_v44, 0.0  ;;  %v1518_v60 = vpop.f32.mrb[28].mxu0 }
 0x134   : > { %v1079_v59 = vmax.f32 %v1045_v50, 0.0  ;;  %1109 = vst [vmem:[%s2063_s28 + $0x48] sm:$0xff] %v1093_v52  ;;  %v902_v61 = vmax.f32 %v2032_v48, %v886_v55  ;;  %v862_v37 = vadd.f32 %v1518_v60, %v1986_v24  ;;  %v856_v63 = vpop.f32.mrb[29].mxu0 }
 0x135   : > { %v1078_v62 = vmax.f32 %v1040_v56, 0.0  ;;  %v1574_v1 = vpop.f32.mrb[28].mxu1  ;;  %1108 = vst [vmem:[%s2063_s28 + $0x40] sm:$0xff] %v1092_v32  ;;  %v901_v53 = vmax.f32 %v2036_v54, %v885_v57  ;;  %v857_v2 = vadd.f32 %v1986_v24, %v856_v63 }
 0x136   : > { %v1055_v4 = vadd.f32 %v1574_v1, %v1986_v24  ;;  %v1049_v5 = vpop.f32.mrb[29].mxu1  ;;  %v1095_v7 = vmax.f32 %v902_v61, %v1079_v59  ;;  %v888_v9 = vmax.f32 %v862_v37, 0.0 }
 0x137   : > { %v1050_v58 = vadd.f32 %v1986_v24, %v1049_v5  ;;  %v1094_v48 = vmax.f32 %v901_v53, %v1078_v62  ;;  %v887_v10 = vmax.f32 %v857_v2, 0.0  ;;  %v1521_v12 = vpop.f32.mrb[30].mxu0 }
 0x138   : > { %v1081_v11 = vmax.f32 %v1055_v4, 0.0  ;;  %1111 = vst [vmem:[%s2063_s28 + $0x58] sm:$0xff] %v1095_v7  ;;  %v904_v13 = vmax.f32 %v2040_v0, %v888_v9  ;;  %v872_v54 = vadd.f32 %v1521_v12, %v1986_v24  ;;  %v866_v16 = vpop.f32.mrb[31].mxu0 }
 0x139   : > { %v1080_v14 = vmax.f32 %v1050_v58, 0.0  ;;  %v1577_v18 = vpop.f32.mrb[30].mxu1  ;;  %1110 = vst [vmem:[%s2063_s28 + $0x50] sm:$0xff] %v1094_v48  ;;  %v903_v19 = vmax.f32 %v2044_v6, %v887_v10  ;;  %v867_v21 = vadd.f32 %v1986_v24, %v866_v16 }
 0x13a   : > { %v1065_v3 = vadd.f32 %v1577_v18, %v1986_v24  ;;  %v1059_v23 = vpop.f32.mrb[31].mxu1  ;;  %v1097_v25 = vmax.f32 %v904_v13, %v1081_v11  ;;  %v890_v26 = vmax.f32 %v872_v54, 0.0 }
 0x13b   : > { %v1060_v0 = vadd.f32 %v1986_v24, %v1059_v23  ;;  %v1096_v27 = vmax.f32 %v903_v19, %v1080_v14  ;;  %v889_v28 = vmax.f32 %v867_v21, 0.0 }
 0x13c   : > { %v1083_v8 = vmax.f32 %v1065_v3, 0.0  ;;  %1113 = vst [vmem:[%s2063_s28 + $0x68] sm:$0xff] %v1097_v25  ;;  %v906_v29 = vmax.f32 %v2048_v15, %v890_v26 }
 0x13d   : > { %v1082_v30 = vmax.f32 %v1060_v0, 0.0  ;;  %1112 = vst [vmem:[%s2063_s28 + $0x60] sm:$0xff] %v1096_v27  ;;  %v905_v6 = vmax.f32 %v2051_v20, %v889_v28 }
 0x13e   : > { %v1099_v31 = vmax.f32 %v906_v29, %v1083_v8 }
 0x13f   : > { %v1098_v33 = vmax.f32 %v905_v6, %v1082_v30 }
 0x140   : > { %1115 = vst [vmem:[%s2063_s28 + $0x78] sm:$0xff] %v1099_v31 }
 0x141   : > { %1114 = vst [vmem:[%s2063_s28 + $0x70] sm:$0xff] %v1098_v33 }
 0x142 PF: > { %s16_s21 = sadd.s32 1, %s1720_s21  }
 0x143   : > { %p13_p4 = scmp.ge.s32.totalorder %s16_s21, 6  }
 0x145   :  { %15 = sbr.rel (!%p13_p4) target bundleno = 1 (0x1), region = 83 }

// kernel: convnet_forward.5
= control target key start
LH: loop header
LB: loop body
LE: loop exit
PB: predicated region body
PF: predicated region fallthrough
CT: control target
= control target key end

     0   :  { %12 = vsyncpa [#allocation4], 0  ;;  %s3218_s24 = smov 0   ;;  %s4467_s0 = inlined_call_operand.vmem [shape: f32[2,6400], index: 0, kind: input, shape index: {}]   ;;  %s4468_s1 = inlined_call_operand.vmem [shape: f32[6400,512], index: 1, kind: input, shape index: {}]   ;;  %s4469_s2 = inlined_call_operand.vmem [shape: f32[1,512], index: 2, kind: input, shape index: {}]   ;;  %s4470_s3 = inlined_call_operand.vmem [shape: f32[512,256], index: 3, kind: input, shape index: {}]   ;;  %s4471_s4 = inlined_call_operand.vmem [shape: f32[1,256], index: 4, kind: input, shape index: {}]   ;;  %s4472_s5 = inlined_call_operand.vmem [shape: f32[256,128], index: 5, kind: input, shape index: {}]   ;;  %s4473_s6 = inlined_call_operand.vmem [shape: f32[1,128], index: 6, kind: input, shape index: {}]   ;;  %s4474_s7 = inlined_call_operand.hbm [shape: f32[2,128], index: 7, kind: output, shape index: {}]  }
   0x1 LB: > { %s3224_s25 = sadd.s32 4294967295, %s3173_s24   ;;  %p2250_p0 = scmp.ge.s32.totalorder %s3173_s24, 1  ;;  %s3173_s24 = sphi %s3218_s24, %s18_s24  }
   0x2   : > { %p246_p1 = scmp.lt.s32.totalorder %s3173_s24, 6 }
   0x4   : > { %p247_p2 = pnand %p2250_p0, %p246_p1 }
   0x5   : > { %s279_s26 = smul.u32 (!%p247_p2), 10, %s3224_s25  ;;  %p2254_p5 = scmp.ne.s32.totalorder (!%p247_p2), %s3224_s25, 0 }
   0x6   : > { %250 = sbr.rel (%p247_p2) target bundleno = 1077 (0x435), region = 48 }
   0x7   : > { %s285_s27 = smul.u32 (!%p247_p2), 160, %s3224_s25  ;;  %p280_p3 = scmp.lt.s32.totalorder (!%p247_p2), %s279_s26, 49 }
   0x9   : > { %p286_p4 = scmp.lt.s32.totalorder (!%p247_p2), %s285_s27, 799 }
   0xd   : > { %s4476_s26 = smov (!%p280_p3, %s279_s26), 49  ;;  %s4478_s27 = smov (!%p286_p4, %s285_s27), 799 }
   0xe   : > { %s2251_s28 = sshll.u32 %s4476_s26, 1  ;;  %s2262_s9 = sshll.u32 %s4478_s27, 5  ;;  %v3175_v0 = vmov (!%p2254_p5), 0.0  }
   0xf   : > { %s3233_s8 = scalar_lea.vmem %s4467_s0, %s2251_s28  ;;  %s3238_s12 = scalar_lea.vmem %s4468_s1, %s2262_s9  ;;  %296 = vst [vmem:[#allocation2] sm:$0xff] (!%p2254_p5), %v3175_v0 }
  0x10   : > { %295 = sbr.rel (%p2254_p5) target bundleno = 23 (0x17), region = 52 }
  0x17 PF: > { %v302_v1 = vld [vmem:[%s3238_s12 + $0x8] sm:$0xff]  ;;  %v304_v3 = vld [vmem:[%s3238_s12 + $0x18] sm:$0xff]  ;;  %v301_v6 = vld [vmem:[%s3238_s12] sm:$0xff]  ;;  %p2256_p6 = scmp.ne.s32.totalorder %s3224_s25, 4 }
  0x18   : > { %v306_v2 = vld [vmem:[%s3238_s12 + $0x28] sm:$0xff]  ;;  %v308_v5 = vld [vmem:[%s3238_s12 + $0x38] sm:$0xff]  ;;  %v305_v7 = vld [vmem:[%s3238_s12 + $0x20] sm:$0xff] }
  0x19   : > { %v2298_v4 = vpack.c.bf16 %v306_v2, %v302_v1  ;;  %v2618_v8 = vpack.c.bf16 %v308_v5, %v304_v3  ;;  %v2300_v9 = vpack.c.bf16 %v305_v7, %v301_v6  ;;  %v303_v10 = vld [vmem:[%s3238_s12 + $0x10] sm:$0xff]  ;;  %v310_v12 = vld [vmem:[%s3238_s12 + $0x48] sm:$0xff]  ;;  %v312_v15 = vld [vmem:[%s3238_s12 + $0x58] sm:$0xff] }
  0x1a   : > { %v307_v11 = vld [vmem:[%s3238_s12 + $0x30] sm:$0xff]  ;;  %v314_v14 = vld [vmem:[%s3238_s12 + $0x68] sm:$0xff]  ;;  %v316_v16 = vld [vmem:[%s3238_s12 + $0x78] sm:$0xff] }
  0x1b   : > { %2299 = vmatprep.subr.bf16.mxu0 %v2298_v4  ;;  %v2620_v13 = vpack.c.bf16 %v307_v11, %v303_v10  ;;  %2619 = vmatprep.subr.bf16.mxu1 %v2618_v8  ;;  %v2302_v17 = vpack.c.bf16 %v314_v14, %v310_v12  ;;  %v2622_v18 = vpack.c.bf16 %v316_v16, %v312_v15  ;;  %v309_v19 = vld [vmem:[%s3238_s12 + $0x40] sm:$0xff]  ;;  %v311_v21 = vld [vmem:[%s3238_s12 + $0x50] sm:$0xff]  ;;  %v318_v24 = vld [vmem:[%s3238_s12 + $0x88] sm:$0xff] }
  0x1c   : > { %2301 = vmatpush1.bf16.msra.mxu0 %v2300_v9  ;;  %v313_v20 = vld [vmem:[%s3238_s12 + $0x60] sm:$0xff]  ;;  %v315_v23 = vld [vmem:[%s3238_s12 + $0x70] sm:$0xff]  ;;  %v322_v25 = vld [vmem:[%s3238_s12 + $0xa8] sm:$0xff] }
  0x1d   : > { %2621 = vmatpush1.bf16.msra.mxu1 %v2620_v13  ;;  %v2304_v22 = vpack.c.bf16 %v313_v20, %v309_v19  ;;  %2303 = vmatprep.subr.bf16.mxu0 %v2302_v17  ;;  %v2624_v26 = vpack.c.bf16 %v315_v23, %v311_v21  ;;  %v2306_v27 = vpack.c.bf16 %v322_v25, %v318_v24  ;;  %v320_v28 = vld [vmem:[%s3238_s12 + $0x98] sm:$0xff]  ;;  %v317_v30 = vld [vmem:[%s3238_s12 + $0x80] sm:$0xff]  ;;  %v319_v33 = vld [vmem:[%s3238_s12 + $0x90] sm:$0xff] }
  0x1e   : > { %2623 = vmatprep.subr.bf16.mxu1 %v2622_v18  ;;  %v324_v29 = vld [vmem:[%s3238_s12 + $0xb8] sm:$0xff]  ;;  %v321_v32 = vld [vmem:[%s3238_s12 + $0xa0] sm:$0xff]  ;;  %v323_v34 = vld [vmem:[%s3238_s12 + $0xb0] sm:$0xff] }
  0x1f   : > { %v2626_v31 = vpack.c.bf16 %v324_v29, %v320_v28  ;;  %v2308_v35 = vpack.c.bf16 %v321_v32, %v317_v30  ;;  %v326_v36 = vld [vmem:[%s3238_s12 + $0xc8] sm:$0xff]  ;;  %v328_v38 = vld [vmem:[%s3238_s12 + $0xd8] sm:$0xff]  ;;  %v2628_v39 = vpack.c.bf16 %v323_v34, %v319_v33  ;;  %v325_v42 = vld [vmem:[%s3238_s12 + $0xc0] sm:$0xff] }
  0x20   : > { %2305 = vmatpush1.bf16.msra.mxu0 %v2304_v22  ;;  %v330_v37 = vld [vmem:[%s3238_s12 + $0xe8] sm:$0xff]  ;;  %v332_v41 = vld [vmem:[%s3238_s12 + $0xf8] sm:$0xff]  ;;  %v329_v43 = vld [vmem:[%s3238_s12 + $0xe0] sm:$0xff] }
  0x21   : > { %2625 = vmatpush1.bf16.msra.mxu1 %v2624_v26  ;;  %2307 = vmatprep.subr.bf16.mxu0 %v2306_v27  ;;  %v2310_v40 = vpack.c.bf16 %v330_v37, %v326_v36  ;;  %v2630_v44 = vpack.c.bf16 %v332_v41, %v328_v38  ;;  %v327_v45 = vld [vmem:[%s3238_s12 + $0xd0] sm:$0xff]  ;;  %v334_v47 = vld [vmem:[%s3238_s12 + $0x108] sm:$0xff]  ;;  %v336_v49 = vld [vmem:[%s3238_s12 + $0x118] sm:$0xff]  ;;  %v2312_v51 = vpack.c.bf16 %v329_v43, %v325_v42 }
  0x22   : > { %2627 = vmatprep.subr.bf16.mxu1 %v2626_v31  ;;  %v331_v46 = vld [vmem:[%s3238_s12 + $0xf0] sm:$0xff]  ;;  %v338_v48 = vld [vmem:[%s3238_s12 + $0x128] sm:$0xff]  ;;  %v340_v50 = vld [vmem:[%s3238_s12 + $0x138] sm:$0xff] }
  0x23   : > { %v2632_v52 = vpack.c.bf16 %v331_v46, %v327_v45  ;;  %v2314_v53 = vpack.c.bf16 %v338_v48, %v334_v47  ;;  %v333_v54 = vld [vmem:[%s3238_s12 + $0x100] sm:$0xff]  ;;  %v335_v56 = vld [vmem:[%s3238_s12 + $0x110] sm:$0xff]  ;;  %v2634_v57 = vpack.c.bf16 %v340_v50, %v336_v49  ;;  %v342_v59 = vld [vmem:[%s3238_s12 + $0x148] sm:$0xff]  ;;  %v3176_v47 = vmov 1983009808  }
  0x24   : > { %2309 = vmatpush1.bf16.msra.mxu0 %v2308_v35  ;;  %v337_v55 = vld [vmem:[%s3238_s12 + $0x120] sm:$0xff]  ;;  %v339_v58 = vld [vmem:[%s3238_s12 + $0x130] sm:$0xff]  ;;  %v346_v60 = vld [vmem:[%s3238_s12 + $0x168] sm:$0xff]  ;;  %v946_v48 = vunpack.c.l.s4 %v3176_v47  ;;  %v948_v49 = vlaneseq }
  0x25   : > { %2629 = vmatpush1.bf16.msra.mxu1 %v2628_v39  ;;  %2311 = vmatprep.subr.bf16.mxu0 %v2310_v40  ;;  %v344_v61 = vld [vmem:[%s3238_s12 + $0x158] sm:$0xff]  ;;  %v2316_v63 = vpack.c.bf16 %v337_v55, %v333_v54  ;;  %v2636_v0 = vpack.c.bf16 %v339_v58, %v335_v56  ;;  %v2318_v1 = vpack.c.bf16 %v346_v60, %v342_v59  ;;  %v341_v2 = vld [vmem:[%s3238_s12 + $0x140] sm:$0xff]  ;;  %v343_v4 = vld [vmem:[%s3238_s12 + $0x150] sm:$0xff] }
  0x26   : > { %2631 = vmatprep.subr.bf16.mxu1 %v2630_v44  ;;  %v348_v62 = vld [vmem:[%s3238_s12 + $0x178] sm:$0xff]  ;;  %v345_v3 = vld [vmem:[%s3238_s12 + $0x160] sm:$0xff]  ;;  %v347_v6 = vld [vmem:[%s3238_s12 + $0x170] sm:$0xff] }
  0x27   : > { %v2638_v5 = vpack.c.bf16 %v348_v62, %v344_v61  ;;  %v350_v7 = vld [vmem:[%s3238_s12 + $0x188] sm:$0xff]  ;;  %v352_v9 = vld [vmem:[%s3238_s12 + $0x198] sm:$0xff]  ;;  %v2320_v11 = vpack.c.bf16 %v345_v3, %v341_v2  ;;  %v2640_v12 = vpack.c.bf16 %v347_v6, %v343_v4  ;;  %v349_v14 = vld [vmem:[%s3238_s12 + $0x180] sm:$0xff]  ;;  %v947_v62 = vunpack.c.0.s8 %v946_v48 }
  0x28   : > { %2313 = vmatpush1.bf16.msra.mxu0 %v2312_v51  ;;  %v354_v8 = vld [vmem:[%s3238_s12 + $0x1a8] sm:$0xff]  ;;  %v356_v10 = vld [vmem:[%s3238_s12 + $0x1b8] sm:$0xff]  ;;  %v353_v15 = vld [vmem:[%s3238_s12 + $0x1a0] sm:$0xff] }
  0x29   : > { %2633 = vmatpush1.bf16.msra.mxu1 %v2632_v52  ;;  %2315 = vmatprep.subr.bf16.mxu0 %v2314_v53  ;;  %v2322_v13 = vpack.c.bf16 %v354_v8, %v350_v7  ;;  %v351_v16 = vld [vmem:[%s3238_s12 + $0x190] sm:$0xff]  ;;  %v2642_v17 = vpack.c.bf16 %v356_v10, %v352_v9  ;;  %v358_v19 = vld [vmem:[%s3238_s12 + $0x1c8] sm:$0xff]  ;;  %v360_v21 = vld [vmem:[%s3238_s12 + $0x1d8] sm:$0xff]  ;;  %v2324_v23 = vpack.c.bf16 %v353_v15, %v349_v14 }
  0x2a   : > { %2635 = vmatprep.subr.bf16.mxu1 %v2634_v57  ;;  %v355_v18 = vld [vmem:[%s3238_s12 + $0x1b0] sm:$0xff]  ;;  %v362_v20 = vld [vmem:[%s3238_s12 + $0x1e8] sm:$0xff]  ;;  %v364_v22 = vld [vmem:[%s3238_s12 + $0x1f8] sm:$0xff] }
  0x2b   : > { %v2644_v24 = vpack.c.bf16 %v355_v18, %v351_v16  ;;  %v2326_v25 = vpack.c.bf16 %v362_v20, %v358_v19  ;;  %v357_v26 = vld [vmem:[%s3238_s12 + $0x1c0] sm:$0xff]  ;;  %v359_v28 = vld [vmem:[%s3238_s12 + $0x1d0] sm:$0xff]  ;;  %v2646_v29 = vpack.c.bf16 %v364_v22, %v360_v21  ;;  %v366_v31 = vld [vmem:[%s3238_s12 + $0x208] sm:$0xff] }
  0x2c   : > { %2317 = vmatpush1.bf16.msra.mxu0 %v2316_v63  ;;  %v361_v27 = vld [vmem:[%s3238_s12 + $0x1e0] sm:$0xff]  ;;  %v363_v30 = vld [vmem:[%s3238_s12 + $0x1f0] sm:$0xff]  ;;  %v370_v32 = vld [vmem:[%s3238_s12 + $0x228] sm:$0xff]  ;;  %v3325_v63 = vshrl.u32 %v948_v49, 7 }
  0x2d   : > { %2637 = vmatpush1.bf16.msra.mxu1 %v2636_v0  ;;  %2319 = vmatprep.subr.bf16.mxu0 %v2318_v1  ;;  %v368_v33 = vld [vmem:[%s3238_s12 + $0x218] sm:$0xff]  ;;  %v2328_v35 = vpack.c.bf16 %v361_v27, %v357_v26  ;;  %v2648_v36 = vpack.c.bf16 %v363_v30, %v359_v28  ;;  %v2330_v37 = vpack.c.bf16 %v370_v32, %v366_v31  ;;  %v365_v38 = vld [vmem:[%s3238_s12 + $0x200] sm:$0xff]  ;;  %v367_v40 = vld [vmem:[%s3238_s12 + $0x210] sm:$0xff] }
  0x2e   : > { %2639 = vmatprep.subr.bf16.mxu1 %v2638_v5  ;;  %v372_v34 = vld [vmem:[%s3238_s12 + $0x238] sm:$0xff]  ;;  %v369_v39 = vld [vmem:[%s3238_s12 + $0x220] sm:$0xff]  ;;  %v371_v42 = vld [vmem:[%s3238_s12 + $0x230] sm:$0xff] }
  0x2f   : > { %v2650_v41 = vpack.c.bf16 %v372_v34, %v368_v33  ;;  %v374_v43 = vld [vmem:[%s3238_s12 + $0x248] sm:$0xff]  ;;  %v376_v45 = vld [vmem:[%s3238_s12 + $0x258] sm:$0xff]  ;;  %v2332_v50 = vpack.c.bf16 %v369_v39, %v365_v38  ;;  %v2652_v51 = vpack.c.bf16 %v371_v42, %v367_v40  ;;  %v373_v53 = vld [vmem:[%s3238_s12 + $0x240] sm:$0xff] }
  0x30   : > { %2321 = vmatpush1.bf16.msra.mxu0 %v2320_v11  ;;  %v378_v44 = vld [vmem:[%s3238_s12 + $0x268] sm:$0xff]  ;;  %v380_v46 = vld [vmem:[%s3238_s12 + $0x278] sm:$0xff]  ;;  %v377_v54 = vld [vmem:[%s3238_s12 + $0x260] sm:$0xff] }
  0x31   : > { %2641 = vmatpush1.bf16.msra.mxu1 %v2640_v12  ;;  %2323 = vmatprep.subr.bf16.mxu0 %v2322_v13  ;;  %v2334_v52 = vpack.c.bf16 %v378_v44, %v374_v43  ;;  %v375_v55 = vld [vmem:[%s3238_s12 + $0x250] sm:$0xff]  ;;  %v2654_v56 = vpack.c.bf16 %v380_v46, %v376_v45  ;;  %v382_v58 = vld [vmem:[%s3238_s12 + $0x288] sm:$0xff]  ;;  %v384_v60 = vld [vmem:[%s3238_s12 + $0x298] sm:$0xff]  ;;  %v2336_v0 = vpack.c.bf16 %v377_v54, %v373_v53 }
  0x32   : > { %2643 = vmatprep.subr.bf16.mxu1 %v2642_v17  ;;  %v379_v57 = vld [vmem:[%s3238_s12 + $0x270] sm:$0xff]  ;;  %v386_v59 = vld [vmem:[%s3238_s12 + $0x2a8] sm:$0xff]  ;;  %v388_v61 = vld [vmem:[%s3238_s12 + $0x2b8] sm:$0xff]  ;;  %v3336_v12 = vsub.s32 %v947_v62, %v3325_v63 }
  0x33   : > { %v2656_v1 = vpack.c.bf16 %v379_v57, %v375_v55  ;;  %v2338_v2 = vpack.c.bf16 %v386_v59, %v382_v58  ;;  %v381_v3 = vld [vmem:[%s3238_s12 + $0x280] sm:$0xff]  ;;  %v383_v5 = vld [vmem:[%s3238_s12 + $0x290] sm:$0xff]  ;;  %v2658_v6 = vpack.c.bf16 %v388_v61, %v384_v60  ;;  %v390_v8 = vld [vmem:[%s3238_s12 + $0x2c8] sm:$0xff] }
  0x34   : > { %2325 = vmatpush1.bf16.msra.mxu0 %v2324_v23  ;;  %v385_v4 = vld [vmem:[%s3238_s12 + $0x2a0] sm:$0xff]  ;;  %v387_v7 = vld [vmem:[%s3238_s12 + $0x2b0] sm:$0xff]  ;;  %v394_v9 = vld [vmem:[%s3238_s12 + $0x2e8] sm:$0xff] }
  0x35   : > { %2645 = vmatpush1.bf16.msra.mxu1 %v2644_v24  ;;  %2327 = vmatprep.subr.bf16.mxu0 %v2326_v25  ;;  %v392_v10 = vld [vmem:[%s3238_s12 + $0x2d8] sm:$0xff]  ;;  %v2340_v13 = vpack.c.bf16 %v385_v4, %v381_v3  ;;  %v389_v14 = vld [vmem:[%s3238_s12 + $0x2c0] sm:$0xff]  ;;  %v2660_v15 = vpack.c.bf16 %v387_v7, %v383_v5  ;;  %v2342_v16 = vpack.c.bf16 %v394_v9, %v390_v8  ;;  %v391_v18 = vld [vmem:[%s3238_s12 + $0x2d0] sm:$0xff] }
  0x36   : > { %2647 = vmatprep.subr.bf16.mxu1 %v2646_v29  ;;  %v396_v11 = vld [vmem:[%s3238_s12 + $0x2f8] sm:$0xff]  ;;  %v393_v17 = vld [vmem:[%s3238_s12 + $0x2e0] sm:$0xff]  ;;  %v395_v19 = vld [vmem:[%s3238_s12 + $0x2f0] sm:$0xff] }
  0x37   : > { %v2662_v20 = vpack.c.bf16 %v396_v11, %v392_v10  ;;  %v398_v21 = vld [vmem:[%s3238_s12 + $0x308] sm:$0xff]  ;;  %v3345_v23 = vld [vmem:[%s3233_s8] sm:$0xff]  ;;  %v400_v24 = vld [vmem:[%s3238_s12 + $0x318] sm:$0xff]  ;;  %v2344_v27 = vpack.c.bf16 %v393_v17, %v389_v14  ;;  %v2664_v28 = vpack.c.bf16 %v395_v19, %v391_v18 }
  0x38   : > { %2329 = vmatpush1.bf16.msra.mxu0 %v2328_v35  ;;  %v402_v22 = vld [vmem:[%s3238_s12 + $0x328] sm:$0xff]  ;;  %v404_v25 = vld [vmem:[%s3238_s12 + $0x338] sm:$0xff]  ;;  %v3351_v26 = vrot.slane %v3345_v23, %v3336_v12  ;;  %v397_v30 = vld [vmem:[%s3238_s12 + $0x300] sm:$0xff]  ;;  %v944_v9 = vcombine.high %v3345_v23, %v3345_v23 }
  0x39   : > { %2649 = vmatpush1.bf16.msra.mxu1 %v2648_v36  ;;  %2331 = vmatprep.subr.bf16.mxu0 %v2330_v37  ;;  %v2346_v29 = vpack.c.bf16 %v402_v22, %v398_v21  ;;  %v401_v31 = vld [vmem:[%s3238_s12 + $0x320] sm:$0xff]  ;;  %v399_v32 = vld [vmem:[%s3238_s12 + $0x310] sm:$0xff]  ;;  %v2666_v34 = vpack.c.bf16 %v404_v25, %v400_v24  ;;  %v406_v36 = vld [vmem:[%s3238_s12 + $0x348] sm:$0xff] }
  0x3a   : > { %2651 = vmatprep.subr.bf16.mxu1 %v2650_v41  ;;  %v959_v33 = vcombine.high %v3351_v26, %v3351_v26  ;;  %v403_v35 = vld [vmem:[%s3238_s12 + $0x330] sm:$0xff]  ;;  %v410_v37 = vld [vmem:[%s3238_s12 + $0x368] sm:$0xff]  ;;  %v408_v38 = vld [vmem:[%s3238_s12 + $0x358] sm:$0xff]  ;;  %v2348_v40 = vpack.c.bf16 %v401_v31, %v397_v30  ;;  %v3396_v25 = vrot.slane %v944_v9, %v3336_v12 }
  0x3b   : > { %v412_v39 = vld [vmem:[%s3238_s12 + $0x378] sm:$0xff]  ;;  %v2668_v41 = vpack.c.bf16 %v403_v35, %v399_v32  ;;  %v2350_v42 = vpack.c.bf16 %v410_v37, %v406_v36  ;;  %v405_v43 = vld [vmem:[%s3238_s12 + $0x340] sm:$0xff]  ;;  %v407_v45 = vld [vmem:[%s3238_s12 + $0x350] sm:$0xff] }
  0x3c   : > { %2333 = vmatpush1.bf16.msra.mxu0 %v2332_v50  ;;  %1060 = vmatprep.mubr.f32.mxu0 %v959_v33  ;;  %v409_v44 = vld [vmem:[%s3238_s12 + $0x360] sm:$0xff]  ;;  %v2670_v46 = vpack.c.bf16 %v412_v39, %v408_v38  ;;  %v411_v47 = vld [vmem:[%s3238_s12 + $0x370] sm:$0xff]  ;;  %v414_v48 = vld [vmem:[%s3238_s12 + $0x388] sm:$0xff]  ;;  %v960_v39 = vcombine.high %v3396_v25, %v3396_v25 }
  0x3d   : > { %2653 = vmatpush1.bf16.msra.mxu1 %v2652_v51  ;;  %2335 = vmatprep.subr.bf16.mxu0 %v2334_v52  ;;  %v418_v49 = vld [vmem:[%s3238_s12 + $0x3a8] sm:$0xff]  ;;  %v416_v50 = vld [vmem:[%s3238_s12 + $0x398] sm:$0xff]  ;;  %v2352_v52 = vpack.c.bf16 %v409_v44, %v405_v43  ;;  %v2672_v53 = vpack.c.bf16 %v411_v47, %v407_v45  ;;  %v413_v55 = vld [vmem:[%s3238_s12 + $0x380] sm:$0xff] }
  0x3e   : > { %2655 = vmatprep.subr.bf16.mxu1 %v2654_v56  ;;  %1415 = vmatprep.mubr.f32.mxu1 %v959_v33  ;;  %v420_v51 = vld [vmem:[%s3238_s12 + $0x3b8] sm:$0xff]  ;;  %v2354_v54 = vpack.c.bf16 %v418_v49, %v414_v48  ;;  %v417_v56 = vld [vmem:[%s3238_s12 + $0x3a0] sm:$0xff]  ;;  %v415_v57 = vld [vmem:[%s3238_s12 + $0x390] sm:$0xff] }
  0x3f   : > { %v2674_v58 = vpack.c.bf16 %v420_v51, %v416_v50  ;;  %v419_v59 = vld [vmem:[%s3238_s12 + $0x3b0] sm:$0xff]  ;;  %v422_v60 = vld [vmem:[%s3238_s12 + $0x3c8] sm:$0xff]  ;;  %v424_v62 = vld [vmem:[%s3238_s12 + $0x3d8] sm:$0xff] }
  0x40   : > { %2337 = vmatpush1.bf16.msra.mxu0 %v2336_v0  ;;  %v426_v61 = vld [vmem:[%s3238_s12 + $0x3e8] sm:$0xff]  ;;  %v428_v0 = vld [vmem:[%s3238_s12 + $0x3f8] sm:$0xff]  ;;  %v421_v4 = vld [vmem:[%s3238_s12 + $0x3c0] sm:$0xff] }
  0x41   : > { %2657 = vmatpush1.bf16.msra.mxu1 %v2656_v1  ;;  %2339 = vmatprep.subr.bf16.mxu0 %v2338_v2  ;;  %v2356_v1 = vpack.c.bf16 %v417_v56, %v413_v55  ;;  %v2676_v2 = vpack.c.bf16 %v419_v59, %v415_v57  ;;  %v2358_v3 = vpack.c.bf16 %v426_v61, %v422_v60  ;;  %v425_v5 = vld [vmem:[%s3238_s12 + $0x3e0] sm:$0xff]  ;;  %v427_v8 = vld [vmem:[%s3238_s12 + $0x3f0] sm:$0xff]  ;;  %v430_v10 = vld [vmem:[%s3238_s12 + $0x408] sm:$0xff] }
  0x42   : > { %2659 = vmatprep.subr.bf16.mxu1 %v2658_v6  ;;  %v423_v6 = vld [vmem:[%s3238_s12 + $0x3d0] sm:$0xff]  ;;  %v2678_v7 = vpack.c.bf16 %v428_v0, %v424_v62  ;;  %v434_v11 = vld [vmem:[%s3238_s12 + $0x428] sm:$0xff]  ;;  %v436_v14 = vld [vmem:[%s3238_s12 + $0x438] sm:$0xff] }
  0x43   : > { %v2362_v17 = vpack.c.bf16 %v434_v11, %v430_v10  ;;  %v429_v18 = vld [vmem:[%s3238_s12 + $0x400] sm:$0xff]  ;;  %v435_v22 = vld [vmem:[%s3238_s12 + $0x430] sm:$0xff]  ;;  %v438_v23 = vld [vmem:[%s3238_s12 + $0x448] sm:$0xff] }
  0x44   : > { %2341 = vmatpush1.bf16.msra.mxu0 %v2340_v13  ;;  %v432_v13 = vld [vmem:[%s3238_s12 + $0x418] sm:$0xff]  ;;  %v433_v19 = vld [vmem:[%s3238_s12 + $0x420] sm:$0xff]  ;;  %v442_v24 = vld [vmem:[%s3238_s12 + $0x468] sm:$0xff] }
  0x45   : > { %2661 = vmatpush1.bf16.msra.mxu1 %v2660_v15  ;;  %2343 = vmatprep.subr.bf16.mxu0 %v2342_v16  ;;  %v2360_v15 = vpack.c.bf16 %v425_v5, %v421_v4  ;;  %v2680_v16 = vpack.c.bf16 %v427_v8, %v423_v6  ;;  %v2682_v21 = vpack.c.bf16 %v436_v14, %v432_v13  ;;  %v437_v32 = vld [vmem:[%s3238_s12 + $0x440] sm:$0xff]  ;;  %v443_v36 = vld [vmem:[%s3238_s12 + $0x470] sm:$0xff]  ;;  %v446_v37 = vld [vmem:[%s3238_s12 + $0x488] sm:$0xff] }
  0x46   : > { %2663 = vmatprep.subr.bf16.mxu1 %v2662_v20  ;;  %v431_v20 = vld [vmem:[%s3238_s12 + $0x410] sm:$0xff]  ;;  %v2366_v31 = vpack.c.bf16 %v442_v24, %v438_v23  ;;  %v441_v33 = vld [vmem:[%s3238_s12 + $0x460] sm:$0xff]  ;;  %v450_v38 = vld [vmem:[%s3238_s12 + $0x4a8] sm:$0xff] }
  0x47   : > { %v2684_v30 = vpack.c.bf16 %v435_v22, %v431_v20  ;;  %v2370_v44 = vpack.c.bf16 %v450_v38, %v446_v37  ;;  %v445_v45 = vld [vmem:[%s3238_s12 + $0x480] sm:$0xff]  ;;  %v447_v47 = vld [vmem:[%s3238_s12 + $0x490] sm:$0xff]  ;;  %v454_v50 = vld [vmem:[%s3238_s12 + $0x4c8] sm:$0xff] }
  0x48   : > { %2345 = vmatpush1.bf16.msra.mxu0 %v2344_v27  ;;  %v440_v27 = vld [vmem:[%s3238_s12 + $0x458] sm:$0xff]  ;;  %v451_v49 = vld [vmem:[%s3238_s12 + $0x4b0] sm:$0xff]  ;;  %v458_v51 = vld [vmem:[%s3238_s12 + $0x4e8] sm:$0xff] }
  0x49   : > { %2665 = vmatpush1.bf16.msra.mxu1 %v2664_v28  ;;  %2347 = vmatprep.subr.bf16.mxu0 %v2346_v29  ;;  %v444_v28 = vld [vmem:[%s3238_s12 + $0x478] sm:$0xff]  ;;  %v2364_v29 = vpack.c.bf16 %v433_v19, %v429_v18  ;;  %v2374_v55 = vpack.c.bf16 %v458_v51, %v454_v50  ;;  %v453_v56 = vld [vmem:[%s3238_s12 + $0x4c0] sm:$0xff]  ;;  %v459_v60 = vld [vmem:[%s3238_s12 + $0x4f0] sm:$0xff] }
  0x4a   : > { %2667 = vmatprep.subr.bf16.mxu1 %v2666_v34  ;;  %v439_v34 = vld [vmem:[%s3238_s12 + $0x450] sm:$0xff]  ;;  %v2686_v35 = vpack.c.bf16 %v444_v28, %v440_v27  ;;  %v457_v57 = vld [vmem:[%s3238_s12 + $0x4e0] sm:$0xff]  ;;  %v462_v61 = vld [vmem:[%s3238_s12 + $0x508] sm:$0xff] }
  0x4b   : > { %v2688_v43 = vpack.c.bf16 %v443_v36, %v439_v34  ;;  %v466_v62 = vld [vmem:[%s3238_s12 + $0x528] sm:$0xff]  ;;  %v464_v0 = vld [vmem:[%s3238_s12 + $0x518] sm:$0xff]  ;;  %v461_v5 = vld [vmem:[%s3238_s12 + $0x500] sm:$0xff] }
  0x4c   : > { %2349 = vmatpush1.bf16.msra.mxu0 %v2348_v40  ;;  %v448_v40 = vld [vmem:[%s3238_s12 + $0x498] sm:$0xff]  ;;  %v2378_v4 = vpack.c.bf16 %v466_v62, %v462_v61  ;;  %v465_v6 = vld [vmem:[%s3238_s12 + $0x520] sm:$0xff]  ;;  %v467_v9 = vld [vmem:[%s3238_s12 + $0x530] sm:$0xff] }
  0x4d   : > { %2669 = vmatpush1.bf16.msra.mxu1 %v2668_v41  ;;  %2351 = vmatprep.subr.bf16.mxu0 %v2350_v42  ;;  %v452_v41 = vld [vmem:[%s3238_s12 + $0x4b8] sm:$0xff]  ;;  %v2368_v42 = vpack.c.bf16 %v441_v33, %v437_v32  ;;  %v470_v10 = vld [vmem:[%s3238_s12 + $0x548] sm:$0xff]  ;;  %v469_v18 = vld [vmem:[%s3238_s12 + $0x540] sm:$0xff] }
  0x4e   : > { %2671 = vmatprep.subr.bf16.mxu1 %v2670_v46  ;;  %v449_v46 = vld [vmem:[%s3238_s12 + $0x4a0] sm:$0xff]  ;;  %v2690_v48 = vpack.c.bf16 %v452_v41, %v448_v40  ;;  %v474_v11 = vld [vmem:[%s3238_s12 + $0x568] sm:$0xff]  ;;  %v472_v13 = vld [vmem:[%s3238_s12 + $0x558] sm:$0xff] }
  0x4f   : > { %v476_v14 = vld [vmem:[%s3238_s12 + $0x578] sm:$0xff]  ;;  %v473_v19 = vld [vmem:[%s3238_s12 + $0x560] sm:$0xff]  ;;  %v471_v20 = vld [vmem:[%s3238_s12 + $0x550] sm:$0xff] }
  0x50   : > { %2353 = vmatpush1.bf16.msra.mxu0 %v2352_v52  ;;  %v460_v52 = vld [vmem:[%s3238_s12 + $0x4f8] sm:$0xff]  ;;  %v475_v22 = vld [vmem:[%s3238_s12 + $0x570] sm:$0xff]  ;;  %v478_v23 = vld [vmem:[%s3238_s12 + $0x588] sm:$0xff] }
  0x51   : > { %2673 = vmatpush1.bf16.msra.mxu1 %v2672_v53  ;;  %2355 = vmatprep.subr.bf16.mxu0 %v2354_v54  ;;  %v2372_v53 = vpack.c.bf16 %v449_v46, %v445_v45  ;;  %v2692_v54 = vpack.c.bf16 %v451_v49, %v447_v47  ;;  %v482_v24 = vld [vmem:[%s3238_s12 + $0x5a8] sm:$0xff]  ;;  %v480_v27 = vld [vmem:[%s3238_s12 + $0x598] sm:$0xff]  ;;  %v477_v32 = vld [vmem:[%s3238_s12 + $0x580] sm:$0xff] }
  0x52   : > { %2675 = vmatprep.subr.bf16.mxu1 %v2674_v58  ;;  %v455_v58 = vld [vmem:[%s3238_s12 + $0x4d0] sm:$0xff]  ;;  %v484_v28 = vld [vmem:[%s3238_s12 + $0x5b8] sm:$0xff]  ;;  %v481_v33 = vld [vmem:[%s3238_s12 + $0x5a0] sm:$0xff] }
  0x53   : > { %v479_v34 = vld [vmem:[%s3238_s12 + $0x590] sm:$0xff]  ;;  %v486_v37 = vld [vmem:[%s3238_s12 + $0x5c8] sm:$0xff]  ;;  %v492_v40 = vld [vmem:[%s3238_s12 + $0x5f8] sm:$0xff]  ;;  %v2388_v41 = vpack.c.bf16 %v481_v33, %v477_v32 }
  0x54   : > { %2357 = vmatpush1.bf16.msra.mxu0 %v2356_v1  ;;  %v468_v1 = vld [vmem:[%s3238_s12 + $0x538] sm:$0xff]  ;;  %v483_v36 = vld [vmem:[%s3238_s12 + $0x5b0] sm:$0xff]  ;;  %v490_v38 = vld [vmem:[%s3238_s12 + $0x5e8] sm:$0xff] }
  0x55   : > { %2677 = vmatpush1.bf16.msra.mxu1 %v2676_v2  ;;  %2359 = vmatprep.subr.bf16.mxu0 %v2358_v3  ;;  %v2376_v2 = vpack.c.bf16 %v457_v57, %v453_v56  ;;  %v2696_v3 = vpack.c.bf16 %v459_v60, %v455_v58  ;;  %v2698_v8 = vpack.c.bf16 %v468_v1, %v464_v0  ;;  %v489_v45 = vld [vmem:[%s3238_s12 + $0x5e0] sm:$0xff]  ;;  %v487_v46 = vld [vmem:[%s3238_s12 + $0x5d0] sm:$0xff]  ;;  %v494_v49 = vld [vmem:[%s3238_s12 + $0x608] sm:$0xff] }
  0x56   : > { %2679 = vmatprep.subr.bf16.mxu1 %v2678_v7  ;;  %v463_v7 = vld [vmem:[%s3238_s12 + $0x510] sm:$0xff]  ;;  %v498_v50 = vld [vmem:[%s3238_s12 + $0x628] sm:$0xff]  ;;  %v496_v51 = vld [vmem:[%s3238_s12 + $0x618] sm:$0xff] }
  0x57   : > { %v497_v56 = vld [vmem:[%s3238_s12 + $0x620] sm:$0xff]  ;;  %v495_v57 = vld [vmem:[%s3238_s12 + $0x610] sm:$0xff]  ;;  %v502_v60 = vld [vmem:[%s3238_s12 + $0x648] sm:$0xff] }
  0x58   : > { %2361 = vmatpush1.bf16.msra.mxu0 %v2360_v15  ;;  %v2380_v15 = vpack.c.bf16 %v465_v6, %v461_v5  ;;  %v506_v61 = vld [vmem:[%s3238_s12 + $0x668] sm:$0xff]  ;;  %v504_v62 = vld [vmem:[%s3238_s12 + $0x658] sm:$0xff]  ;;  %v505_v5 = vld [vmem:[%s3238_s12 + $0x660] sm:$0xff] }
  0x59   : > { %2681 = vmatpush1.bf16.msra.mxu1 %v2680_v16  ;;  %2363 = vmatprep.subr.bf16.mxu0 %v2362_v17  ;;  %v2700_v16 = vpack.c.bf16 %v467_v9, %v463_v7  ;;  %v2382_v17 = vpack.c.bf16 %v474_v11, %v470_v10  ;;  %v508_v0 = vld [vmem:[%s3238_s12 + $0x678] sm:$0xff]  ;;  %v503_v6 = vld [vmem:[%s3238_s12 + $0x650] sm:$0xff]  ;;  %v510_v9 = vld [vmem:[%s3238_s12 + $0x688] sm:$0xff] }
  0x5a   : > { %2683 = vmatprep.subr.bf16.mxu1 %v2682_v21  ;;  %v2702_v21 = vpack.c.bf16 %v476_v14, %v472_v13  ;;  %v2718_v7 = vpack.c.bf16 %v508_v0, %v504_v62  ;;  %v514_v10 = vld [vmem:[%s3238_s12 + $0x6a8] sm:$0xff]  ;;  %v512_v11 = vld [vmem:[%s3238_s12 + $0x698] sm:$0xff]  ;;  %v521_v32 = vld [vmem:[%s3238_s12 + $0x6e0] sm:$0xff] }
  0x5b   : > { %1061 = vmatmul.mubr.f32.vlgmr.msra.gmra.mrb[0].mxu0 %v3351_v26  ;;  %v516_v13 = vld [vmem:[%s3238_s12 + $0x6b8] sm:$0xff]  ;;  %v519_v33 = vld [vmem:[%s3238_s12 + $0x6d0] sm:$0xff] }
  0x5c   : > { %2365 = vmatpush1.bf16.msra.mxu0 %v2364_v29  ;;  %1416 = vmatmul.mubr.f32.vlgmr.msra.gmra.mrb[0].mxu1 %v3351_v26  ;;  %v456_v26 = vld [vmem:[%s3238_s12 + $0x4d8] sm:$0xff]  ;;  %v2384_v29 = vpack.c.bf16 %v473_v19, %v469_v18  ;;  %v513_v18 = vld [vmem:[%s3238_s12 + $0x6a0] sm:$0xff]  ;;  %v511_v19 = vld [vmem:[%s3238_s12 + $0x690] sm:$0xff] }
  0x5d   : > { %2685 = vmatpush1.bf16.msra.mxu1 %v2684_v30  ;;  %2367 = vmatprep.subr.bf16.mxu0 %v2366_v31  ;;  %v2694_v59 = vpack.c.bf16 %v460_v52, %v456_v26  ;;  %v2704_v30 = vpack.c.bf16 %v475_v22, %v471_v20  ;;  %v2386_v31 = vpack.c.bf16 %v482_v24, %v478_v23  ;;  %v500_v26 = vld [vmem:[%s3238_s12 + $0x638] sm:$0xff]  ;;  %v518_v22 = vld [vmem:[%s3238_s12 + $0x6c8] sm:$0xff] }
  0x5e   : > { %2687 = vmatprep.subr.bf16.mxu1 %v2686_v35  ;;  %1131 = vmatprep.mubr.f32.mxu0 %v960_v39  ;;  %v2706_v35 = vpack.c.bf16 %v484_v28, %v480_v27  ;;  %v2714_v58 = vpack.c.bf16 %v500_v26, %v496_v51  ;;  %v2722_v20 = vpack.c.bf16 %v516_v13, %v512_v11  ;;  %v522_v23 = vld [vmem:[%s3238_s12 + $0x6e8] sm:$0xff]  ;;  %v520_v24 = vld [vmem:[%s3238_s12 + $0x6d8] sm:$0xff] }
  0x5f   : > { %1486 = vmatprep.mubr.f32.mxu1 %v960_v39  ;;  %v488_v39 = vld [vmem:[%s3238_s12 + $0x5d8] sm:$0xff] }
  0x60   : > { %2369 = vmatpush1.bf16.msra.mxu0 %v2368_v42  ;;  %v2708_v42 = vpack.c.bf16 %v483_v36, %v479_v34  ;;  %v2710_v47 = vpack.c.bf16 %v492_v40, %v488_v39  ;;  %v524_v27 = vld [vmem:[%s3238_s12 + $0x6f8] sm:$0xff]  ;;  %v526_v36 = vld [vmem:[%s3238_s12 + $0x708] sm:$0xff] }
  0x61   : > { %2689 = vmatpush1.bf16.msra.mxu1 %v2688_v43  ;;  %2371 = vmatprep.subr.bf16.mxu0 %v2370_v44  ;;  %v2390_v43 = vpack.c.bf16 %v490_v38, %v486_v37  ;;  %v485_v44 = vld [vmem:[%s3238_s12 + $0x5c0] sm:$0xff]  ;;  %v2726_v34 = vpack.c.bf16 %v524_v27, %v520_v24  ;;  %v530_v37 = vld [vmem:[%s3238_s12 + $0x728] sm:$0xff]  ;;  %v528_v38 = vld [vmem:[%s3238_s12 + $0x718] sm:$0xff] }
  0x62   : > { %2691 = vmatprep.subr.bf16.mxu1 %v2690_v48  ;;  %v491_v48 = vld [vmem:[%s3238_s12 + $0x5f0] sm:$0xff]  ;;  %v2392_v52 = vpack.c.bf16 %v489_v45, %v485_v44  ;;  %v532_v39 = vld [vmem:[%s3238_s12 + $0x738] sm:$0xff]  ;;  %v529_v44 = vld [vmem:[%s3238_s12 + $0x720] sm:$0xff] }
  0x63   : > { %v527_v45 = vld [vmem:[%s3238_s12 + $0x710] sm:$0xff]  ;;  %v540_v51 = vld [vmem:[%s3238_s12 + $0x778] sm:$0xff] }
  0x64   : > { %2373 = vmatpush1.bf16.msra.mxu0 %v2372_v53  ;;  %v2712_v53 = vpack.c.bf16 %v491_v48, %v487_v46  ;;  %v2730_v46 = vpack.c.bf16 %v532_v39, %v528_v38  ;;  %v534_v48 = vld [vmem:[%s3238_s12 + $0x748] sm:$0xff]  ;;  %v548_v62 = vld [vmem:[%s3238_s12 + $0x7b8] sm:$0xff] }
  0x65   : > { %2693 = vmatpush1.bf16.msra.mxu1 %v2692_v54  ;;  %2375 = vmatprep.subr.bf16.mxu0 %v2374_v55  ;;  %v2394_v54 = vpack.c.bf16 %v498_v50, %v494_v49  ;;  %v493_v55 = vld [vmem:[%s3238_s12 + $0x600] sm:$0xff]  ;;  %v538_v49 = vld [vmem:[%s3238_s12 + $0x768] sm:$0xff]  ;;  %v536_v50 = vld [vmem:[%s3238_s12 + $0x758] sm:$0xff] }
  0x66   : > { %2695 = vmatprep.subr.bf16.mxu1 %v2694_v59  ;;  %v499_v59 = vld [vmem:[%s3238_s12 + $0x630] sm:$0xff]  ;;  %v2396_v1 = vpack.c.bf16 %v497_v56, %v493_v55  ;;  %v537_v55 = vld [vmem:[%s3238_s12 + $0x760] sm:$0xff]  ;;  %v556_v11 = vld [vmem:[%s3238_s12 + $0x7f8] sm:$0xff] }
  0x67   : > { %v535_v56 = vld [vmem:[%s3238_s12 + $0x750] sm:$0xff]  ;;  %v564_v24 = vld [vmem:[%s3238_s12 + $0x838] sm:$0xff] }
  0x68   : > { %2377 = vmatpush1.bf16.msra.mxu0 %v2376_v2  ;;  %v2716_v2 = vpack.c.bf16 %v499_v59, %v495_v57  ;;  %v2734_v57 = vpack.c.bf16 %v540_v51, %v536_v50  ;;  %v542_v59 = vld [vmem:[%s3238_s12 + $0x788] sm:$0xff]  ;;  %v572_v38 = vld [vmem:[%s3238_s12 + $0x878] sm:$0xff] }
  0x69   : > { %2697 = vmatpush1.bf16.msra.mxu1 %v2696_v3  ;;  %2379 = vmatprep.subr.bf16.mxu0 %v2378_v4  ;;  %v2398_v3 = vpack.c.bf16 %v506_v61, %v502_v60  ;;  %v501_v4 = vld [vmem:[%s3238_s12 + $0x640] sm:$0xff]  ;;  %v546_v60 = vld [vmem:[%s3238_s12 + $0x7a8] sm:$0xff]  ;;  %v544_v61 = vld [vmem:[%s3238_s12 + $0x798] sm:$0xff] }
  0x6a   : > { %2699 = vmatprep.subr.bf16.mxu1 %v2698_v8  ;;  %v507_v8 = vld [vmem:[%s3238_s12 + $0x670] sm:$0xff]  ;;  %v2400_v14 = vpack.c.bf16 %v505_v5, %v501_v4  ;;  %v545_v4 = vld [vmem:[%s3238_s12 + $0x7a0] sm:$0xff]  ;;  %v578_v50 = vld [vmem:[%s3238_s12 + $0x8a8] sm:$0xff] }
  0x6b   : > { %v543_v5 = vld [vmem:[%s3238_s12 + $0x790] sm:$0xff]  ;;  %v576_v51 = vld [vmem:[%s3238_s12 + $0x898] sm:$0xff] }
  0x6c   : > { %2381 = vmatpush1.bf16.msra.mxu0 %v2380_v15  ;;  %v2720_v15 = vpack.c.bf16 %v507_v8, %v503_v6  ;;  %v2738_v6 = vpack.c.bf16 %v548_v62, %v544_v61  ;;  %v550_v8 = vld [vmem:[%s3238_s12 + $0x7c8] sm:$0xff] }
  0x6d   : > { %2701 = vmatpush1.bf16.msra.mxu1 %v2700_v16  ;;  %2383 = vmatprep.subr.bf16.mxu0 %v2382_v17  ;;  %v2402_v16 = vpack.c.bf16 %v514_v10, %v510_v9  ;;  %v509_v17 = vld [vmem:[%s3238_s12 + $0x680] sm:$0xff]  ;;  %v554_v9 = vld [vmem:[%s3238_s12 + $0x7e8] sm:$0xff]  ;;  %v552_v10 = vld [vmem:[%s3238_s12 + $0x7d8] sm:$0xff] }
  0x6e   : > { %2703 = vmatprep.subr.bf16.mxu1 %v2702_v21  ;;  %v515_v21 = vld [vmem:[%s3238_s12 + $0x6b0] sm:$0xff]  ;;  %v2404_v28 = vpack.c.bf16 %v513_v18, %v509_v17  ;;  %v553_v17 = vld [vmem:[%s3238_s12 + $0x7e0] sm:$0xff]  ;;  %v582_v61 = vld [vmem:[%s3238_s12 + $0x8c8] sm:$0xff] }
  0x6f   : > { %v551_v18 = vld [vmem:[%s3238_s12 + $0x7d0] sm:$0xff]  ;;  %v586_v62 = vld [vmem:[%s3238_s12 + $0x8e8] sm:$0xff] }
  0x70   : > { %2385 = vmatpush1.bf16.msra.mxu0 %v2384_v29  ;;  %v2724_v29 = vpack.c.bf16 %v515_v21, %v511_v19  ;;  %v2742_v19 = vpack.c.bf16 %v556_v11, %v552_v10  ;;  %v558_v21 = vld [vmem:[%s3238_s12 + $0x808] sm:$0xff]  ;;  %v592_v11 = vld [vmem:[%s3238_s12 + $0x918] sm:$0xff] }
  0x71   : > { %2705 = vmatpush1.bf16.msra.mxu1 %v2704_v30  ;;  %2387 = vmatprep.subr.bf16.mxu0 %v2386_v31  ;;  %v2406_v30 = vpack.c.bf16 %v522_v23, %v518_v22  ;;  %v517_v31 = vld [vmem:[%s3238_s12 + $0x6c0] sm:$0xff]  ;;  %v562_v22 = vld [vmem:[%s3238_s12 + $0x828] sm:$0xff]  ;;  %v560_v23 = vld [vmem:[%s3238_s12 + $0x818] sm:$0xff] }
  0x72   : > { %2707 = vmatprep.subr.bf16.mxu1 %v2706_v35  ;;  %v523_v35 = vld [vmem:[%s3238_s12 + $0x6f0] sm:$0xff]  ;;  %v2408_v40 = vpack.c.bf16 %v521_v32, %v517_v31  ;;  %v561_v31 = vld [vmem:[%s3238_s12 + $0x820] sm:$0xff]  ;;  %v594_v10 = vld [vmem:[%s3238_s12 + $0x928] sm:$0xff] }
  0x73   : > { %v559_v32 = vld [vmem:[%s3238_s12 + $0x810] sm:$0xff] }
  0x74   : > { %2389 = vmatpush1.bf16.msra.mxu0 %v2388_v41  ;;  %v2728_v41 = vpack.c.bf16 %v523_v35, %v519_v33  ;;  %v2746_v33 = vpack.c.bf16 %v564_v24, %v560_v23  ;;  %v566_v35 = vld [vmem:[%s3238_s12 + $0x848] sm:$0xff]  ;;  %v600_v24 = vld [vmem:[%s3238_s12 + $0x958] sm:$0xff] }
  0x75   : > { %2709 = vmatpush1.bf16.msra.mxu1 %v2708_v42  ;;  %2391 = vmatprep.subr.bf16.mxu0 %v2390_v43  ;;  %v2410_v42 = vpack.c.bf16 %v530_v37, %v526_v36  ;;  %v525_v43 = vld [vmem:[%s3238_s12 + $0x700] sm:$0xff]  ;;  %v570_v36 = vld [vmem:[%s3238_s12 + $0x868] sm:$0xff]  ;;  %v568_v37 = vld [vmem:[%s3238_s12 + $0x858] sm:$0xff] }
  0x76   : > { %2711 = vmatprep.subr.bf16.mxu1 %v2710_v47  ;;  %v531_v47 = vld [vmem:[%s3238_s12 + $0x730] sm:$0xff]  ;;  %v2412_v26 = vpack.c.bf16 %v529_v44, %v525_v43  ;;  %v565_v43 = vld [vmem:[%s3238_s12 + $0x840] sm:$0xff]  ;;  %v602_v23 = vld [vmem:[%s3238_s12 + $0x968] sm:$0xff] }
  0x77   : > { %v569_v44 = vld [vmem:[%s3238_s12 + $0x860] sm:$0xff] }
  0x78   : > { %2393 = vmatpush1.bf16.msra.mxu0 %v2392_v52  ;;  %v2732_v52 = vpack.c.bf16 %v531_v47, %v527_v45  ;;  %v567_v45 = vld [vmem:[%s3238_s12 + $0x850] sm:$0xff]  ;;  %v2750_v47 = vpack.c.bf16 %v572_v38, %v568_v37  ;;  %v610_v37 = vld [vmem:[%s3238_s12 + $0x9a8] sm:$0xff]  ;;  %v608_v38 = vld [vmem:[%s3238_s12 + $0x998] sm:$0xff] }
  0x79   : > { %2713 = vmatpush1.bf16.msra.mxu1 %v2712_v53  ;;  %2395 = vmatprep.subr.bf16.mxu0 %v2394_v54  ;;  %v2414_v53 = vpack.c.bf16 %v538_v49, %v534_v48  ;;  %v533_v54 = vld [vmem:[%s3238_s12 + $0x740] sm:$0xff]  ;;  %v571_v48 = vld [vmem:[%s3238_s12 + $0x870] sm:$0xff]  ;;  %v574_v49 = vld [vmem:[%s3238_s12 + $0x888] sm:$0xff] }
  0x7a   : > { %2715 = vmatprep.subr.bf16.mxu1 %v2714_v58  ;;  %v539_v58 = vld [vmem:[%s3238_s12 + $0x770] sm:$0xff]  ;;  %v2416_v0 = vpack.c.bf16 %v537_v55, %v533_v54  ;;  %v2752_v54 = vpack.c.bf16 %v571_v48, %v567_v45  ;;  %v2434_v55 = vpack.c.bf16 %v578_v50, %v574_v49  ;;  %v609_v45 = vld [vmem:[%s3238_s12 + $0x9a0] sm:$0xff]  ;;  %v614_v50 = vld [vmem:[%s3238_s12 + $0x9c8] sm:$0xff] }
  0x7b   : > { %v611_v49 = vld [vmem:[%s3238_s12 + $0x9b0] sm:$0xff] }
  0x7c   : > { %2397 = vmatpush1.bf16.msra.mxu0 %v2396_v1  ;;  %v2736_v1 = vpack.c.bf16 %v539_v58, %v535_v56  ;;  %v573_v56 = vld [vmem:[%s3238_s12 + $0x880] sm:$0xff]  ;;  %v575_v58 = vld [vmem:[%s3238_s12 + $0x890] sm:$0xff] }
  0x7d   : > { %2717 = vmatpush1.bf16.msra.mxu1 %v2716_v2  ;;  %2399 = vmatprep.subr.bf16.mxu0 %v2398_v3  ;;  %v2418_v2 = vpack.c.bf16 %v546_v60, %v542_v59  ;;  %v541_v3 = vld [vmem:[%s3238_s12 + $0x780] sm:$0xff]  ;;  %v579_v60 = vld [vmem:[%s3238_s12 + $0x8b0] sm:$0xff] }
  0x7e   : > { %2719 = vmatprep.subr.bf16.mxu1 %v2718_v7  ;;  %v547_v7 = vld [vmem:[%s3238_s12 + $0x7b0] sm:$0xff]  ;;  %v2420_v13 = vpack.c.bf16 %v545_v4, %v541_v3  ;;  %v2438_v3 = vpack.c.bf16 %v586_v62, %v582_v61  ;;  %v581_v4 = vld [vmem:[%s3238_s12 + $0x8c0] sm:$0xff]  ;;  %v622_v61 = vld [vmem:[%s3238_s12 + $0xa08] sm:$0xff] }
  0x7f   : > { %v626_v62 = vld [vmem:[%s3238_s12 + $0xa28] sm:$0xff] }
  0x80   : > { %2401 = vmatpush1.bf16.msra.mxu0 %v2400_v14  ;;  %v2740_v14 = vpack.c.bf16 %v547_v7, %v543_v5  ;;  %v585_v5 = vld [vmem:[%s3238_s12 + $0x8e0] sm:$0xff] }
  0x81   : > { %2721 = vmatpush1.bf16.msra.mxu1 %v2720_v15  ;;  %2403 = vmatprep.subr.bf16.mxu0 %v2402_v16  ;;  %v2422_v15 = vpack.c.bf16 %v554_v9, %v550_v8  ;;  %v549_v16 = vld [vmem:[%s3238_s12 + $0x7c0] sm:$0xff]  ;;  %v587_v8 = vld [vmem:[%s3238_s12 + $0x8f0] sm:$0xff]  ;;  %v590_v9 = vld [vmem:[%s3238_s12 + $0x908] sm:$0xff] }
  0x82   : > { %2723 = vmatprep.subr.bf16.mxu1 %v2722_v20  ;;  %v555_v20 = vld [vmem:[%s3238_s12 + $0x7f0] sm:$0xff]  ;;  %v2424_v27 = vpack.c.bf16 %v553_v17, %v549_v16  ;;  %v2442_v16 = vpack.c.bf16 %v594_v10, %v590_v9  ;;  %v589_v17 = vld [vmem:[%s3238_s12 + $0x900] sm:$0xff]  ;;  %v630_v9 = vld [vmem:[%s3238_s12 + $0xa48] sm:$0xff] }
  0x83   : > { %v634_v10 = vld [vmem:[%s3238_s12 + $0xa68] sm:$0xff] }
  0x84   : > { %2405 = vmatpush1.bf16.msra.mxu0 %v2404_v28  ;;  %v2744_v28 = vpack.c.bf16 %v555_v20, %v551_v18  ;;  %v593_v18 = vld [vmem:[%s3238_s12 + $0x920] sm:$0xff] }
  0x85   : > { %2725 = vmatpush1.bf16.msra.mxu1 %v2724_v29  ;;  %2407 = vmatprep.subr.bf16.mxu0 %v2406_v30  ;;  %v2426_v29 = vpack.c.bf16 %v562_v22, %v558_v21  ;;  %v557_v30 = vld [vmem:[%s3238_s12 + $0x800] sm:$0xff]  ;;  %v595_v21 = vld [vmem:[%s3238_s12 + $0x930] sm:$0xff]  ;;  %v598_v22 = vld [vmem:[%s3238_s12 + $0x948] sm:$0xff] }
  0x86   : > { %2727 = vmatprep.subr.bf16.mxu1 %v2726_v34  ;;  %v563_v34 = vld [vmem:[%s3238_s12 + $0x830] sm:$0xff]  ;;  %v2428_v39 = vpack.c.bf16 %v561_v31, %v557_v30  ;;  %v2446_v30 = vpack.c.bf16 %v602_v23, %v598_v22  ;;  %v597_v31 = vld [vmem:[%s3238_s12 + $0x940] sm:$0xff]  ;;  %v638_v22 = vld [vmem:[%s3238_s12 + $0xa88] sm:$0xff] }
  0x87   : > { %v642_v23 = vld [vmem:[%s3238_s12 + $0xaa8] sm:$0xff] }
  0x88   : > { %2409 = vmatpush1.bf16.msra.mxu0 %v2408_v40  ;;  %v3533_v40 = vld [vmem:[%s3233_s8 + $0x8] sm:$0xff] }
  0x89   : > { %2729 = vmatpush1.bf16.msra.mxu1 %v2728_v41  ;;  %2411 = vmatprep.subr.bf16.mxu0 %v2410_v42  ;;  %v2748_v41 = vpack.c.bf16 %v563_v34, %v559_v32  ;;  %v2430_v42 = vpack.c.bf16 %v570_v36, %v566_v35  ;;  %v601_v32 = vld [vmem:[%s3238_s12 + $0x960] sm:$0xff]  ;;  %v603_v35 = vld [vmem:[%s3238_s12 + $0x970] sm:$0xff]  ;;  %v606_v36 = vld [vmem:[%s3238_s12 + $0x988] sm:$0xff] }
  0x8a   : > { %2731 = vmatprep.subr.bf16.mxu1 %v2730_v46  ;;  %v3540_v46 = vrot.slane %v3533_v40, %v3336_v12 }
  0x8c   : > { %2413 = vmatpush1.bf16.msra.mxu0 %v2412_v26  ;;  %v580_v26 = vld [vmem:[%s3238_s12 + $0x8b8] sm:$0xff] }
  0x8d   : > { %2733 = vmatpush1.bf16.msra.mxu1 %v2732_v52  ;;  %2415 = vmatprep.subr.bf16.mxu0 %v2414_v53  ;;  %v976_v52 = vcombine.high %v3540_v46, %v3540_v46  ;;  %v2432_v53 = vpack.c.bf16 %v569_v44, %v565_v43  ;;  %v2754_v59 = vpack.c.bf16 %v580_v26, %v576_v51  ;;  %v605_v44 = vld [vmem:[%s3238_s12 + $0x980] sm:$0xff]  ;;  %v618_v51 = vld [vmem:[%s3238_s12 + $0x9e8] sm:$0xff]  ;;  %v616_v26 = vld [vmem:[%s3238_s12 + $0x9d8] sm:$0xff] }
  0x8e   : > { %2735 = vmatprep.subr.bf16.mxu1 %v2734_v57  ;;  %v577_v57 = vld [vmem:[%s3238_s12 + $0x8a0] sm:$0xff]  ;;  %v2450_v43 = vpack.c.bf16 %v610_v37, %v606_v36  ;;  %v646_v36 = vld [vmem:[%s3238_s12 + $0xac8] sm:$0xff] }
  0x8f   : > { %v650_v37 = vld [vmem:[%s3238_s12 + $0xae8] sm:$0xff] }
  0x90   : > { %2417 = vmatpush1.bf16.msra.mxu0 %v2416_v0  ;;  %v588_v0 = vld [vmem:[%s3238_s12 + $0x8f8] sm:$0xff] }
  0x91   : > { %2737 = vmatpush1.bf16.msra.mxu1 %v2736_v1  ;;  %2419 = vmatprep.subr.bf16.mxu0 %v2418_v2  ;;  %v2436_v1 = vpack.c.bf16 %v577_v57, %v573_v56  ;;  %v2756_v2 = vpack.c.bf16 %v579_v60, %v575_v58  ;;  %v613_v56 = vld [vmem:[%s3238_s12 + $0x9c0] sm:$0xff]  ;;  %v615_v58 = vld [vmem:[%s3238_s12 + $0x9d0] sm:$0xff] }
  0x92   : > { %2739 = vmatprep.subr.bf16.mxu1 %v2738_v6  ;;  %v583_v6 = vld [vmem:[%s3238_s12 + $0x8d0] sm:$0xff]  ;;  %v617_v57 = vld [vmem:[%s3238_s12 + $0x9e0] sm:$0xff] }
  0x93   : > { %v619_v60 = vld [vmem:[%s3238_s12 + $0x9f0] sm:$0xff] }
  0x94   : > { %2421 = vmatpush1.bf16.msra.mxu0 %v2420_v13  ;;  %v596_v13 = vld [vmem:[%s3238_s12 + $0x938] sm:$0xff] }
  0x95   : > { %2741 = vmatpush1.bf16.msra.mxu1 %v2740_v14  ;;  %2423 = vmatprep.subr.bf16.mxu0 %v2422_v15  ;;  %v2440_v14 = vpack.c.bf16 %v585_v5, %v581_v4  ;;  %v2760_v15 = vpack.c.bf16 %v587_v8, %v583_v6  ;;  %v2762_v20 = vpack.c.bf16 %v596_v13, %v592_v11  ;;  %v621_v4 = vld [vmem:[%s3238_s12 + $0xa00] sm:$0xff]  ;;  %v623_v6 = vld [vmem:[%s3238_s12 + $0xa10] sm:$0xff]  ;;  %v632_v11 = vld [vmem:[%s3238_s12 + $0xa58] sm:$0xff] }
  0x96   : > { %2743 = vmatprep.subr.bf16.mxu1 %v2742_v19  ;;  %v591_v19 = vld [vmem:[%s3238_s12 + $0x910] sm:$0xff]  ;;  %v625_v5 = vld [vmem:[%s3238_s12 + $0xa20] sm:$0xff]  ;;  %v636_v13 = vld [vmem:[%s3238_s12 + $0xa78] sm:$0xff] }
  0x97   : > { %v627_v8 = vld [vmem:[%s3238_s12 + $0xa30] sm:$0xff] }
  0x98   : > { %2425 = vmatpush1.bf16.msra.mxu0 %v2424_v27  ;;  %v604_v27 = vld [vmem:[%s3238_s12 + $0x978] sm:$0xff] }
  0x99   : > { %2745 = vmatpush1.bf16.msra.mxu1 %v2744_v28  ;;  %2427 = vmatprep.subr.bf16.mxu0 %v2426_v29  ;;  %v2444_v28 = vpack.c.bf16 %v593_v18, %v589_v17  ;;  %v2764_v29 = vpack.c.bf16 %v595_v21, %v591_v19  ;;  %v2766_v34 = vpack.c.bf16 %v604_v27, %v600_v24  ;;  %v629_v17 = vld [vmem:[%s3238_s12 + $0xa40] sm:$0xff]  ;;  %v631_v19 = vld [vmem:[%s3238_s12 + $0xa50] sm:$0xff]  ;;  %v640_v24 = vld [vmem:[%s3238_s12 + $0xa98] sm:$0xff] }
  0x9a   : > { %2747 = vmatprep.subr.bf16.mxu1 %v2746_v33  ;;  %v599_v33 = vld [vmem:[%s3238_s12 + $0x950] sm:$0xff]  ;;  %v633_v18 = vld [vmem:[%s3238_s12 + $0xa60] sm:$0xff]  ;;  %v644_v27 = vld [vmem:[%s3238_s12 + $0xab8] sm:$0xff] }
  0x9b   : > { %1132 = vmatmul.mubr.f32.vlgmr.msra.gmra.mrb[0].mxu0 %v3396_v25  ;;  %v635_v21 = vld [vmem:[%s3238_s12 + $0xa70] sm:$0xff] }
  0x9c   : > { %2429 = vmatpush1.bf16.msra.mxu0 %v2428_v39  ;;  %1487 = vmatmul.mubr.f32.vlgmr.msra.gmra.mrb[0].mxu1 %v3396_v25  ;;  %v584_v25 = vld [vmem:[%s3238_s12 + $0x8d8] sm:$0xff] }
  0x9d   : > { %2749 = vmatpush1.bf16.msra.mxu1 %v2748_v41  ;;  %2431 = vmatprep.subr.bf16.mxu0 %v2430_v42  ;;  %v2758_v7 = vpack.c.bf16 %v588_v0, %v584_v25  ;;  %v612_v39 = vld [vmem:[%s3238_s12 + $0x9b8] sm:$0xff]  ;;  %v2448_v41 = vpack.c.bf16 %v601_v32, %v597_v31  ;;  %v2768_v42 = vpack.c.bf16 %v603_v35, %v599_v33  ;;  %v637_v31 = vld [vmem:[%s3238_s12 + $0xa80] sm:$0xff]  ;;  %v639_v33 = vld [vmem:[%s3238_s12 + $0xa90] sm:$0xff] }
  0x9e   : > { %2751 = vmatprep.subr.bf16.mxu1 %v2750_v47  ;;  %1202 = vmatprep.mubr.f32.mxu0 %v976_v52  ;;  %v607_v47 = vld [vmem:[%s3238_s12 + $0x990] sm:$0xff]  ;;  %v2770_v48 = vpack.c.bf16 %v612_v39, %v608_v38  ;;  %v624_v25 = vld [vmem:[%s3238_s12 + $0xa18] sm:$0xff]  ;;  %v641_v32 = vld [vmem:[%s3238_s12 + $0xaa0] sm:$0xff] }
  0x9f   : > { %1557 = vmatprep.mubr.f32.mxu1 %v976_v52  ;;  %v620_v52 = vld [vmem:[%s3238_s12 + $0x9f8] sm:$0xff]  ;;  %v643_v35 = vld [vmem:[%s3238_s12 + $0xab0] sm:$0xff] }
  0xa0   : > { %2433 = vmatpush1.bf16.msra.mxu0 %v2432_v53  ;;  %v2452_v53 = vpack.c.bf16 %v609_v45, %v605_v44  ;;  %v628_v0 = vld [vmem:[%s3238_s12 + $0xa38] sm:$0xff]  ;;  %v645_v44 = vld [vmem:[%s3238_s12 + $0xac0] sm:$0xff] }
  0xa1   : > { %2753 = vmatpush1.bf16.msra.mxu1 %v2752_v54  ;;  %2435 = vmatprep.subr.bf16.mxu0 %v2434_v55  ;;  %v2772_v54 = vpack.c.bf16 %v611_v49, %v607_v47  ;;  %v2454_v55 = vpack.c.bf16 %v618_v51, %v614_v50  ;;  %v648_v38 = vld [vmem:[%s3238_s12 + $0xad8] sm:$0xff]  ;;  %v649_v45 = vld [vmem:[%s3238_s12 + $0xae0] sm:$0xff]  ;;  %v647_v47 = vld [vmem:[%s3238_s12 + $0xad0] sm:$0xff] }
  0xa2   : > { %2755 = vmatprep.subr.bf16.mxu1 %v2754_v59  ;;  %v2774_v59 = vpack.c.bf16 %v620_v52, %v616_v26  ;;  %v652_v39 = vld [vmem:[%s3238_s12 + $0xaf8] sm:$0xff]  ;;  %v651_v49 = vld [vmem:[%s3238_s12 + $0xaf0] sm:$0xff]  ;;  %v654_v50 = vld [vmem:[%s3238_s12 + $0xb08] sm:$0xff] }
  0xa3   : > { %v658_v51 = vld [vmem:[%s3238_s12 + $0xb28] sm:$0xff]  ;;  %v656_v26 = vld [vmem:[%s3238_s12 + $0xb18] sm:$0xff] }
  0xa4   : > { %2437 = vmatpush1.bf16.msra.mxu0 %v2436_v1  ;;  %v2456_v1 = vpack.c.bf16 %v617_v57, %v613_v56  ;;  %v660_v52 = vld [vmem:[%s3238_s12 + $0xb38] sm:$0xff]  ;;  %v653_v56 = vld [vmem:[%s3238_s12 + $0xb00] sm:$0xff] }
  0xa5   : > { %2757 = vmatpush1.bf16.msra.mxu1 %v2756_v2  ;;  %2439 = vmatprep.subr.bf16.mxu0 %v2438_v3  ;;  %v2776_v2 = vpack.c.bf16 %v619_v60, %v615_v58  ;;  %v2458_v3 = vpack.c.bf16 %v626_v62, %v622_v61  ;;  %v657_v57 = vld [vmem:[%s3238_s12 + $0xb20] sm:$0xff]  ;;  %v655_v58 = vld [vmem:[%s3238_s12 + $0xb10] sm:$0xff]  ;;  %v662_v61 = vld [vmem:[%s3238_s12 + $0xb48] sm:$0xff] }
  0xa6   : > { %2759 = vmatprep.subr.bf16.mxu1 %v2758_v7  ;;  %v2778_v7 = vpack.c.bf16 %v628_v0, %v624_v25  ;;  %v659_v60 = vld [vmem:[%s3238_s12 + $0xb30] sm:$0xff]  ;;  %v666_v62 = vld [vmem:[%s3238_s12 + $0xb68] sm:$0xff]  ;;  %v664_v25 = vld [vmem:[%s3238_s12 + $0xb58] sm:$0xff] }
  0xa7   : > { %v668_v0 = vld [vmem:[%s3238_s12 + $0xb78] sm:$0xff] }
  0xa8   : > { %2441 = vmatpush1.bf16.msra.mxu0 %v2440_v14  ;;  %v2460_v14 = vpack.c.bf16 %v625_v5, %v621_v4  ;;  %v661_v4 = vld [vmem:[%s3238_s12 + $0xb40] sm:$0xff] }
  0xa9   : > { %2761 = vmatpush1.bf16.msra.mxu1 %v2760_v15  ;;  %2443 = vmatprep.subr.bf16.mxu0 %v2442_v16  ;;  %v2780_v15 = vpack.c.bf16 %v627_v8, %v623_v6  ;;  %v2462_v16 = vpack.c.bf16 %v634_v10, %v630_v9  ;;  %v665_v5 = vld [vmem:[%s3238_s12 + $0xb60] sm:$0xff]  ;;  %v663_v6 = vld [vmem:[%s3238_s12 + $0xb50] sm:$0xff]  ;;  %v670_v9 = vld [vmem:[%s3238_s12 + $0xb88] sm:$0xff] }
  0xaa   : > { %2763 = vmatprep.subr.bf16.mxu1 %v2762_v20  ;;  %v2782_v20 = vpack.c.bf16 %v636_v13, %v632_v11  ;;  %v667_v8 = vld [vmem:[%s3238_s12 + $0xb70] sm:$0xff]  ;;  %v674_v10 = vld [vmem:[%s3238_s12 + $0xba8] sm:$0xff]  ;;  %v672_v11 = vld [vmem:[%s3238_s12 + $0xb98] sm:$0xff] }
  0xab   : > { %v676_v13 = vld [vmem:[%s3238_s12 + $0xbb8] sm:$0xff] }
  0xac   : > { %2445 = vmatpush1.bf16.msra.mxu0 %v2444_v28  ;;  %v2464_v28 = vpack.c.bf16 %v633_v18, %v629_v17  ;;  %v669_v17 = vld [vmem:[%s3238_s12 + $0xb80] sm:$0xff] }
  0xad   : > { %2765 = vmatpush1.bf16.msra.mxu1 %v2764_v29  ;;  %2447 = vmatprep.subr.bf16.mxu0 %v2446_v30  ;;  %v2784_v29 = vpack.c.bf16 %v635_v21, %v631_v19  ;;  %v2466_v30 = vpack.c.bf16 %v642_v23, %v638_v22  ;;  %v673_v18 = vld [vmem:[%s3238_s12 + $0xba0] sm:$0xff]  ;;  %v671_v19 = vld [vmem:[%s3238_s12 + $0xb90] sm:$0xff]  ;;  %v678_v22 = vld [vmem:[%s3238_s12 + $0xbc8] sm:$0xff] }
  0xae   : > { %2767 = vmatprep.subr.bf16.mxu1 %v2766_v34  ;;  %v2786_v34 = vpack.c.bf16 %v644_v27, %v640_v24  ;;  %v675_v21 = vld [vmem:[%s3238_s12 + $0xbb0] sm:$0xff]  ;;  %v682_v23 = vld [vmem:[%s3238_s12 + $0xbe8] sm:$0xff]  ;;  %v680_v24 = vld [vmem:[%s3238_s12 + $0xbd8] sm:$0xff] }
  0xaf   : > { %v684_v27 = vld [vmem:[%s3238_s12 + $0xbf8] sm:$0xff] }
  0xb0   : > { %2449 = vmatpush1.bf16.msra.mxu0 %v2448_v41  ;;  %v2468_v41 = vpack.c.bf16 %v641_v32, %v637_v31  ;;  %v677_v31 = vld [vmem:[%s3238_s12 + $0xbc0] sm:$0xff] }
  0xb1   : > { %2769 = vmatpush1.bf16.msra.mxu1 %v2768_v42  ;;  %2451 = vmatprep.subr.bf16.mxu0 %v2450_v43  ;;  %v2788_v42 = vpack.c.bf16 %v643_v35, %v639_v33  ;;  %v2470_v43 = vpack.c.bf16 %v650_v37, %v646_v36  ;;  %v681_v32 = vld [vmem:[%s3238_s12 + $0xbe0] sm:$0xff]  ;;  %v679_v33 = vld [vmem:[%s3238_s12 + $0xbd0] sm:$0xff]  ;;  %v686_v36 = vld [vmem:[%s3238_s12 + $0xc08] sm:$0xff] }
  0xb2   : > { %2771 = vmatprep.subr.bf16.mxu1 %v2770_v48  ;;  %v2790_v48 = vpack.c.bf16 %v652_v39, %v648_v38  ;;  %v683_v35 = vld [vmem:[%s3238_s12 + $0xbf0] sm:$0xff]  ;;  %v690_v37 = vld [vmem:[%s3238_s12 + $0xc28] sm:$0xff]  ;;  %v961_v38 = vcombine.high %v3533_v40, %v3533_v40  ;;  %v688_v39 = vld [vmem:[%s3238_s12 + $0xc18] sm:$0xff] }
  0xb3   : > { %v691_v40 = vld [vmem:[%s3238_s12 + $0xc30] sm:$0xff] }
  0xb4   : > { %2453 = vmatpush1.bf16.msra.mxu0 %v2452_v53  ;;  %v2472_v53 = vpack.c.bf16 %v649_v45, %v645_v44  ;;  %v2490_v44 = vpack.c.bf16 %v690_v37, %v686_v36  ;;  %v685_v45 = vld [vmem:[%s3238_s12 + $0xc00] sm:$0xff]  ;;  %v723_v36 = vld [vmem:[%s3238_s12 + $0xd30] sm:$0xff]  ;;  %v726_v37 = vld [vmem:[%s3238_s12 + $0xd48] sm:$0xff] }
  0xb5   : > { %2773 = vmatpush1.bf16.msra.mxu1 %v2772_v54  ;;  %2455 = vmatprep.subr.bf16.mxu0 %v2454_v55  ;;  %v2792_v54 = vpack.c.bf16 %v651_v49, %v647_v47  ;;  %v2474_v55 = vpack.c.bf16 %v658_v51, %v654_v50  ;;  %v689_v47 = vld [vmem:[%s3238_s12 + $0xc20] sm:$0xff]  ;;  %v694_v50 = vld [vmem:[%s3238_s12 + $0xc48] sm:$0xff] }
  0xb6   : > { %2775 = vmatprep.subr.bf16.mxu1 %v2774_v59  ;;  %v2794_v59 = vpack.c.bf16 %v660_v52, %v656_v26  ;;  %v698_v51 = vld [vmem:[%s3238_s12 + $0xc68] sm:$0xff]  ;;  %v3672_v26 = vrot.slane %v961_v38, %v3336_v12  ;;  %v696_v52 = vld [vmem:[%s3238_s12 + $0xc58] sm:$0xff] }
  0xb7   : > { %v730_v38 = vld [vmem:[%s3238_s12 + $0xd68] sm:$0xff] }
  0xb8   : > { %2457 = vmatpush1.bf16.msra.mxu0 %v2456_v1  ;;  %v2476_v1 = vpack.c.bf16 %v657_v57, %v653_v56  ;;  %v2494_v56 = vpack.c.bf16 %v698_v51, %v694_v50  ;;  %v693_v57 = vld [vmem:[%s3238_s12 + $0xc40] sm:$0xff]  ;;  %v734_v50 = vld [vmem:[%s3238_s12 + $0xd88] sm:$0xff] }
  0xb9   : > { %2777 = vmatpush1.bf16.msra.mxu1 %v2776_v2  ;;  %2459 = vmatprep.subr.bf16.mxu0 %v2458_v3  ;;  %v2796_v2 = vpack.c.bf16 %v659_v60, %v655_v58  ;;  %v2478_v3 = vpack.c.bf16 %v666_v62, %v662_v61  ;;  %v697_v58 = vld [vmem:[%s3238_s12 + $0xc60] sm:$0xff]  ;;  %v699_v61 = vld [vmem:[%s3238_s12 + $0xc70] sm:$0xff]  ;;  %v702_v62 = vld [vmem:[%s3238_s12 + $0xc88] sm:$0xff] }
  0xba   : > { %2779 = vmatprep.subr.bf16.mxu1 %v2778_v7  ;;  %v2798_v7 = vpack.c.bf16 %v668_v0, %v664_v25  ;;  %v706_v25 = vld [vmem:[%s3238_s12 + $0xca8] sm:$0xff]  ;;  %v977_v0 = vcombine.high %v3672_v26, %v3672_v26 }
  0xbb   : > { %v738_v51 = vld [vmem:[%s3238_s12 + $0xda8] sm:$0xff] }
  0xbc   : > { %2461 = vmatpush1.bf16.msra.mxu0 %v2460_v14  ;;  %v2480_v14 = vpack.c.bf16 %v665_v5, %v661_v4  ;;  %v2498_v5 = vpack.c.bf16 %v706_v25, %v702_v62  ;;  %v742_v62 = vld [vmem:[%s3238_s12 + $0xdc8] sm:$0xff] }
  0xbd   : > { %2781 = vmatpush1.bf16.msra.mxu1 %v2780_v15  ;;  %2463 = vmatprep.subr.bf16.mxu0 %v2462_v16  ;;  %v2800_v15 = vpack.c.bf16 %v667_v8, %v663_v6  ;;  %v2482_v16 = vpack.c.bf16 %v674_v10, %v670_v9  ;;  %v701_v6 = vld [vmem:[%s3238_s12 + $0xc80] sm:$0xff]  ;;  %v703_v8 = vld [vmem:[%s3238_s12 + $0xc90] sm:$0xff]  ;;  %v746_v25 = vld [vmem:[%s3238_s12 + $0xde8] sm:$0xff] }
  0xbe   : > { %2783 = vmatprep.subr.bf16.mxu1 %v2782_v20  ;;  %v2802_v20 = vpack.c.bf16 %v676_v13, %v672_v11  ;;  %v707_v10 = vld [vmem:[%s3238_s12 + $0xcb0] sm:$0xff]  ;;  %v710_v11 = vld [vmem:[%s3238_s12 + $0xcc8] sm:$0xff] }
  0xbf   : > { %v714_v13 = vld [vmem:[%s3238_s12 + $0xce8] sm:$0xff] }
  0xc0   : > { %2465 = vmatpush1.bf16.msra.mxu0 %v2464_v28  ;;  %v2484_v28 = vpack.c.bf16 %v673_v18, %v669_v17  ;;  %v2502_v17 = vpack.c.bf16 %v714_v13, %v710_v11  ;;  %v709_v18 = vld [vmem:[%s3238_s12 + $0xcc0] sm:$0xff]  ;;  %v754_v11 = vld [vmem:[%s3238_s12 + $0xe28] sm:$0xff]  ;;  %v752_v13 = vld [vmem:[%s3238_s12 + $0xe18] sm:$0xff] }
  0xc1   : > { %2785 = vmatpush1.bf16.msra.mxu1 %v2784_v29  ;;  %2467 = vmatprep.subr.bf16.mxu0 %v2466_v30  ;;  %v2804_v29 = vpack.c.bf16 %v675_v21, %v671_v19  ;;  %v2486_v30 = vpack.c.bf16 %v682_v23, %v678_v22  ;;  %v713_v19 = vld [vmem:[%s3238_s12 + $0xce0] sm:$0xff]  ;;  %v715_v22 = vld [vmem:[%s3238_s12 + $0xcf0] sm:$0xff]  ;;  %v718_v23 = vld [vmem:[%s3238_s12 + $0xd08] sm:$0xff] }
  0xc2   : > { %2787 = vmatprep.subr.bf16.mxu1 %v2786_v34  ;;  %v2806_v34 = vpack.c.bf16 %v684_v27, %v680_v24  ;;  %v722_v24 = vld [vmem:[%s3238_s12 + $0xd28] sm:$0xff]  ;;  %v720_v27 = vld [vmem:[%s3238_s12 + $0xd18] sm:$0xff] }
  0xc4   : > { %2469 = vmatpush1.bf16.msra.mxu0 %v2468_v41  ;;  %v692_v41 = vld [vmem:[%s3238_s12 + $0xc38] sm:$0xff] }
  0xc5   : > { %2789 = vmatpush1.bf16.msra.mxu1 %v2788_v42  ;;  %2471 = vmatprep.subr.bf16.mxu0 %v2470_v43  ;;  %v2488_v42 = vpack.c.bf16 %v681_v32, %v677_v31  ;;  %v2808_v43 = vpack.c.bf16 %v683_v35, %v679_v33  ;;  %v2810_v49 = vpack.c.bf16 %v692_v41, %v688_v39  ;;  %v717_v32 = vld [vmem:[%s3238_s12 + $0xd00] sm:$0xff]  ;;  %v728_v39 = vld [vmem:[%s3238_s12 + $0xd58] sm:$0xff] }
  0xc6   : > { %2791 = vmatprep.subr.bf16.mxu1 %v2790_v48  ;;  %v687_v48 = vld [vmem:[%s3238_s12 + $0xc10] sm:$0xff]  ;;  %v2506_v31 = vpack.c.bf16 %v722_v24, %v718_v23  ;;  %v721_v33 = vld [vmem:[%s3238_s12 + $0xd20] sm:$0xff]  ;;  %v732_v41 = vld [vmem:[%s3238_s12 + $0xd78] sm:$0xff] }
  0xc7   : > { %v762_v23 = vld [vmem:[%s3238_s12 + $0xe68] sm:$0xff]  ;;  %v760_v24 = vld [vmem:[%s3238_s12 + $0xe58] sm:$0xff] }
  0xc8   : > { %2473 = vmatpush1.bf16.msra.mxu0 %v2472_v53  ;;  %v700_v53 = vld [vmem:[%s3238_s12 + $0xc78] sm:$0xff] }
  0xc9   : > { %2793 = vmatpush1.bf16.msra.mxu1 %v2792_v54  ;;  %2475 = vmatprep.subr.bf16.mxu0 %v2474_v55  ;;  %v2492_v54 = vpack.c.bf16 %v689_v47, %v685_v45  ;;  %v2812_v55 = vpack.c.bf16 %v691_v40, %v687_v48  ;;  %v2814_v60 = vpack.c.bf16 %v700_v53, %v696_v52  ;;  %v725_v45 = vld [vmem:[%s3238_s12 + $0xd40] sm:$0xff]  ;;  %v727_v48 = vld [vmem:[%s3238_s12 + $0xd50] sm:$0xff]  ;;  %v736_v52 = vld [vmem:[%s3238_s12 + $0xd98] sm:$0xff] }
  0xca   : > { %2795 = vmatprep.subr.bf16.mxu1 %v2794_v59  ;;  %v695_v59 = vld [vmem:[%s3238_s12 + $0xc50] sm:$0xff]  ;;  %v729_v47 = vld [vmem:[%s3238_s12 + $0xd60] sm:$0xff]  ;;  %v740_v53 = vld [vmem:[%s3238_s12 + $0xdb8] sm:$0xff] }
  0xcb   : > { %v2816_v4 = vpack.c.bf16 %v699_v61, %v695_v59  ;;  %v731_v40 = vld [vmem:[%s3238_s12 + $0xd70] sm:$0xff] }
  0xcc   : > { %2477 = vmatpush1.bf16.msra.mxu0 %v2476_v1  ;;  %v704_v1 = vld [vmem:[%s3238_s12 + $0xc98] sm:$0xff]  ;;  %v735_v59 = vld [vmem:[%s3238_s12 + $0xd90] sm:$0xff] }
  0xcd   : > { %2797 = vmatpush1.bf16.msra.mxu1 %v2796_v2  ;;  %2479 = vmatprep.subr.bf16.mxu0 %v2478_v3  ;;  %v708_v2 = vld [vmem:[%s3238_s12 + $0xcb8] sm:$0xff]  ;;  %v2496_v3 = vpack.c.bf16 %v697_v58, %v693_v57  ;;  %v733_v57 = vld [vmem:[%s3238_s12 + $0xd80] sm:$0xff]  ;;  %v739_v61 = vld [vmem:[%s3238_s12 + $0xdb0] sm:$0xff] }
  0xce   : > { %2799 = vmatprep.subr.bf16.mxu1 %v2798_v7  ;;  %v705_v7 = vld [vmem:[%s3238_s12 + $0xca0] sm:$0xff]  ;;  %v2818_v9 = vpack.c.bf16 %v708_v2, %v704_v1  ;;  %v748_v1 = vld [vmem:[%s3238_s12 + $0xdf8] sm:$0xff] }
  0xcf   : > { %v737_v58 = vld [vmem:[%s3238_s12 + $0xda0] sm:$0xff] }
  0xd0   : > { %2481 = vmatpush1.bf16.msra.mxu0 %v2480_v14  ;;  %v716_v14 = vld [vmem:[%s3238_s12 + $0xcf8] sm:$0xff]  ;;  %v2516_v2 = vpack.c.bf16 %v737_v58, %v733_v57  ;;  %v777_v57 = vld [vmem:[%s3238_s12 + $0xee0] sm:$0xff]  ;;  %v775_v58 = vld [vmem:[%s3238_s12 + $0xed0] sm:$0xff] }
  0xd1   : > { %2801 = vmatpush1.bf16.msra.mxu1 %v2800_v15  ;;  %2483 = vmatprep.subr.bf16.mxu0 %v2482_v16  ;;  %v2500_v15 = vpack.c.bf16 %v705_v7, %v701_v6  ;;  %v2820_v16 = vpack.c.bf16 %v707_v10, %v703_v8  ;;  %v745_v6 = vld [vmem:[%s3238_s12 + $0xde0] sm:$0xff]  ;;  %v743_v7 = vld [vmem:[%s3238_s12 + $0xdd0] sm:$0xff]  ;;  %v750_v10 = vld [vmem:[%s3238_s12 + $0xe08] sm:$0xff] }
  0xd2   : > { %2803 = vmatprep.subr.bf16.mxu1 %v2802_v20  ;;  %v711_v20 = vld [vmem:[%s3238_s12 + $0xcd0] sm:$0xff] }
  0xd4   : > { %2485 = vmatpush1.bf16.msra.mxu0 %v2484_v28  ;;  %v724_v28 = vld [vmem:[%s3238_s12 + $0xd38] sm:$0xff] }
  0xd5   : > { %2805 = vmatpush1.bf16.msra.mxu1 %v2804_v29  ;;  %2487 = vmatprep.subr.bf16.mxu0 %v2486_v30  ;;  %v2504_v29 = vpack.c.bf16 %v713_v19, %v709_v18  ;;  %v2824_v30 = vpack.c.bf16 %v715_v22, %v711_v20  ;;  %v2826_v35 = vpack.c.bf16 %v724_v28, %v720_v27  ;;  %v753_v18 = vld [vmem:[%s3238_s12 + $0xe20] sm:$0xff]  ;;  %v751_v19 = vld [vmem:[%s3238_s12 + $0xe10] sm:$0xff]  ;;  %v758_v22 = vld [vmem:[%s3238_s12 + $0xe48] sm:$0xff] }
  0xd6   : > { %2807 = vmatprep.subr.bf16.mxu1 %v2806_v34  ;;  %v719_v34 = vld [vmem:[%s3238_s12 + $0xd10] sm:$0xff]  ;;  %v764_v27 = vld [vmem:[%s3238_s12 + $0xe78] sm:$0xff] }
  0xd8   : > { %2489 = vmatpush1.bf16.msra.mxu0 %v2488_v42  ;;  %v2508_v42 = vpack.c.bf16 %v721_v33, %v717_v32  ;;  %v761_v32 = vld [vmem:[%s3238_s12 + $0xe60] sm:$0xff]  ;;  %v759_v33 = vld [vmem:[%s3238_s12 + $0xe50] sm:$0xff] }
  0xd9   : > { %2809 = vmatpush1.bf16.msra.mxu1 %v2808_v43  ;;  %2491 = vmatprep.subr.bf16.mxu0 %v2490_v44  ;;  %v2828_v43 = vpack.c.bf16 %v723_v36, %v719_v34  ;;  %v2510_v44 = vpack.c.bf16 %v730_v38, %v726_v37  ;;  %v2846_v34 = vpack.c.bf16 %v764_v27, %v760_v24  ;;  %v766_v36 = vld [vmem:[%s3238_s12 + $0xe88] sm:$0xff]  ;;  %v768_v38 = vld [vmem:[%s3238_s12 + $0xe98] sm:$0xff] }
  0xda   : > { %2811 = vmatprep.subr.bf16.mxu1 %v2810_v49  ;;  %v2830_v49 = vpack.c.bf16 %v732_v41, %v728_v39  ;;  %v770_v37 = vld [vmem:[%s3238_s12 + $0xea8] sm:$0xff]  ;;  %v772_v39 = vld [vmem:[%s3238_s12 + $0xeb8] sm:$0xff] }
  0xdb   : > { %1203 = vmatmul.mubr.f32.vlgmr.msra.gmra.mrb[0].mxu0 %v3540_v46  ;;  %v804_v24 = vld [vmem:[%s3238_s12 + $0xfb8] sm:$0xff] }
  0xdc   : > { %2493 = vmatpush1.bf16.msra.mxu0 %v2492_v54  ;;  %1558 = vmatmul.mubr.f32.vlgmr.msra.gmra.mrb[0].mxu1 %v3540_v46  ;;  %v712_v46 = vld [vmem:[%s3238_s12 + $0xcd8] sm:$0xff]  ;;  %v2512_v54 = vpack.c.bf16 %v729_v47, %v725_v45  ;;  %v769_v45 = vld [vmem:[%s3238_s12 + $0xea0] sm:$0xff]  ;;  %v767_v47 = vld [vmem:[%s3238_s12 + $0xe90] sm:$0xff] }
  0xdd   : > { %2813 = vmatpush1.bf16.msra.mxu1 %v2812_v55  ;;  %2495 = vmatprep.subr.bf16.mxu0 %v2494_v56  ;;  %v2822_v21 = vpack.c.bf16 %v716_v14, %v712_v46  ;;  %v2832_v55 = vpack.c.bf16 %v731_v40, %v727_v48  ;;  %v2514_v56 = vpack.c.bf16 %v738_v51, %v734_v50  ;;  %v756_v46 = vld [vmem:[%s3238_s12 + $0xe38] sm:$0xff]  ;;  %v774_v40 = vld [vmem:[%s3238_s12 + $0xec8] sm:$0xff] }
  0xde   : > { %2815 = vmatprep.subr.bf16.mxu1 %v2814_v60  ;;  %1273 = vmatprep.mubr.f32.mxu0 %v977_v0  ;;  %v2834_v60 = vpack.c.bf16 %v740_v53, %v736_v52  ;;  %v2842_v20 = vpack.c.bf16 %v756_v46, %v752_v13  ;;  %v2850_v48 = vpack.c.bf16 %v772_v39, %v768_v38  ;;  %v778_v50 = vld [vmem:[%s3238_s12 + $0xee8] sm:$0xff]  ;;  %v776_v51 = vld [vmem:[%s3238_s12 + $0xed8] sm:$0xff] }
  0xdf   : > { %1628 = vmatprep.mubr.f32.mxu1 %v977_v0  ;;  %v744_v0 = vld [vmem:[%s3238_s12 + $0xdd8] sm:$0xff] }
  0xe0   : > { %2497 = vmatpush1.bf16.msra.mxu0 %v2496_v3  ;;  %v2836_v3 = vpack.c.bf16 %v739_v61, %v735_v59  ;;  %v2838_v8 = vpack.c.bf16 %v748_v1, %v744_v0  ;;  %v780_v52 = vld [vmem:[%s3238_s12 + $0xef8] sm:$0xff]  ;;  %v782_v61 = vld [vmem:[%s3238_s12 + $0xf08] sm:$0xff] }
  0xe1   : > { %2817 = vmatpush1.bf16.msra.mxu1 %v2816_v4  ;;  %2499 = vmatprep.subr.bf16.mxu0 %v2498_v5  ;;  %v2518_v4 = vpack.c.bf16 %v746_v25, %v742_v62  ;;  %v741_v5 = vld [vmem:[%s3238_s12 + $0xdc0] sm:$0xff]  ;;  %v2854_v59 = vpack.c.bf16 %v780_v52, %v776_v51  ;;  %v786_v62 = vld [vmem:[%s3238_s12 + $0xf28] sm:$0xff]  ;;  %v784_v25 = vld [vmem:[%s3238_s12 + $0xf18] sm:$0xff] }
  0xe2   : > { %2819 = vmatprep.subr.bf16.mxu1 %v2818_v9  ;;  %v747_v9 = vld [vmem:[%s3238_s12 + $0xdf0] sm:$0xff]  ;;  %v2520_v14 = vpack.c.bf16 %v745_v6, %v741_v5  ;;  %v788_v0 = vld [vmem:[%s3238_s12 + $0xf38] sm:$0xff]  ;;  %v785_v5 = vld [vmem:[%s3238_s12 + $0xf20] sm:$0xff] }
  0xe3   : > { %v783_v6 = vld [vmem:[%s3238_s12 + $0xf10] sm:$0xff]  ;;  %v796_v13 = vld [vmem:[%s3238_s12 + $0xf78] sm:$0xff] }
  0xe4   : > { %2501 = vmatpush1.bf16.msra.mxu0 %v2500_v15  ;;  %v2840_v15 = vpack.c.bf16 %v747_v9, %v743_v7  ;;  %v2858_v7 = vpack.c.bf16 %v788_v0, %v784_v25  ;;  %v790_v9 = vld [vmem:[%s3238_s12 + $0xf48] sm:$0xff]  ;;  %v812_v38 = vld [vmem:[%s3238_s12 + $0xff8] sm:$0xff]  ;;  %v3809_v0 = vld.sshfl [vmem:[%s3233_s8 + $0x10] sm:$0x33 pattern:$0x76325410] }
  0xe5   : > { %2821 = vmatpush1.bf16.msra.mxu1 %v2820_v16  ;;  %2503 = vmatprep.subr.bf16.mxu0 %v2502_v17  ;;  %v2522_v16 = vpack.c.bf16 %v754_v11, %v750_v10  ;;  %v749_v17 = vld [vmem:[%s3238_s12 + $0xe00] sm:$0xff]  ;;  %v794_v10 = vld [vmem:[%s3238_s12 + $0xf68] sm:$0xff]  ;;  %v792_v11 = vld [vmem:[%s3238_s12 + $0xf58] sm:$0xff] }
  0xe6   : > { %2823 = vmatprep.subr.bf16.mxu1 %v2822_v21  ;;  %v755_v21 = vld [vmem:[%s3238_s12 + $0xe30] sm:$0xff]  ;;  %v2524_v28 = vpack.c.bf16 %v753_v18, %v749_v17  ;;  %v793_v17 = vld [vmem:[%s3238_s12 + $0xf60] sm:$0xff]  ;;  %v820_v51 = vld [vmem:[%s3238_s12 + $0x1038] sm:$0xff] }
  0xe7   : > { %v791_v18 = vld [vmem:[%s3238_s12 + $0xf50] sm:$0xff]  ;;  %v828_v25 = vld [vmem:[%s3238_s12 + $0x1078] sm:$0xff] }
  0xe8   : > { %2505 = vmatpush1.bf16.msra.mxu0 %v2504_v29  ;;  %v2844_v29 = vpack.c.bf16 %v755_v21, %v751_v19  ;;  %v2862_v19 = vpack.c.bf16 %v796_v13, %v792_v11  ;;  %v798_v21 = vld [vmem:[%s3238_s12 + $0xf88] sm:$0xff]  ;;  %v985_v11 = vcombine.high %v3809_v0, %v3809_v0  ;;  %v832_v13 = vld [vmem:[%s3238_s12 + $0x1098] sm:$0xff] }
  0xe9   : > { %2825 = vmatpush1.bf16.msra.mxu1 %v2824_v30  ;;  %2507 = vmatprep.subr.bf16.mxu0 %v2506_v31  ;;  %v2526_v30 = vpack.c.bf16 %v762_v23, %v758_v22  ;;  %v757_v31 = vld [vmem:[%s3238_s12 + $0xe40] sm:$0xff]  ;;  %v802_v22 = vld [vmem:[%s3238_s12 + $0xfa8] sm:$0xff]  ;;  %v800_v23 = vld [vmem:[%s3238_s12 + $0xf98] sm:$0xff] }
  0xea   : > { %2827 = vmatprep.subr.bf16.mxu1 %v2826_v35  ;;  %v763_v35 = vld [vmem:[%s3238_s12 + $0xe70] sm:$0xff]  ;;  %v2528_v41 = vpack.c.bf16 %v761_v32, %v757_v31  ;;  %v801_v31 = vld [vmem:[%s3238_s12 + $0xfa0] sm:$0xff] }
  0xeb   : > { %v799_v32 = vld [vmem:[%s3238_s12 + $0xf90] sm:$0xff] }
  0xec   : > { %2509 = vmatpush1.bf16.msra.mxu0 %v2508_v42  ;;  %v2848_v42 = vpack.c.bf16 %v763_v35, %v759_v33  ;;  %v2866_v33 = vpack.c.bf16 %v804_v24, %v800_v23  ;;  %v806_v35 = vld [vmem:[%s3238_s12 + $0xfc8] sm:$0xff]  ;;  %v844_v24 = vld [vmem:[%s3238_s12 + $0x10f8] sm:$0xff] }
  0xed   : > { %2829 = vmatpush1.bf16.msra.mxu1 %v2828_v43  ;;  %2511 = vmatprep.subr.bf16.mxu0 %v2510_v44  ;;  %v2530_v43 = vpack.c.bf16 %v770_v37, %v766_v36  ;;  %v765_v44 = vld [vmem:[%s3238_s12 + $0xe80] sm:$0xff]  ;;  %v810_v36 = vld [vmem:[%s3238_s12 + $0xfe8] sm:$0xff]  ;;  %v808_v37 = vld [vmem:[%s3238_s12 + $0xfd8] sm:$0xff] }
  0xee   : > { %2831 = vmatprep.subr.bf16.mxu1 %v2830_v49  ;;  %v771_v49 = vld [vmem:[%s3238_s12 + $0xeb0] sm:$0xff]  ;;  %v2532_v53 = vpack.c.bf16 %v769_v45, %v765_v44  ;;  %v809_v44 = vld [vmem:[%s3238_s12 + $0xfe0] sm:$0xff]  ;;  %v842_v23 = vld [vmem:[%s3238_s12 + $0x10e8] sm:$0xff] }
  0xef   : > { %v807_v45 = vld [vmem:[%s3238_s12 + $0xfd0] sm:$0xff] }
  0xf0   : > { %2513 = vmatpush1.bf16.msra.mxu0 %v2512_v54  ;;  %v2852_v54 = vpack.c.bf16 %v771_v49, %v767_v47  ;;  %v2870_v47 = vpack.c.bf16 %v812_v38, %v808_v37  ;;  %v814_v49 = vld [vmem:[%s3238_s12 + $0x1008] sm:$0xff]  ;;  %v848_v37 = vld [vmem:[%s3238_s12 + $0x1118] sm:$0xff] }
  0xf1   : > { %2833 = vmatpush1.bf16.msra.mxu1 %v2832_v55  ;;  %2515 = vmatprep.subr.bf16.mxu0 %v2514_v56  ;;  %v2534_v55 = vpack.c.bf16 %v778_v50, %v774_v40  ;;  %v773_v56 = vld [vmem:[%s3238_s12 + $0xec0] sm:$0xff]  ;;  %v818_v40 = vld [vmem:[%s3238_s12 + $0x1028] sm:$0xff]  ;;  %v816_v50 = vld [vmem:[%s3238_s12 + $0x1018] sm:$0xff] }
  0xf2   : > { %2835 = vmatprep.subr.bf16.mxu1 %v2834_v60  ;;  %v779_v60 = vld [vmem:[%s3238_s12 + $0xef0] sm:$0xff]  ;;  %v2536_v1 = vpack.c.bf16 %v777_v57, %v773_v56  ;;  %v817_v56 = vld [vmem:[%s3238_s12 + $0x1020] sm:$0xff]  ;;  %v852_v38 = vld [vmem:[%s3238_s12 + $0x1138] sm:$0xff] }
  0xf3   : > { %v815_v57 = vld [vmem:[%s3238_s12 + $0x1010] sm:$0xff] }
  0xf4   : > { %2517 = vmatpush1.bf16.msra.mxu0 %v2516_v2  ;;  %v2856_v2 = vpack.c.bf16 %v779_v60, %v775_v58  ;;  %v2874_v58 = vpack.c.bf16 %v820_v51, %v816_v50  ;;  %v822_v60 = vld [vmem:[%s3238_s12 + $0x1048] sm:$0xff]  ;;  %v856_v50 = vld [vmem:[%s3238_s12 + $0x1158] sm:$0xff] }
  0xf5   : > { %2837 = vmatpush1.bf16.msra.mxu1 %v2836_v3  ;;  %2519 = vmatprep.subr.bf16.mxu0 %v2518_v4  ;;  %v2538_v3 = vpack.c.bf16 %v786_v62, %v782_v61  ;;  %v781_v4 = vld [vmem:[%s3238_s12 + $0xf00] sm:$0xff]  ;;  %v826_v61 = vld [vmem:[%s3238_s12 + $0x1068] sm:$0xff]  ;;  %v824_v62 = vld [vmem:[%s3238_s12 + $0x1058] sm:$0xff] }
  0xf6   : > { %2839 = vmatprep.subr.bf16.mxu1 %v2838_v8  ;;  %v787_v8 = vld [vmem:[%s3238_s12 + $0xf30] sm:$0xff]  ;;  %v2540_v46 = vpack.c.bf16 %v785_v5, %v781_v4  ;;  %v821_v4 = vld [vmem:[%s3238_s12 + $0x1040] sm:$0xff]  ;;  %v860_v51 = vld [vmem:[%s3238_s12 + $0x1178] sm:$0xff] }
  0xf7   : > { %v825_v5 = vld [vmem:[%s3238_s12 + $0x1060] sm:$0xff] }
  0xf8   : > { %2521 = vmatpush1.bf16.msra.mxu0 %v2520_v14  ;;  %v2860_v14 = vpack.c.bf16 %v787_v8, %v783_v6  ;;  %v823_v6 = vld [vmem:[%s3238_s12 + $0x1050] sm:$0xff] }
  0xf9   : > { %2841 = vmatpush1.bf16.msra.mxu1 %v2840_v15  ;;  %2523 = vmatprep.subr.bf16.mxu0 %v2522_v16  ;;  %v2542_v15 = vpack.c.bf16 %v794_v10, %v790_v9  ;;  %v789_v16 = vld [vmem:[%s3238_s12 + $0xf40] sm:$0xff]  ;;  %v827_v8 = vld [vmem:[%s3238_s12 + $0x1070] sm:$0xff]  ;;  %v830_v9 = vld [vmem:[%s3238_s12 + $0x1088] sm:$0xff] }
  0xfa   : > { %2843 = vmatprep.subr.bf16.mxu1 %v2842_v20  ;;  %v795_v20 = vld [vmem:[%s3238_s12 + $0xf70] sm:$0xff]  ;;  %v2544_v27 = vpack.c.bf16 %v793_v17, %v789_v16  ;;  %v834_v10 = vld [vmem:[%s3238_s12 + $0x10a8] sm:$0xff]  ;;  %v829_v17 = vld [vmem:[%s3238_s12 + $0x1080] sm:$0xff] }
  0xfb   : > { %v2562_v16 = vpack.c.bf16 %v834_v10, %v830_v9  ;;  %v870_v9 = vld [vmem:[%s3238_s12 + $0x11c8] sm:$0xff] }
  0xfc   : > { %2525 = vmatpush1.bf16.msra.mxu0 %v2524_v28  ;;  %v2864_v28 = vpack.c.bf16 %v795_v20, %v791_v18  ;;  %v833_v18 = vld [vmem:[%s3238_s12 + $0x10a0] sm:$0xff]  ;;  %v874_v10 = vld [vmem:[%s3238_s12 + $0x11e8] sm:$0xff] }
  0xfd   : > { %2845 = vmatpush1.bf16.msra.mxu1 %v2844_v29  ;;  %2527 = vmatprep.subr.bf16.mxu0 %v2526_v30  ;;  %v2546_v29 = vpack.c.bf16 %v802_v22, %v798_v21  ;;  %v797_v30 = vld [vmem:[%s3238_s12 + $0xf80] sm:$0xff]  ;;  %v835_v21 = vld [vmem:[%s3238_s12 + $0x10b0] sm:$0xff]  ;;  %v838_v22 = vld [vmem:[%s3238_s12 + $0x10c8] sm:$0xff] }
  0xfe   : > { %2847 = vmatprep.subr.bf16.mxu1 %v2846_v34  ;;  %v803_v34 = vld [vmem:[%s3238_s12 + $0xfb0] sm:$0xff]  ;;  %v2548_v39 = vpack.c.bf16 %v801_v31, %v797_v30  ;;  %v837_v30 = vld [vmem:[%s3238_s12 + $0x10c0] sm:$0xff] }
  0xff   : > { %v841_v31 = vld [vmem:[%s3238_s12 + $0x10e0] sm:$0xff] }
 0x100   : > { %2529 = vmatpush1.bf16.msra.mxu0 %v2528_v41  ;;  %v2868_v41 = vpack.c.bf16 %v803_v34, %v799_v32  ;;  %v839_v32 = vld [vmem:[%s3238_s12 + $0x10d0] sm:$0xff] }
 0x101   : > { %2849 = vmatpush1.bf16.msra.mxu1 %v2848_v42  ;;  %2531 = vmatprep.subr.bf16.mxu0 %v2530_v43  ;;  %v2550_v42 = vpack.c.bf16 %v810_v36, %v806_v35  ;;  %v805_v43 = vld [vmem:[%s3238_s12 + $0xfc0] sm:$0xff]  ;;  %v843_v34 = vld [vmem:[%s3238_s12 + $0x10f0] sm:$0xff]  ;;  %v846_v35 = vld [vmem:[%s3238_s12 + $0x1108] sm:$0xff] }
 0x102   : > { %2851 = vmatprep.subr.bf16.mxu1 %v2850_v48  ;;  %v811_v48 = vld [vmem:[%s3238_s12 + $0xff0] sm:$0xff]  ;;  %v2552_v52 = vpack.c.bf16 %v809_v44, %v805_v43  ;;  %v850_v36 = vld [vmem:[%s3238_s12 + $0x1128] sm:$0xff]  ;;  %v845_v43 = vld [vmem:[%s3238_s12 + $0x1100] sm:$0xff] }
 0x103   : > { %v849_v44 = vld [vmem:[%s3238_s12 + $0x1120] sm:$0xff] }
 0x104   : > { %2533 = vmatpush1.bf16.msra.mxu0 %v2532_v53  ;;  %v2872_v53 = vpack.c.bf16 %v811_v48, %v807_v45  ;;  %v847_v45 = vld [vmem:[%s3238_s12 + $0x1110] sm:$0xff] }
 0x105   : > { %2853 = vmatpush1.bf16.msra.mxu1 %v2852_v54  ;;  %2535 = vmatprep.subr.bf16.mxu0 %v2534_v55  ;;  %v2554_v54 = vpack.c.bf16 %v818_v40, %v814_v49  ;;  %v813_v55 = vld [vmem:[%s3238_s12 + $0x1000] sm:$0xff]  ;;  %v851_v48 = vld [vmem:[%s3238_s12 + $0x1130] sm:$0xff]  ;;  %v854_v49 = vld [vmem:[%s3238_s12 + $0x1148] sm:$0xff] }
 0x106   : > { %2855 = vmatprep.subr.bf16.mxu1 %v2854_v59  ;;  %v819_v59 = vld [vmem:[%s3238_s12 + $0x1030] sm:$0xff]  ;;  %v858_v40 = vld [vmem:[%s3238_s12 + $0x1168] sm:$0xff] }
 0x108   : > { %2537 = vmatpush1.bf16.msra.mxu0 %v2536_v1  ;;  %v2556_v1 = vpack.c.bf16 %v817_v56, %v813_v55  ;;  %v853_v55 = vld [vmem:[%s3238_s12 + $0x1140] sm:$0xff] }
 0x109   : > { %2857 = vmatpush1.bf16.msra.mxu1 %v2856_v2  ;;  %2539 = vmatprep.subr.bf16.mxu0 %v2538_v3  ;;  %v2876_v2 = vpack.c.bf16 %v819_v59, %v815_v57  ;;  %v2558_v3 = vpack.c.bf16 %v826_v61, %v822_v60  ;;  %v857_v56 = vld [vmem:[%s3238_s12 + $0x1160] sm:$0xff]  ;;  %v855_v57 = vld [vmem:[%s3238_s12 + $0x1150] sm:$0xff]  ;;  %v862_v60 = vld [vmem:[%s3238_s12 + $0x1188] sm:$0xff] }
 0x10a   : > { %2859 = vmatprep.subr.bf16.mxu1 %v2858_v7  ;;  %v2878_v7 = vpack.c.bf16 %v828_v25, %v824_v62  ;;  %v859_v59 = vld [vmem:[%s3238_s12 + $0x1170] sm:$0xff]  ;;  %v866_v61 = vld [vmem:[%s3238_s12 + $0x11a8] sm:$0xff]  ;;  %v864_v62 = vld [vmem:[%s3238_s12 + $0x1198] sm:$0xff] }
 0x10b   : > { %v868_v25 = vld [vmem:[%s3238_s12 + $0x11b8] sm:$0xff] }
 0x10c   : > { %2541 = vmatpush1.bf16.msra.mxu0 %v2540_v46  ;;  %v836_v46 = vld [vmem:[%s3238_s12 + $0x10b8] sm:$0xff] }
 0x10d   : > { %2861 = vmatpush1.bf16.msra.mxu1 %v2860_v14  ;;  %2543 = vmatprep.subr.bf16.mxu0 %v2542_v15  ;;  %v2560_v14 = vpack.c.bf16 %v825_v5, %v821_v4  ;;  %v2880_v15 = vpack.c.bf16 %v827_v8, %v823_v6  ;;  %v2882_v20 = vpack.c.bf16 %v836_v46, %v832_v13  ;;  %v861_v4 = vld [vmem:[%s3238_s12 + $0x1180] sm:$0xff]  ;;  %v863_v6 = vld [vmem:[%s3238_s12 + $0x1190] sm:$0xff]  ;;  %v876_v13 = vld [vmem:[%s3238_s12 + $0x11f8] sm:$0xff] }
 0x10e   : > { %2863 = vmatprep.subr.bf16.mxu1 %v2862_v19  ;;  %v831_v19 = vld [vmem:[%s3238_s12 + $0x1090] sm:$0xff]  ;;  %v865_v5 = vld [vmem:[%s3238_s12 + $0x11a0] sm:$0xff] }
 0x10f   : > { %v867_v8 = vld [vmem:[%s3238_s12 + $0x11b0] sm:$0xff]  ;;  %v2580_v46 = vpack.c.bf16 %v865_v5, %v861_v4  ;;  %v905_v4 = vld [vmem:[%s3238_s12 + $0x12e0] sm:$0xff] }
 0x110   : > { %2545 = vmatpush1.bf16.msra.mxu0 %v2544_v27  ;;  %v2564_v27 = vpack.c.bf16 %v833_v18, %v829_v17  ;;  %v873_v17 = vld [vmem:[%s3238_s12 + $0x11e0] sm:$0xff]  ;;  %v871_v18 = vld [vmem:[%s3238_s12 + $0x11d0] sm:$0xff] }
 0x111   : > { %2865 = vmatpush1.bf16.msra.mxu1 %v2864_v28  ;;  %2547 = vmatprep.subr.bf16.mxu0 %v2546_v29  ;;  %v2884_v28 = vpack.c.bf16 %v835_v21, %v831_v19  ;;  %v2566_v29 = vpack.c.bf16 %v842_v23, %v838_v22  ;;  %v878_v21 = vld [vmem:[%s3238_s12 + $0x1208] sm:$0xff]  ;;  %v880_v23 = vld [vmem:[%s3238_s12 + $0x1218] sm:$0xff]  ;;  %v903_v5 = vld [vmem:[%s3238_s12 + $0x12d0] sm:$0xff] }
 0x112   : > { %2867 = vmatprep.subr.bf16.mxu1 %v2866_v33  ;;  %v882_v22 = vld [vmem:[%s3238_s12 + $0x1228] sm:$0xff] }
 0x114   : > { %2549 = vmatpush1.bf16.msra.mxu0 %v2548_v39  ;;  %v2568_v39 = vpack.c.bf16 %v841_v31, %v837_v30  ;;  %v881_v30 = vld [vmem:[%s3238_s12 + $0x1220] sm:$0xff]  ;;  %v879_v31 = vld [vmem:[%s3238_s12 + $0x1210] sm:$0xff] }
 0x115   : > { %2869 = vmatpush1.bf16.msra.mxu1 %v2868_v41  ;;  %2551 = vmatprep.subr.bf16.mxu0 %v2550_v42  ;;  %v2888_v41 = vpack.c.bf16 %v843_v34, %v839_v32  ;;  %v2570_v42 = vpack.c.bf16 %v850_v36, %v846_v35  ;;  %v886_v34 = vld [vmem:[%s3238_s12 + $0x1248] sm:$0xff]  ;;  %v888_v36 = vld [vmem:[%s3238_s12 + $0x1258] sm:$0xff] }
 0x116   : > { %2871 = vmatprep.subr.bf16.mxu1 %v2870_v47  ;;  %v2890_v47 = vpack.c.bf16 %v852_v38, %v848_v37  ;;  %v890_v35 = vld [vmem:[%s3238_s12 + $0x1268] sm:$0xff]  ;;  %v892_v37 = vld [vmem:[%s3238_s12 + $0x1278] sm:$0xff] }
 0x118   : > { %2553 = vmatpush1.bf16.msra.mxu0 %v2552_v52  ;;  %v2572_v52 = vpack.c.bf16 %v849_v44, %v845_v43  ;;  %v889_v43 = vld [vmem:[%s3238_s12 + $0x1260] sm:$0xff]  ;;  %v887_v44 = vld [vmem:[%s3238_s12 + $0x1250] sm:$0xff] }
 0x119   : > { %2873 = vmatpush1.bf16.msra.mxu1 %v2872_v53  ;;  %2555 = vmatprep.subr.bf16.mxu0 %v2554_v54  ;;  %v2892_v53 = vpack.c.bf16 %v851_v48, %v847_v45  ;;  %v2574_v54 = vpack.c.bf16 %v858_v40, %v854_v49  ;;  %v2910_v45 = vpack.c.bf16 %v892_v37, %v888_v36  ;;  %v894_v48 = vld [vmem:[%s3238_s12 + $0x1288] sm:$0xff]  ;;  %v896_v40 = vld [vmem:[%s3238_s12 + $0x1298] sm:$0xff] }
 0x11a   : > { %2875 = vmatprep.subr.bf16.mxu1 %v2874_v58  ;;  %v2894_v58 = vpack.c.bf16 %v860_v51, %v856_v50  ;;  %v898_v49 = vld [vmem:[%s3238_s12 + $0x12a8] sm:$0xff]  ;;  %v900_v50 = vld [vmem:[%s3238_s12 + $0x12b8] sm:$0xff] }
 0x11b   : > { %1274 = vmatmul.mubr.f32.vlgmr.msra.gmra.mrb[0].mxu0 %v3672_v26  ;;  %v932_v36 = vld [vmem:[%s3238_s12 + $0x13b8] sm:$0xff] }
 0x11c   : > { %2557 = vmatpush1.bf16.msra.mxu0 %v2556_v1  ;;  %1629 = vmatmul.mubr.f32.vlgmr.msra.gmra.mrb[0].mxu1 %v3672_v26  ;;  %v840_v26 = vld [vmem:[%s3238_s12 + $0x10d8] sm:$0xff]  ;;  %v2576_v1 = vpack.c.bf16 %v857_v56, %v853_v55  ;;  %v897_v55 = vld [vmem:[%s3238_s12 + $0x12a0] sm:$0xff]  ;;  %v895_v56 = vld [vmem:[%s3238_s12 + $0x1290] sm:$0xff] }
 0x11d   : > { %2877 = vmatpush1.bf16.msra.mxu1 %v2876_v2  ;;  %2559 = vmatprep.subr.bf16.mxu0 %v2558_v3  ;;  %v2886_v33 = vpack.c.bf16 %v844_v24, %v840_v26  ;;  %v2896_v2 = vpack.c.bf16 %v859_v59, %v855_v57  ;;  %v2578_v3 = vpack.c.bf16 %v866_v61, %v862_v60  ;;  %v884_v26 = vld [vmem:[%s3238_s12 + $0x1238] sm:$0xff]  ;;  %v902_v59 = vld [vmem:[%s3238_s12 + $0x12c8] sm:$0xff] }
 0x11e   : > { %2879 = vmatprep.subr.bf16.mxu1 %v2878_v7  ;;  %1344 = vmatprep.mubr.f32.mxu0 %v985_v11  ;;  %v2898_v7 = vpack.c.bf16 %v868_v25, %v864_v62  ;;  %v2906_v32 = vpack.c.bf16 %v884_v26, %v880_v23  ;;  %v2914_v57 = vpack.c.bf16 %v900_v50, %v896_v40  ;;  %v906_v60 = vld [vmem:[%s3238_s12 + $0x12e8] sm:$0xff]  ;;  %v904_v61 = vld [vmem:[%s3238_s12 + $0x12d8] sm:$0xff] }
 0x11f   : > { %1699 = vmatprep.mubr.f32.mxu1 %v985_v11  ;;  %v872_v11 = vld [vmem:[%s3238_s12 + $0x11d8] sm:$0xff] }
 0x120   : > { %2561 = vmatpush1.bf16.msra.mxu0 %v2560_v14  ;;  %v2900_v14 = vpack.c.bf16 %v867_v8, %v863_v6  ;;  %v2902_v19 = vpack.c.bf16 %v876_v13, %v872_v11  ;;  %v908_v62 = vld [vmem:[%s3238_s12 + $0x12f8] sm:$0xff]  ;;  %v910_v8 = vld [vmem:[%s3238_s12 + $0x1308] sm:$0xff] }
 0x121   : > { %2881 = vmatpush1.bf16.msra.mxu1 %v2880_v15  ;;  %2563 = vmatprep.subr.bf16.mxu0 %v2562_v16  ;;  %v2582_v15 = vpack.c.bf16 %v874_v10, %v870_v9  ;;  %v869_v16 = vld [vmem:[%s3238_s12 + $0x11c0] sm:$0xff]  ;;  %v2918_v6 = vpack.c.bf16 %v908_v62, %v904_v61  ;;  %v914_v9 = vld [vmem:[%s3238_s12 + $0x1328] sm:$0xff]  ;;  %v912_v10 = vld [vmem:[%s3238_s12 + $0x1318] sm:$0xff] }
 0x122   : > { %2883 = vmatprep.subr.bf16.mxu1 %v2882_v20  ;;  %v875_v20 = vld [vmem:[%s3238_s12 + $0x11f0] sm:$0xff]  ;;  %v2584_v24 = vpack.c.bf16 %v873_v17, %v869_v16  ;;  %v916_v11 = vld [vmem:[%s3238_s12 + $0x1338] sm:$0xff]  ;;  %v913_v16 = vld [vmem:[%s3238_s12 + $0x1320] sm:$0xff] }
 0x123   : > { %v911_v17 = vld [vmem:[%s3238_s12 + $0x1310] sm:$0xff]  ;;  %v924_v23 = vld [vmem:[%s3238_s12 + $0x1378] sm:$0xff] }
 0x124   : > { %2565 = vmatpush1.bf16.msra.mxu0 %v2564_v27  ;;  %v2904_v27 = vpack.c.bf16 %v875_v20, %v871_v18  ;;  %v2922_v18 = vpack.c.bf16 %v916_v11, %v912_v10  ;;  %v918_v20 = vld [vmem:[%s3238_s12 + $0x1348] sm:$0xff]  ;;  %v940_v40 = vld [vmem:[%s3238_s12 + $0x13f8] sm:$0xff]  ;;  %v1775_v11 = vld [vmem:[%s4470_s3 + $0x10] sm:$0xff] (!%p2256_p6) }
 0x125   : > { %2885 = vmatpush1.bf16.msra.mxu1 %v2884_v28  ;;  %2567 = vmatprep.subr.bf16.mxu0 %v2566_v29  ;;  %v2586_v28 = vpack.c.bf16 %v882_v22, %v878_v21  ;;  %v877_v29 = vld [vmem:[%s3238_s12 + $0x1200] sm:$0xff]  ;;  %v922_v21 = vld [vmem:[%s3238_s12 + $0x1368] sm:$0xff]  ;;  %v920_v22 = vld [vmem:[%s3238_s12 + $0x1358] sm:$0xff] }
 0x126   : > { %2887 = vmatprep.subr.bf16.mxu1 %v2886_v33  ;;  %v883_v33 = vld [vmem:[%s3238_s12 + $0x1230] sm:$0xff]  ;;  %v2588_v38 = vpack.c.bf16 %v881_v30, %v877_v29  ;;  %v921_v29 = vld [vmem:[%s3238_s12 + $0x1360] sm:$0xff] }
 0x127   : > { %v919_v30 = vld [vmem:[%s3238_s12 + $0x1350] sm:$0xff] }
 0x128   : > { %2569 = vmatpush1.bf16.msra.mxu0 %v2568_v39  ;;  %v2908_v39 = vpack.c.bf16 %v883_v33, %v879_v31  ;;  %v2926_v31 = vpack.c.bf16 %v924_v23, %v920_v22  ;;  %v926_v33 = vld [vmem:[%s3238_s12 + $0x1388] sm:$0xff]  ;;  %v1779_v22 = vld [vmem:[%s4470_s3 + $0x30] sm:$0xff] (!%p2256_p6) }
 0x129   : > { %2889 = vmatpush1.bf16.msra.mxu1 %v2888_v41  ;;  %2571 = vmatprep.subr.bf16.mxu0 %v2570_v42  ;;  %v2590_v41 = vpack.c.bf16 %v890_v35, %v886_v34  ;;  %v885_v42 = vld [vmem:[%s3238_s12 + $0x1240] sm:$0xff]  ;;  %v930_v34 = vld [vmem:[%s3238_s12 + $0x13a8] sm:$0xff]  ;;  %v928_v35 = vld [vmem:[%s3238_s12 + $0x1398] sm:$0xff] }
 0x12a   : > { %2891 = vmatprep.subr.bf16.mxu1 %v2890_v47  ;;  %v891_v47 = vld [vmem:[%s3238_s12 + $0x1270] sm:$0xff]  ;;  %v2592_v51 = vpack.c.bf16 %v889_v43, %v885_v42  ;;  %v929_v42 = vld [vmem:[%s3238_s12 + $0x13a0] sm:$0xff] }
 0x12b   : > { %v927_v43 = vld [vmem:[%s3238_s12 + $0x1390] sm:$0xff] }
 0x12c   : > { %2573 = vmatpush1.bf16.msra.mxu0 %v2572_v52  ;;  %v2912_v52 = vpack.c.bf16 %v891_v47, %v887_v44  ;;  %v2930_v44 = vpack.c.bf16 %v932_v36, %v928_v35  ;;  %v934_v47 = vld [vmem:[%s3238_s12 + $0x13c8] sm:$0xff]  ;;  %v1781_v35 = vld [vmem:[%s4470_s3 + $0x40] sm:$0xff] (!%p2256_p6)  ;;  %v1783_v36 = vld [vmem:[%s4470_s3 + $0x50] sm:$0xff] (!%p2256_p6) }
 0x12d   : > { %2893 = vmatpush1.bf16.msra.mxu1 %v2892_v53  ;;  %2575 = vmatprep.subr.bf16.mxu0 %v2574_v54  ;;  %v2594_v53 = vpack.c.bf16 %v898_v49, %v894_v48  ;;  %v893_v54 = vld [vmem:[%s3238_s12 + $0x1280] sm:$0xff]  ;;  %v938_v48 = vld [vmem:[%s3238_s12 + $0x13e8] sm:$0xff]  ;;  %v936_v49 = vld [vmem:[%s3238_s12 + $0x13d8] sm:$0xff] }
 0x12e   : > { %2895 = vmatprep.subr.bf16.mxu1 %v2894_v58  ;;  %v899_v58 = vld [vmem:[%s3238_s12 + $0x12b0] sm:$0xff]  ;;  %v2596_v25 = vpack.c.bf16 %v897_v55, %v893_v54  ;;  %v937_v54 = vld [vmem:[%s3238_s12 + $0x13e0] sm:$0xff]  ;;  %v2934_v55 = vpack.c.bf16 %v940_v40, %v936_v49 }
 0x12f   : > { %v1787_v40 = vld [vmem:[%s4470_s3 + $0x70] sm:$0xff] (!%p2256_p6) }
 0x130   : > { %2577 = vmatpush1.bf16.msra.mxu0 %v2576_v1  ;;  %v2916_v1 = vpack.c.bf16 %v899_v58, %v895_v56  ;;  %v935_v56 = vld [vmem:[%s3238_s12 + $0x13d0] sm:$0xff] }
 0x131   : > { %2897 = vmatpush1.bf16.msra.mxu1 %v2896_v2  ;;  %2579 = vmatprep.subr.bf16.mxu0 %v2578_v3  ;;  %v2598_v2 = vpack.c.bf16 %v906_v60, %v902_v59  ;;  %v901_v3 = vld [vmem:[%s3238_s12 + $0x12c0] sm:$0xff] }
 0x132   : > { %2899 = vmatprep.subr.bf16.mxu1 %v2898_v7  ;;  %v907_v7 = vld [vmem:[%s3238_s12 + $0x12f0] sm:$0xff]  ;;  %v2600_v13 = vpack.c.bf16 %v905_v4, %v901_v3 }
 0x134   : > { %2581 = vmatpush1.bf16.msra.mxu0 %v2580_v46  ;;  %v2920_v46 = vpack.c.bf16 %v907_v7, %v903_v5  ;;  %v297_v5 = vld [vmem:[#allocation2] sm:$0xff] }
 0x135   : > { %2901 = vmatpush1.bf16.msra.mxu1 %v2900_v14  ;;  %2583 = vmatprep.subr.bf16.mxu0 %v2582_v15  ;;  %v2602_v14 = vpack.c.bf16 %v914_v9, %v910_v8  ;;  %v909_v15 = vld [vmem:[%s3238_s12 + $0x1300] sm:$0xff]  ;;  %v1776_v8 = vld [vmem:[%s4470_s3 + $0x18] sm:$0xff] (!%p2256_p6) }
 0x136   : > { %2903 = vmatprep.subr.bf16.mxu1 %v2902_v19  ;;  %v915_v19 = vld [vmem:[%s3238_s12 + $0x1330] sm:$0xff]  ;;  %v2604_v26 = vpack.c.bf16 %v913_v16, %v909_v15  ;;  %v1773_v9 = vld [vmem:[%s4470_s3] sm:$0xff] (!%p2256_p6) }
 0x137   : > { %v1837_v16 = vld [vmem:[%s4470_s3 + $0x200] sm:$0xff] (!%p2256_p6) }
 0x138   : > { %2585 = vmatpush1.bf16.msra.mxu0 %v2584_v24  ;;  %v2924_v24 = vpack.c.bf16 %v915_v19, %v911_v17  ;;  %v1839_v17 = vld [vmem:[%s4470_s3 + $0x210] sm:$0xff] (!%p2256_p6) }
 0x139   : > { %2905 = vmatpush1.bf16.msra.mxu1 %v2904_v27  ;;  %2587 = vmatprep.subr.bf16.mxu0 %v2586_v28  ;;  %v2606_v27 = vpack.c.bf16 %v922_v21, %v918_v20  ;;  %v917_v28 = vld [vmem:[%s3238_s12 + $0x1340] sm:$0xff]  ;;  %v3004_v19 = vpack.c.bf16 (!%p2256_p6), %v1839_v17, %v1837_v16  ;;  %v1780_v20 = vld [vmem:[%s4470_s3 + $0x38] sm:$0xff] (!%p2256_p6)  ;;  %v1862_v17 = vld [vmem:[%s4470_s3 + $0x2c8] sm:$0xff] (!%p2256_p6) }
 0x13a   : > { %2907 = vmatprep.subr.bf16.mxu1 %v2906_v32  ;;  %v923_v32 = vld [vmem:[%s3238_s12 + $0x1370] sm:$0xff]  ;;  %v2608_v37 = vpack.c.bf16 %v921_v29, %v917_v28  ;;  %v1777_v21 = vld [vmem:[%s4470_s3 + $0x20] sm:$0xff] (!%p2256_p6)  ;;  %v1800_v16 = vld [vmem:[%s4470_s3 + $0xd8] sm:$0xff] (!%p2256_p6) }
 0x13b   : > { %v1841_v28 = vld [vmem:[%s4470_s3 + $0x220] sm:$0xff] (!%p2256_p6) }
 0x13c   : > { %2589 = vmatpush1.bf16.msra.mxu0 %v2588_v38  ;;  %v2928_v38 = vpack.c.bf16 %v923_v32, %v919_v30  ;;  %v1843_v30 = vld [vmem:[%s4470_s3 + $0x230] sm:$0xff] (!%p2256_p6)  ;;  %v1784_v32 = vld [vmem:[%s4470_s3 + $0x58] sm:$0xff] (!%p2256_p6) }
 0x13d   : > { %2909 = vmatpush1.bf16.msra.mxu1 %v2908_v39  ;;  %2591 = vmatprep.subr.bf16.mxu0 %v2590_v41  ;;  %v2610_v39 = vpack.c.bf16 %v930_v34, %v926_v33  ;;  %v925_v41 = vld [vmem:[%s3238_s12 + $0x1380] sm:$0xff]  ;;  %v3008_v33 = vpack.c.bf16 (!%p2256_p6), %v1843_v30, %v1841_v28  ;;  %v1802_v28 = vld [vmem:[%s4470_s3 + $0xe8] sm:$0xff] (!%p2256_p6) }
 0x13e   : > { %2911 = vmatprep.subr.bf16.mxu1 %v2910_v45  ;;  %v931_v45 = vld [vmem:[%s3238_s12 + $0x13b0] sm:$0xff]  ;;  %v2612_v50 = vpack.c.bf16 %v929_v42, %v925_v41  ;;  %v2948_v42 = vpack.c.bf16 (!%p2256_p6), %v1783_v36, %v1781_v35  ;;  %v1866_v30 = vld [vmem:[%s4470_s3 + $0x2e8] sm:$0xff] (!%p2256_p6)  ;;  %v1801_v35 = vld [vmem:[%s4470_s3 + $0xe0] sm:$0xff] (!%p2256_p6) }
 0x13f   : > { %v1847_v41 = vld [vmem:[%s4470_s3 + $0x250] sm:$0xff] (!%p2256_p6) }
 0x140   : > { %2593 = vmatpush1.bf16.msra.mxu0 %v2592_v51  ;;  %v2932_v51 = vpack.c.bf16 %v931_v45, %v927_v43  ;;  %v1788_v45 = vld [vmem:[%s4470_s3 + $0x78] sm:$0xff] (!%p2256_p6)  ;;  %v1803_v36 = vld [vmem:[%s4470_s3 + $0xf0] sm:$0xff] (!%p2256_p6) }
 0x141   : > { %2913 = vmatpush1.bf16.msra.mxu1 %v2912_v52  ;;  %2595 = vmatprep.subr.bf16.mxu0 %v2594_v53  ;;  %v2614_v52 = vpack.c.bf16 %v938_v48, %v934_v47  ;;  %v933_v53 = vld [vmem:[%s3238_s12 + $0x13c0] sm:$0xff] }
 0x142   : > { %2915 = vmatprep.subr.bf16.mxu1 %v2914_v57  ;;  %v939_v57 = vld [vmem:[%s3238_s12 + $0x13f0] sm:$0xff]  ;;  %v2616_v58 = vpack.c.bf16 %v937_v54, %v933_v53  ;;  %v1785_v47 = vld [vmem:[%s4470_s3 + $0x60] sm:$0xff] (!%p2256_p6) }
 0x143   : > { %v2936_v59 = vpack.c.bf16 %v939_v57, %v935_v56  ;;  %v1849_v53 = vld [vmem:[%s4470_s3 + $0x260] sm:$0xff] (!%p2256_p6)  ;;  %v1851_v54 = vld [vmem:[%s4470_s3 + $0x270] sm:$0xff] (!%p2256_p6)  ;;  %v1792_v56 = vld [vmem:[%s4470_s3 + $0x98] sm:$0xff] (!%p2256_p6)  ;;  %v2952_v57 = vpack.c.bf16 (!%p2256_p6), %v1787_v40, %v1785_v47 }
 0x144   : > { %2597 = vmatpush1.bf16.msra.mxu0 %v2596_v25  ;;  %v1807_v40 = vld [vmem:[%s4470_s3 + $0x110] sm:$0xff] (!%p2256_p6) }
 0x145   : > { %2917 = vmatpush1.bf16.msra.mxu1 %v2916_v1  ;;  %2599 = vmatprep.subr.bf16.mxu0 %v2598_v2 }
 0x146   : > { %2919 = vmatprep.subr.bf16.mxu1 %v2918_v6 }
 0x148   : > { %2601 = vmatpush1.bf16.msra.mxu0 %v2600_v13  ;;  %v1838_v13 = vld [vmem:[%s4470_s3 + $0x208] sm:$0xff] (!%p2256_p6) }
 0x149   : > { %2921 = vmatpush1.bf16.msra.mxu1 %v2920_v46  ;;  %2603 = vmatprep.subr.bf16.mxu0 %v2602_v14  ;;  %v1840_v46 = vld [vmem:[%s4470_s3 + $0x218] sm:$0xff] (!%p2256_p6)  ;;  %v2940_v14 = vpack.c.bf16 (!%p2256_p6), %v1775_v11, %v1773_v9  ;;  %v1795_v11 = vld [vmem:[%s4470_s3 + $0xb0] sm:$0xff] (!%p2256_p6) }
 0x14a   : > { %2923 = vmatprep.subr.bf16.mxu1 %v2922_v18  ;;  %v3002_v15 = vpack.c.bf16 (!%p2256_p6), %v1840_v46, %v1838_v13  ;;  %v1778_v18 = vld [vmem:[%s4470_s3 + $0x28] sm:$0xff] (!%p2256_p6)  ;;  %v1857_v13 = vld [vmem:[%s4470_s3 + $0x2a0] sm:$0xff] (!%p2256_p6) }
 0x14b   : > { %v2942_v23 = vpack.c.bf16 (!%p2256_p6), %v1780_v20, %v1778_v18  ;;  %v1864_v18 = vld [vmem:[%s4470_s3 + $0x2d8] sm:$0xff] (!%p2256_p6) }
 0x14c   : > { %2605 = vmatpush1.bf16.msra.mxu0 %v2604_v26  ;;  %v2944_v26 = vpack.c.bf16 (!%p2256_p6), %v1779_v22, %v1777_v21  ;;  %v1797_v22 = vld [vmem:[%s4470_s3 + $0xc0] sm:$0xff] (!%p2256_p6) }
 0x14d   : > { %2925 = vmatpush1.bf16.msra.mxu1 %v2924_v24  ;;  %2607 = vmatprep.subr.bf16.mxu0 %v2606_v27  ;;  %v1842_v24 = vld [vmem:[%s4470_s3 + $0x228] sm:$0xff] (!%p2256_p6)  ;;  %v1844_v27 = vld [vmem:[%s4470_s3 + $0x238] sm:$0xff] (!%p2256_p6) }
 0x14e   : > { %2927 = vmatprep.subr.bf16.mxu1 %v2926_v31  ;;  %v3006_v29 = vpack.c.bf16 (!%p2256_p6), %v1844_v27, %v1842_v24  ;;  %v1782_v31 = vld [vmem:[%s4470_s3 + $0x48] sm:$0xff] (!%p2256_p6)  ;;  %v3026_v24 = vpack.c.bf16 (!%p2256_p6), %v1864_v18, %v1862_v17  ;;  %v1863_v27 = vld [vmem:[%s4470_s3 + $0x2d0] sm:$0xff] (!%p2256_p6)  ;;  %v1739_v17 = vsub.s32 (!%p2256_p6), 0, %v3325_v63 }
 0x14f   : > { %v2946_v34 = vpack.c.bf16 (!%p2256_p6), %v1784_v32, %v1782_v31  ;;  %v1868_v31 = vld [vmem:[%s4470_s3 + $0x2f8] sm:$0xff] (!%p2256_p6) }
 0x150   : > { %2609 = vmatpush1.bf16.msra.mxu0 %v2608_v37  ;;  %v1846_v37 = vld [vmem:[%s4470_s3 + $0x248] sm:$0xff] (!%p2256_p6) }
 0x151   : > { %2929 = vmatpush1.bf16.msra.mxu1 %v2928_v38  ;;  %2611 = vmatprep.subr.bf16.mxu0 %v2610_v39  ;;  %v1848_v38 = vld [vmem:[%s4470_s3 + $0x258] sm:$0xff] (!%p2256_p6)  ;;  %v1845_v39 = vld [vmem:[%s4470_s3 + $0x240] sm:$0xff] (!%p2256_p6) }
 0x152   : > { %2931 = vmatprep.subr.bf16.mxu1 %v2930_v44  ;;  %v3010_v43 = vpack.c.bf16 (!%p2256_p6), %v1848_v38, %v1846_v37  ;;  %v1786_v44 = vld [vmem:[%s4470_s3 + $0x68] sm:$0xff] (!%p2256_p6)  ;;  %v3012_v48 = vpack.c.bf16 (!%p2256_p6), %v1847_v41, %v1845_v39  ;;  %v1865_v37 = vld [vmem:[%s4470_s3 + $0x2e0] sm:$0xff] (!%p2256_p6)  ;;  %v3030_v38 = vpack.c.bf16 (!%p2256_p6), %v1868_v31, %v1866_v30  ;;  %v1867_v39 = vld [vmem:[%s4470_s3 + $0x2f0] sm:$0xff] (!%p2256_p6) }
 0x153   : > { %v2950_v49 = vpack.c.bf16 (!%p2256_p6), %v1788_v45, %v1786_v44  ;;  %v1806_v41 = vld [vmem:[%s4470_s3 + $0x108] sm:$0xff] (!%p2256_p6)  ;;  %v1872_v44 = vld [vmem:[%s4470_s3 + $0x318] sm:$0xff] (!%p2256_p6)  ;;  %v2968_v45 = vpack.c.bf16 (!%p2256_p6), %v1803_v36, %v1801_v35  ;;  %v3032_v47 = vpack.c.bf16 (!%p2256_p6), %v1867_v39, %v1865_v37  ;;  %v1735_v35 = vld [vmem:[%s4469_s2] sm:$0xf] (!%p2256_p6) }
 0x154   : > { %2613 = vmatpush1.bf16.msra.mxu0 %v2612_v50  ;;  %v1850_v50 = vld [vmem:[%s4470_s3 + $0x268] sm:$0xff] (!%p2256_p6)  ;;  %v1824_v31 = vld [vmem:[%s4470_s3 + $0x198] sm:$0xff] (!%p2256_p6)  ;;  %v1740_v36 = vrot.slane (!%p2256_p6), %v1735_v35, %v1739_v17 }
 0x155   : > { %2933 = vmatpush1.bf16.msra.mxu1 %v2932_v51  ;;  %2615 = vmatprep.subr.bf16.mxu0 %v2614_v52  ;;  %v1852_v51 = vld [vmem:[%s4470_s3 + $0x278] sm:$0xff] (!%p2256_p6)  ;;  %v1822_v30 = vld [vmem:[%s4470_s3 + $0x188] sm:$0xff] (!%p2256_p6) }
 0x156   : > { %2935 = vmatprep.subr.bf16.mxu1 %v2934_v55  ;;  %v3014_v52 = vpack.c.bf16 (!%p2256_p6), %v1852_v51, %v1850_v50  ;;  %v1790_v55 = vld [vmem:[%s4470_s3 + $0x88] sm:$0xff] (!%p2256_p6)  ;;  %v1869_v50 = vld [vmem:[%s4470_s3 + $0x300] sm:$0xff] (!%p2256_p6) }
 0x158   : > { %2617 = vmatpush1.bf16.msra.mxu0 %v2616_v58  ;;  %v1854_v58 = vld [vmem:[%s4470_s3 + $0x288] sm:$0xff] (!%p2256_p6) }
 0x159   : > { %2937 = vmatpush1.bf16.msra.mxu1 %v2936_v59  ;;  %3003 = vmatprep.subr.bf16.mxu0 (!%p2256_p6), %v3002_v15  ;;  %v1856_v59 = vld [vmem:[%s4470_s3 + $0x298] sm:$0xff] (!%p2256_p6)  ;;  %v1798_v15 = vld [vmem:[%s4470_s3 + $0xc8] sm:$0xff] (!%p2256_p6) }
 0x15a   : > { %v2962_v21 = vpack.c.bf16 (!%p2256_p6), %v1800_v16, %v1798_v15  ;;  %v1882_v15 = vld [vmem:[%s4470_s3 + $0x368] sm:$0xff] (!%p2256_p6)  ;;  %v1884_v16 = vld [vmem:[%s4470_s3 + $0x378] sm:$0xff] (!%p2256_p6) }
 0x15b   : > { %1345 = vmatmul.mubr.f32.vlgmr.msra.gmra.mrb[0].mxu0 %v3809_v0 }
 0x15c   : > { %1700 = vmatmul.mubr.f32.vlgmr.msra.gmra.mrb[0].mxu1 %v3809_v0  ;;  %v1774_v0 = vld [vmem:[%s4470_s3 + $0x8] sm:$0xff] (!%p2256_p6)  ;;  %3005 = vmatpush1.bf16.msra.mxu0 (!%p2256_p6), %v3004_v19 }
 0x15d   : > { %v2938_v10 = vpack.c.bf16 (!%p2256_p6), %v1776_v8, %v1774_v0  ;;  %3007 = vmatprep.subr.bf16.mxu0 (!%p2256_p6), %v3006_v29  ;;  %v1804_v29 = vld [vmem:[%s4470_s3 + $0xf8] sm:$0xff] (!%p2256_p6) }
 0x15f   : > { %2939 = vmatprep.subr.bf16.mxu1 (!%p2256_p6), %v2938_v10  ;;  %v1793_v10 = vld [vmem:[%s4470_s3 + $0xa0] sm:$0xff] (!%p2256_p6) }
 0x160   : > { %2941 = vmatpush1.bf16.msra.mxu1 (!%p2256_p6), %v2940_v14  ;;  %3009 = vmatpush1.bf16.msra.mxu0 (!%p2256_p6), %v3008_v33  ;;  %v1859_v14 = vld [vmem:[%s4470_s3 + $0x2b0] sm:$0xff] (!%p2256_p6)  ;;  %v2960_v19 = vpack.c.bf16 (!%p2256_p6), %v1795_v11, %v1793_v10  ;;  %v1877_v10 = vld [vmem:[%s4470_s3 + $0x340] sm:$0xff] (!%p2256_p6) }
 0x161   : > { %2943 = vmatprep.subr.bf16.mxu1 (!%p2256_p6), %v2942_v23  ;;  %3011 = vmatprep.subr.bf16.mxu0 (!%p2256_p6), %v3010_v43  ;;  %v3024_v20 = vpack.c.bf16 (!%p2256_p6), %v1859_v14, %v1857_v13  ;;  %v1799_v23 = vld [vmem:[%s4470_s3 + $0xd0] sm:$0xff] (!%p2256_p6)  ;;  %v1870_v43 = vld [vmem:[%s4470_s3 + $0x308] sm:$0xff] (!%p2256_p6)  ;;  %v1820_v14 = vld [vmem:[%s4470_s3 + $0x178] sm:$0xff] (!%p2256_p6) }
 0x162   : > { %v2964_v32 = vpack.c.bf16 (!%p2256_p6), %v1799_v23, %v1797_v22  ;;  %v3034_v51 = vpack.c.bf16 (!%p2256_p6), %v1872_v44, %v1870_v43  ;;  %v1879_v13 = vld [vmem:[%s4470_s3 + $0x350] sm:$0xff] (!%p2256_p6)  ;;  %v1747_v22 = vsub.s32 (!%p2256_p6), 2, %v3325_v63  ;;  %v1751_v23 = vsub.s32 (!%p2256_p6), 3, %v3325_v63  ;;  %v1821_v43 = vld [vmem:[%s4470_s3 + $0x180] sm:$0xff] (!%p2256_p6) }
 0x163   : > { %v1823_v44 = vld [vmem:[%s4470_s3 + $0x190] sm:$0xff] (!%p2256_p6) }
 0x164   : > { %2945 = vmatpush1.bf16.msra.mxu1 (!%p2256_p6), %v2944_v26  ;;  %3013 = vmatpush1.bf16.msra.mxu0 (!%p2256_p6), %v3012_v48  ;;  %v1861_v26 = vld [vmem:[%s4470_s3 + $0x2c0] sm:$0xff] (!%p2256_p6)  ;;  %v1752_v39 = vrot.slane (!%p2256_p6), %v1735_v35, %v1751_v23 }
 0x165   : > { %2947 = vmatprep.subr.bf16.mxu1 (!%p2256_p6), %v2946_v34  ;;  %3015 = vmatprep.subr.bf16.mxu0 (!%p2256_p6), %v3014_v52  ;;  %v3028_v33 = vpack.c.bf16 (!%p2256_p6), %v1863_v27, %v1861_v26  ;;  %v2966_v34 = vpack.c.bf16 (!%p2256_p6), %v1804_v29, %v1802_v28  ;;  %v1871_v52 = vld [vmem:[%s4470_s3 + $0x310] sm:$0xff] (!%p2256_p6)  ;;  %v3044_v26 = vpack.c.bf16 (!%p2256_p6), %v1879_v13, %v1877_v10  ;;  %v1881_v27 = vld [vmem:[%s4470_s3 + $0x360] sm:$0xff] (!%p2256_p6) }
 0x166   : > { %v3046_v28 = vpack.c.bf16 (!%p2256_p6), %v1884_v16, %v1882_v15  ;;  %v1883_v29 = vld [vmem:[%s4470_s3 + $0x370] sm:$0xff] (!%p2256_p6)  ;;  %v1829_v10 = vld [vmem:[%s4470_s3 + $0x1c0] sm:$0xff] (!%p2256_p6)  ;;  %v1834_v15 = vld [vmem:[%s4470_s3 + $0x1e8] sm:$0xff] (!%p2256_p6) }
 0x167   : > { %v1893_v13 = vld [vmem:[%s4470_s3 + $0x3c0] sm:$0xff] (!%p2256_p6)  ;;  %v1836_v16 = vld [vmem:[%s4470_s3 + $0x1f8] sm:$0xff] (!%p2256_p6) }
 0x168   : > { %2949 = vmatpush1.bf16.msra.mxu1 (!%p2256_p6), %v2948_v42  ;;  %v1808_v42 = vld [vmem:[%s4470_s3 + $0x118] sm:$0xff] (!%p2256_p6) }
 0x169   : > { %2951 = vmatprep.subr.bf16.mxu1 (!%p2256_p6), %v2950_v49  ;;  %v2970_v48 = vpack.c.bf16 (!%p2256_p6), %v1808_v42, %v1806_v41  ;;  %v1805_v49 = vld [vmem:[%s4470_s3 + $0x100] sm:$0xff] (!%p2256_p6)  ;;  %v3048_v41 = vpack.c.bf16 (!%p2256_p6), %v1883_v29, %v1881_v27  ;;  %v2986_v42 = vpack.c.bf16 (!%p2256_p6), %v1824_v31, %v1822_v30  ;;  %v2998_v27 = vpack.c.bf16 (!%p2256_p6), %v1836_v16, %v1834_v15  ;;  %v1835_v29 = vld [vmem:[%s4470_s3 + $0x1f0] sm:$0xff] (!%p2256_p6) }
 0x16a   : > { %v1897_v30 = vld [vmem:[%s4470_s3 + $0x3e0] sm:$0xff] (!%p2256_p6)  ;;  %v2109_v16 = vld [vmem:[%s4472_s5 + $0xf0] sm:$0xff] (!%p2256_p6) }
 0x16c   : > { %2953 = vmatpush1.bf16.msra.mxu1 (!%p2256_p6), %v2952_v57  ;;  %v2972_v57 = vpack.c.bf16 (!%p2256_p6), %v1807_v40, %v1805_v49  ;;  %v1826_v49 = vld [vmem:[%s4470_s3 + $0x1a8] sm:$0xff] (!%p2256_p6)  ;;  %v1828_v40 = vld [vmem:[%s4470_s3 + $0x1b8] sm:$0xff] (!%p2256_p6) }
 0x22e   : > { %v1346_v60 = vpop.f32.mrb[0].mxu0 }
 0x22f   : > { %v1701_v61 = vpop.f32.mrb[0].mxu1  ;;  %v1348_v62 = vpop.f32.mrb[1].mxu0 }
 0x230   : > { %v1710_v25 = vcombine.low %v1346_v60, %v1348_v62  ;;  %v1703_v1 = vpop.f32.mrb[1].mxu1  ;;  %v3016_v60 = vpack.c.bf16 (!%p2256_p6), %v1851_v54, %v1849_v53  ;;  %v1789_v62 = vld [vmem:[%s4470_s3 + $0x80] sm:$0xff] (!%p2256_p6)  ;;  %v1810_v53 = vld [vmem:[%s4470_s3 + $0x128] sm:$0xff] (!%p2256_p6)  ;;  %v1812_v54 = vld [vmem:[%s4470_s3 + $0x138] sm:$0xff] (!%p2256_p6) }
 0x231   : > { %v1711_v2 = vcombine.low %v1701_v61, %v1703_v1  ;;  %v2954_v61 = vpack.c.bf16 (!%p2256_p6), %v1792_v56, %v1790_v55  ;;  %v1853_v1 = vld [vmem:[%s4470_s3 + $0x280] sm:$0xff] (!%p2256_p6)  ;;  %v1874_v55 = vld [vmem:[%s4470_s3 + $0x328] sm:$0xff] (!%p2256_p6)  ;;  %v1876_v56 = vld [vmem:[%s4470_s3 + $0x338] sm:$0xff] (!%p2256_p6) }
 0x232   : > { %v1718_v3 = vrot.slane %v1710_v25, %v3336_v12  ;;  %v1791_v25 = vld [vmem:[%s4470_s3 + $0x90] sm:$0xff] (!%p2256_p6)  ;;  %3017 = vmatpush1.bf16.msra.mxu0 (!%p2256_p6), %v3016_v60  ;;  %v1809_v60 = vld [vmem:[%s4470_s3 + $0x120] sm:$0xff] (!%p2256_p6) }
 0x233   : > { %v1725_v4 = vrot.slane %v1711_v2, %v3336_v12  ;;  %1733 = sbr.rel (%p2256_p6) target bundleno = 1052 (0x41c), region = 56  ;;  %v3018_v2 = vpack.c.bf16 (!%p2256_p6), %v1856_v59, %v1854_v58  ;;  %v2956_v0 = vpack.c.bf16 (!%p2256_p6), %v1791_v25, %v1789_v62  ;;  %2955 = vmatprep.subr.bf16.mxu1 (!%p2256_p6), %v2954_v61  ;;  %v3036_v58 = vpack.c.bf16 (!%p2256_p6), %v1871_v52, %v1869_v50  ;;  %v1811_v61 = vld [vmem:[%s4470_s3 + $0x130] sm:$0xff] (!%p2256_p6)  ;;  %v1873_v62 = vld [vmem:[%s4470_s3 + $0x320] sm:$0xff] (!%p2256_p6)  ;;  %v1890_v52 = vld [vmem:[%s4470_s3 + $0x3a8] sm:$0xff] (!%p2256_p6) }
 0x234   : > { %v2974_v59 = vpack.c.bf16 (!%p2256_p6), %v1812_v54, %v1810_v53  ;;  %v3038_v25 = vpack.c.bf16 (!%p2256_p6), %v1876_v56, %v1874_v55  ;;  %v1892_v53 = vld [vmem:[%s4470_s3 + $0x3b8] sm:$0xff] (!%p2256_p6)  ;;  %v2988_v54 = vpack.c.bf16 (!%p2256_p6), %v1823_v44, %v1821_v43  ;;  %v1825_v55 = vld [vmem:[%s4470_s3 + $0x1a0] sm:$0xff] (!%p2256_p6)  ;;  %v2097_v43 = vld [vmem:[%s4472_s5 + $0x90] sm:$0xff] (!%p2256_p6) }
 0x235   : > { %v1726_v6 = vcombine.low %v1718_v3, %v1725_v4  ;;  %v1855_v3 = vld [vmem:[%s4470_s3 + $0x290] sm:$0xff] (!%p2256_p6)  ;;  %v1794_v4 = vld [vmem:[%s4470_s3 + $0xa8] sm:$0xff] (!%p2256_p6)  ;;  %3019 = vmatprep.subr.bf16.mxu0 (!%p2256_p6), %v3018_v2  ;;  %2957 = vmatpush1.bf16.msra.mxu1 (!%p2256_p6), %v2956_v0  ;;  %v2098_v44 = vld [vmem:[%s4472_s5 + $0x98] sm:$0xff] (!%p2256_p6) }
 0x236   : > { %v3020_v8 = vpack.c.bf16 (!%p2256_p6), %v1855_v3, %v1853_v1  ;;  %v1875_v1 = vld [vmem:[%s4470_s3 + $0x330] sm:$0xff] (!%p2256_p6)  ;;  %v1814_v2 = vld [vmem:[%s4470_s3 + $0x148] sm:$0xff] (!%p2256_p6)  ;;  %v1816_v3 = vld [vmem:[%s4470_s3 + $0x158] sm:$0xff] (!%p2256_p6) }
 0x237   : > { %v1728_v7 = vadd.f32 %v1726_v6, %v297_v5  ;;  %v1796_v5 = vld [vmem:[%s4470_s3 + $0xb8] sm:$0xff] (!%p2256_p6)  ;;  %v1858_v6 = vld [vmem:[%s4470_s3 + $0x2a8] sm:$0xff] (!%p2256_p6)  ;;  %v2978_v0 = vpack.c.bf16 (!%p2256_p6), %v1816_v3, %v1814_v2 }
 0x238   : > { %v2958_v9 = vpack.c.bf16 (!%p2256_p6), %v1796_v5, %v1794_v4  ;;  %3021 = vmatpush1.bf16.msra.mxu0 (!%p2256_p6), %v3020_v8  ;;  %v1878_v4 = vld [vmem:[%s4470_s3 + $0x348] sm:$0xff] (!%p2256_p6)  ;;  %v1880_v5 = vld [vmem:[%s4470_s3 + $0x358] sm:$0xff] (!%p2256_p6)  ;;  %v1813_v8 = vld [vmem:[%s4470_s3 + $0x140] sm:$0xff] (!%p2256_p6) }
 0x239   : > { %1729 = vst [vmem:[#allocation2] sm:$0xff] %v1728_v7  ;;  %v1860_v7 = vld [vmem:[%s4470_s3 + $0x2b8] sm:$0xff] (!%p2256_p6)  ;;  %v3042_v11 = vpack.c.bf16 (!%p2256_p6), %v1880_v5, %v1878_v4  ;;  %v1830_v2 = vld [vmem:[%s4470_s3 + $0x1c8] sm:$0xff] (!%p2256_p6) }
 0x23a   : > { %v3022_v46 = vpack.c.bf16 %v1860_v7, %v1858_v6  ;;  %2959 = vmatprep.subr.bf16.mxu1 %v2958_v9  ;;  %v2976_v6 = vpack.c.bf16 %v1811_v61, %v1809_v60  ;;  %v3040_v7 = vpack.c.bf16 %v1875_v1, %v1873_v62  ;;  %v1815_v9 = vld [vmem:[%s4470_s3 + $0x150] sm:$0xff]  ;;  %v1889_v61 = vld [vmem:[%s4470_s3 + $0x3a0] sm:$0xff]  ;;  %v1832_v3 = vld [vmem:[%s4470_s3 + $0x1d8] sm:$0xff] }
 0x23b   : > { %2961 = vmatpush1.bf16.msra.mxu1 %v2960_v19  ;;  %v2980_v18 = vpack.c.bf16 %v1815_v9, %v1813_v8  ;;  %v1817_v19 = vld [vmem:[%s4470_s3 + $0x160] sm:$0xff]  ;;  %v1827_v60 = vld [vmem:[%s4470_s3 + $0x1b0] sm:$0xff]  ;;  %v1894_v5 = vld [vmem:[%s4470_s3 + $0x3c8] sm:$0xff]  ;;  %v2994_v9 = vpack.c.bf16 %v1832_v3, %v1830_v2 }
 0x23c   : > { %3023 = vmatprep.subr.bf16.mxu0 %v3022_v46  ;;  %2963 = vmatprep.subr.bf16.mxu1 %v2962_v21  ;;  %v1818_v46 = vld [vmem:[%s4470_s3 + $0x168] sm:$0xff]  ;;  %v1743_v21 = vsub.s32 1, %v3325_v63  ;;  %v1891_v1 = vld [vmem:[%s4470_s3 + $0x3b0] sm:$0xff]  ;;  %v2087_v2 = vld [vmem:[%s4472_s5 + $0x40] sm:$0xff] }
 0x23d   : > { %3025 = vmatpush1.bf16.msra.mxu0 %v3024_v20  ;;  %v1819_v20 = vld [vmem:[%s4470_s3 + $0x170] sm:$0xff]  ;;  %v3056_v8 = vpack.c.bf16 %v1891_v1, %v1889_v61  ;;  %v2103_v61 = vld [vmem:[%s4472_s5 + $0xc0] sm:$0xff]  ;;  %v2088_v3 = vld [vmem:[%s4472_s5 + $0x48] sm:$0xff] }
 0x23e   : > { %3027 = vmatprep.subr.bf16.mxu0 %v3026_v24  ;;  %v2982_v24 = vpack.c.bf16 %v1820_v14, %v1818_v46  ;;  %v1744_v37 = vrot.slane %v1735_v35, %v1743_v21  ;;  %v1895_v14 = vld [vmem:[%s4470_s3 + $0x3d0] sm:$0xff] }
 0x23f   : > { %2965 = vmatpush1.bf16.msra.mxu1 %v2964_v32  ;;  %v2984_v32 = vpack.c.bf16 %v1819_v20, %v1817_v19  ;;  %v1898_v19 = vld [vmem:[%s4470_s3 + $0x3e8] sm:$0xff]  ;;  %v1900_v20 = vld [vmem:[%s4470_s3 + $0x3f8] sm:$0xff] }
 0x240   : > { %2967 = vmatprep.subr.bf16.mxu1 %v2966_v34  ;;  %v1888_v34 = vld [vmem:[%s4470_s3 + $0x398] sm:$0xff]  ;;  %v1753_v50 = vcombine.low %v1740_v36, %v1744_v37  ;;  %v1734_v62 = vld [vmem:[#allocation2] sm:$0xff]  ;;  %v3062_v31 = vpack.c.bf16 %v1900_v20, %v1898_v19  ;;  %v2096_v36 = vld [vmem:[%s4472_s5 + $0x88] sm:$0xff] }
 0x241   : > { %3029 = vmatpush1.bf16.msra.mxu0 %v3028_v33  ;;  %v1886_v33 = vld [vmem:[%s4470_s3 + $0x388] sm:$0xff]  ;;  %v2093_v20 = vld [vmem:[%s4472_s5 + $0x70] sm:$0xff] }
 0x242   : > { %3031 = vmatprep.subr.bf16.mxu0 %v3030_v38  ;;  %v1748_v38 = vrot.slane %v1735_v35, %v1747_v22  ;;  %v1761_v56 = vrot.slane %v1753_v50, %v3336_v12  ;;  %v2095_v35 = vld [vmem:[%s4472_s5 + $0x80] sm:$0xff]  ;;  %v2100_v50 = vld [vmem:[%s4472_s5 + $0xa8] sm:$0xff] }
 0x243   : > { %2969 = vmatpush1.bf16.msra.mxu1 %v2968_v45  ;;  %v1885_v45 = vld [vmem:[%s4470_s3 + $0x380] sm:$0xff] }
 0x244   : > { %2971 = vmatprep.subr.bf16.mxu1 %v2970_v48  ;;  %v1887_v48 = vld [vmem:[%s4470_s3 + $0x390] sm:$0xff] }
 0x245   : > { %3033 = vmatpush1.bf16.msra.mxu0 %v3032_v47  ;;  %v3050_v47 = vpack.c.bf16 %v1888_v34, %v1886_v33 }
 0x246   : > { %3035 = vmatprep.subr.bf16.mxu0 %v3034_v51  ;;  %v1754_v51 = vcombine.low %v1748_v38, %v1752_v39 }
 0x247   : > { %2973 = vmatpush1.bf16.msra.mxu1 %v2972_v57 }
 0x248   : > { %2975 = vmatprep.subr.bf16.mxu1 %v2974_v59  ;;  %v1768_v57 = vrot.slane %v1754_v51, %v3336_v12  ;;  %v2990_v59 = vpack.c.bf16 %v1828_v40, %v1826_v49  ;;  %v2082_v49 = vld [vmem:[%s4472_s5 + $0x18] sm:$0xff]  ;;  %v2099_v40 = vld [vmem:[%s4472_s5 + $0xa0] sm:$0xff] }
 0x249   : > { %3037 = vmatpush1.bf16.msra.mxu0 %v3036_v58  ;;  %v3052_v58 = vpack.c.bf16 %v1887_v48, %v1885_v45  ;;  %v2081_v48 = vld [vmem:[%s4472_s5 + $0x10] sm:$0xff] }
 0x24a   : > { %3039 = vmatprep.subr.bf16.mxu0 %v3038_v25  ;;  %v3054_v25 = vpack.c.bf16 %v1892_v53, %v1890_v52  ;;  %v1769_v4 = vcombine.low %v1761_v56, %v1768_v57  ;;  %v3072_v51 = vpack.c.bf16 %v2082_v49, %v2081_v48  ;;  %v3074_v52 = vpack.c.bf16 %v2100_v50, %v2099_v40  ;;  %v2083_v53 = vld [vmem:[%s4472_s5 + $0x20] sm:$0xff]  ;;  %v2102_v56 = vld [vmem:[%s4472_s5 + $0xb8] sm:$0xff] }
 0x24b   : > { %2977 = vmatpush1.bf16.msra.mxu1 %v2976_v6  ;;  %v1896_v6 = vld [vmem:[%s4470_s3 + $0x3d8] sm:$0xff] }
 0x24c   : > { %2979 = vmatprep.subr.bf16.mxu1 %v2978_v0  ;;  %v1771_v0 = vadd.f32 %v1769_v4, %v1734_v62  ;;  %v3058_v46 = vpack.c.bf16 %v1896_v6, %v1894_v5  ;;  %v2104_v62 = vld [vmem:[%s4472_s5 + $0xc8] sm:$0xff]  ;;  %v2105_v4 = vld [vmem:[%s4472_s5 + $0xd0] sm:$0xff]  ;;  %v2106_v5 = vld [vmem:[%s4472_s5 + $0xd8] sm:$0xff]  ;;  %v3084_v6 = vpack.c.bf16 %v2088_v3, %v2087_v2 }
 0x24d   : > { %3041 = vmatpush1.bf16.msra.mxu0 %v3040_v7  ;;  %v2992_v7 = vpack.c.bf16 %v1827_v60, %v1825_v55  ;;  %v2101_v55 = vld [vmem:[%s4472_s5 + $0xb0] sm:$0xff]  ;;  %v2086_v60 = vld [vmem:[%s4472_s5 + $0x38] sm:$0xff]  ;;  %v3082_v1 = vpack.c.bf16 %v2104_v62, %v2103_v61 }
 0x24e   : > { %3043 = vmatprep.subr.bf16.mxu0 %v3042_v11  ;;  %v1831_v11 = vld [vmem:[%s4470_s3 + $0x1d0] sm:$0xff] }
 0x24f   : > { %2981 = vmatpush1.bf16.msra.mxu1 %v2980_v18  ;;  %v1772_v18 = vmax.f32 %v1771_v0, 0.0  ;;  %v2996_v22 = vpack.c.bf16 %v1831_v11, %v1829_v10  ;;  %v2089_v0 = vld [vmem:[%s4472_s5 + $0x50] sm:$0xff]  ;;  %v2107_v10 = vld [vmem:[%s4472_s5 + $0xe0] sm:$0xff]  ;;  %v2108_v11 = vld [vmem:[%s4472_s5 + $0xe8] sm:$0xff] }
 0x250   : > { %2983 = vmatprep.subr.bf16.mxu1 %v2982_v24  ;;  %v3060_v24 = vpack.c.bf16 %v1895_v14, %v1893_v13  ;;  %v3090_v13 = vpack.c.bf16 %v2108_v11, %v2107_v10  ;;  %v2092_v14 = vld [vmem:[%s4472_s5 + $0x68] sm:$0xff] }
 0x251   : > { %3045 = vmatpush1.bf16.msra.mxu0 %v3044_v26  ;;  %v1921_v23 = vrot.slane %v1772_v18, %v3336_v12  ;;  %v1914_v26 = vcombine.high %v1772_v18, %v1772_v18  ;;  %v2110_v18 = vld [vmem:[%s4472_s5 + $0xf8] sm:$0xff] }
 0x252   : > { %3047 = vmatprep.subr.bf16.mxu0 %v3046_v28  ;;  %v1833_v28 = vld [vmem:[%s4470_s3 + $0x1e0] sm:$0xff]  ;;  %v3094_v19 = vpack.c.bf16 %v2110_v18, %v2109_v16 }
 0x253   : > { %2985 = vmatpush1.bf16.msra.mxu1 %v2984_v32  ;;  %v1899_v32 = vld [vmem:[%s4470_s3 + $0x3f0] sm:$0xff]  ;;  %v1929_v33 = vcombine.high %v1921_v23, %v1921_v23  ;;  %v1928_v34 = vrot.slane %v1914_v26, %v3336_v12  ;;  %v3000_v37 = vpack.c.bf16 %v1835_v29, %v1833_v28  ;;  %v2079_v12 = vld [vmem:[%s4472_s5] sm:$0xff] }
 0x254   : > { %2987 = vmatprep.subr.bf16.mxu1 %v2986_v42  ;;  %v3064_v39 = vpack.c.bf16 %v1899_v32, %v1897_v30  ;;  %v2080_v42 = vld [vmem:[%s4472_s5 + $0x8] sm:$0xff]  ;;  %v1901_v26 = vld [vmem:[%s4471_s4] sm:$0x3] }
 0x255   : > { %3049 = vmatpush1.bf16.msra.mxu0 %v3048_v41  ;;  %1999 = vmatprep.mubr.f32.mxu1 %v1929_v33  ;;  %v1930_v38 = vcombine.high %v1928_v34, %v1928_v34  ;;  %v3066_v41 = vpack.c.bf16 %v2096_v36, %v2095_v35  ;;  %v3068_v45 = vpack.c.bf16 %v2080_v42, %v2079_v12 }
 0x256   : > { %3051 = vmatprep.subr.bf16.mxu0 %v3050_v47  ;;  %v3070_v47 = vpack.c.bf16 %v2098_v44, %v2097_v43 }
 0x257   : > { %2989 = vmatpush1.bf16.msra.mxu1 %v2988_v54  ;;  %2070 = vmatprep.mubr.f32.mxu0 %v1930_v38  ;;  %v2084_v54 = vld [vmem:[%s4472_s5 + $0x28] sm:$0xff] }
 0x258   : > { %2991 = vmatprep.subr.bf16.mxu1 %v2990_v59  ;;  %v3076_v57 = vpack.c.bf16 %v2084_v54, %v2083_v53  ;;  %v2085_v59 = vld [vmem:[%s4472_s5 + $0x30] sm:$0xff] }
 0x259   : > { %3053 = vmatpush1.bf16.msra.mxu0 %v3052_v58  ;;  %v3078_v58 = vpack.c.bf16 %v2102_v56, %v2101_v55 }
 0x25a   : > { %3055 = vmatprep.subr.bf16.mxu0 %v3054_v25  ;;  %v3080_v25 = vpack.c.bf16 %v2086_v60, %v2085_v59 }
 0x25b   : > { %2993 = vmatpush1.bf16.msra.mxu1 %v2992_v7  ;;  %v3086_v7 = vpack.c.bf16 %v2106_v5, %v2105_v4 }
 0x25c   : > { %2995 = vmatprep.subr.bf16.mxu1 %v2994_v9 }
 0x25d   : > { %3057 = vmatpush1.bf16.msra.mxu0 %v3056_v8  ;;  %v2090_v8 = vld [vmem:[%s4472_s5 + $0x58] sm:$0xff] }
 0x25e   : > { %3059 = vmatprep.subr.bf16.mxu0 %v3058_v46  ;;  %v3088_v9 = vpack.c.bf16 %v2090_v8, %v2089_v0  ;;  %v2091_v46 = vld [vmem:[%s4472_s5 + $0x60] sm:$0xff] }
 0x25f   : > { %2997 = vmatpush1.bf16.msra.mxu1 %v2996_v22  ;;  %v3092_v15 = vpack.c.bf16 %v2092_v14, %v2091_v46  ;;  %v2094_v22 = vld [vmem:[%s4472_s5 + $0x78] sm:$0xff] }
 0x260   : > { %2999 = vmatprep.subr.bf16.mxu1 %v2998_v27  ;;  %v1910_v27 = vrot.slane %v1901_v26, %v1743_v21 }
 0x261   : > { %3061 = vmatpush1.bf16.msra.mxu0 %v3060_v24  ;;  %v1906_v24 = vrot.slane %v1901_v26, %v1739_v17  ;;  %v2257_v17 = vld [vmem:[%s4473_s6] ss:$0 sm:$0xff] }
 0x262   : > { %3063 = vmatprep.subr.bf16.mxu0 %v3062_v31 }
 0x263   : > { %3001 = vmatpush1.bf16.msra.mxu1 %v3000_v37 }
 0x264   : > { %3067 = vmatprep.subr.bf16.mxu1 %v3066_v41 }
 0x265   : > { %3065 = vmatpush1.bf16.msra.mxu0 %v3064_v39 }
 0x266   : > { %2000 = vmatmul.mubr.f32.vlgmr.msra.gmra.mrb[0].mxu1 %v1921_v23  ;;  %v3096_v23 = vpack.c.bf16 %v2094_v22, %v2093_v20 }
 0x267   : > { %3069 = vmatpush3.bf16.msra.mxu1 %v3068_v45 }
 0x268   : > { %2071 = vmatmul.mubr.f32.vlgmr.msra.gmra.mrb[0].mxu0 %v1928_v34  ;;  %3071 = vmatprep.subr.bf16.mxu1 %v3070_v47 }
 0x26b   : > { %3073 = vmatpush3.bf16.msra.mxu1 %v3072_v51 }
 0x26c   : > { %3075 = vmatprep.subr.bf16.mxu1 %v3074_v52 }
 0x26f   : > { %3077 = vmatpush3.bf16.msra.mxu1 %v3076_v57 }
 0x270   : > { %3079 = vmatprep.subr.bf16.mxu1 %v3078_v58 }
 0x273   : > { %3081 = vmatpush3.bf16.msra.mxu1 %v3080_v25 }
 0x274   : > { %3083 = vmatprep.subr.bf16.mxu1 %v3082_v1 }
 0x277   : > { %3085 = vmatpush3.bf16.msra.mxu1 %v3084_v6 }
 0x278   : > { %3087 = vmatprep.subr.bf16.mxu1 %v3086_v7 }
 0x27b   : > { %3089 = vmatpush3.bf16.msra.mxu1 %v3088_v9 }
 0x27c   : > { %3091 = vmatprep.subr.bf16.mxu1 %v3090_v13 }
 0x27f   : > { %3093 = vmatpush3.bf16.msra.mxu1 %v3092_v15 }
 0x280   : > { %3095 = vmatprep.subr.bf16.mxu1 %v3094_v19 }
 0x283   : > { %3097 = vmatpush3.bf16.msra.mxu1 %v3096_v23 }
 0x339   : > { %v2001_v28 = vpop.f32.mrb[0].mxu1 }
 0x33a   : > { %v2002_v29 = vadd.f32 %v2001_v28, %v1906_v24  ;;  %v2003_v30 = vpop.f32.mrb[1].mxu1 }
 0x33b   : > { %v2072_v31 = vpop.f32.mrb[0].mxu0  ;;  %v2004_v32 = vadd.f32 %v2003_v30, %v1910_v27 }
 0x33c   : > { %v2074_v33 = vpop.f32.mrb[1].mxu0  ;;  %v2073_v34 = vadd.f32 %v2072_v31, %v2002_v29 }
 0x33d   : > { %v2075_v35 = vadd.f32 %v2074_v33, %v2004_v32 }
 0x33e   : > { %v2077_v37 = vmax.f32 %v2073_v34, 0.0 }
 0x33f   : > { %v2078_v36 = vmax.f32 %v2075_v35, 0.0 }
 0x341   : > { %2182 = vmatprep.mubr.f32.mxu1 %v2078_v36 }
 0x342   : > { %2183 = vmatmul.mubr.f32.vlgmr.msra.gmra.mrb[2].mxu1 %v2077_v37 }
 0x415   : > { %v2295_v38 = vpop.f32.mrb[2].mxu1 }
 0x416   : > { %v2296_v39 = vpop.f32.mrb[3].mxu1 }
 0x417   : > { %v2297_v63 = vadd.f32 %v2296_v39, %v2295_v38 }
 0x419   : > { %v2185_v21 = vadd.f32 %v2297_v63, %v2257_v17 }
 0x41b   : > { %2188 = vst [vmem:[#allocation3] sm:$0x3] %v2185_v21 }
 0x41c PF: > { %p3122_p7 = scmp.eq.s32.totalorder %s3224_s25, 4  ;;  %s3177_s26 = smov [#allocation3]  }
 0x41d   : > { %s2196_s27 = sshll.u32 %s3177_s26, 4  ;;  %s2197_s27 = int_to_ptr.vmem [resolvable:$true] %s2196_s27 }
 0x41e   : > { %s3137_s28 = scalar_lea.vmem %s2197_s27, 32  ;;  %p3144_p11 = scmp.lt.s32.totalorder %s2197_s27, %s2197_s27 }
 0x41f   : > { %p3138_p8 = scmp.ne.s32.totalorder %s2197_s27, %s3137_s28  ;;  %p3145_p12 = scmp.lt.s32.totalorder %s3137_s28, %s3137_s28 }
 0x421   : > { %p3139_p9 = pnand %p3138_p8, %p3122_p7  ;;  %p3146_p13 = por %p3145_p12, %p3144_p11 }
 0x423   : > { %p3140_p10 = pneg %p3139_p9 }
 0x425   : > { %p3147_p0 = pnand %p3146_p13, %p3140_p10 }
 0x427   : > { %3150 = shalt.err (!%p3147_p0)
}
 0x428   : > { %s3151_s8 = scalar_lea.hbm %s4474_s7, 32 }
 0x429   : > { %p3152_p1 = scmp.ne.s32.totalorder %s4474_s7, %s3151_s8  ;;  %p3157_p4 = scmp.lt.u32.totalorder %s3151_s8, %s4474_s7 }
 0x42b   : > { %p3153_p2 = pnand %p3152_p1, %p3122_p7 }
 0x42d   : > { %p3154_p3 = pneg %p3153_p2 }
 0x42f   : > { %p3159_p5 = pnand %p3157_p4, %p3154_p3 }
 0x431   : > { %3162 = shalt.err (!%p3159_p5)
}
 0x432   : > { %3119 = dma.vmem_to_hbm [thread:$0]  (%p3122_p7), %s2197_s27, 32, %s4474_s7, [#allocation4]  }
 0x433   : > { %3168 = dma.done.wait (%p3122_p7), [#allocation4], 32  }
 0x434   : > { %3170 = vsyncadd (%p3122_p7), [#allocation4], 4294967264 }
 0x435 PF: > { %s18_s24 = sadd.s32 1, %s3173_s24  }
 0x436   : > { %p15_p6 = scmp.ge.s32.totalorder %s18_s24, 7  }
 0x438   :  { %17 = sbr.rel (!%p15_p6) target bundleno = 1 (0x1), region = 86 }
 0x43f   :  { %2209 = vsyncpa [#allocation4], 1 }
 0x440   :  { %2211 = vsyncpa [#allocation4 + $0x1], 1 }

// kernel: convnet_forward.4
= control target key start
LH: loop header
LB: loop body
LE: loop exit
PB: predicated region body
PF: predicated region fallthrough
CT: control target
= control target key end

     0   :  { %s10549_s21 = smov 0   ;;  %s16002_s0 = inlined_call_operand.vmem [shape: f32[80,3200], index: 0, kind: input, shape index: {}]   ;;  %s16003_s1 = inlined_call_operand.vmem [shape: f32[80,3200], index: 1, kind: input, shape index: {}]   ;;  %s16004_s2 = inlined_call_operand.vmem [shape: f32[80,3200], index: 2, kind: input, shape index: {}]   ;;  %s16005_s3 = inlined_call_operand.vmem [shape: f32[80,3200], index: 3, kind: input, shape index: {}]   ;;  %s16006_s4 = inlined_call_operand.vmem [shape: f32[3200,256], index: 4, kind: input, shape index: {}]   ;;  %s16007_s5 = inlined_call_operand.vmem [shape: f32[1,256], index: 5, kind: input, shape index: {}]   ;;  %s16008_s6 = inlined_call_operand.vmem [shape: f32[80,256], index: 6, kind: output, shape index: {}]  }
   0x1 LB: > { %s6761_s22 = sadd.s32 4294967295, %s10511_s21   ;;  %p6765_p0 = scmp.ge.s32.totalorder %s10511_s21, 1  ;;  %s10511_s21 = sphi %s10549_s21, %s16_s21  }
   0x2   : > { %p250_p1 = scmp.lt.s32.totalorder %s10511_s21, 3 }
   0x4   : > { %p251_p2 = pnand %p6765_p0, %p250_p1 }
   0x6   : > { %254 = sbr.rel (%p251_p2) target bundleno = 1854 (0x73e), region = 44 }
   0xd   : > { %v336_v0 = vld [vmem:[%s16006_s4 + $0x8] sm:$0xff]  ;;  %v338_v1 = vld [vmem:[%s16006_s4 + $0x18] sm:$0xff]  ;;  %v335_v2 = vld [vmem:[%s16006_s4] sm:$0xff]  ;;  %s300_s17 = smul.u32 5, %s6761_s22 }
   0xe   : > { %v10566_v3 = vpack.c.bf16 %v338_v1, %v336_v0  ;;  %v337_v4 = vld [vmem:[%s16006_s4 + $0x10] sm:$0xff]  ;;  %v340_v5 = vld [vmem:[%s16006_s4 + $0x28] sm:$0xff]  ;;  %v342_v6 = vld [vmem:[%s16006_s4 + $0x38] sm:$0xff] }
   0xf   : > { %v10577_v7 = vpack.c.bf16 %v337_v4, %v335_v2  ;;  %v10579_v8 = vpack.c.bf16 %v342_v6, %v340_v5  ;;  %v339_v9 = vld [vmem:[%s16006_s4 + $0x20] sm:$0xff]  ;;  %v341_v10 = vld [vmem:[%s16006_s4 + $0x30] sm:$0xff]  ;;  %v344_v11 = vld [vmem:[%s16006_s4 + $0x48] sm:$0xff]  ;;  %p301_p3 = scmp.lt.s32.totalorder %s300_s17, 9 }
  0x10   : > { %6776 = vmatprep.subr.bf16.mxu0 %v10566_v3  ;;  %7576 = vmatprep.subr.bf16.mxu1 %v10566_v3  ;;  %v346_v12 = vld [vmem:[%s16006_s4 + $0x58] sm:$0xff]  ;;  %v10597_v13 = vpack.c.bf16 %v341_v10, %v339_v9  ;;  %v343_v15 = vld [vmem:[%s16006_s4 + $0x40] sm:$0xff]  ;;  %v345_v16 = vld [vmem:[%s16006_s4 + $0x50] sm:$0xff] }
  0x11   : > { %6778 = vmatpush1.bf16.msra.mxu0 %v10577_v7  ;;  %7578 = vmatpush1.bf16.msra.mxu1 %v10577_v7  ;;  %v10601_v14 = vpack.c.bf16 %v346_v12, %v344_v11  ;;  %v348_v17 = vld [vmem:[%s16006_s4 + $0x68] sm:$0xff]  ;;  %v350_v18 = vld [vmem:[%s16006_s4 + $0x78] sm:$0xff]  ;;  %v10617_v19 = vpack.c.bf16 %v345_v16, %v343_v15  ;;  %v347_v21 = vld [vmem:[%s16006_s4 + $0x60] sm:$0xff]  ;;  %s17382_s17 = smov (!%p301_p3, %s300_s17), 9 }
  0x12   : > { %6780 = vmatprep.subr.bf16.mxu0 %v10579_v8  ;;  %7580 = vmatprep.subr.bf16.mxu1 %v10579_v8  ;;  %v10621_v20 = vpack.c.bf16 %v350_v18, %v348_v17  ;;  %v349_v22 = vld [vmem:[%s16006_s4 + $0x70] sm:$0xff]  ;;  %v352_v23 = vld [vmem:[%s16006_s4 + $0x88] sm:$0xff]  ;;  %v354_v24 = vld [vmem:[%s16006_s4 + $0x98] sm:$0xff]  ;;  %s10658_s23 = smul.u32 200, %s17382_s17 }
  0x13   : > { %v10639_v25 = vpack.c.bf16 %v349_v22, %v347_v21  ;;  %v10643_v26 = vpack.c.bf16 %v354_v24, %v352_v23  ;;  %v351_v27 = vld [vmem:[%s16006_s4 + $0x80] sm:$0xff]  ;;  %v353_v28 = vld [vmem:[%s16006_s4 + $0x90] sm:$0xff]  ;;  %v356_v29 = vld [vmem:[%s16006_s4 + $0xa8] sm:$0xff] }
  0x14   : > { %v358_v30 = vld [vmem:[%s16006_s4 + $0xb8] sm:$0xff]  ;;  %v10662_v31 = vpack.c.bf16 %v353_v28, %v351_v27  ;;  %v355_v33 = vld [vmem:[%s16006_s4 + $0xa0] sm:$0xff]  ;;  %v357_v34 = vld [vmem:[%s16006_s4 + $0xb0] sm:$0xff]  ;;  %s10684_s10 = scalar_lea.vmem %s16002_s0, %s10658_s23  ;;  %s10690_s13 = scalar_lea.vmem %s16003_s1, %s10658_s23 }
  0x15   : > { %6782 = vmatpush1.bf16.msra.mxu0 %v10597_v13  ;;  %7582 = vmatpush1.bf16.msra.mxu1 %v10597_v13  ;;  %v10666_v32 = vpack.c.bf16 %v358_v30, %v356_v29  ;;  %v360_v35 = vld [vmem:[%s16006_s4 + $0xc8] sm:$0xff]  ;;  %v362_v36 = vld [vmem:[%s16006_s4 + $0xd8] sm:$0xff]  ;;  %v10694_v37 = vpack.c.bf16 %v357_v34, %v355_v33  ;;  %v359_v39 = vld [vmem:[%s16006_s4 + $0xc0] sm:$0xff]  ;;  %s14852_s28 = scalar_lea.vmem %s16004_s2, %s10658_s23  ;;  %s14858_s7 = scalar_lea.vmem %s16005_s3, %s10658_s23 }
  0x16   : > { %6784 = vmatprep.subr.bf16.mxu0 %v10601_v14  ;;  %7584 = vmatprep.subr.bf16.mxu1 %v10601_v14  ;;  %v10698_v38 = vpack.c.bf16 %v362_v36, %v360_v35  ;;  %v361_v40 = vld [vmem:[%s16006_s4 + $0xd0] sm:$0xff]  ;;  %v1137_v41 = vld [vmem:[%s10684_s10 + $0x8] sm:$0xff]  ;;  %v366_v43 = vld [vmem:[%s16006_s4 + $0xf8] sm:$0xff] }
  0x17   : > { %v364_v42 = vld [vmem:[%s16006_s4 + $0xe8] sm:$0xff]  ;;  %1336 = vmatprep.mubr.f32.mxu0 %v1137_v41  ;;  %v10716_v45 = vpack.c.bf16 %v361_v40, %v359_v39  ;;  %v363_v47 = vld [vmem:[%s16006_s4 + $0xe0] sm:$0xff]  ;;  %v365_v48 = vld [vmem:[%s16006_s4 + $0xf0] sm:$0xff] }
  0x18   : > { %v2518_v44 = vld [vmem:[%s10690_s13 + $0x8] sm:$0xff]  ;;  %v10720_v46 = vpack.c.bf16 %v366_v43, %v364_v42  ;;  %v370_v50 = vld [vmem:[%s16006_s4 + $0x118] sm:$0xff]  ;;  %v10736_v51 = vpack.c.bf16 %v365_v48, %v363_v47  ;;  %v367_v53 = vld [vmem:[%s16006_s4 + $0x100] sm:$0xff] }
  0x19   : > { %6786 = vmatpush1.bf16.msra.mxu0 %v10617_v19  ;;  %7586 = vmatpush1.bf16.msra.mxu1 %v10617_v19  ;;  %v368_v49 = vld [vmem:[%s16006_s4 + $0x108] sm:$0xff]  ;;  %v369_v54 = vld [vmem:[%s16006_s4 + $0x110] sm:$0xff]  ;;  %v374_v56 = vld [vmem:[%s16006_s4 + $0x138] sm:$0xff] }
  0x1a   : > { %6788 = vmatprep.subr.bf16.mxu0 %v10621_v20  ;;  %7588 = vmatprep.subr.bf16.mxu1 %v10621_v20  ;;  %v10740_v52 = vpack.c.bf16 %v370_v50, %v368_v49  ;;  %v372_v55 = vld [vmem:[%s16006_s4 + $0x128] sm:$0xff]  ;;  %v10756_v57 = vpack.c.bf16 %v369_v54, %v367_v53  ;;  %v371_v59 = vld [vmem:[%s16006_s4 + $0x120] sm:$0xff]  ;;  %v373_v60 = vld [vmem:[%s16006_s4 + $0x130] sm:$0xff] }
  0x1b   : > { %2706 = vmatprep.mubr.f32.mxu1 %v2518_v44  ;;  %v10760_v58 = vpack.c.bf16 %v374_v56, %v372_v55  ;;  %v376_v61 = vld [vmem:[%s16006_s4 + $0x148] sm:$0xff]  ;;  %v378_v62 = vld [vmem:[%s16006_s4 + $0x158] sm:$0xff]  ;;  %v10776_v63 = vpack.c.bf16 %v373_v60, %v371_v59  ;;  %v375_v1 = vld [vmem:[%s16006_s4 + $0x140] sm:$0xff] }
  0x1c   : > { %v10780_v0 = vpack.c.bf16 %v378_v62, %v376_v61  ;;  %v377_v2 = vld [vmem:[%s16006_s4 + $0x150] sm:$0xff]  ;;  %v380_v4 = vld [vmem:[%s16006_s4 + $0x168] sm:$0xff]  ;;  %v382_v5 = vld [vmem:[%s16006_s4 + $0x178] sm:$0xff] }
  0x1d   : > { %6790 = vmatpush1.bf16.msra.mxu0 %v10639_v25  ;;  %7590 = vmatpush1.bf16.msra.mxu1 %v10639_v25  ;;  %v10796_v6 = vpack.c.bf16 %v377_v2, %v375_v1  ;;  %v10800_v9 = vpack.c.bf16 %v382_v5, %v380_v4  ;;  %v379_v10 = vld [vmem:[%s16006_s4 + $0x160] sm:$0xff]  ;;  %v381_v11 = vld [vmem:[%s16006_s4 + $0x170] sm:$0xff]  ;;  %v384_v12 = vld [vmem:[%s16006_s4 + $0x188] sm:$0xff] }
  0x1e   : > { %6792 = vmatprep.subr.bf16.mxu0 %v10643_v26  ;;  %7592 = vmatprep.subr.bf16.mxu1 %v10643_v26  ;;  %v386_v15 = vld [vmem:[%s16006_s4 + $0x198] sm:$0xff]  ;;  %v10816_v16 = vpack.c.bf16 %v381_v11, %v379_v10  ;;  %v383_v18 = vld [vmem:[%s16006_s4 + $0x180] sm:$0xff]  ;;  %v385_v21 = vld [vmem:[%s16006_s4 + $0x190] sm:$0xff] }
  0x1f   : > { %v10820_v17 = vpack.c.bf16 %v386_v15, %v384_v12  ;;  %v388_v22 = vld [vmem:[%s16006_s4 + $0x1a8] sm:$0xff]  ;;  %v390_v23 = vld [vmem:[%s16006_s4 + $0x1b8] sm:$0xff]  ;;  %v10836_v24 = vpack.c.bf16 %v385_v21, %v383_v18  ;;  %v387_v28 = vld [vmem:[%s16006_s4 + $0x1a0] sm:$0xff] }
  0x20   : > { %v10840_v27 = vpack.c.bf16 %v390_v23, %v388_v22  ;;  %v389_v29 = vld [vmem:[%s16006_s4 + $0x1b0] sm:$0xff]  ;;  %v392_v30 = vld [vmem:[%s16006_s4 + $0x1c8] sm:$0xff]  ;;  %v394_v33 = vld [vmem:[%s16006_s4 + $0x1d8] sm:$0xff] }
  0x21   : > { %6794 = vmatpush1.bf16.msra.mxu0 %v10662_v31  ;;  %7594 = vmatpush1.bf16.msra.mxu1 %v10662_v31  ;;  %v10856_v34 = vpack.c.bf16 %v389_v29, %v387_v28  ;;  %v10860_v35 = vpack.c.bf16 %v394_v33, %v392_v30  ;;  %v391_v36 = vld [vmem:[%s16006_s4 + $0x1c0] sm:$0xff]  ;;  %v393_v39 = vld [vmem:[%s16006_s4 + $0x1d0] sm:$0xff]  ;;  %v396_v40 = vld [vmem:[%s16006_s4 + $0x1e8] sm:$0xff] }
  0x22   : > { %6796 = vmatprep.subr.bf16.mxu0 %v10666_v32  ;;  %7596 = vmatprep.subr.bf16.mxu1 %v10666_v32  ;;  %v398_v41 = vld [vmem:[%s16006_s4 + $0x1f8] sm:$0xff]  ;;  %v10876_v42 = vpack.c.bf16 %v393_v39, %v391_v36  ;;  %v395_v44 = vld [vmem:[%s16006_s4 + $0x1e0] sm:$0xff]  ;;  %v397_v47 = vld [vmem:[%s16006_s4 + $0x1f0] sm:$0xff] }
  0x23   : > { %v10880_v43 = vpack.c.bf16 %v398_v41, %v396_v40  ;;  %v400_v48 = vld [vmem:[%s16006_s4 + $0x208] sm:$0xff]  ;;  %v402_v49 = vld [vmem:[%s16006_s4 + $0x218] sm:$0xff]  ;;  %v10896_v50 = vpack.c.bf16 %v397_v47, %v395_v44  ;;  %v399_v54 = vld [vmem:[%s16006_s4 + $0x200] sm:$0xff] }
  0x24   : > { %v10900_v53 = vpack.c.bf16 %v402_v49, %v400_v48  ;;  %v401_v55 = vld [vmem:[%s16006_s4 + $0x210] sm:$0xff]  ;;  %v404_v56 = vld [vmem:[%s16006_s4 + $0x228] sm:$0xff]  ;;  %v406_v59 = vld [vmem:[%s16006_s4 + $0x238] sm:$0xff] }
  0x25   : > { %6798 = vmatpush1.bf16.msra.mxu0 %v10694_v37  ;;  %7598 = vmatpush1.bf16.msra.mxu1 %v10694_v37  ;;  %v1136_v60 = vld [vmem:[%s10684_s10] sm:$0xff]  ;;  %v10917_v61 = vpack.c.bf16 %v401_v55, %v399_v54  ;;  %v10922_v1 = vpack.c.bf16 %v406_v59, %v404_v56  ;;  %v405_v4 = vld [vmem:[%s16006_s4 + $0x230] sm:$0xff]  ;;  %v408_v5 = vld [vmem:[%s16006_s4 + $0x248] sm:$0xff] }
  0x26   : > { %6800 = vmatprep.subr.bf16.mxu0 %v10698_v38  ;;  %7600 = vmatprep.subr.bf16.mxu1 %v10698_v38  ;;  %v2517_v62 = vld [vmem:[%s10690_s13] sm:$0xff]  ;;  %v410_v10 = vld [vmem:[%s16006_s4 + $0x258] sm:$0xff]  ;;  %v1162_v11 = vld [vmem:[%s10684_s10 + $0xd0] sm:$0xff] }
  0x27   : > { %v403_v2 = vld [vmem:[%s16006_s4 + $0x220] sm:$0xff]  ;;  %v2543_v12 = vld [vmem:[%s10690_s13 + $0xd0] sm:$0xff]  ;;  %v1161_v18 = vld [vmem:[%s10684_s10 + $0xc8] sm:$0xff]  ;;  %v10946_v22 = vpack.c.bf16 %v410_v10, %v408_v5 }
  0x28   : > { %v10940_v15 = vpack.c.bf16 %v405_v4, %v403_v2  ;;  %v2542_v21 = vld [vmem:[%s10690_s13 + $0xc8] sm:$0xff]  ;;  %v407_v23 = vld [vmem:[%s16006_s4 + $0x240] sm:$0xff]  ;;  %v409_v28 = vld [vmem:[%s16006_s4 + $0x250] sm:$0xff] }
  0x29   : > { %6802 = vmatpush1.bf16.msra.mxu0 %v10716_v45  ;;  %7602 = vmatpush1.bf16.msra.mxu1 %v10716_v45  ;;  %v412_v29 = vld [vmem:[%s16006_s4 + $0x268] sm:$0xff]  ;;  %v414_v30 = vld [vmem:[%s16006_s4 + $0x278] sm:$0xff]  ;;  %v10964_v39 = vpack.c.bf16 %v409_v28, %v407_v23  ;;  %v1186_v40 = vld [vmem:[%s10684_s10 + $0x190] sm:$0xff] }
  0x2a   : > { %6804 = vmatprep.subr.bf16.mxu0 %v10720_v46  ;;  %7604 = vmatprep.subr.bf16.mxu1 %v10720_v46  ;;  %v1187_v33 = vld [vmem:[%s10684_s10 + $0x198] sm:$0xff]  ;;  %v2567_v41 = vld [vmem:[%s10690_s13 + $0x190] sm:$0xff]  ;;  %v10970_v44 = vpack.c.bf16 %v414_v30, %v412_v29  ;;  %v411_v47 = vld [vmem:[%s16006_s4 + $0x260] sm:$0xff] }
  0x2b   : > { %v2568_v36 = vld [vmem:[%s10690_s13 + $0x198] sm:$0xff]  ;;  %v413_v48 = vld [vmem:[%s16006_s4 + $0x270] sm:$0xff]  ;;  %v416_v49 = vld [vmem:[%s16006_s4 + $0x288] sm:$0xff] }
  0x2c   : > { %v418_v54 = vld [vmem:[%s16006_s4 + $0x298] sm:$0xff]  ;;  %v1212_v55 = vld [vmem:[%s10684_s10 + $0x260] sm:$0xff]  ;;  %v10988_v59 = vpack.c.bf16 %v413_v48, %v411_v47  ;;  %v417_v5 = vld [vmem:[%s16006_s4 + $0x290] sm:$0xff] }
  0x2d   : > { %6806 = vmatpush1.bf16.msra.mxu0 %v10736_v51  ;;  %7606 = vmatpush1.bf16.msra.mxu1 %v10736_v51  ;;  %v2593_v56 = vld [vmem:[%s10690_s13 + $0x260] sm:$0xff]  ;;  %v10994_v2 = vpack.c.bf16 %v418_v54, %v416_v49  ;;  %v420_v10 = vld [vmem:[%s16006_s4 + $0x2a8] sm:$0xff]  ;;  %v2520_v47 = vld [vmem:[%s10690_s13 + $0x18] sm:$0xff] }
  0x2e   : > { %6808 = vmatprep.subr.bf16.mxu0 %v10740_v52  ;;  %7608 = vmatprep.subr.bf16.mxu1 %v10740_v52  ;;  %v415_v4 = vld [vmem:[%s16006_s4 + $0x280] sm:$0xff] }
  0x2f   : > { %v1236_v23 = vld [vmem:[%s10684_s10 + $0x320] sm:$0xff] }
  0x30   : > { %v2617_v28 = vld [vmem:[%s10690_s13 + $0x320] sm:$0xff] }
  0x31   : > { %6810 = vmatpush1.bf16.msra.mxu0 %v10756_v57  ;;  %7610 = vmatpush1.bf16.msra.mxu1 %v10756_v57  ;;  %v419_v30 = vld [vmem:[%s16006_s4 + $0x2a0] sm:$0xff] }
  0x32   : > { %6812 = vmatprep.subr.bf16.mxu0 %v10760_v58  ;;  %7612 = vmatprep.subr.bf16.mxu1 %v10760_v58  ;;  %v423_v54 = vld [vmem:[%s16006_s4 + $0x2c0] sm:$0xff] }
  0x35   : > { %6814 = vmatpush1.bf16.msra.mxu0 %v10776_v63  ;;  %7614 = vmatpush1.bf16.msra.mxu1 %v10776_v63 }
  0x36   : > { %6816 = vmatprep.subr.bf16.mxu0 %v10780_v0  ;;  %7616 = vmatprep.subr.bf16.mxu1 %v10780_v0 }
  0x39   : > { %6818 = vmatpush1.bf16.msra.mxu0 %v10796_v6  ;;  %7618 = vmatpush1.bf16.msra.mxu1 %v10796_v6 }
  0x3a   : > { %6820 = vmatprep.subr.bf16.mxu0 %v10800_v9  ;;  %7620 = vmatprep.subr.bf16.mxu1 %v10800_v9 }
  0x3d   : > { %6822 = vmatpush1.bf16.msra.mxu0 %v10816_v16  ;;  %7622 = vmatpush1.bf16.msra.mxu1 %v10816_v16 }
  0x3e   : > { %6824 = vmatprep.subr.bf16.mxu0 %v10820_v17  ;;  %7624 = vmatprep.subr.bf16.mxu1 %v10820_v17 }
  0x41   : > { %6826 = vmatpush1.bf16.msra.mxu0 %v10836_v24  ;;  %7626 = vmatpush1.bf16.msra.mxu1 %v10836_v24 }
  0x42   : > { %6828 = vmatprep.subr.bf16.mxu0 %v10840_v27  ;;  %7628 = vmatprep.subr.bf16.mxu1 %v10840_v27 }
  0x45   : > { %6830 = vmatpush1.bf16.msra.mxu0 %v10856_v34  ;;  %7630 = vmatpush1.bf16.msra.mxu1 %v10856_v34 }
  0x46   : > { %6832 = vmatprep.subr.bf16.mxu0 %v10860_v35  ;;  %7632 = vmatprep.subr.bf16.mxu1 %v10860_v35 }
  0x49   : > { %6834 = vmatpush1.bf16.msra.mxu0 %v10876_v42  ;;  %7634 = vmatpush1.bf16.msra.mxu1 %v10876_v42 }
  0x4a   : > { %6836 = vmatprep.subr.bf16.mxu0 %v10880_v43  ;;  %7636 = vmatprep.subr.bf16.mxu1 %v10880_v43 }
  0x4d   : > { %6838 = vmatpush1.bf16.msra.mxu0 %v10896_v50  ;;  %7638 = vmatpush1.bf16.msra.mxu1 %v10896_v50 }
  0x4e   : > { %6840 = vmatprep.subr.bf16.mxu0 %v10900_v53  ;;  %7640 = vmatprep.subr.bf16.mxu1 %v10900_v53 }
  0x50   : > { %1337 = vmatmul.mubr.f32.vlgmr.msra.gmra.mrb[0].mxu0 %v1136_v60  ;;  %2707 = vmatmul.mubr.f32.vlgmr.msra.gmra.mrb[0].mxu1 %v2517_v62  ;;  %v1211_v60 = vld [vmem:[%s10684_s10 + $0x258] sm:$0xff] }
  0x51   : > { %6842 = vmatpush1.bf16.msra.mxu0 %v10917_v61  ;;  %7642 = vmatpush1.bf16.msra.mxu1 %v10917_v61  ;;  %v2592_v62 = vld [vmem:[%s10690_s13 + $0x258] sm:$0xff] }
  0x52   : > { %6844 = vmatprep.subr.bf16.mxu0 %v10922_v1  ;;  %7644 = vmatprep.subr.bf16.mxu1 %v10922_v1 }
  0x53   : > { %1342 = vmatprep.mubr.f32.mxu0 %v1162_v11  ;;  %2712 = vmatprep.mubr.f32.mxu1 %v2543_v12  ;;  %v422_v11 = vld [vmem:[%s16006_s4 + $0x2b8] sm:$0xff]  ;;  %v1237_v12 = vld [vmem:[%s10684_s10 + $0x328] sm:$0xff] }
  0x54   : > { %1343 = vmatmul.mubr.f32.gmra.mrb[2].mxu0 %v1161_v18  ;;  %2713 = vmatmul.mubr.f32.gmra.mrb[2].mxu1 %v2542_v21  ;;  %v2618_v18 = vld [vmem:[%s10690_s13 + $0x328] sm:$0xff]  ;;  %v11012_v21 = vpack.c.bf16 %v417_v5, %v415_v4  ;;  %v11018_v29 = vpack.c.bf16 %v422_v11, %v420_v10  ;;  %v427_v5 = vld [vmem:[%s16006_s4 + $0x2e0] sm:$0xff]  ;;  %v429_v10 = vld [vmem:[%s16006_s4 + $0x2f0] sm:$0xff] }
  0x55   : > { %6846 = vmatpush1.bf16.msra.mxu0 %v10940_v15  ;;  %7646 = vmatpush1.bf16.msra.mxu1 %v10940_v15  ;;  %v432_v11 = vld [vmem:[%s16006_s4 + $0x308] sm:$0xff] }
  0x56   : > { %6848 = vmatprep.subr.bf16.mxu0 %v10946_v22  ;;  %7648 = vmatprep.subr.bf16.mxu1 %v10946_v22 }
  0x57   : > { %1348 = vmatprep.mubr.f32.mxu0 %v1187_v33  ;;  %2718 = vmatprep.mubr.f32.mxu1 %v2568_v36  ;;  %v421_v33 = vld [vmem:[%s16006_s4 + $0x2b0] sm:$0xff]  ;;  %v424_v36 = vld [vmem:[%s16006_s4 + $0x2c8] sm:$0xff] }
  0x58   : > { %1349 = vmatmul.mubr.f32.gmra.mrb[4].mxu0 %v1186_v40  ;;  %2719 = vmatmul.mubr.f32.gmra.mrb[4].mxu1 %v2567_v41  ;;  %v426_v40 = vld [vmem:[%s16006_s4 + $0x2d8] sm:$0xff]  ;;  %v11036_v48 = vpack.c.bf16 %v421_v33, %v419_v30  ;;  %v433_v30 = vld [vmem:[%s16006_s4 + $0x310] sm:$0xff]  ;;  %v436_v33 = vld [vmem:[%s16006_s4 + $0x328] sm:$0xff] }
  0x59   : > { %6850 = vmatpush1.bf16.msra.mxu0 %v10964_v39  ;;  %7650 = vmatpush1.bf16.msra.mxu1 %v10964_v39  ;;  %v1139_v41 = vld [vmem:[%s10684_s10 + $0x18] sm:$0xff]  ;;  %v11040_v49 = vpack.c.bf16 %v426_v40, %v424_v36 }
  0x5a   : > { %6852 = vmatprep.subr.bf16.mxu0 %v10970_v44  ;;  %7652 = vmatprep.subr.bf16.mxu1 %v10970_v44  ;;  %v438_v36 = vld [vmem:[%s16006_s4 + $0x338] sm:$0xff] }
  0x5b   : > { %1354 = vmatprep.mubr.f32.mxu0 %v1212_v55  ;;  %2724 = vmatprep.mubr.f32.mxu1 %v2593_v56  ;;  %v425_v55 = vld [vmem:[%s16006_s4 + $0x2d0] sm:$0xff]  ;;  %v428_v56 = vld [vmem:[%s16006_s4 + $0x2e8] sm:$0xff] }
  0x5c   : > { %1355 = vmatmul.mubr.f32.gmra.mrb[6].mxu0 %v1211_v60  ;;  %2725 = vmatmul.mubr.f32.gmra.mrb[6].mxu1 %v2592_v62  ;;  %v430_v60 = vld [vmem:[%s16006_s4 + $0x2f8] sm:$0xff]  ;;  %v11056_v62 = vpack.c.bf16 %v425_v55, %v423_v54  ;;  %v437_v54 = vld [vmem:[%s16006_s4 + $0x330] sm:$0xff]  ;;  %v440_v55 = vld [vmem:[%s16006_s4 + $0x348] sm:$0xff] }
  0x5d   : > { %6854 = vmatpush1.bf16.msra.mxu0 %v10988_v59  ;;  %7654 = vmatpush1.bf16.msra.mxu1 %v10988_v59  ;;  %v11060_v4 = vpack.c.bf16 %v430_v60, %v428_v56  ;;  %v442_v56 = vld [vmem:[%s16006_s4 + $0x358] sm:$0xff] }
  0x5e   : > { %6856 = vmatprep.subr.bf16.mxu0 %v10994_v2  ;;  %7656 = vmatprep.subr.bf16.mxu1 %v10994_v2 }
  0x5f   : > { %1360 = vmatprep.mubr.f32.mxu0 %v1237_v12  ;;  %2730 = vmatprep.mubr.f32.mxu1 %v2618_v18  ;;  %v434_v12 = vld [vmem:[%s16006_s4 + $0x318] sm:$0xff]  ;;  %v11076_v18 = vpack.c.bf16 %v429_v10, %v427_v5  ;;  %v11120_v5 = vpack.c.bf16 %v442_v56, %v440_v55  ;;  %v439_v10 = vld [vmem:[%s16006_s4 + $0x340] sm:$0xff] }
  0x60   : > { %1361 = vmatmul.mubr.f32.gmra.mrb[8].mxu0 %v1236_v23  ;;  %2731 = vmatmul.mubr.f32.gmra.mrb[8].mxu1 %v2617_v28  ;;  %v11080_v23 = vpack.c.bf16 %v434_v12, %v432_v11  ;;  %v431_v28 = vld [vmem:[%s16006_s4 + $0x300] sm:$0xff]  ;;  %v441_v11 = vld [vmem:[%s16006_s4 + $0x350] sm:$0xff]  ;;  %v444_v12 = vld [vmem:[%s16006_s4 + $0x368] sm:$0xff] }
  0x61   : > { %6858 = vmatpush1.bf16.msra.mxu0 %v11012_v21  ;;  %7658 = vmatpush1.bf16.msra.mxu1 %v11012_v21  ;;  %v11096_v40 = vpack.c.bf16 %v433_v30, %v431_v28  ;;  %16699 = vst [vmem:[#allocation6_spill] sm:$0xff] %v11120_v5  ;;  %v446_v28 = vld [vmem:[%s16006_s4 + $0x378] sm:$0xff]  ;;  %v11136_v30 = vpack.c.bf16 %v441_v11, %v439_v10  ;;  %v447_v11 = vld [vmem:[%s16006_s4 + $0x380] sm:$0xff] }
  0x62   : > { %6860 = vmatprep.subr.bf16.mxu0 %v11018_v29  ;;  %7660 = vmatprep.subr.bf16.mxu1 %v11018_v29  ;;  %16695 = vst [vmem:[#allocation2_spill] sm:$0xff] %v11080_v23  ;;  %v450_v55 = vld [vmem:[%s16006_s4 + $0x398] sm:$0xff] }
  0x63   : > { %1431 = vmatprep.mubr.f32.mxu0 %v1139_v41  ;;  %2801 = vmatprep.mubr.f32.mxu1 %v2520_v47  ;;  %16696 = vst [vmem:[#allocation3_spill] sm:$0xff] %v11096_v40  ;;  %v11100_v41 = vpack.c.bf16 %v438_v36, %v436_v33  ;;  %v435_v47 = vld [vmem:[%s16006_s4 + $0x320] sm:$0xff]  ;;  %16700 = vst [vmem:[#allocation7_spill] sm:$0xff] %v11136_v30  ;;  %v11140_v33 = vpack.c.bf16 %v446_v28, %v444_v12  ;;  %v449_v12 = vld [vmem:[%s16006_s4 + $0x390] sm:$0xff] }
  0x64   : > { %v11116_v60 = vpack.c.bf16 %v437_v54, %v435_v47  ;;  %v443_v36 = vld [vmem:[%s16006_s4 + $0x360] sm:$0xff]  ;;  %v445_v47 = vld [vmem:[%s16006_s4 + $0x370] sm:$0xff]  ;;  %v448_v54 = vld [vmem:[%s16006_s4 + $0x388] sm:$0xff] }
  0x65   : > { %6862 = vmatpush1.bf16.msra.mxu0 %v11036_v48  ;;  %7662 = vmatpush1.bf16.msra.mxu1 %v11036_v48  ;;  %16697 = vst [vmem:[#allocation4_spill] sm:$0xff] %v11100_v41  ;;  %16701 = vst [vmem:[#allocation8_spill] sm:$0xff] %v11140_v33  ;;  %v11156_v56 = vpack.c.bf16 %v445_v47, %v443_v36  ;;  %v11160_v10 = vpack.c.bf16 %v450_v55, %v448_v54  ;;  %v452_v28 = vld [vmem:[%s16006_s4 + $0x3a8] sm:$0xff]  ;;  %v454_v36 = vld [vmem:[%s16006_s4 + $0x3b8] sm:$0xff] }
  0x66   : > { %6864 = vmatprep.subr.bf16.mxu0 %v11040_v49  ;;  %7664 = vmatprep.subr.bf16.mxu1 %v11040_v49  ;;  %16698 = vst [vmem:[#allocation5_spill] sm:$0xff] %v11116_v60  ;;  %v11176_v47 = vpack.c.bf16 %v449_v12, %v447_v11  ;;  %v11180_v54 = vpack.c.bf16 %v454_v36, %v452_v28  ;;  %v451_v55 = vld [vmem:[%s16006_s4 + $0x3a0] sm:$0xff]  ;;  %v458_v11 = vld [vmem:[%s16006_s4 + $0x3d8] sm:$0xff] }
  0x67   : > { %16702 = vst [vmem:[#allocation9_spill] sm:$0xff] %v11156_v56  ;;  %16703 = vst [vmem:[#allocation10_spill] sm:$0xff] %v11160_v10  ;;  %v455_v36 = vld [vmem:[%s16006_s4 + $0x3c0] sm:$0xff] }
  0x68   : > { %16704 = vst [vmem:[#allocation11_spill] sm:$0xff] %v11176_v47  ;;  %16705 = vst [vmem:[#allocation12_spill] sm:$0xff] %v11180_v54 }
  0x69   : > { %6866 = vmatpush1.bf16.msra.mxu0 %v11056_v62  ;;  %7666 = vmatpush1.bf16.msra.mxu1 %v11056_v62 }
  0x6a   : > { %6868 = vmatprep.subr.bf16.mxu0 %v11060_v4  ;;  %7668 = vmatprep.subr.bf16.mxu1 %v11060_v4 }
  0x6d   : > { %6870 = vmatpush1.bf16.msra.mxu0 %v11076_v18  ;;  %7670 = vmatpush1.bf16.msra.mxu1 %v11076_v18 }
  0x6e   : > { %6872 = vmatprep.subr.bf16.mxu0 %v11080_v23  ;;  %7672 = vmatprep.subr.bf16.mxu1 %v11080_v23 }
  0x71   : > { %6874 = vmatpush1.bf16.msra.mxu0 %v11096_v40  ;;  %7674 = vmatpush1.bf16.msra.mxu1 %v11096_v40  ;;  %v2569_v40 = vld [vmem:[%s10690_s13 + $0x1a0] sm:$0xff] }
  0x72   : > { %6876 = vmatprep.subr.bf16.mxu0 %v11100_v41  ;;  %7676 = vmatprep.subr.bf16.mxu1 %v11100_v41  ;;  %v1188_v41 = vld [vmem:[%s10684_s10 + $0x1a0] sm:$0xff] }
  0x75   : > { %6878 = vmatpush1.bf16.msra.mxu0 %v11116_v60  ;;  %7678 = vmatpush1.bf16.msra.mxu1 %v11116_v60  ;;  %v2544_v60 = vld [vmem:[%s10690_s13 + $0xd8] sm:$0xff] }
  0x76   : > { %6880 = vmatprep.subr.bf16.mxu0 %v11120_v5  ;;  %7680 = vmatprep.subr.bf16.mxu1 %v11120_v5  ;;  %v1163_v5 = vld [vmem:[%s10684_s10 + $0xd8] sm:$0xff] }
  0x79   : > { %6882 = vmatpush1.bf16.msra.mxu0 %v11136_v30  ;;  %7682 = vmatpush1.bf16.msra.mxu1 %v11136_v30  ;;  %v467_v30 = vld [vmem:[%s16006_s4 + $0x420] sm:$0xff] }
  0x7a   : > { %6884 = vmatprep.subr.bf16.mxu0 %v11140_v33  ;;  %7684 = vmatprep.subr.bf16.mxu1 %v11140_v33  ;;  %v453_v33 = vld [vmem:[%s16006_s4 + $0x3b0] sm:$0xff] }
  0x7b   : > { %v11196_v12 = vpack.c.bf16 %v453_v33, %v451_v55  ;;  %v462_v33 = vld [vmem:[%s16006_s4 + $0x3f8] sm:$0xff] }
  0x7d   : > { %6886 = vmatpush1.bf16.msra.mxu0 %v11156_v56  ;;  %7686 = vmatpush1.bf16.msra.mxu1 %v11156_v56  ;;  %v456_v56 = vld [vmem:[%s16006_s4 + $0x3c8] sm:$0xff]  ;;  %16706 = vst [vmem:[#allocation13_spill] sm:$0xff] %v11196_v12 }
  0x7e   : > { %6888 = vmatprep.subr.bf16.mxu0 %v11160_v10  ;;  %7688 = vmatprep.subr.bf16.mxu1 %v11160_v10  ;;  %v11200_v28 = vpack.c.bf16 %v458_v11, %v456_v56  ;;  %v457_v10 = vld [vmem:[%s16006_s4 + $0x3d0] sm:$0xff]  ;;  %v459_v11 = vld [vmem:[%s16006_s4 + $0x3e0] sm:$0xff] }
  0x7f   : > { %v11216_v56 = vpack.c.bf16 %v457_v10, %v455_v36  ;;  %v464_v10 = vld [vmem:[%s16006_s4 + $0x408] sm:$0xff]  ;;  %v466_v36 = vld [vmem:[%s16006_s4 + $0x418] sm:$0xff] }
  0x80   : > { %16707 = vst [vmem:[#allocation14_spill] sm:$0xff] %v11200_v28 }
  0x81   : > { %6890 = vmatpush1.bf16.msra.mxu0 %v11176_v47  ;;  %7690 = vmatpush1.bf16.msra.mxu1 %v11176_v47  ;;  %v460_v47 = vld [vmem:[%s16006_s4 + $0x3e8] sm:$0xff]  ;;  %16708 = vst [vmem:[#allocation15_spill] sm:$0xff] %v11216_v56 }
  0x82   : > { %6892 = vmatprep.subr.bf16.mxu0 %v11180_v54  ;;  %7692 = vmatprep.subr.bf16.mxu1 %v11180_v54  ;;  %v11220_v55 = vpack.c.bf16 %v462_v33, %v460_v47  ;;  %v461_v54 = vld [vmem:[%s16006_s4 + $0x3f0] sm:$0xff]  ;;  %v11240_v33 = vpack.c.bf16 %v466_v36, %v464_v10 }
  0x83   : > { %v11236_v47 = vpack.c.bf16 %v461_v54, %v459_v11  ;;  %v470_v54 = vld [vmem:[%s16006_s4 + $0x438] sm:$0xff]  ;;  %v1138_v11 = vld [vmem:[%s10684_s10 + $0x10] sm:$0xff] }
  0x84   : > { %16709 = vst [vmem:[#allocation16_spill] sm:$0xff] %v11220_v55  ;;  %16711 = vst [vmem:[#allocation18_spill] sm:$0xff] %v11240_v33  ;;  %v2519_v36 = vld [vmem:[%s10690_s13 + $0x10] sm:$0xff] }
  0x85   : > { %6894 = vmatpush1.bf16.msra.mxu0 %v11196_v12  ;;  %7694 = vmatpush1.bf16.msra.mxu1 %v11196_v12  ;;  %16710 = vst [vmem:[#allocation17_spill] sm:$0xff] %v11236_v47  ;;  %v465_v12 = vld [vmem:[%s16006_s4 + $0x410] sm:$0xff] }
  0x86   : > { %6896 = vmatprep.subr.bf16.mxu0 %v11200_v28  ;;  %7696 = vmatprep.subr.bf16.mxu1 %v11200_v28  ;;  %v463_v28 = vld [vmem:[%s16006_s4 + $0x400] sm:$0xff] }
  0x87   : > { %v11257_v10 = vpack.c.bf16 %v465_v12, %v463_v28  ;;  %v472_v12 = vld [vmem:[%s16006_s4 + $0x448] sm:$0xff]  ;;  %v474_v28 = vld [vmem:[%s16006_s4 + $0x458] sm:$0xff] }
  0x89   : > { %6898 = vmatpush1.bf16.msra.mxu0 %v11216_v56  ;;  %7698 = vmatpush1.bf16.msra.mxu1 %v11216_v56  ;;  %v468_v56 = vld [vmem:[%s16006_s4 + $0x428] sm:$0xff]  ;;  %16712 = vst [vmem:[#allocation19_spill] sm:$0xff] %v11257_v10 }
  0x8a   : > { %6900 = vmatprep.subr.bf16.mxu0 %v11220_v55  ;;  %7700 = vmatprep.subr.bf16.mxu1 %v11220_v55  ;;  %v11262_v55 = vpack.c.bf16 %v470_v54, %v468_v56  ;;  %v1164_v56 = vld [vmem:[%s10684_s10 + $0xe0] sm:$0xff] }
  0x8b   : > { %v2545_v54 = vld [vmem:[%s10690_s13 + $0xe0] sm:$0xff] }
  0x8c   : > { %16713 = vst [vmem:[#allocation20_spill] sm:$0xff] %v11262_v55 }
  0x8d   : > { %6902 = vmatpush1.bf16.msra.mxu0 %v11236_v47  ;;  %7702 = vmatpush1.bf16.msra.mxu1 %v11236_v47  ;;  %v469_v47 = vld [vmem:[%s16006_s4 + $0x430] sm:$0xff] }
  0x8e   : > { %6904 = vmatprep.subr.bf16.mxu0 %v11240_v33  ;;  %7704 = vmatprep.subr.bf16.mxu1 %v11240_v33  ;;  %v11280_v33 = vpack.c.bf16 %v469_v47, %v467_v30  ;;  %v476_v30 = vld [vmem:[%s16006_s4 + $0x468] sm:$0xff]  ;;  %v478_v47 = vld [vmem:[%s16006_s4 + $0x478] sm:$0xff] }
  0x90   : > { %1432 = vmatmul.mubr.f32.vlgmr.msra.gmra.mrb[0].mxu0 %v1138_v11  ;;  %2802 = vmatmul.mubr.f32.vlgmr.msra.gmra.mrb[0].mxu1 %v2519_v36  ;;  %16714 = vst [vmem:[#allocation21_spill] sm:$0xff] %v11280_v33  ;;  %v11286_v11 = vpack.c.bf16 %v474_v28, %v472_v12  ;;  %v471_v36 = vld [vmem:[%s16006_s4 + $0x440] sm:$0xff]  ;;  %v1189_v12 = vld [vmem:[%s10684_s10 + $0x1a8] sm:$0xff] }
  0x91   : > { %6906 = vmatpush1.bf16.msra.mxu0 %v11257_v10  ;;  %7706 = vmatpush1.bf16.msra.mxu1 %v11257_v10  ;;  %v473_v10 = vld [vmem:[%s16006_s4 + $0x450] sm:$0xff]  ;;  %v2570_v28 = vld [vmem:[%s10690_s13 + $0x1a8] sm:$0xff] }
  0x92   : > { %6908 = vmatprep.subr.bf16.mxu0 %v11262_v55  ;;  %7708 = vmatprep.subr.bf16.mxu1 %v11262_v55  ;;  %16715 = vst [vmem:[#allocation22_spill] sm:$0xff] %v11286_v11  ;;  %v11304_v55 = vpack.c.bf16 %v473_v10, %v471_v36  ;;  %v480_v10 = vld [vmem:[%s16006_s4 + $0x488] sm:$0xff]  ;;  %v1214_v36 = vld [vmem:[%s10684_s10 + $0x270] sm:$0xff] }
  0x93   : > { %1437 = vmatprep.mubr.f32.mxu0 %v1164_v56  ;;  %2807 = vmatprep.mubr.f32.mxu1 %v2545_v54  ;;  %v477_v56 = vld [vmem:[%s16006_s4 + $0x470] sm:$0xff]  ;;  %v482_v54 = vld [vmem:[%s16006_s4 + $0x498] sm:$0xff] }
  0x94   : > { %1438 = vmatmul.mubr.f32.gmra.mrb[2].mxu0 %v1163_v5  ;;  %2808 = vmatmul.mubr.f32.gmra.mrb[2].mxu1 %v2544_v60  ;;  %16716 = vst [vmem:[#allocation23_spill] sm:$0xff] %v11304_v55  ;;  %v11310_v5 = vpack.c.bf16 %v478_v47, %v476_v30  ;;  %v475_v60 = vld [vmem:[%s16006_s4 + $0x460] sm:$0xff]  ;;  %v2595_v30 = vld [vmem:[%s10690_s13 + $0x270] sm:$0xff] }
  0x95   : > { %6910 = vmatpush1.bf16.msra.mxu0 %v11280_v33  ;;  %7710 = vmatpush1.bf16.msra.mxu1 %v11280_v33  ;;  %v11328_v47 = vpack.c.bf16 %v477_v56, %v475_v60  ;;  %v2594_v33 = vld [vmem:[%s10690_s13 + $0x268] sm:$0xff]  ;;  %v486_v60 = vld [vmem:[%s16006_s4 + $0x4b8] sm:$0xff] }
  0x96   : > { %6912 = vmatprep.subr.bf16.mxu0 %v11286_v11  ;;  %7712 = vmatprep.subr.bf16.mxu1 %v11286_v11  ;;  %16717 = vst [vmem:[#allocation24_spill] sm:$0xff] %v11310_v5  ;;  %v1213_v11 = vld [vmem:[%s10684_s10 + $0x268] sm:$0xff]  ;;  %v1239_v56 = vld [vmem:[%s10684_s10 + $0x338] sm:$0xff] }
  0x97   : > { %1443 = vmatprep.mubr.f32.mxu0 %v1189_v12  ;;  %2813 = vmatprep.mubr.f32.mxu1 %v2570_v28  ;;  %16718 = vst [vmem:[#allocation25_spill] sm:$0xff] %v11328_v47  ;;  %v481_v12 = vld [vmem:[%s16006_s4 + $0x490] sm:$0xff]  ;;  %v484_v28 = vld [vmem:[%s16006_s4 + $0x4a8] sm:$0xff] }
  0x98   : > { %1444 = vmatmul.mubr.f32.gmra.mrb[4].mxu0 %v1188_v41  ;;  %2814 = vmatmul.mubr.f32.gmra.mrb[4].mxu1 %v2569_v40  ;;  %v11334_v41 = vpack.c.bf16 %v482_v54, %v480_v10  ;;  %v479_v40 = vld [vmem:[%s16006_s4 + $0x480] sm:$0xff]  ;;  %v2620_v10 = vld [vmem:[%s10690_s13 + $0x338] sm:$0xff] }
  0x99   : > { %6914 = vmatpush1.bf16.msra.mxu0 %v11304_v55  ;;  %7714 = vmatpush1.bf16.msra.mxu1 %v11304_v55  ;;  %v11352_v54 = vpack.c.bf16 %v481_v12, %v479_v40  ;;  %v2619_v55 = vld [vmem:[%s10690_s13 + $0x330] sm:$0xff]  ;;  %v490_v40 = vld [vmem:[%s16006_s4 + $0x4d8] sm:$0xff]  ;;  %v1141_v12 = vld [vmem:[%s10684_s10 + $0x28] sm:$0xff] }
  0x9a   : > { %6916 = vmatprep.subr.bf16.mxu0 %v11310_v5  ;;  %7716 = vmatprep.subr.bf16.mxu1 %v11310_v5  ;;  %16719 = vst [vmem:[#allocation26_spill] sm:$0xff] %v11334_v41  ;;  %v1238_v5 = vld [vmem:[%s10684_s10 + $0x330] sm:$0xff] }
  0x9b   : > { %1449 = vmatprep.mubr.f32.mxu0 %v1214_v36  ;;  %2819 = vmatprep.mubr.f32.mxu1 %v2595_v30  ;;  %16720 = vst [vmem:[#allocation27_spill] sm:$0xff] %v11352_v54  ;;  %v11358_v36 = vpack.c.bf16 %v486_v60, %v484_v28  ;;  %v488_v30 = vld [vmem:[%s16006_s4 + $0x4c8] sm:$0xff] }
  0x9c   : > { %1450 = vmatmul.mubr.f32.gmra.mrb[6].mxu0 %v1213_v11  ;;  %2820 = vmatmul.mubr.f32.gmra.mrb[6].mxu1 %v2594_v33  ;;  %v483_v33 = vld [vmem:[%s16006_s4 + $0x4a0] sm:$0xff]  ;;  %v485_v11 = vld [vmem:[%s16006_s4 + $0x4b0] sm:$0xff]  ;;  %v2522_v28 = vld [vmem:[%s10690_s13 + $0x28] sm:$0xff] }
  0x9d   : > { %6918 = vmatpush1.bf16.msra.mxu0 %v11328_v47  ;;  %7718 = vmatpush1.bf16.msra.mxu1 %v11328_v47  ;;  %16721 = vst [vmem:[#allocation28_spill] sm:$0xff] %v11358_v36  ;;  %v11376_v60 = vpack.c.bf16 %v485_v11, %v483_v33  ;;  %v2571_v47 = vld [vmem:[%s10690_s13 + $0x1b0] sm:$0xff] }
  0x9e   : > { %6920 = vmatprep.subr.bf16.mxu0 %v11334_v41  ;;  %7720 = vmatprep.subr.bf16.mxu1 %v11334_v41  ;;  %v11380_v41 = vpack.c.bf16 %v490_v40, %v488_v30  ;;  %v491_v30 = vld [vmem:[%s16006_s4 + $0x4e0] sm:$0xff]  ;;  %v493_v40 = vld [vmem:[%s16006_s4 + $0x4f0] sm:$0xff] }
  0x9f   : > { %1455 = vmatprep.mubr.f32.mxu0 %v1239_v56  ;;  %2825 = vmatprep.mubr.f32.mxu1 %v2620_v10  ;;  %16722 = vst [vmem:[#allocation29_spill] sm:$0xff] %v11376_v60  ;;  %v487_v56 = vld [vmem:[%s16006_s4 + $0x4c0] sm:$0xff]  ;;  %v494_v10 = vld [vmem:[%s16006_s4 + $0x4f8] sm:$0xff] }
  0xa0   : > { %1456 = vmatmul.mubr.f32.gmra.mrb[8].mxu0 %v1238_v5  ;;  %2826 = vmatmul.mubr.f32.gmra.mrb[8].mxu1 %v2619_v55  ;;  %16723 = vst [vmem:[#allocation30_spill] sm:$0xff] %v11380_v41  ;;  %v489_v55 = vld [vmem:[%s16006_s4 + $0x4d0] sm:$0xff]  ;;  %v492_v5 = vld [vmem:[%s16006_s4 + $0x4e8] sm:$0xff] }
  0xa1   : > { %6922 = vmatpush1.bf16.msra.mxu0 %v11352_v54  ;;  %7722 = vmatpush1.bf16.msra.mxu1 %v11352_v54  ;;  %v11396_v33 = vpack.c.bf16 %v489_v55, %v487_v56  ;;  %v11400_v11 = vpack.c.bf16 %v494_v10, %v492_v5  ;;  %v11416_v56 = vpack.c.bf16 %v493_v40, %v491_v30  ;;  %v495_v5 = vld [vmem:[%s16006_s4 + $0x500] sm:$0xff]  ;;  %v497_v10 = vld [vmem:[%s16006_s4 + $0x510] sm:$0xff]  ;;  %v502_v30 = vld [vmem:[%s16006_s4 + $0x538] sm:$0xff] }
  0xa2   : > { %6924 = vmatprep.subr.bf16.mxu0 %v11358_v36  ;;  %7724 = vmatprep.subr.bf16.mxu1 %v11358_v36  ;;  %v11436_v40 = vpack.c.bf16 %v497_v10, %v495_v5  ;;  %v506_v5 = vld [vmem:[%s16006_s4 + $0x558] sm:$0xff]  ;;  %v2546_v36 = vld [vmem:[%s10690_s13 + $0xe8] sm:$0xff]  ;;  %v1190_v54 = vld [vmem:[%s10684_s10 + $0x1b0] sm:$0xff] }
  0xa3   : > { %1526 = vmatprep.mubr.f32.mxu0 %v1141_v12  ;;  %2896 = vmatprep.mubr.f32.mxu1 %v2522_v28  ;;  %16724 = vst [vmem:[#allocation31_spill] sm:$0xff] %v11396_v33  ;;  %16725 = vst [vmem:[#allocation32_spill] sm:$0xff] %v11400_v11  ;;  %v496_v12 = vld [vmem:[%s16006_s4 + $0x508] sm:$0xff]  ;;  %v498_v28 = vld [vmem:[%s16006_s4 + $0x518] sm:$0xff] }
  0xa4   : > { %16726 = vst [vmem:[#allocation33_spill] sm:$0xff] %v11416_v56  ;;  %v11420_v55 = vpack.c.bf16 %v498_v28, %v496_v12  ;;  %16728 = vst [vmem:[#allocation35_spill] sm:$0xff] %v11436_v40  ;;  %v499_v28 = vld [vmem:[%s16006_s4 + $0x520] sm:$0xff] }
  0xa5   : > { %6926 = vmatpush1.bf16.msra.mxu0 %v11376_v60  ;;  %7726 = vmatpush1.bf16.msra.mxu1 %v11376_v60  ;;  %v1165_v60 = vld [vmem:[%s10684_s10 + $0xe8] sm:$0xff] }
  0xa6   : > { %6928 = vmatprep.subr.bf16.mxu0 %v11380_v41  ;;  %7728 = vmatprep.subr.bf16.mxu1 %v11380_v41  ;;  %16727 = vst [vmem:[#allocation34_spill] sm:$0xff] %v11420_v55  ;;  %v531_v41 = vld [vmem:[%s16006_s4 + $0x620] sm:$0xff] }
  0xa9   : > { %6930 = vmatpush1.bf16.msra.mxu0 %v11396_v33  ;;  %7730 = vmatpush1.bf16.msra.mxu1 %v11396_v33  ;;  %v500_v33 = vld [vmem:[%s16006_s4 + $0x528] sm:$0xff] }
  0xaa   : > { %6932 = vmatprep.subr.bf16.mxu0 %v11400_v11  ;;  %7732 = vmatprep.subr.bf16.mxu1 %v11400_v11  ;;  %v11440_v12 = vpack.c.bf16 %v502_v30, %v500_v33  ;;  %v501_v11 = vld [vmem:[%s16006_s4 + $0x530] sm:$0xff]  ;;  %v503_v30 = vld [vmem:[%s16006_s4 + $0x540] sm:$0xff] }
  0xab   : > { %v11456_v33 = vpack.c.bf16 %v501_v11, %v499_v28  ;;  %v510_v11 = vld [vmem:[%s16006_s4 + $0x578] sm:$0xff] }
  0xac   : > { %16729 = vst [vmem:[#allocation36_spill] sm:$0xff] %v11440_v12 }
  0xad   : > { %6934 = vmatpush1.bf16.msra.mxu0 %v11416_v56  ;;  %7734 = vmatpush1.bf16.msra.mxu1 %v11416_v56  ;;  %v504_v56 = vld [vmem:[%s16006_s4 + $0x548] sm:$0xff]  ;;  %16730 = vst [vmem:[#allocation37_spill] sm:$0xff] %v11456_v33 }
  0xae   : > { %6936 = vmatprep.subr.bf16.mxu0 %v11420_v55  ;;  %7736 = vmatprep.subr.bf16.mxu1 %v11420_v55  ;;  %v11460_v10 = vpack.c.bf16 %v506_v5, %v504_v56  ;;  %v505_v55 = vld [vmem:[%s16006_s4 + $0x550] sm:$0xff]  ;;  %v507_v5 = vld [vmem:[%s16006_s4 + $0x560] sm:$0xff] }
  0xaf   : > { %v11476_v56 = vpack.c.bf16 %v505_v55, %v503_v30  ;;  %v514_v55 = vld [vmem:[%s16006_s4 + $0x598] sm:$0xff] }
  0xb0   : > { %16731 = vst [vmem:[#allocation38_spill] sm:$0xff] %v11460_v10 }
  0xb1   : > { %6938 = vmatpush1.bf16.msra.mxu0 %v11436_v40  ;;  %7738 = vmatpush1.bf16.msra.mxu1 %v11436_v40  ;;  %v508_v40 = vld [vmem:[%s16006_s4 + $0x568] sm:$0xff]  ;;  %16732 = vst [vmem:[#allocation39_spill] sm:$0xff] %v11476_v56 }
  0xb2   : > { %6940 = vmatprep.subr.bf16.mxu0 %v11440_v12  ;;  %7740 = vmatprep.subr.bf16.mxu1 %v11440_v12  ;;  %v11480_v28 = vpack.c.bf16 %v510_v11, %v508_v40  ;;  %v509_v12 = vld [vmem:[%s16006_s4 + $0x570] sm:$0xff]  ;;  %v511_v11 = vld [vmem:[%s16006_s4 + $0x580] sm:$0xff] }
  0xb3   : > { %v11496_v40 = vpack.c.bf16 %v509_v12, %v507_v5  ;;  %v518_v12 = vld [vmem:[%s16006_s4 + $0x5b8] sm:$0xff] }
  0xb4   : > { %16733 = vst [vmem:[#allocation40_spill] sm:$0xff] %v11480_v28 }
  0xb5   : > { %6942 = vmatpush1.bf16.msra.mxu0 %v11456_v33  ;;  %7742 = vmatpush1.bf16.msra.mxu1 %v11456_v33  ;;  %v512_v33 = vld [vmem:[%s16006_s4 + $0x588] sm:$0xff]  ;;  %16734 = vst [vmem:[#allocation41_spill] sm:$0xff] %v11496_v40 }
  0xb6   : > { %6944 = vmatprep.subr.bf16.mxu0 %v11460_v10  ;;  %7744 = vmatprep.subr.bf16.mxu1 %v11460_v10  ;;  %v11500_v30 = vpack.c.bf16 %v514_v55, %v512_v33  ;;  %v513_v10 = vld [vmem:[%s16006_s4 + $0x590] sm:$0xff]  ;;  %v515_v55 = vld [vmem:[%s16006_s4 + $0x5a0] sm:$0xff] }
  0xb7   : > { %v11516_v33 = vpack.c.bf16 %v513_v10, %v511_v11  ;;  %v522_v10 = vld [vmem:[%s16006_s4 + $0x5d8] sm:$0xff] }
  0xb8   : > { %16735 = vst [vmem:[#allocation42_spill] sm:$0xff] %v11500_v30 }
  0xb9   : > { %6946 = vmatpush1.bf16.msra.mxu0 %v11476_v56  ;;  %7746 = vmatpush1.bf16.msra.mxu1 %v11476_v56  ;;  %v516_v56 = vld [vmem:[%s16006_s4 + $0x5a8] sm:$0xff]  ;;  %16736 = vst [vmem:[#allocation43_spill] sm:$0xff] %v11516_v33 }
  0xba   : > { %6948 = vmatprep.subr.bf16.mxu0 %v11480_v28  ;;  %7748 = vmatprep.subr.bf16.mxu1 %v11480_v28  ;;  %v11520_v5 = vpack.c.bf16 %v518_v12, %v516_v56  ;;  %v517_v28 = vld [vmem:[%s16006_s4 + $0x5b0] sm:$0xff]  ;;  %v519_v12 = vld [vmem:[%s16006_s4 + $0x5c0] sm:$0xff] }
  0xbb   : > { %v11536_v56 = vpack.c.bf16 %v517_v28, %v515_v55  ;;  %v526_v28 = vld [vmem:[%s16006_s4 + $0x5f8] sm:$0xff] }
  0xbc   : > { %16737 = vst [vmem:[#allocation44_spill] sm:$0xff] %v11520_v5 }
  0xbd   : > { %6950 = vmatpush1.bf16.msra.mxu0 %v11496_v40  ;;  %7750 = vmatpush1.bf16.msra.mxu1 %v11496_v40  ;;  %v520_v40 = vld [vmem:[%s16006_s4 + $0x5c8] sm:$0xff]  ;;  %16738 = vst [vmem:[#allocation45_spill] sm:$0xff] %v11536_v56 }
  0xbe   : > { %6952 = vmatprep.subr.bf16.mxu0 %v11500_v30  ;;  %7752 = vmatprep.subr.bf16.mxu1 %v11500_v30  ;;  %v11540_v11 = vpack.c.bf16 %v522_v10, %v520_v40  ;;  %v521_v30 = vld [vmem:[%s16006_s4 + $0x5d0] sm:$0xff]  ;;  %v523_v10 = vld [vmem:[%s16006_s4 + $0x5e0] sm:$0xff] }
  0xbf   : > { %v11556_v40 = vpack.c.bf16 %v521_v30, %v519_v12  ;;  %v528_v30 = vld [vmem:[%s16006_s4 + $0x608] sm:$0xff]  ;;  %v530_v12 = vld [vmem:[%s16006_s4 + $0x618] sm:$0xff] }
  0xc0   : > { %16739 = vst [vmem:[#allocation46_spill] sm:$0xff] %v11540_v11 }
  0xc1   : > { %6954 = vmatpush1.bf16.msra.mxu0 %v11516_v33  ;;  %7754 = vmatpush1.bf16.msra.mxu1 %v11516_v33  ;;  %v524_v33 = vld [vmem:[%s16006_s4 + $0x5e8] sm:$0xff]  ;;  %16740 = vst [vmem:[#allocation47_spill] sm:$0xff] %v11556_v40 }
  0xc2   : > { %6956 = vmatprep.subr.bf16.mxu0 %v11520_v5  ;;  %7756 = vmatprep.subr.bf16.mxu1 %v11520_v5  ;;  %v11560_v55 = vpack.c.bf16 %v526_v28, %v524_v33  ;;  %v525_v5 = vld [vmem:[%s16006_s4 + $0x5f0] sm:$0xff]  ;;  %v11580_v28 = vpack.c.bf16 %v530_v12, %v528_v30  ;;  %v2521_v12 = vld [vmem:[%s10690_s13 + $0x20] sm:$0xff] }
  0xc3   : > { %v11576_v33 = vpack.c.bf16 %v525_v5, %v523_v10  ;;  %v534_v5 = vld [vmem:[%s16006_s4 + $0x638] sm:$0xff]  ;;  %v1140_v10 = vld [vmem:[%s10684_s10 + $0x20] sm:$0xff] }
  0xc4   : > { %16741 = vst [vmem:[#allocation48_spill] sm:$0xff] %v11560_v55  ;;  %16743 = vst [vmem:[#allocation50_spill] sm:$0xff] %v11580_v28 }
  0xc5   : > { %6958 = vmatpush1.bf16.msra.mxu0 %v11536_v56  ;;  %7758 = vmatpush1.bf16.msra.mxu1 %v11536_v56  ;;  %16742 = vst [vmem:[#allocation49_spill] sm:$0xff] %v11576_v33  ;;  %v529_v56 = vld [vmem:[%s16006_s4 + $0x610] sm:$0xff] }
  0xc6   : > { %6960 = vmatprep.subr.bf16.mxu0 %v11540_v11  ;;  %7760 = vmatprep.subr.bf16.mxu1 %v11540_v11  ;;  %v527_v11 = vld [vmem:[%s16006_s4 + $0x600] sm:$0xff] }
  0xc7   : > { %v11597_v30 = vpack.c.bf16 %v529_v56, %v527_v11  ;;  %v536_v56 = vld [vmem:[%s16006_s4 + $0x648] sm:$0xff]  ;;  %v538_v11 = vld [vmem:[%s16006_s4 + $0x658] sm:$0xff] }
  0xc9   : > { %6962 = vmatpush1.bf16.msra.mxu0 %v11556_v40  ;;  %7762 = vmatpush1.bf16.msra.mxu1 %v11556_v40  ;;  %v532_v40 = vld [vmem:[%s16006_s4 + $0x628] sm:$0xff]  ;;  %16744 = vst [vmem:[#allocation51_spill] sm:$0xff] %v11597_v30 }
  0xca   : > { %6964 = vmatprep.subr.bf16.mxu0 %v11560_v55  ;;  %7764 = vmatprep.subr.bf16.mxu1 %v11560_v55  ;;  %v11602_v55 = vpack.c.bf16 %v534_v5, %v532_v40  ;;  %v1166_v40 = vld [vmem:[%s10684_s10 + $0xf0] sm:$0xff] }
  0xcb   : > { %v2547_v5 = vld [vmem:[%s10690_s13 + $0xf0] sm:$0xff] }
  0xcc   : > { %16745 = vst [vmem:[#allocation52_spill] sm:$0xff] %v11602_v55 }
  0xcd   : > { %6966 = vmatpush1.bf16.msra.mxu0 %v11576_v33  ;;  %7766 = vmatpush1.bf16.msra.mxu1 %v11576_v33  ;;  %v533_v33 = vld [vmem:[%s16006_s4 + $0x630] sm:$0xff] }
  0xce   : > { %6968 = vmatprep.subr.bf16.mxu0 %v11580_v28  ;;  %7768 = vmatprep.subr.bf16.mxu1 %v11580_v28  ;;  %v11620_v28 = vpack.c.bf16 %v533_v33, %v531_v41  ;;  %v540_v41 = vld [vmem:[%s16006_s4 + $0x668] sm:$0xff]  ;;  %v542_v33 = vld [vmem:[%s16006_s4 + $0x678] sm:$0xff] }
  0xd0   : > { %1527 = vmatmul.mubr.f32.vlgmr.msra.gmra.mrb[0].mxu0 %v1140_v10  ;;  %2897 = vmatmul.mubr.f32.vlgmr.msra.gmra.mrb[0].mxu1 %v2521_v12  ;;  %16746 = vst [vmem:[#allocation53_spill] sm:$0xff] %v11620_v28  ;;  %v11626_v10 = vpack.c.bf16 %v538_v11, %v536_v56  ;;  %v535_v12 = vld [vmem:[%s16006_s4 + $0x640] sm:$0xff]  ;;  %v1191_v56 = vld [vmem:[%s10684_s10 + $0x1b8] sm:$0xff] }
  0xd1   : > { %6970 = vmatpush1.bf16.msra.mxu0 %v11597_v30  ;;  %7770 = vmatpush1.bf16.msra.mxu1 %v11597_v30  ;;  %v537_v30 = vld [vmem:[%s16006_s4 + $0x650] sm:$0xff]  ;;  %v2572_v11 = vld [vmem:[%s10690_s13 + $0x1b8] sm:$0xff] }
  0xd2   : > { %6972 = vmatprep.subr.bf16.mxu0 %v11602_v55  ;;  %7772 = vmatprep.subr.bf16.mxu1 %v11602_v55  ;;  %16747 = vst [vmem:[#allocation54_spill] sm:$0xff] %v11626_v10  ;;  %v11644_v55 = vpack.c.bf16 %v537_v30, %v535_v12  ;;  %v544_v30 = vld [vmem:[%s16006_s4 + $0x688] sm:$0xff]  ;;  %v1216_v12 = vld [vmem:[%s10684_s10 + $0x280] sm:$0xff] }
  0xd3   : > { %1532 = vmatprep.mubr.f32.mxu0 %v1166_v40  ;;  %2902 = vmatprep.mubr.f32.mxu1 %v2547_v5  ;;  %v541_v40 = vld [vmem:[%s16006_s4 + $0x670] sm:$0xff]  ;;  %v546_v5 = vld [vmem:[%s16006_s4 + $0x698] sm:$0xff] }
  0xd4   : > { %1533 = vmatmul.mubr.f32.gmra.mrb[2].mxu0 %v1165_v60  ;;  %2903 = vmatmul.mubr.f32.gmra.mrb[2].mxu1 %v2546_v36  ;;  %16748 = vst [vmem:[#allocation55_spill] sm:$0xff] %v11644_v55  ;;  %v11650_v60 = vpack.c.bf16 %v542_v33, %v540_v41  ;;  %v539_v36 = vld [vmem:[%s16006_s4 + $0x660] sm:$0xff] }
  0xd5   : > { %6974 = vmatpush1.bf16.msra.mxu0 %v11620_v28  ;;  %7774 = vmatpush1.bf16.msra.mxu1 %v11620_v28  ;;  %v2597_v41 = vld [vmem:[%s10690_s13 + $0x280] sm:$0xff]  ;;  %v11668_v33 = vpack.c.bf16 %v541_v40, %v539_v36  ;;  %v2596_v28 = vld [vmem:[%s10690_s13 + $0x278] sm:$0xff]  ;;  %v1241_v40 = vld [vmem:[%s10684_s10 + $0x348] sm:$0xff] }
  0xd6   : > { %6976 = vmatprep.subr.bf16.mxu0 %v11626_v10  ;;  %7776 = vmatprep.subr.bf16.mxu1 %v11626_v10  ;;  %16749 = vst [vmem:[#allocation56_spill] sm:$0xff] %v11650_v60  ;;  %v1215_v10 = vld [vmem:[%s10684_s10 + $0x278] sm:$0xff] }
  0xd7   : > { %1538 = vmatprep.mubr.f32.mxu0 %v1191_v56  ;;  %2908 = vmatprep.mubr.f32.mxu1 %v2572_v11  ;;  %16750 = vst [vmem:[#allocation57_spill] sm:$0xff] %v11668_v33  ;;  %v545_v56 = vld [vmem:[%s16006_s4 + $0x690] sm:$0xff]  ;;  %v548_v11 = vld [vmem:[%s16006_s4 + $0x6a8] sm:$0xff]  ;;  %v550_v36 = vld [vmem:[%s16006_s4 + $0x6b8] sm:$0xff] }
  0xd8   : > { %1539 = vmatmul.mubr.f32.gmra.mrb[4].mxu0 %v1190_v54  ;;  %2909 = vmatmul.mubr.f32.gmra.mrb[4].mxu1 %v2571_v47  ;;  %v11674_v54 = vpack.c.bf16 %v546_v5, %v544_v30  ;;  %v543_v47 = vld [vmem:[%s16006_s4 + $0x680] sm:$0xff]  ;;  %v2622_v30 = vld [vmem:[%s10690_s13 + $0x348] sm:$0xff] }
  0xd9   : > { %6978 = vmatpush1.bf16.msra.mxu0 %v11644_v55  ;;  %7778 = vmatpush1.bf16.msra.mxu1 %v11644_v55  ;;  %v11692_v5 = vpack.c.bf16 %v545_v56, %v543_v47  ;;  %v2621_v55 = vld [vmem:[%s10690_s13 + $0x340] sm:$0xff]  ;;  %v554_v47 = vld [vmem:[%s16006_s4 + $0x6d8] sm:$0xff] }
  0xda   : > { %6980 = vmatprep.subr.bf16.mxu0 %v11650_v60  ;;  %7780 = vmatprep.subr.bf16.mxu1 %v11650_v60  ;;  %16751 = vst [vmem:[#allocation58_spill] sm:$0xff] %v11674_v54  ;;  %v1240_v60 = vld [vmem:[%s10684_s10 + $0x340] sm:$0xff]  ;;  %v1143_v56 = vld [vmem:[%s10684_s10 + $0x38] sm:$0xff] }
  0xdb   : > { %1544 = vmatprep.mubr.f32.mxu0 %v1216_v12  ;;  %2914 = vmatprep.mubr.f32.mxu1 %v2597_v41  ;;  %16752 = vst [vmem:[#allocation59_spill] sm:$0xff] %v11692_v5  ;;  %v11698_v12 = vpack.c.bf16 %v550_v36, %v548_v11  ;;  %v552_v41 = vld [vmem:[%s16006_s4 + $0x6c8] sm:$0xff]  ;;  %v2524_v11 = vld [vmem:[%s10690_s13 + $0x38] sm:$0xff] }
  0xdc   : > { %1545 = vmatmul.mubr.f32.gmra.mrb[6].mxu0 %v1215_v10  ;;  %2915 = vmatmul.mubr.f32.gmra.mrb[6].mxu1 %v2596_v28  ;;  %v547_v28 = vld [vmem:[%s16006_s4 + $0x6a0] sm:$0xff]  ;;  %v549_v10 = vld [vmem:[%s16006_s4 + $0x6b0] sm:$0xff] }
  0xdd   : > { %6982 = vmatpush1.bf16.msra.mxu0 %v11668_v33  ;;  %7782 = vmatpush1.bf16.msra.mxu1 %v11668_v33  ;;  %16753 = vst [vmem:[#allocation60_spill] sm:$0xff] %v11698_v12  ;;  %v11716_v36 = vpack.c.bf16 %v549_v10, %v547_v28  ;;  %v2573_v33 = vld [vmem:[%s10690_s13 + $0x1c0] sm:$0xff] }
  0xde   : > { %6984 = vmatprep.subr.bf16.mxu0 %v11674_v54  ;;  %7784 = vmatprep.subr.bf16.mxu1 %v11674_v54  ;;  %v11720_v54 = vpack.c.bf16 %v554_v47, %v552_v41  ;;  %v555_v41 = vld [vmem:[%s16006_s4 + $0x6e0] sm:$0xff]  ;;  %v557_v47 = vld [vmem:[%s16006_s4 + $0x6f0] sm:$0xff] }
  0xdf   : > { %1550 = vmatprep.mubr.f32.mxu0 %v1241_v40  ;;  %2920 = vmatprep.mubr.f32.mxu1 %v2622_v30  ;;  %16754 = vst [vmem:[#allocation61_spill] sm:$0xff] %v11716_v36  ;;  %v551_v40 = vld [vmem:[%s16006_s4 + $0x6c0] sm:$0xff]  ;;  %v558_v30 = vld [vmem:[%s16006_s4 + $0x6f8] sm:$0xff] }
  0xe0   : > { %1551 = vmatmul.mubr.f32.gmra.mrb[8].mxu0 %v1240_v60  ;;  %2921 = vmatmul.mubr.f32.gmra.mrb[8].mxu1 %v2621_v55  ;;  %16755 = vst [vmem:[#allocation62_spill] sm:$0xff] %v11720_v54  ;;  %v553_v55 = vld [vmem:[%s16006_s4 + $0x6d0] sm:$0xff]  ;;  %v556_v60 = vld [vmem:[%s16006_s4 + $0x6e8] sm:$0xff] }
  0xe1   : > { %6986 = vmatpush1.bf16.msra.mxu0 %v11692_v5  ;;  %7786 = vmatpush1.bf16.msra.mxu1 %v11692_v5  ;;  %v11736_v28 = vpack.c.bf16 %v553_v55, %v551_v40  ;;  %v11740_v10 = vpack.c.bf16 %v558_v30, %v556_v60  ;;  %v11756_v40 = vpack.c.bf16 %v557_v47, %v555_v41  ;;  %v559_v60 = vld [vmem:[%s16006_s4 + $0x700] sm:$0xff]  ;;  %v561_v30 = vld [vmem:[%s16006_s4 + $0x710] sm:$0xff]  ;;  %v566_v41 = vld [vmem:[%s16006_s4 + $0x738] sm:$0xff] }
  0xe2   : > { %6988 = vmatprep.subr.bf16.mxu0 %v11698_v12  ;;  %7788 = vmatprep.subr.bf16.mxu1 %v11698_v12  ;;  %v11776_v47 = vpack.c.bf16 %v561_v30, %v559_v60  ;;  %v570_v60 = vld [vmem:[%s16006_s4 + $0x758] sm:$0xff]  ;;  %v1192_v5 = vld [vmem:[%s10684_s10 + $0x1c0] sm:$0xff] }
  0xe3   : > { %1621 = vmatprep.mubr.f32.mxu0 %v1143_v56  ;;  %2991 = vmatprep.mubr.f32.mxu1 %v2524_v11  ;;  %16756 = vst [vmem:[#allocation63_spill] sm:$0xff] %v11736_v28  ;;  %16757 = vst [vmem:[#allocation64_spill] sm:$0xff] %v11740_v10  ;;  %v560_v56 = vld [vmem:[%s16006_s4 + $0x708] sm:$0xff]  ;;  %v562_v11 = vld [vmem:[%s16006_s4 + $0x718] sm:$0xff] }
  0xe4   : > { %16758 = vst [vmem:[#allocation65_spill] sm:$0xff] %v11756_v40  ;;  %v11760_v55 = vpack.c.bf16 %v562_v11, %v560_v56  ;;  %16760 = vst [vmem:[#allocation67_spill] sm:$0xff] %v11776_v47  ;;  %v563_v11 = vld [vmem:[%s16006_s4 + $0x720] sm:$0xff]  ;;  %v2548_v12 = vld [vmem:[%s10690_s13 + $0xf8] sm:$0xff] }
  0xe5   : > { %6990 = vmatpush1.bf16.msra.mxu0 %v11716_v36  ;;  %7790 = vmatpush1.bf16.msra.mxu1 %v11716_v36  ;;  %v1167_v36 = vld [vmem:[%s10684_s10 + $0xf8] sm:$0xff] }
  0xe6   : > { %6992 = vmatprep.subr.bf16.mxu0 %v11720_v54  ;;  %7792 = vmatprep.subr.bf16.mxu1 %v11720_v54  ;;  %16759 = vst [vmem:[#allocation66_spill] sm:$0xff] %v11760_v55  ;;  %v595_v54 = vld [vmem:[%s16006_s4 + $0x820] sm:$0xff] }
  0xe9   : > { %6994 = vmatpush1.bf16.msra.mxu0 %v11736_v28  ;;  %7794 = vmatpush1.bf16.msra.mxu1 %v11736_v28  ;;  %v564_v28 = vld [vmem:[%s16006_s4 + $0x728] sm:$0xff] }
  0xea   : > { %6996 = vmatprep.subr.bf16.mxu0 %v11740_v10  ;;  %7796 = vmatprep.subr.bf16.mxu1 %v11740_v10  ;;  %v11780_v56 = vpack.c.bf16 %v566_v41, %v564_v28  ;;  %v565_v10 = vld [vmem:[%s16006_s4 + $0x730] sm:$0xff]  ;;  %v567_v41 = vld [vmem:[%s16006_s4 + $0x740] sm:$0xff] }
  0xeb   : > { %v11796_v28 = vpack.c.bf16 %v565_v10, %v563_v11  ;;  %v574_v10 = vld [vmem:[%s16006_s4 + $0x778] sm:$0xff] }
  0xec   : > { %16761 = vst [vmem:[#allocation68_spill] sm:$0xff] %v11780_v56 }
  0xed   : > { %6998 = vmatpush1.bf16.msra.mxu0 %v11756_v40  ;;  %7798 = vmatpush1.bf16.msra.mxu1 %v11756_v40  ;;  %v568_v40 = vld [vmem:[%s16006_s4 + $0x748] sm:$0xff]  ;;  %16762 = vst [vmem:[#allocation69_spill] sm:$0xff] %v11796_v28 }
  0xee   : > { %7000 = vmatprep.subr.bf16.mxu0 %v11760_v55  ;;  %7800 = vmatprep.subr.bf16.mxu1 %v11760_v55  ;;  %v11800_v30 = vpack.c.bf16 %v570_v60, %v568_v40  ;;  %v569_v55 = vld [vmem:[%s16006_s4 + $0x750] sm:$0xff]  ;;  %v571_v60 = vld [vmem:[%s16006_s4 + $0x760] sm:$0xff] }
  0xef   : > { %v11816_v40 = vpack.c.bf16 %v569_v55, %v567_v41  ;;  %v578_v55 = vld [vmem:[%s16006_s4 + $0x798] sm:$0xff] }
  0xf0   : > { %16763 = vst [vmem:[#allocation70_spill] sm:$0xff] %v11800_v30 }
  0xf1   : > { %7002 = vmatpush1.bf16.msra.mxu0 %v11776_v47  ;;  %7802 = vmatpush1.bf16.msra.mxu1 %v11776_v47  ;;  %v572_v47 = vld [vmem:[%s16006_s4 + $0x768] sm:$0xff]  ;;  %16764 = vst [vmem:[#allocation71_spill] sm:$0xff] %v11816_v40 }
  0xf2   : > { %7004 = vmatprep.subr.bf16.mxu0 %v11780_v56  ;;  %7804 = vmatprep.subr.bf16.mxu1 %v11780_v56  ;;  %v11820_v11 = vpack.c.bf16 %v574_v10, %v572_v47  ;;  %v573_v56 = vld [vmem:[%s16006_s4 + $0x770] sm:$0xff]  ;;  %v575_v10 = vld [vmem:[%s16006_s4 + $0x780] sm:$0xff] }
  0xf3   : > { %v11836_v47 = vpack.c.bf16 %v573_v56, %v571_v60  ;;  %v582_v56 = vld [vmem:[%s16006_s4 + $0x7b8] sm:$0xff] }
  0xf4   : > { %16765 = vst [vmem:[#allocation72_spill] sm:$0xff] %v11820_v11 }
  0xf5   : > { %7006 = vmatpush1.bf16.msra.mxu0 %v11796_v28  ;;  %7806 = vmatpush1.bf16.msra.mxu1 %v11796_v28  ;;  %v576_v28 = vld [vmem:[%s16006_s4 + $0x788] sm:$0xff]  ;;  %16766 = vst [vmem:[#allocation73_spill] sm:$0xff] %v11836_v47 }
  0xf6   : > { %7008 = vmatprep.subr.bf16.mxu0 %v11800_v30  ;;  %7808 = vmatprep.subr.bf16.mxu1 %v11800_v30  ;;  %v11840_v41 = vpack.c.bf16 %v578_v55, %v576_v28  ;;  %v577_v30 = vld [vmem:[%s16006_s4 + $0x790] sm:$0xff]  ;;  %v579_v55 = vld [vmem:[%s16006_s4 + $0x7a0] sm:$0xff] }
  0xf7   : > { %v11856_v28 = vpack.c.bf16 %v577_v30, %v575_v10  ;;  %v586_v30 = vld [vmem:[%s16006_s4 + $0x7d8] sm:$0xff] }
  0xf8   : > { %16767 = vst [vmem:[#allocation74_spill] sm:$0xff] %v11840_v41 }
  0xf9   : > { %7010 = vmatpush1.bf16.msra.mxu0 %v11816_v40  ;;  %7810 = vmatpush1.bf16.msra.mxu1 %v11816_v40  ;;  %v580_v40 = vld [vmem:[%s16006_s4 + $0x7a8] sm:$0xff]  ;;  %16768 = vst [vmem:[#allocation75_spill] sm:$0xff] %v11856_v28 }
  0xfa   : > { %7012 = vmatprep.subr.bf16.mxu0 %v11820_v11  ;;  %7812 = vmatprep.subr.bf16.mxu1 %v11820_v11  ;;  %v11860_v60 = vpack.c.bf16 %v582_v56, %v580_v40  ;;  %v581_v11 = vld [vmem:[%s16006_s4 + $0x7b0] sm:$0xff]  ;;  %v583_v56 = vld [vmem:[%s16006_s4 + $0x7c0] sm:$0xff] }
  0xfb   : > { %v11876_v40 = vpack.c.bf16 %v581_v11, %v579_v55  ;;  %v590_v11 = vld [vmem:[%s16006_s4 + $0x7f8] sm:$0xff] }
  0xfc   : > { %16769 = vst [vmem:[#allocation76_spill] sm:$0xff] %v11860_v60 }
  0xfd   : > { %7014 = vmatpush1.bf16.msra.mxu0 %v11836_v47  ;;  %7814 = vmatpush1.bf16.msra.mxu1 %v11836_v47  ;;  %v584_v47 = vld [vmem:[%s16006_s4 + $0x7c8] sm:$0xff]  ;;  %16770 = vst [vmem:[#allocation77_spill] sm:$0xff] %v11876_v40 }
  0xfe   : > { %7016 = vmatprep.subr.bf16.mxu0 %v11840_v41  ;;  %7816 = vmatprep.subr.bf16.mxu1 %v11840_v41  ;;  %v11880_v10 = vpack.c.bf16 %v586_v30, %v584_v47  ;;  %v585_v41 = vld [vmem:[%s16006_s4 + $0x7d0] sm:$0xff]  ;;  %v587_v30 = vld [vmem:[%s16006_s4 + $0x7e0] sm:$0xff] }
  0xff   : > { %v11896_v47 = vpack.c.bf16 %v585_v41, %v583_v56  ;;  %v592_v41 = vld [vmem:[%s16006_s4 + $0x808] sm:$0xff]  ;;  %v594_v56 = vld [vmem:[%s16006_s4 + $0x818] sm:$0xff] }
 0x100   : > { %16771 = vst [vmem:[#allocation78_spill] sm:$0xff] %v11880_v10 }
 0x101   : > { %7018 = vmatpush1.bf16.msra.mxu0 %v11856_v28  ;;  %7818 = vmatpush1.bf16.msra.mxu1 %v11856_v28  ;;  %v588_v28 = vld [vmem:[%s16006_s4 + $0x7e8] sm:$0xff]  ;;  %16772 = vst [vmem:[#allocation79_spill] sm:$0xff] %v11896_v47 }
 0x102   : > { %7020 = vmatprep.subr.bf16.mxu0 %v11860_v60  ;;  %7820 = vmatprep.subr.bf16.mxu1 %v11860_v60  ;;  %v11900_v55 = vpack.c.bf16 %v590_v11, %v588_v28  ;;  %v589_v60 = vld [vmem:[%s16006_s4 + $0x7f0] sm:$0xff]  ;;  %v11920_v11 = vpack.c.bf16 %v594_v56, %v592_v41 }
 0x103   : > { %v11916_v28 = vpack.c.bf16 %v589_v60, %v587_v30  ;;  %v598_v60 = vld [vmem:[%s16006_s4 + $0x838] sm:$0xff]  ;;  %v1142_v30 = vld [vmem:[%s10684_s10 + $0x30] sm:$0xff] }
 0x104   : > { %16773 = vst [vmem:[#allocation80_spill] sm:$0xff] %v11900_v55  ;;  %16775 = vst [vmem:[#allocation82_spill] sm:$0xff] %v11920_v11  ;;  %v2523_v56 = vld [vmem:[%s10690_s13 + $0x30] sm:$0xff] }
 0x105   : > { %7022 = vmatpush1.bf16.msra.mxu0 %v11876_v40  ;;  %7822 = vmatpush1.bf16.msra.mxu1 %v11876_v40  ;;  %16774 = vst [vmem:[#allocation81_spill] sm:$0xff] %v11916_v28  ;;  %v593_v40 = vld [vmem:[%s16006_s4 + $0x810] sm:$0xff] }
 0x106   : > { %7024 = vmatprep.subr.bf16.mxu0 %v11880_v10  ;;  %7824 = vmatprep.subr.bf16.mxu1 %v11880_v10  ;;  %v591_v10 = vld [vmem:[%s16006_s4 + $0x800] sm:$0xff] }
 0x107   : > { %v11937_v41 = vpack.c.bf16 %v593_v40, %v591_v10  ;;  %v600_v40 = vld [vmem:[%s16006_s4 + $0x848] sm:$0xff]  ;;  %v602_v10 = vld [vmem:[%s16006_s4 + $0x858] sm:$0xff] }
 0x109   : > { %7026 = vmatpush1.bf16.msra.mxu0 %v11896_v47  ;;  %7826 = vmatpush1.bf16.msra.mxu1 %v11896_v47  ;;  %v596_v47 = vld [vmem:[%s16006_s4 + $0x828] sm:$0xff]  ;;  %16776 = vst [vmem:[#allocation83_spill] sm:$0xff] %v11937_v41 }
 0x10a   : > { %7028 = vmatprep.subr.bf16.mxu0 %v11900_v55  ;;  %7828 = vmatprep.subr.bf16.mxu1 %v11900_v55  ;;  %v11942_v55 = vpack.c.bf16 %v598_v60, %v596_v47  ;;  %v1168_v47 = vld [vmem:[%s10684_s10 + $0x100] sm:$0xff] }
 0x10b   : > { %v2549_v60 = vld [vmem:[%s10690_s13 + $0x100] sm:$0xff] }
 0x10c   : > { %16777 = vst [vmem:[#allocation84_spill] sm:$0xff] %v11942_v55 }
 0x10d   : > { %7030 = vmatpush1.bf16.msra.mxu0 %v11916_v28  ;;  %7830 = vmatpush1.bf16.msra.mxu1 %v11916_v28  ;;  %v597_v28 = vld [vmem:[%s16006_s4 + $0x830] sm:$0xff] }
 0x10e   : > { %7032 = vmatprep.subr.bf16.mxu0 %v11920_v11  ;;  %7832 = vmatprep.subr.bf16.mxu1 %v11920_v11  ;;  %v11960_v11 = vpack.c.bf16 %v597_v28, %v595_v54  ;;  %v604_v54 = vld [vmem:[%s16006_s4 + $0x868] sm:$0xff]  ;;  %v606_v28 = vld [vmem:[%s16006_s4 + $0x878] sm:$0xff] }
 0x110   : > { %1622 = vmatmul.mubr.f32.vlgmr.msra.gmra.mrb[0].mxu0 %v1142_v30  ;;  %2992 = vmatmul.mubr.f32.vlgmr.msra.gmra.mrb[0].mxu1 %v2523_v56  ;;  %16778 = vst [vmem:[#allocation85_spill] sm:$0xff] %v11960_v11  ;;  %v11966_v30 = vpack.c.bf16 %v602_v10, %v600_v40  ;;  %v599_v56 = vld [vmem:[%s16006_s4 + $0x840] sm:$0xff]  ;;  %v1193_v40 = vld [vmem:[%s10684_s10 + $0x1c8] sm:$0xff] }
 0x111   : > { %7034 = vmatpush1.bf16.msra.mxu0 %v11937_v41  ;;  %7834 = vmatpush1.bf16.msra.mxu1 %v11937_v41  ;;  %v601_v41 = vld [vmem:[%s16006_s4 + $0x850] sm:$0xff]  ;;  %v2574_v10 = vld [vmem:[%s10690_s13 + $0x1c8] sm:$0xff] }
 0x112   : > { %7036 = vmatprep.subr.bf16.mxu0 %v11942_v55  ;;  %7836 = vmatprep.subr.bf16.mxu1 %v11942_v55  ;;  %16779 = vst [vmem:[#allocation86_spill] sm:$0xff] %v11966_v30  ;;  %v11984_v55 = vpack.c.bf16 %v601_v41, %v599_v56  ;;  %v608_v41 = vld [vmem:[%s16006_s4 + $0x888] sm:$0xff]  ;;  %v1218_v56 = vld [vmem:[%s10684_s10 + $0x290] sm:$0xff] }
 0x113   : > { %1627 = vmatprep.mubr.f32.mxu0 %v1168_v47  ;;  %2997 = vmatprep.mubr.f32.mxu1 %v2549_v60  ;;  %v605_v47 = vld [vmem:[%s16006_s4 + $0x870] sm:$0xff]  ;;  %v610_v60 = vld [vmem:[%s16006_s4 + $0x898] sm:$0xff] }
 0x114   : > { %1628 = vmatmul.mubr.f32.gmra.mrb[2].mxu0 %v1167_v36  ;;  %2998 = vmatmul.mubr.f32.gmra.mrb[2].mxu1 %v2548_v12  ;;  %16780 = vst [vmem:[#allocation87_spill] sm:$0xff] %v11984_v55  ;;  %v11990_v36 = vpack.c.bf16 %v606_v28, %v604_v54  ;;  %v603_v12 = vld [vmem:[%s16006_s4 + $0x860] sm:$0xff]  ;;  %v2599_v54 = vld [vmem:[%s10690_s13 + $0x290] sm:$0xff] }
 0x115   : > { %7038 = vmatpush1.bf16.msra.mxu0 %v11960_v11  ;;  %7838 = vmatpush1.bf16.msra.mxu1 %v11960_v11  ;;  %v12008_v28 = vpack.c.bf16 %v605_v47, %v603_v12  ;;  %v2598_v11 = vld [vmem:[%s10690_s13 + $0x288] sm:$0xff]  ;;  %v614_v12 = vld [vmem:[%s16006_s4 + $0x8b8] sm:$0xff] }
 0x116   : > { %7040 = vmatprep.subr.bf16.mxu0 %v11966_v30  ;;  %7840 = vmatprep.subr.bf16.mxu1 %v11966_v30  ;;  %16781 = vst [vmem:[#allocation88_spill] sm:$0xff] %v11990_v36  ;;  %v1217_v30 = vld [vmem:[%s10684_s10 + $0x288] sm:$0xff]  ;;  %v1243_v47 = vld [vmem:[%s10684_s10 + $0x358] sm:$0xff] }
 0x117   : > { %1633 = vmatprep.mubr.f32.mxu0 %v1193_v40  ;;  %3003 = vmatprep.mubr.f32.mxu1 %v2574_v10  ;;  %16782 = vst [vmem:[#allocation89_spill] sm:$0xff] %v12008_v28  ;;  %v609_v40 = vld [vmem:[%s16006_s4 + $0x890] sm:$0xff]  ;;  %v612_v10 = vld [vmem:[%s16006_s4 + $0x8a8] sm:$0xff] }
 0x118   : > { %1634 = vmatmul.mubr.f32.gmra.mrb[4].mxu0 %v1192_v5  ;;  %3004 = vmatmul.mubr.f32.gmra.mrb[4].mxu1 %v2573_v33  ;;  %v12014_v5 = vpack.c.bf16 %v610_v60, %v608_v41  ;;  %v607_v33 = vld [vmem:[%s16006_s4 + $0x880] sm:$0xff]  ;;  %v2624_v41 = vld [vmem:[%s10690_s13 + $0x358] sm:$0xff] }
 0x119   : > { %7042 = vmatpush1.bf16.msra.mxu0 %v11984_v55  ;;  %7842 = vmatpush1.bf16.msra.mxu1 %v11984_v55  ;;  %v12032_v60 = vpack.c.bf16 %v609_v40, %v607_v33  ;;  %v2623_v55 = vld [vmem:[%s10690_s13 + $0x350] sm:$0xff]  ;;  %v618_v33 = vld [vmem:[%s16006_s4 + $0x8d8] sm:$0xff]  ;;  %v1145_v40 = vld [vmem:[%s10684_s10 + $0x48] sm:$0xff] }
 0x11a   : > { %7044 = vmatprep.subr.bf16.mxu0 %v11990_v36  ;;  %7844 = vmatprep.subr.bf16.mxu1 %v11990_v36  ;;  %16783 = vst [vmem:[#allocation90_spill] sm:$0xff] %v12014_v5  ;;  %v1242_v36 = vld [vmem:[%s10684_s10 + $0x350] sm:$0xff] }
 0x11b   : > { %1639 = vmatprep.mubr.f32.mxu0 %v1218_v56  ;;  %3009 = vmatprep.mubr.f32.mxu1 %v2599_v54  ;;  %16784 = vst [vmem:[#allocation91_spill] sm:$0xff] %v12032_v60  ;;  %v12038_v56 = vpack.c.bf16 %v614_v12, %v612_v10  ;;  %v616_v54 = vld [vmem:[%s16006_s4 + $0x8c8] sm:$0xff] }
 0x11c   : > { %1640 = vmatmul.mubr.f32.gmra.mrb[6].mxu0 %v1217_v30  ;;  %3010 = vmatmul.mubr.f32.gmra.mrb[6].mxu1 %v2598_v11  ;;  %v611_v11 = vld [vmem:[%s16006_s4 + $0x8a0] sm:$0xff]  ;;  %v613_v30 = vld [vmem:[%s16006_s4 + $0x8b0] sm:$0xff]  ;;  %v2526_v10 = vld [vmem:[%s10690_s13 + $0x48] sm:$0xff] }
 0x11d   : > { %7046 = vmatpush1.bf16.msra.mxu0 %v12008_v28  ;;  %7846 = vmatpush1.bf16.msra.mxu1 %v12008_v28  ;;  %16785 = vst [vmem:[#allocation92_spill] sm:$0xff] %v12038_v56  ;;  %v12056_v12 = vpack.c.bf16 %v613_v30, %v611_v11  ;;  %v2575_v28 = vld [vmem:[%s10690_s13 + $0x1d0] sm:$0xff] }
 0x11e   : > { %7048 = vmatprep.subr.bf16.mxu0 %v12014_v5  ;;  %7848 = vmatprep.subr.bf16.mxu1 %v12014_v5  ;;  %v12060_v5 = vpack.c.bf16 %v618_v33, %v616_v54  ;;  %v619_v54 = vld [vmem:[%s16006_s4 + $0x8e0] sm:$0xff]  ;;  %v621_v33 = vld [vmem:[%s16006_s4 + $0x8f0] sm:$0xff] }
 0x11f   : > { %1645 = vmatprep.mubr.f32.mxu0 %v1243_v47  ;;  %3015 = vmatprep.mubr.f32.mxu1 %v2624_v41  ;;  %16786 = vst [vmem:[#allocation93_spill] sm:$0xff] %v12056_v12  ;;  %v615_v47 = vld [vmem:[%s16006_s4 + $0x8c0] sm:$0xff]  ;;  %v622_v41 = vld [vmem:[%s16006_s4 + $0x8f8] sm:$0xff] }
 0x120   : > { %1646 = vmatmul.mubr.f32.gmra.mrb[8].mxu0 %v1242_v36  ;;  %3016 = vmatmul.mubr.f32.gmra.mrb[8].mxu1 %v2623_v55  ;;  %16787 = vst [vmem:[#allocation94_spill] sm:$0xff] %v12060_v5  ;;  %v617_v55 = vld [vmem:[%s16006_s4 + $0x8d0] sm:$0xff]  ;;  %v620_v36 = vld [vmem:[%s16006_s4 + $0x8e8] sm:$0xff] }
 0x121   : > { %7050 = vmatpush1.bf16.msra.mxu0 %v12032_v60  ;;  %7850 = vmatpush1.bf16.msra.mxu1 %v12032_v60  ;;  %v12076_v11 = vpack.c.bf16 %v617_v55, %v615_v47  ;;  %v12080_v30 = vpack.c.bf16 %v622_v41, %v620_v36  ;;  %v12096_v47 = vpack.c.bf16 %v621_v33, %v619_v54  ;;  %v623_v36 = vld [vmem:[%s16006_s4 + $0x900] sm:$0xff]  ;;  %v625_v41 = vld [vmem:[%s16006_s4 + $0x910] sm:$0xff]  ;;  %v630_v54 = vld [vmem:[%s16006_s4 + $0x938] sm:$0xff] }
 0x122   : > { %7052 = vmatprep.subr.bf16.mxu0 %v12038_v56  ;;  %7852 = vmatprep.subr.bf16.mxu1 %v12038_v56  ;;  %v12116_v33 = vpack.c.bf16 %v625_v41, %v623_v36  ;;  %v634_v36 = vld [vmem:[%s16006_s4 + $0x958] sm:$0xff]  ;;  %v2550_v56 = vld [vmem:[%s10690_s13 + $0x108] sm:$0xff]  ;;  %v1194_v60 = vld [vmem:[%s10684_s10 + $0x1d0] sm:$0xff] }
 0x123   : > { %1716 = vmatprep.mubr.f32.mxu0 %v1145_v40  ;;  %3086 = vmatprep.mubr.f32.mxu1 %v2526_v10  ;;  %16788 = vst [vmem:[#allocation95_spill] sm:$0xff] %v12076_v11  ;;  %16789 = vst [vmem:[#allocation96_spill] sm:$0xff] %v12080_v30  ;;  %v624_v40 = vld [vmem:[%s16006_s4 + $0x908] sm:$0xff]  ;;  %v626_v10 = vld [vmem:[%s16006_s4 + $0x918] sm:$0xff] }
 0x124   : > { %16790 = vst [vmem:[#allocation97_spill] sm:$0xff] %v12096_v47  ;;  %v12100_v55 = vpack.c.bf16 %v626_v10, %v624_v40  ;;  %16792 = vst [vmem:[#allocation99_spill] sm:$0xff] %v12116_v33  ;;  %v627_v10 = vld [vmem:[%s16006_s4 + $0x920] sm:$0xff] }
 0x125   : > { %7054 = vmatpush1.bf16.msra.mxu0 %v12056_v12  ;;  %7854 = vmatpush1.bf16.msra.mxu1 %v12056_v12  ;;  %v1169_v12 = vld [vmem:[%s10684_s10 + $0x108] sm:$0xff] }
 0x126   : > { %7056 = vmatprep.subr.bf16.mxu0 %v12060_v5  ;;  %7856 = vmatprep.subr.bf16.mxu1 %v12060_v5  ;;  %16791 = vst [vmem:[#allocation98_spill] sm:$0xff] %v12100_v55  ;;  %v659_v5 = vld [vmem:[%s16006_s4 + $0xa20] sm:$0xff] }
 0x129   : > { %7058 = vmatpush1.bf16.msra.mxu0 %v12076_v11  ;;  %7858 = vmatpush1.bf16.msra.mxu1 %v12076_v11  ;;  %v628_v11 = vld [vmem:[%s16006_s4 + $0x928] sm:$0xff] }
 0x12a   : > { %7060 = vmatprep.subr.bf16.mxu0 %v12080_v30  ;;  %7860 = vmatprep.subr.bf16.mxu1 %v12080_v30  ;;  %v12120_v40 = vpack.c.bf16 %v630_v54, %v628_v11  ;;  %v629_v30 = vld [vmem:[%s16006_s4 + $0x930] sm:$0xff]  ;;  %v631_v54 = vld [vmem:[%s16006_s4 + $0x940] sm:$0xff] }
 0x12b   : > { %v12136_v11 = vpack.c.bf16 %v629_v30, %v627_v10  ;;  %v638_v30 = vld [vmem:[%s16006_s4 + $0x978] sm:$0xff] }
 0x12c   : > { %16793 = vst [vmem:[#allocation100_spill] sm:$0xff] %v12120_v40 }
 0x12d   : > { %7062 = vmatpush1.bf16.msra.mxu0 %v12096_v47  ;;  %7862 = vmatpush1.bf16.msra.mxu1 %v12096_v47  ;;  %v632_v47 = vld [vmem:[%s16006_s4 + $0x948] sm:$0xff]  ;;  %16794 = vst [vmem:[#allocation101_spill] sm:$0xff] %v12136_v11 }
 0x12e   : > { %7064 = vmatprep.subr.bf16.mxu0 %v12100_v55  ;;  %7864 = vmatprep.subr.bf16.mxu1 %v12100_v55  ;;  %v12140_v41 = vpack.c.bf16 %v634_v36, %v632_v47  ;;  %v633_v55 = vld [vmem:[%s16006_s4 + $0x950] sm:$0xff]  ;;  %v635_v36 = vld [vmem:[%s16006_s4 + $0x960] sm:$0xff] }
 0x12f   : > { %v12156_v47 = vpack.c.bf16 %v633_v55, %v631_v54  ;;  %v642_v55 = vld [vmem:[%s16006_s4 + $0x998] sm:$0xff] }
 0x130   : > { %16795 = vst [vmem:[#allocation102_spill] sm:$0xff] %v12140_v41 }
 0x131   : > { %7066 = vmatpush1.bf16.msra.mxu0 %v12116_v33  ;;  %7866 = vmatpush1.bf16.msra.mxu1 %v12116_v33  ;;  %v636_v33 = vld [vmem:[%s16006_s4 + $0x968] sm:$0xff]  ;;  %16796 = vst [vmem:[#allocation103_spill] sm:$0xff] %v12156_v47 }
 0x132   : > { %7068 = vmatprep.subr.bf16.mxu0 %v12120_v40  ;;  %7868 = vmatprep.subr.bf16.mxu1 %v12120_v40  ;;  %v12160_v10 = vpack.c.bf16 %v638_v30, %v636_v33  ;;  %v637_v40 = vld [vmem:[%s16006_s4 + $0x970] sm:$0xff]  ;;  %v639_v30 = vld [vmem:[%s16006_s4 + $0x980] sm:$0xff] }
 0x133   : > { %v12176_v33 = vpack.c.bf16 %v637_v40, %v635_v36  ;;  %v646_v40 = vld [vmem:[%s16006_s4 + $0x9b8] sm:$0xff] }
 0x134   : > { %16797 = vst [vmem:[#allocation104_spill] sm:$0xff] %v12160_v10 }
 0x135   : > { %7070 = vmatpush1.bf16.msra.mxu0 %v12136_v11  ;;  %7870 = vmatpush1.bf16.msra.mxu1 %v12136_v11  ;;  %v640_v11 = vld [vmem:[%s16006_s4 + $0x988] sm:$0xff]  ;;  %16798 = vst [vmem:[#allocation105_spill] sm:$0xff] %v12176_v33 }
 0x136   : > { %7072 = vmatprep.subr.bf16.mxu0 %v12140_v41  ;;  %7872 = vmatprep.subr.bf16.mxu1 %v12140_v41  ;;  %v12180_v54 = vpack.c.bf16 %v642_v55, %v640_v11  ;;  %v641_v41 = vld [vmem:[%s16006_s4 + $0x990] sm:$0xff]  ;;  %v643_v55 = vld [vmem:[%s16006_s4 + $0x9a0] sm:$0xff] }
 0x137   : > { %v12196_v11 = vpack.c.bf16 %v641_v41, %v639_v30  ;;  %v650_v41 = vld [vmem:[%s16006_s4 + $0x9d8] sm:$0xff] }
 0x138   : > { %16799 = vst [vmem:[#allocation106_spill] sm:$0xff] %v12180_v54 }
 0x139   : > { %7074 = vmatpush1.bf16.msra.mxu0 %v12156_v47  ;;  %7874 = vmatpush1.bf16.msra.mxu1 %v12156_v47  ;;  %v644_v47 = vld [vmem:[%s16006_s4 + $0x9a8] sm:$0xff]  ;;  %16800 = vst [vmem:[#allocation107_spill] sm:$0xff] %v12196_v11 }
 0x13a   : > { %7076 = vmatprep.subr.bf16.mxu0 %v12160_v10  ;;  %7876 = vmatprep.subr.bf16.mxu1 %v12160_v10  ;;  %v12200_v36 = vpack.c.bf16 %v646_v40, %v644_v47  ;;  %v645_v10 = vld [vmem:[%s16006_s4 + $0x9b0] sm:$0xff]  ;;  %v647_v40 = vld [vmem:[%s16006_s4 + $0x9c0] sm:$0xff] }
 0x13b   : > { %v12216_v47 = vpack.c.bf16 %v645_v10, %v643_v55  ;;  %v654_v10 = vld [vmem:[%s16006_s4 + $0x9f8] sm:$0xff] }
 0x13c   : > { %16801 = vst [vmem:[#allocation108_spill] sm:$0xff] %v12200_v36 }
 0x13d   : > { %7078 = vmatpush1.bf16.msra.mxu0 %v12176_v33  ;;  %7878 = vmatpush1.bf16.msra.mxu1 %v12176_v33  ;;  %v648_v33 = vld [vmem:[%s16006_s4 + $0x9c8] sm:$0xff]  ;;  %16802 = vst [vmem:[#allocation109_spill] sm:$0xff] %v12216_v47 }
 0x13e   : > { %7080 = vmatprep.subr.bf16.mxu0 %v12180_v54  ;;  %7880 = vmatprep.subr.bf16.mxu1 %v12180_v54  ;;  %v12220_v30 = vpack.c.bf16 %v650_v41, %v648_v33  ;;  %v649_v54 = vld [vmem:[%s16006_s4 + $0x9d0] sm:$0xff]  ;;  %v651_v41 = vld [vmem:[%s16006_s4 + $0x9e0] sm:$0xff] }
 0x13f   : > { %v12236_v33 = vpack.c.bf16 %v649_v54, %v647_v40  ;;  %v656_v54 = vld [vmem:[%s16006_s4 + $0xa08] sm:$0xff]  ;;  %v658_v40 = vld [vmem:[%s16006_s4 + $0xa18] sm:$0xff] }
 0x140   : > { %16803 = vst [vmem:[#allocation110_spill] sm:$0xff] %v12220_v30 }
 0x141   : > { %7082 = vmatpush1.bf16.msra.mxu0 %v12196_v11  ;;  %7882 = vmatpush1.bf16.msra.mxu1 %v12196_v11  ;;  %v652_v11 = vld [vmem:[%s16006_s4 + $0x9e8] sm:$0xff]  ;;  %16804 = vst [vmem:[#allocation111_spill] sm:$0xff] %v12236_v33 }
 0x142   : > { %7084 = vmatprep.subr.bf16.mxu0 %v12200_v36  ;;  %7884 = vmatprep.subr.bf16.mxu1 %v12200_v36  ;;  %v12240_v55 = vpack.c.bf16 %v654_v10, %v652_v11  ;;  %v653_v36 = vld [vmem:[%s16006_s4 + $0x9f0] sm:$0xff]  ;;  %v12260_v10 = vpack.c.bf16 %v658_v40, %v656_v54  ;;  %v2525_v40 = vld [vmem:[%s10690_s13 + $0x40] sm:$0xff] }
 0x143   : > { %v12256_v11 = vpack.c.bf16 %v653_v36, %v651_v41  ;;  %v662_v36 = vld [vmem:[%s16006_s4 + $0xa38] sm:$0xff]  ;;  %v1144_v41 = vld [vmem:[%s10684_s10 + $0x40] sm:$0xff] }
 0x144   : > { %16805 = vst [vmem:[#allocation112_spill] sm:$0xff] %v12240_v55  ;;  %16807 = vst [vmem:[#allocation114_spill] sm:$0xff] %v12260_v10 }
 0x145   : > { %7086 = vmatpush1.bf16.msra.mxu0 %v12216_v47  ;;  %7886 = vmatpush1.bf16.msra.mxu1 %v12216_v47  ;;  %16806 = vst [vmem:[#allocation113_spill] sm:$0xff] %v12256_v11  ;;  %v657_v47 = vld [vmem:[%s16006_s4 + $0xa10] sm:$0xff] }
 0x146   : > { %7088 = vmatprep.subr.bf16.mxu0 %v12220_v30  ;;  %7888 = vmatprep.subr.bf16.mxu1 %v12220_v30  ;;  %v655_v30 = vld [vmem:[%s16006_s4 + $0xa00] sm:$0xff] }
 0x147   : > { %v12277_v54 = vpack.c.bf16 %v657_v47, %v655_v30  ;;  %v664_v47 = vld [vmem:[%s16006_s4 + $0xa48] sm:$0xff]  ;;  %v666_v30 = vld [vmem:[%s16006_s4 + $0xa58] sm:$0xff] }
 0x149   : > { %7090 = vmatpush1.bf16.msra.mxu0 %v12236_v33  ;;  %7890 = vmatpush1.bf16.msra.mxu1 %v12236_v33  ;;  %v660_v33 = vld [vmem:[%s16006_s4 + $0xa28] sm:$0xff]  ;;  %16808 = vst [vmem:[#allocation115_spill] sm:$0xff] %v12277_v54 }
 0x14a   : > { %7092 = vmatprep.subr.bf16.mxu0 %v12240_v55  ;;  %7892 = vmatprep.subr.bf16.mxu1 %v12240_v55  ;;  %v12282_v55 = vpack.c.bf16 %v662_v36, %v660_v33  ;;  %v1170_v33 = vld [vmem:[%s10684_s10 + $0x110] sm:$0xff] }
 0x14b   : > { %v2551_v36 = vld [vmem:[%s10690_s13 + $0x110] sm:$0xff] }
 0x14c   : > { %16809 = vst [vmem:[#allocation116_spill] sm:$0xff] %v12282_v55 }
 0x14d   : > { %7094 = vmatpush1.bf16.msra.mxu0 %v12256_v11  ;;  %7894 = vmatpush1.bf16.msra.mxu1 %v12256_v11  ;;  %v661_v11 = vld [vmem:[%s16006_s4 + $0xa30] sm:$0xff] }
 0x14e   : > { %7096 = vmatprep.subr.bf16.mxu0 %v12260_v10  ;;  %7896 = vmatprep.subr.bf16.mxu1 %v12260_v10  ;;  %v12300_v10 = vpack.c.bf16 %v661_v11, %v659_v5  ;;  %v668_v5 = vld [vmem:[%s16006_s4 + $0xa68] sm:$0xff]  ;;  %v670_v11 = vld [vmem:[%s16006_s4 + $0xa78] sm:$0xff] }
 0x150   : > { %1717 = vmatmul.mubr.f32.vlgmr.msra.gmra.mrb[0].mxu0 %v1144_v41  ;;  %3087 = vmatmul.mubr.f32.vlgmr.msra.gmra.mrb[0].mxu1 %v2525_v40  ;;  %16810 = vst [vmem:[#allocation117_spill] sm:$0xff] %v12300_v10  ;;  %v12306_v41 = vpack.c.bf16 %v666_v30, %v664_v47  ;;  %v663_v40 = vld [vmem:[%s16006_s4 + $0xa40] sm:$0xff]  ;;  %v1195_v47 = vld [vmem:[%s10684_s10 + $0x1d8] sm:$0xff] }
 0x151   : > { %7098 = vmatpush1.bf16.msra.mxu0 %v12277_v54  ;;  %7898 = vmatpush1.bf16.msra.mxu1 %v12277_v54  ;;  %v665_v54 = vld [vmem:[%s16006_s4 + $0xa50] sm:$0xff]  ;;  %v2576_v30 = vld [vmem:[%s10690_s13 + $0x1d8] sm:$0xff] }
 0x152   : > { %7100 = vmatprep.subr.bf16.mxu0 %v12282_v55  ;;  %7900 = vmatprep.subr.bf16.mxu1 %v12282_v55  ;;  %16811 = vst [vmem:[#allocation118_spill] sm:$0xff] %v12306_v41  ;;  %v12324_v55 = vpack.c.bf16 %v665_v54, %v663_v40  ;;  %v672_v54 = vld [vmem:[%s16006_s4 + $0xa88] sm:$0xff]  ;;  %v1220_v40 = vld [vmem:[%s10684_s10 + $0x2a0] sm:$0xff] }
 0x153   : > { %1722 = vmatprep.mubr.f32.mxu0 %v1170_v33  ;;  %3092 = vmatprep.mubr.f32.mxu1 %v2551_v36  ;;  %v669_v33 = vld [vmem:[%s16006_s4 + $0xa70] sm:$0xff]  ;;  %v674_v36 = vld [vmem:[%s16006_s4 + $0xa98] sm:$0xff] }
 0x154   : > { %1723 = vmatmul.mubr.f32.gmra.mrb[2].mxu0 %v1169_v12  ;;  %3093 = vmatmul.mubr.f32.gmra.mrb[2].mxu1 %v2550_v56  ;;  %16812 = vst [vmem:[#allocation119_spill] sm:$0xff] %v12324_v55  ;;  %v12330_v12 = vpack.c.bf16 %v670_v11, %v668_v5  ;;  %v667_v56 = vld [vmem:[%s16006_s4 + $0xa60] sm:$0xff] }
 0x155   : > { %7102 = vmatpush1.bf16.msra.mxu0 %v12300_v10  ;;  %7902 = vmatpush1.bf16.msra.mxu1 %v12300_v10  ;;  %v2601_v5 = vld [vmem:[%s10690_s13 + $0x2a0] sm:$0xff]  ;;  %v12348_v11 = vpack.c.bf16 %v669_v33, %v667_v56  ;;  %v2600_v10 = vld [vmem:[%s10690_s13 + $0x298] sm:$0xff]  ;;  %v1245_v33 = vld [vmem:[%s10684_s10 + $0x368] sm:$0xff] }
 0x156   : > { %7104 = vmatprep.subr.bf16.mxu0 %v12306_v41  ;;  %7904 = vmatprep.subr.bf16.mxu1 %v12306_v41  ;;  %16813 = vst [vmem:[#allocation120_spill] sm:$0xff] %v12330_v12  ;;  %v1219_v41 = vld [vmem:[%s10684_s10 + $0x298] sm:$0xff] }
 0x157   : > { %1728 = vmatprep.mubr.f32.mxu0 %v1195_v47  ;;  %3098 = vmatprep.mubr.f32.mxu1 %v2576_v30  ;;  %16814 = vst [vmem:[#allocation121_spill] sm:$0xff] %v12348_v11  ;;  %v673_v47 = vld [vmem:[%s16006_s4 + $0xa90] sm:$0xff]  ;;  %v676_v30 = vld [vmem:[%s16006_s4 + $0xaa8] sm:$0xff]  ;;  %v678_v56 = vld [vmem:[%s16006_s4 + $0xab8] sm:$0xff] }
 0x158   : > { %1729 = vmatmul.mubr.f32.gmra.mrb[4].mxu0 %v1194_v60  ;;  %3099 = vmatmul.mubr.f32.gmra.mrb[4].mxu1 %v2575_v28  ;;  %v12354_v60 = vpack.c.bf16 %v674_v36, %v672_v54  ;;  %v671_v28 = vld [vmem:[%s16006_s4 + $0xa80] sm:$0xff]  ;;  %v2626_v54 = vld [vmem:[%s10690_s13 + $0x368] sm:$0xff] }
 0x159   : > { %7106 = vmatpush1.bf16.msra.mxu0 %v12324_v55  ;;  %7906 = vmatpush1.bf16.msra.mxu1 %v12324_v55  ;;  %v12372_v36 = vpack.c.bf16 %v673_v47, %v671_v28  ;;  %v2625_v55 = vld [vmem:[%s10690_s13 + $0x360] sm:$0xff]  ;;  %v682_v28 = vld [vmem:[%s16006_s4 + $0xad8] sm:$0xff] }
 0x15a   : > { %7108 = vmatprep.subr.bf16.mxu0 %v12330_v12  ;;  %7908 = vmatprep.subr.bf16.mxu1 %v12330_v12  ;;  %16815 = vst [vmem:[#allocation122_spill] sm:$0xff] %v12354_v60  ;;  %v1244_v12 = vld [vmem:[%s10684_s10 + $0x360] sm:$0xff]  ;;  %v1147_v47 = vld [vmem:[%s10684_s10 + $0x58] sm:$0xff] }
 0x15b   : > { %1734 = vmatprep.mubr.f32.mxu0 %v1220_v40  ;;  %3104 = vmatprep.mubr.f32.mxu1 %v2601_v5  ;;  %16816 = vst [vmem:[#allocation123_spill] sm:$0xff] %v12372_v36  ;;  %v12378_v40 = vpack.c.bf16 %v678_v56, %v676_v30  ;;  %v680_v5 = vld [vmem:[%s16006_s4 + $0xac8] sm:$0xff]  ;;  %v2528_v30 = vld [vmem:[%s10690_s13 + $0x58] sm:$0xff] }
 0x15c   : > { %1735 = vmatmul.mubr.f32.gmra.mrb[6].mxu0 %v1219_v41  ;;  %3105 = vmatmul.mubr.f32.gmra.mrb[6].mxu1 %v2600_v10  ;;  %v675_v10 = vld [vmem:[%s16006_s4 + $0xaa0] sm:$0xff]  ;;  %v677_v41 = vld [vmem:[%s16006_s4 + $0xab0] sm:$0xff] }
 0x15d   : > { %7110 = vmatpush1.bf16.msra.mxu0 %v12348_v11  ;;  %7910 = vmatpush1.bf16.msra.mxu1 %v12348_v11  ;;  %16817 = vst [vmem:[#allocation124_spill] sm:$0xff] %v12378_v40  ;;  %v12396_v56 = vpack.c.bf16 %v677_v41, %v675_v10  ;;  %v2577_v11 = vld [vmem:[%s10690_s13 + $0x1e0] sm:$0xff] }
 0x15e   : > { %7112 = vmatprep.subr.bf16.mxu0 %v12354_v60  ;;  %7912 = vmatprep.subr.bf16.mxu1 %v12354_v60  ;;  %v12400_v60 = vpack.c.bf16 %v682_v28, %v680_v5  ;;  %v683_v5 = vld [vmem:[%s16006_s4 + $0xae0] sm:$0xff]  ;;  %v685_v28 = vld [vmem:[%s16006_s4 + $0xaf0] sm:$0xff] }
 0x15f   : > { %1740 = vmatprep.mubr.f32.mxu0 %v1245_v33  ;;  %3110 = vmatprep.mubr.f32.mxu1 %v2626_v54  ;;  %16818 = vst [vmem:[#allocation125_spill] sm:$0xff] %v12396_v56  ;;  %v679_v33 = vld [vmem:[%s16006_s4 + $0xac0] sm:$0xff]  ;;  %v686_v54 = vld [vmem:[%s16006_s4 + $0xaf8] sm:$0xff] }
 0x160   : > { %1741 = vmatmul.mubr.f32.gmra.mrb[8].mxu0 %v1244_v12  ;;  %3111 = vmatmul.mubr.f32.gmra.mrb[8].mxu1 %v2625_v55  ;;  %16819 = vst [vmem:[#allocation126_spill] sm:$0xff] %v12400_v60  ;;  %v681_v55 = vld [vmem:[%s16006_s4 + $0xad0] sm:$0xff]  ;;  %v684_v12 = vld [vmem:[%s16006_s4 + $0xae8] sm:$0xff] }
 0x161   : > { %7114 = vmatpush1.bf16.msra.mxu0 %v12372_v36  ;;  %7914 = vmatpush1.bf16.msra.mxu1 %v12372_v36  ;;  %v12416_v10 = vpack.c.bf16 %v681_v55, %v679_v33  ;;  %v12420_v41 = vpack.c.bf16 %v686_v54, %v684_v12  ;;  %v12436_v33 = vpack.c.bf16 %v685_v28, %v683_v5  ;;  %v687_v12 = vld [vmem:[%s16006_s4 + $0xb00] sm:$0xff]  ;;  %v689_v54 = vld [vmem:[%s16006_s4 + $0xb10] sm:$0xff]  ;;  %v694_v5 = vld [vmem:[%s16006_s4 + $0xb38] sm:$0xff] }
 0x162   : > { %7116 = vmatprep.subr.bf16.mxu0 %v12378_v40  ;;  %7916 = vmatprep.subr.bf16.mxu1 %v12378_v40  ;;  %v12456_v28 = vpack.c.bf16 %v689_v54, %v687_v12  ;;  %v698_v12 = vld [vmem:[%s16006_s4 + $0xb58] sm:$0xff]  ;;  %v1196_v36 = vld [vmem:[%s10684_s10 + $0x1e0] sm:$0xff] }
 0x163   : > { %1811 = vmatprep.mubr.f32.mxu0 %v1147_v47  ;;  %3181 = vmatprep.mubr.f32.mxu1 %v2528_v30  ;;  %16820 = vst [vmem:[#allocation127_spill] sm:$0xff] %v12416_v10  ;;  %16821 = vst [vmem:[#allocation128_spill] sm:$0xff] %v12420_v41  ;;  %v688_v47 = vld [vmem:[%s16006_s4 + $0xb08] sm:$0xff]  ;;  %v690_v30 = vld [vmem:[%s16006_s4 + $0xb18] sm:$0xff] }
 0x164   : > { %16822 = vst [vmem:[#allocation129_spill] sm:$0xff] %v12436_v33  ;;  %v12440_v55 = vpack.c.bf16 %v690_v30, %v688_v47  ;;  %16824 = vst [vmem:[#allocation131_spill] sm:$0xff] %v12456_v28  ;;  %v691_v30 = vld [vmem:[%s16006_s4 + $0xb20] sm:$0xff]  ;;  %v2552_v40 = vld [vmem:[%s10690_s13 + $0x118] sm:$0xff] }
 0x165   : > { %7118 = vmatpush1.bf16.msra.mxu0 %v12396_v56  ;;  %7918 = vmatpush1.bf16.msra.mxu1 %v12396_v56  ;;  %v1171_v56 = vld [vmem:[%s10684_s10 + $0x118] sm:$0xff] }
 0x166   : > { %7120 = vmatprep.subr.bf16.mxu0 %v12400_v60  ;;  %7920 = vmatprep.subr.bf16.mxu1 %v12400_v60  ;;  %16823 = vst [vmem:[#allocation130_spill] sm:$0xff] %v12440_v55  ;;  %v723_v60 = vld [vmem:[%s16006_s4 + $0xc20] sm:$0xff] }
 0x169   : > { %7122 = vmatpush1.bf16.msra.mxu0 %v12416_v10  ;;  %7922 = vmatpush1.bf16.msra.mxu1 %v12416_v10  ;;  %v692_v10 = vld [vmem:[%s16006_s4 + $0xb28] sm:$0xff] }
 0x16a   : > { %7124 = vmatprep.subr.bf16.mxu0 %v12420_v41  ;;  %7924 = vmatprep.subr.bf16.mxu1 %v12420_v41  ;;  %v12460_v47 = vpack.c.bf16 %v694_v5, %v692_v10  ;;  %v693_v41 = vld [vmem:[%s16006_s4 + $0xb30] sm:$0xff]  ;;  %v695_v5 = vld [vmem:[%s16006_s4 + $0xb40] sm:$0xff] }
 0x16b   : > { %v12476_v10 = vpack.c.bf16 %v693_v41, %v691_v30  ;;  %v702_v41 = vld [vmem:[%s16006_s4 + $0xb78] sm:$0xff] }
 0x16c   : > { %16825 = vst [vmem:[#allocation132_spill] sm:$0xff] %v12460_v47 }
 0x16d   : > { %7126 = vmatpush1.bf16.msra.mxu0 %v12436_v33  ;;  %7926 = vmatpush1.bf16.msra.mxu1 %v12436_v33  ;;  %v696_v33 = vld [vmem:[%s16006_s4 + $0xb48] sm:$0xff]  ;;  %16826 = vst [vmem:[#allocation133_spill] sm:$0xff] %v12476_v10 }
 0x16e   : > { %7128 = vmatprep.subr.bf16.mxu0 %v12440_v55  ;;  %7928 = vmatprep.subr.bf16.mxu1 %v12440_v55  ;;  %v12480_v54 = vpack.c.bf16 %v698_v12, %v696_v33  ;;  %v697_v55 = vld [vmem:[%s16006_s4 + $0xb50] sm:$0xff]  ;;  %v699_v12 = vld [vmem:[%s16006_s4 + $0xb60] sm:$0xff] }
 0x16f   : > { %v12496_v33 = vpack.c.bf16 %v697_v55, %v695_v5  ;;  %v706_v55 = vld [vmem:[%s16006_s4 + $0xb98] sm:$0xff] }
 0x170   : > { %16827 = vst [vmem:[#allocation134_spill] sm:$0xff] %v12480_v54 }
 0x171   : > { %7130 = vmatpush1.bf16.msra.mxu0 %v12456_v28  ;;  %7930 = vmatpush1.bf16.msra.mxu1 %v12456_v28  ;;  %v700_v28 = vld [vmem:[%s16006_s4 + $0xb68] sm:$0xff]  ;;  %16828 = vst [vmem:[#allocation135_spill] sm:$0xff] %v12496_v33 }
 0x172   : > { %7132 = vmatprep.subr.bf16.mxu0 %v12460_v47  ;;  %7932 = vmatprep.subr.bf16.mxu1 %v12460_v47  ;;  %v12500_v30 = vpack.c.bf16 %v702_v41, %v700_v28  ;;  %v701_v47 = vld [vmem:[%s16006_s4 + $0xb70] sm:$0xff]  ;;  %v703_v41 = vld [vmem:[%s16006_s4 + $0xb80] sm:$0xff] }
 0x173   : > { %v12516_v28 = vpack.c.bf16 %v701_v47, %v699_v12  ;;  %v710_v47 = vld [vmem:[%s16006_s4 + $0xbb8] sm:$0xff] }
 0x174   : > { %16829 = vst [vmem:[#allocation136_spill] sm:$0xff] %v12500_v30 }
 0x175   : > { %7134 = vmatpush1.bf16.msra.mxu0 %v12476_v10  ;;  %7934 = vmatpush1.bf16.msra.mxu1 %v12476_v10  ;;  %v704_v10 = vld [vmem:[%s16006_s4 + $0xb88] sm:$0xff]  ;;  %16830 = vst [vmem:[#allocation137_spill] sm:$0xff] %v12516_v28 }
 0x176   : > { %7136 = vmatprep.subr.bf16.mxu0 %v12480_v54  ;;  %7936 = vmatprep.subr.bf16.mxu1 %v12480_v54  ;;  %v12520_v5 = vpack.c.bf16 %v706_v55, %v704_v10  ;;  %v705_v54 = vld [vmem:[%s16006_s4 + $0xb90] sm:$0xff]  ;;  %v707_v55 = vld [vmem:[%s16006_s4 + $0xba0] sm:$0xff] }
 0x177   : > { %v12536_v10 = vpack.c.bf16 %v705_v54, %v703_v41  ;;  %v714_v54 = vld [vmem:[%s16006_s4 + $0xbd8] sm:$0xff] }
 0x178   : > { %16831 = vst [vmem:[#allocation138_spill] sm:$0xff] %v12520_v5 }
 0x179   : > { %7138 = vmatpush1.bf16.msra.mxu0 %v12496_v33  ;;  %7938 = vmatpush1.bf16.msra.mxu1 %v12496_v33  ;;  %v708_v33 = vld [vmem:[%s16006_s4 + $0xba8] sm:$0xff]  ;;  %16832 = vst [vmem:[#allocation139_spill] sm:$0xff] %v12536_v10 }
 0x17a   : > { %7140 = vmatprep.subr.bf16.mxu0 %v12500_v30  ;;  %7940 = vmatprep.subr.bf16.mxu1 %v12500_v30  ;;  %v12540_v12 = vpack.c.bf16 %v710_v47, %v708_v33  ;;  %v709_v30 = vld [vmem:[%s16006_s4 + $0xbb0] sm:$0xff]  ;;  %v711_v47 = vld [vmem:[%s16006_s4 + $0xbc0] sm:$0xff] }
 0x17b   : > { %v12556_v33 = vpack.c.bf16 %v709_v30, %v707_v55  ;;  %v718_v30 = vld [vmem:[%s16006_s4 + $0xbf8] sm:$0xff] }
 0x17c   : > { %16833 = vst [vmem:[#allocation140_spill] sm:$0xff] %v12540_v12 }
 0x17d   : > { %7142 = vmatpush1.bf16.msra.mxu0 %v12516_v28  ;;  %7942 = vmatpush1.bf16.msra.mxu1 %v12516_v28  ;;  %v712_v28 = vld [vmem:[%s16006_s4 + $0xbc8] sm:$0xff]  ;;  %16834 = vst [vmem:[#allocation141_spill] sm:$0xff] %v12556_v33 }
 0x17e   : > { %7144 = vmatprep.subr.bf16.mxu0 %v12520_v5  ;;  %7944 = vmatprep.subr.bf16.mxu1 %v12520_v5  ;;  %v12560_v41 = vpack.c.bf16 %v714_v54, %v712_v28  ;;  %v713_v5 = vld [vmem:[%s16006_s4 + $0xbd0] sm:$0xff]  ;;  %v715_v54 = vld [vmem:[%s16006_s4 + $0xbe0] sm:$0xff] }
 0x17f   : > { %v12576_v28 = vpack.c.bf16 %v713_v5, %v711_v47  ;;  %v720_v5 = vld [vmem:[%s16006_s4 + $0xc08] sm:$0xff]  ;;  %v722_v47 = vld [vmem:[%s16006_s4 + $0xc18] sm:$0xff] }
 0x180   : > { %16835 = vst [vmem:[#allocation142_spill] sm:$0xff] %v12560_v41 }
 0x181   : > { %7146 = vmatpush1.bf16.msra.mxu0 %v12536_v10  ;;  %7946 = vmatpush1.bf16.msra.mxu1 %v12536_v10  ;;  %v716_v10 = vld [vmem:[%s16006_s4 + $0xbe8] sm:$0xff]  ;;  %16836 = vst [vmem:[#allocation143_spill] sm:$0xff] %v12576_v28 }
 0x182   : > { %7148 = vmatprep.subr.bf16.mxu0 %v12540_v12  ;;  %7948 = vmatprep.subr.bf16.mxu1 %v12540_v12  ;;  %v12580_v55 = vpack.c.bf16 %v718_v30, %v716_v10  ;;  %v717_v12 = vld [vmem:[%s16006_s4 + $0xbf0] sm:$0xff]  ;;  %v12600_v30 = vpack.c.bf16 %v722_v47, %v720_v5 }
 0x183   : > { %v12596_v10 = vpack.c.bf16 %v717_v12, %v715_v54  ;;  %v726_v12 = vld [vmem:[%s16006_s4 + $0xc38] sm:$0xff]  ;;  %v1146_v54 = vld [vmem:[%s10684_s10 + $0x50] sm:$0xff] }
 0x184   : > { %16837 = vst [vmem:[#allocation144_spill] sm:$0xff] %v12580_v55  ;;  %16839 = vst [vmem:[#allocation146_spill] sm:$0xff] %v12600_v30  ;;  %v2527_v47 = vld [vmem:[%s10690_s13 + $0x50] sm:$0xff] }
 0x185   : > { %7150 = vmatpush1.bf16.msra.mxu0 %v12556_v33  ;;  %7950 = vmatpush1.bf16.msra.mxu1 %v12556_v33  ;;  %16838 = vst [vmem:[#allocation145_spill] sm:$0xff] %v12596_v10  ;;  %v721_v33 = vld [vmem:[%s16006_s4 + $0xc10] sm:$0xff] }
 0x186   : > { %7152 = vmatprep.subr.bf16.mxu0 %v12560_v41  ;;  %7952 = vmatprep.subr.bf16.mxu1 %v12560_v41  ;;  %v719_v41 = vld [vmem:[%s16006_s4 + $0xc00] sm:$0xff] }
 0x187   : > { %v12617_v5 = vpack.c.bf16 %v721_v33, %v719_v41  ;;  %v728_v33 = vld [vmem:[%s16006_s4 + $0xc48] sm:$0xff]  ;;  %v730_v41 = vld [vmem:[%s16006_s4 + $0xc58] sm:$0xff] }
 0x189   : > { %7154 = vmatpush1.bf16.msra.mxu0 %v12576_v28  ;;  %7954 = vmatpush1.bf16.msra.mxu1 %v12576_v28  ;;  %v724_v28 = vld [vmem:[%s16006_s4 + $0xc28] sm:$0xff]  ;;  %16840 = vst [vmem:[#allocation147_spill] sm:$0xff] %v12617_v5 }
 0x18a   : > { %7156 = vmatprep.subr.bf16.mxu0 %v12580_v55  ;;  %7956 = vmatprep.subr.bf16.mxu1 %v12580_v55  ;;  %v12622_v55 = vpack.c.bf16 %v726_v12, %v724_v28  ;;  %v1172_v28 = vld [vmem:[%s10684_s10 + $0x120] sm:$0xff] }
 0x18b   : > { %v2553_v12 = vld [vmem:[%s10690_s13 + $0x120] sm:$0xff] }
 0x18c   : > { %16841 = vst [vmem:[#allocation148_spill] sm:$0xff] %v12622_v55 }
 0x18d   : > { %7158 = vmatpush1.bf16.msra.mxu0 %v12596_v10  ;;  %7958 = vmatpush1.bf16.msra.mxu1 %v12596_v10  ;;  %v725_v10 = vld [vmem:[%s16006_s4 + $0xc30] sm:$0xff] }
 0x18e   : > { %7160 = vmatprep.subr.bf16.mxu0 %v12600_v30  ;;  %7960 = vmatprep.subr.bf16.mxu1 %v12600_v30  ;;  %v12640_v30 = vpack.c.bf16 %v725_v10, %v723_v60  ;;  %v732_v60 = vld [vmem:[%s16006_s4 + $0xc68] sm:$0xff]  ;;  %v734_v10 = vld [vmem:[%s16006_s4 + $0xc78] sm:$0xff] }
 0x190   : > { %1812 = vmatmul.mubr.f32.vlgmr.msra.gmra.mrb[0].mxu0 %v1146_v54  ;;  %3182 = vmatmul.mubr.f32.vlgmr.msra.gmra.mrb[0].mxu1 %v2527_v47  ;;  %16842 = vst [vmem:[#allocation149_spill] sm:$0xff] %v12640_v30  ;;  %v12646_v54 = vpack.c.bf16 %v730_v41, %v728_v33  ;;  %v727_v47 = vld [vmem:[%s16006_s4 + $0xc40] sm:$0xff]  ;;  %v1197_v33 = vld [vmem:[%s10684_s10 + $0x1e8] sm:$0xff] }
 0x191   : > { %7162 = vmatpush1.bf16.msra.mxu0 %v12617_v5  ;;  %7962 = vmatpush1.bf16.msra.mxu1 %v12617_v5  ;;  %v729_v5 = vld [vmem:[%s16006_s4 + $0xc50] sm:$0xff]  ;;  %v2578_v41 = vld [vmem:[%s10690_s13 + $0x1e8] sm:$0xff] }
 0x192   : > { %7164 = vmatprep.subr.bf16.mxu0 %v12622_v55  ;;  %7964 = vmatprep.subr.bf16.mxu1 %v12622_v55  ;;  %16843 = vst [vmem:[#allocation150_spill] sm:$0xff] %v12646_v54  ;;  %v12664_v55 = vpack.c.bf16 %v729_v5, %v727_v47  ;;  %v736_v5 = vld [vmem:[%s16006_s4 + $0xc88] sm:$0xff]  ;;  %v1222_v47 = vld [vmem:[%s10684_s10 + $0x2b0] sm:$0xff] }
 0x193   : > { %1817 = vmatprep.mubr.f32.mxu0 %v1172_v28  ;;  %3187 = vmatprep.mubr.f32.mxu1 %v2553_v12  ;;  %v733_v28 = vld [vmem:[%s16006_s4 + $0xc70] sm:$0xff]  ;;  %v738_v12 = vld [vmem:[%s16006_s4 + $0xc98] sm:$0xff] }
 0x194   : > { %1818 = vmatmul.mubr.f32.gmra.mrb[2].mxu0 %v1171_v56  ;;  %3188 = vmatmul.mubr.f32.gmra.mrb[2].mxu1 %v2552_v40  ;;  %16844 = vst [vmem:[#allocation151_spill] sm:$0xff] %v12664_v55  ;;  %v12670_v56 = vpack.c.bf16 %v734_v10, %v732_v60  ;;  %v731_v40 = vld [vmem:[%s16006_s4 + $0xc60] sm:$0xff]  ;;  %v2603_v60 = vld [vmem:[%s10690_s13 + $0x2b0] sm:$0xff] }
 0x195   : > { %7166 = vmatpush1.bf16.msra.mxu0 %v12640_v30  ;;  %7966 = vmatpush1.bf16.msra.mxu1 %v12640_v30  ;;  %v12688_v10 = vpack.c.bf16 %v733_v28, %v731_v40  ;;  %v2602_v30 = vld [vmem:[%s10690_s13 + $0x2a8] sm:$0xff]  ;;  %v742_v40 = vld [vmem:[%s16006_s4 + $0xcb8] sm:$0xff] }
 0x196   : > { %7168 = vmatprep.subr.bf16.mxu0 %v12646_v54  ;;  %7968 = vmatprep.subr.bf16.mxu1 %v12646_v54  ;;  %16845 = vst [vmem:[#allocation152_spill] sm:$0xff] %v12670_v56  ;;  %v1221_v54 = vld [vmem:[%s10684_s10 + $0x2a8] sm:$0xff]  ;;  %v1247_v28 = vld [vmem:[%s10684_s10 + $0x378] sm:$0xff] }
 0x197   : > { %1823 = vmatprep.mubr.f32.mxu0 %v1197_v33  ;;  %3193 = vmatprep.mubr.f32.mxu1 %v2578_v41  ;;  %16846 = vst [vmem:[#allocation153_spill] sm:$0xff] %v12688_v10  ;;  %v737_v33 = vld [vmem:[%s16006_s4 + $0xc90] sm:$0xff]  ;;  %v740_v41 = vld [vmem:[%s16006_s4 + $0xca8] sm:$0xff] }
 0x198   : > { %1824 = vmatmul.mubr.f32.gmra.mrb[4].mxu0 %v1196_v36  ;;  %3194 = vmatmul.mubr.f32.gmra.mrb[4].mxu1 %v2577_v11  ;;  %v12694_v36 = vpack.c.bf16 %v738_v12, %v736_v5  ;;  %v735_v11 = vld [vmem:[%s16006_s4 + $0xc80] sm:$0xff]  ;;  %v2628_v5 = vld [vmem:[%s10690_s13 + $0x378] sm:$0xff] }
 0x199   : > { %7170 = vmatpush1.bf16.msra.mxu0 %v12664_v55  ;;  %7970 = vmatpush1.bf16.msra.mxu1 %v12664_v55  ;;  %v12712_v12 = vpack.c.bf16 %v737_v33, %v735_v11  ;;  %v2627_v55 = vld [vmem:[%s10690_s13 + $0x370] sm:$0xff]  ;;  %v746_v11 = vld [vmem:[%s16006_s4 + $0xcd8] sm:$0xff]  ;;  %v1149_v33 = vld [vmem:[%s10684_s10 + $0x68] sm:$0xff] }
 0x19a   : > { %7172 = vmatprep.subr.bf16.mxu0 %v12670_v56  ;;  %7972 = vmatprep.subr.bf16.mxu1 %v12670_v56  ;;  %16847 = vst [vmem:[#allocation154_spill] sm:$0xff] %v12694_v36  ;;  %v1246_v56 = vld [vmem:[%s10684_s10 + $0x370] sm:$0xff] }
 0x19b   : > { %1829 = vmatprep.mubr.f32.mxu0 %v1222_v47  ;;  %3199 = vmatprep.mubr.f32.mxu1 %v2603_v60  ;;  %16848 = vst [vmem:[#allocation155_spill] sm:$0xff] %v12712_v12  ;;  %v12718_v47 = vpack.c.bf16 %v742_v40, %v740_v41  ;;  %v744_v60 = vld [vmem:[%s16006_s4 + $0xcc8] sm:$0xff] }
 0x19c   : > { %1830 = vmatmul.mubr.f32.gmra.mrb[6].mxu0 %v1221_v54  ;;  %3200 = vmatmul.mubr.f32.gmra.mrb[6].mxu1 %v2602_v30  ;;  %v739_v30 = vld [vmem:[%s16006_s4 + $0xca0] sm:$0xff]  ;;  %v741_v54 = vld [vmem:[%s16006_s4 + $0xcb0] sm:$0xff]  ;;  %v2530_v41 = vld [vmem:[%s10690_s13 + $0x68] sm:$0xff] }
 0x19d   : > { %7174 = vmatpush1.bf16.msra.mxu0 %v12688_v10  ;;  %7974 = vmatpush1.bf16.msra.mxu1 %v12688_v10  ;;  %16849 = vst [vmem:[#allocation156_spill] sm:$0xff] %v12718_v47  ;;  %v12736_v40 = vpack.c.bf16 %v741_v54, %v739_v30  ;;  %v2579_v10 = vld [vmem:[%s10690_s13 + $0x1f0] sm:$0xff] }
 0x19e   : > { %7176 = vmatprep.subr.bf16.mxu0 %v12694_v36  ;;  %7976 = vmatprep.subr.bf16.mxu1 %v12694_v36  ;;  %v12740_v36 = vpack.c.bf16 %v746_v11, %v744_v60  ;;  %v747_v60 = vld [vmem:[%s16006_s4 + $0xce0] sm:$0xff]  ;;  %v749_v11 = vld [vmem:[%s16006_s4 + $0xcf0] sm:$0xff] }
 0x19f   : > { %1835 = vmatprep.mubr.f32.mxu0 %v1247_v28  ;;  %3205 = vmatprep.mubr.f32.mxu1 %v2628_v5  ;;  %16850 = vst [vmem:[#allocation157_spill] sm:$0xff] %v12736_v40  ;;  %v743_v28 = vld [vmem:[%s16006_s4 + $0xcc0] sm:$0xff]  ;;  %v750_v5 = vld [vmem:[%s16006_s4 + $0xcf8] sm:$0xff] }
 0x1a0   : > { %1836 = vmatmul.mubr.f32.gmra.mrb[8].mxu0 %v1246_v56  ;;  %3206 = vmatmul.mubr.f32.gmra.mrb[8].mxu1 %v2627_v55  ;;  %16851 = vst [vmem:[#allocation158_spill] sm:$0xff] %v12740_v36  ;;  %v745_v55 = vld [vmem:[%s16006_s4 + $0xcd0] sm:$0xff]  ;;  %v748_v56 = vld [vmem:[%s16006_s4 + $0xce8] sm:$0xff] }
 0x1a1   : > { %7178 = vmatpush1.bf16.msra.mxu0 %v12712_v12  ;;  %7978 = vmatpush1.bf16.msra.mxu1 %v12712_v12  ;;  %v12756_v30 = vpack.c.bf16 %v745_v55, %v743_v28  ;;  %v12760_v54 = vpack.c.bf16 %v750_v5, %v748_v56  ;;  %v12776_v28 = vpack.c.bf16 %v749_v11, %v747_v60  ;;  %v751_v56 = vld [vmem:[%s16006_s4 + $0xd00] sm:$0xff]  ;;  %v753_v5 = vld [vmem:[%s16006_s4 + $0xd10] sm:$0xff]  ;;  %v758_v60 = vld [vmem:[%s16006_s4 + $0xd38] sm:$0xff] }
 0x1a2   : > { %7180 = vmatprep.subr.bf16.mxu0 %v12718_v47  ;;  %7980 = vmatprep.subr.bf16.mxu1 %v12718_v47  ;;  %v12796_v11 = vpack.c.bf16 %v753_v5, %v751_v56  ;;  %v762_v56 = vld [vmem:[%s16006_s4 + $0xd58] sm:$0xff]  ;;  %v2554_v47 = vld [vmem:[%s10690_s13 + $0x128] sm:$0xff]  ;;  %v1198_v12 = vld [vmem:[%s10684_s10 + $0x1f0] sm:$0xff] }
 0x1a3   : > { %1906 = vmatprep.mubr.f32.mxu0 %v1149_v33  ;;  %3276 = vmatprep.mubr.f32.mxu1 %v2530_v41  ;;  %16852 = vst [vmem:[#allocation159_spill] sm:$0xff] %v12756_v30  ;;  %16853 = vst [vmem:[#allocation160_spill] sm:$0xff] %v12760_v54  ;;  %v752_v33 = vld [vmem:[%s16006_s4 + $0xd08] sm:$0xff]  ;;  %v754_v41 = vld [vmem:[%s16006_s4 + $0xd18] sm:$0xff] }
 0x1a4   : > { %16854 = vst [vmem:[#allocation161_spill] sm:$0xff] %v12776_v28  ;;  %v12780_v55 = vpack.c.bf16 %v754_v41, %v752_v33  ;;  %16856 = vst [vmem:[#allocation163_spill] sm:$0xff] %v12796_v11  ;;  %v755_v41 = vld [vmem:[%s16006_s4 + $0xd20] sm:$0xff] }
 0x1a5   : > { %7182 = vmatpush1.bf16.msra.mxu0 %v12736_v40  ;;  %7982 = vmatpush1.bf16.msra.mxu1 %v12736_v40  ;;  %v1173_v40 = vld [vmem:[%s10684_s10 + $0x128] sm:$0xff] }
 0x1a6   : > { %7184 = vmatprep.subr.bf16.mxu0 %v12740_v36  ;;  %7984 = vmatprep.subr.bf16.mxu1 %v12740_v36  ;;  %16855 = vst [vmem:[#allocation162_spill] sm:$0xff] %v12780_v55  ;;  %v787_v36 = vld [vmem:[%s16006_s4 + $0xe20] sm:$0xff] }
 0x1a9   : > { %7186 = vmatpush1.bf16.msra.mxu0 %v12756_v30  ;;  %7986 = vmatpush1.bf16.msra.mxu1 %v12756_v30  ;;  %v756_v30 = vld [vmem:[%s16006_s4 + $0xd28] sm:$0xff] }
 0x1aa   : > { %7188 = vmatprep.subr.bf16.mxu0 %v12760_v54  ;;  %7988 = vmatprep.subr.bf16.mxu1 %v12760_v54  ;;  %v12800_v33 = vpack.c.bf16 %v758_v60, %v756_v30  ;;  %v757_v54 = vld [vmem:[%s16006_s4 + $0xd30] sm:$0xff]  ;;  %v759_v60 = vld [vmem:[%s16006_s4 + $0xd40] sm:$0xff] }
 0x1ab   : > { %v12816_v30 = vpack.c.bf16 %v757_v54, %v755_v41  ;;  %v766_v54 = vld [vmem:[%s16006_s4 + $0xd78] sm:$0xff] }
 0x1ac   : > { %16857 = vst [vmem:[#allocation164_spill] sm:$0xff] %v12800_v33 }
 0x1ad   : > { %7190 = vmatpush1.bf16.msra.mxu0 %v12776_v28  ;;  %7990 = vmatpush1.bf16.msra.mxu1 %v12776_v28  ;;  %v760_v28 = vld [vmem:[%s16006_s4 + $0xd48] sm:$0xff]  ;;  %16858 = vst [vmem:[#allocation165_spill] sm:$0xff] %v12816_v30 }
 0x1ae   : > { %7192 = vmatprep.subr.bf16.mxu0 %v12780_v55  ;;  %7992 = vmatprep.subr.bf16.mxu1 %v12780_v55  ;;  %v12820_v5 = vpack.c.bf16 %v762_v56, %v760_v28  ;;  %v761_v55 = vld [vmem:[%s16006_s4 + $0xd50] sm:$0xff]  ;;  %v763_v56 = vld [vmem:[%s16006_s4 + $0xd60] sm:$0xff] }
 0x1af   : > { %v12836_v28 = vpack.c.bf16 %v761_v55, %v759_v60  ;;  %v770_v55 = vld [vmem:[%s16006_s4 + $0xd98] sm:$0xff] }
 0x1b0   : > { %16859 = vst [vmem:[#allocation166_spill] sm:$0xff] %v12820_v5 }
 0x1b1   : > { %7194 = vmatpush1.bf16.msra.mxu0 %v12796_v11  ;;  %7994 = vmatpush1.bf16.msra.mxu1 %v12796_v11  ;;  %v764_v11 = vld [vmem:[%s16006_s4 + $0xd68] sm:$0xff]  ;;  %16860 = vst [vmem:[#allocation167_spill] sm:$0xff] %v12836_v28 }
 0x1b2   : > { %7196 = vmatprep.subr.bf16.mxu0 %v12800_v33  ;;  %7996 = vmatprep.subr.bf16.mxu1 %v12800_v33  ;;  %v12840_v41 = vpack.c.bf16 %v766_v54, %v764_v11  ;;  %v765_v33 = vld [vmem:[%s16006_s4 + $0xd70] sm:$0xff]  ;;  %v767_v54 = vld [vmem:[%s16006_s4 + $0xd80] sm:$0xff] }
 0x1b3   : > { %v12856_v11 = vpack.c.bf16 %v765_v33, %v763_v56  ;;  %v774_v33 = vld [vmem:[%s16006_s4 + $0xdb8] sm:$0xff] }
 0x1b4   : > { %16861 = vst [vmem:[#allocation168_spill] sm:$0xff] %v12840_v41 }
 0x1b5   : > { %7198 = vmatpush1.bf16.msra.mxu0 %v12816_v30  ;;  %7998 = vmatpush1.bf16.msra.mxu1 %v12816_v30  ;;  %v768_v30 = vld [vmem:[%s16006_s4 + $0xd88] sm:$0xff]  ;;  %16862 = vst [vmem:[#allocation169_spill] sm:$0xff] %v12856_v11 }
 0x1b6   : > { %7200 = vmatprep.subr.bf16.mxu0 %v12820_v5  ;;  %8000 = vmatprep.subr.bf16.mxu1 %v12820_v5  ;;  %v12860_v60 = vpack.c.bf16 %v770_v55, %v768_v30  ;;  %v769_v5 = vld [vmem:[%s16006_s4 + $0xd90] sm:$0xff]  ;;  %v771_v55 = vld [vmem:[%s16006_s4 + $0xda0] sm:$0xff] }
 0x1b7   : > { %v12876_v30 = vpack.c.bf16 %v769_v5, %v767_v54  ;;  %v778_v5 = vld [vmem:[%s16006_s4 + $0xdd8] sm:$0xff] }
 0x1b8   : > { %16863 = vst [vmem:[#allocation170_spill] sm:$0xff] %v12860_v60 }
 0x1b9   : > { %7202 = vmatpush1.bf16.msra.mxu0 %v12836_v28  ;;  %8002 = vmatpush1.bf16.msra.mxu1 %v12836_v28  ;;  %v772_v28 = vld [vmem:[%s16006_s4 + $0xda8] sm:$0xff]  ;;  %16864 = vst [vmem:[#allocation171_spill] sm:$0xff] %v12876_v30 }
 0x1ba   : > { %7204 = vmatprep.subr.bf16.mxu0 %v12840_v41  ;;  %8004 = vmatprep.subr.bf16.mxu1 %v12840_v41  ;;  %v12880_v56 = vpack.c.bf16 %v774_v33, %v772_v28  ;;  %v773_v41 = vld [vmem:[%s16006_s4 + $0xdb0] sm:$0xff]  ;;  %v775_v33 = vld [vmem:[%s16006_s4 + $0xdc0] sm:$0xff] }
 0x1bb   : > { %v12896_v28 = vpack.c.bf16 %v773_v41, %v771_v55  ;;  %v782_v41 = vld [vmem:[%s16006_s4 + $0xdf8] sm:$0xff] }
 0x1bc   : > { %16865 = vst [vmem:[#allocation172_spill] sm:$0xff] %v12880_v56 }
 0x1bd   : > { %7206 = vmatpush1.bf16.msra.mxu0 %v12856_v11  ;;  %8006 = vmatpush1.bf16.msra.mxu1 %v12856_v11  ;;  %v776_v11 = vld [vmem:[%s16006_s4 + $0xdc8] sm:$0xff]  ;;  %16866 = vst [vmem:[#allocation173_spill] sm:$0xff] %v12896_v28 }
 0x1be   : > { %7208 = vmatprep.subr.bf16.mxu0 %v12860_v60  ;;  %8008 = vmatprep.subr.bf16.mxu1 %v12860_v60  ;;  %v12900_v54 = vpack.c.bf16 %v778_v5, %v776_v11  ;;  %v777_v60 = vld [vmem:[%s16006_s4 + $0xdd0] sm:$0xff]  ;;  %v779_v5 = vld [vmem:[%s16006_s4 + $0xde0] sm:$0xff] }
 0x1bf   : > { %v12916_v11 = vpack.c.bf16 %v777_v60, %v775_v33  ;;  %v784_v60 = vld [vmem:[%s16006_s4 + $0xe08] sm:$0xff]  ;;  %v786_v33 = vld [vmem:[%s16006_s4 + $0xe18] sm:$0xff] }
 0x1c0   : > { %16867 = vst [vmem:[#allocation174_spill] sm:$0xff] %v12900_v54 }
 0x1c1   : > { %7210 = vmatpush1.bf16.msra.mxu0 %v12876_v30  ;;  %8010 = vmatpush1.bf16.msra.mxu1 %v12876_v30  ;;  %v780_v30 = vld [vmem:[%s16006_s4 + $0xde8] sm:$0xff]  ;;  %16868 = vst [vmem:[#allocation175_spill] sm:$0xff] %v12916_v11 }
 0x1c2   : > { %7212 = vmatprep.subr.bf16.mxu0 %v12880_v56  ;;  %8012 = vmatprep.subr.bf16.mxu1 %v12880_v56  ;;  %v12920_v55 = vpack.c.bf16 %v782_v41, %v780_v30  ;;  %v781_v56 = vld [vmem:[%s16006_s4 + $0xdf0] sm:$0xff]  ;;  %v12940_v41 = vpack.c.bf16 %v786_v33, %v784_v60  ;;  %v2529_v33 = vld [vmem:[%s10690_s13 + $0x60] sm:$0xff] }
 0x1c3   : > { %v12936_v30 = vpack.c.bf16 %v781_v56, %v779_v5  ;;  %v790_v56 = vld [vmem:[%s16006_s4 + $0xe38] sm:$0xff]  ;;  %v1148_v5 = vld [vmem:[%s10684_s10 + $0x60] sm:$0xff] }
 0x1c4   : > { %16869 = vst [vmem:[#allocation176_spill] sm:$0xff] %v12920_v55  ;;  %16871 = vst [vmem:[#allocation178_spill] sm:$0xff] %v12940_v41 }
 0x1c5   : > { %7214 = vmatpush1.bf16.msra.mxu0 %v12896_v28  ;;  %8014 = vmatpush1.bf16.msra.mxu1 %v12896_v28  ;;  %16870 = vst [vmem:[#allocation177_spill] sm:$0xff] %v12936_v30  ;;  %v785_v28 = vld [vmem:[%s16006_s4 + $0xe10] sm:$0xff] }
 0x1c6   : > { %7216 = vmatprep.subr.bf16.mxu0 %v12900_v54  ;;  %8016 = vmatprep.subr.bf16.mxu1 %v12900_v54  ;;  %v783_v54 = vld [vmem:[%s16006_s4 + $0xe00] sm:$0xff] }
 0x1c7   : > { %v12957_v60 = vpack.c.bf16 %v785_v28, %v783_v54  ;;  %v792_v28 = vld [vmem:[%s16006_s4 + $0xe48] sm:$0xff]  ;;  %v794_v54 = vld [vmem:[%s16006_s4 + $0xe58] sm:$0xff] }
 0x1c9   : > { %7218 = vmatpush1.bf16.msra.mxu0 %v12916_v11  ;;  %8018 = vmatpush1.bf16.msra.mxu1 %v12916_v11  ;;  %v788_v11 = vld [vmem:[%s16006_s4 + $0xe28] sm:$0xff]  ;;  %16872 = vst [vmem:[#allocation179_spill] sm:$0xff] %v12957_v60 }
 0x1ca   : > { %7220 = vmatprep.subr.bf16.mxu0 %v12920_v55  ;;  %8020 = vmatprep.subr.bf16.mxu1 %v12920_v55  ;;  %v12962_v55 = vpack.c.bf16 %v790_v56, %v788_v11  ;;  %v1174_v11 = vld [vmem:[%s10684_s10 + $0x130] sm:$0xff] }
 0x1cb   : > { %v2555_v56 = vld [vmem:[%s10690_s13 + $0x130] sm:$0xff] }
 0x1cc   : > { %16873 = vst [vmem:[#allocation180_spill] sm:$0xff] %v12962_v55 }
 0x1cd   : > { %7222 = vmatpush1.bf16.msra.mxu0 %v12936_v30  ;;  %8022 = vmatpush1.bf16.msra.mxu1 %v12936_v30  ;;  %v789_v30 = vld [vmem:[%s16006_s4 + $0xe30] sm:$0xff] }
 0x1ce   : > { %7224 = vmatprep.subr.bf16.mxu0 %v12940_v41  ;;  %8024 = vmatprep.subr.bf16.mxu1 %v12940_v41  ;;  %v12980_v41 = vpack.c.bf16 %v789_v30, %v787_v36  ;;  %v796_v36 = vld [vmem:[%s16006_s4 + $0xe68] sm:$0xff]  ;;  %v798_v30 = vld [vmem:[%s16006_s4 + $0xe78] sm:$0xff] }
 0x1d0   : > { %1907 = vmatmul.mubr.f32.vlgmr.msra.gmra.mrb[0].mxu0 %v1148_v5  ;;  %3277 = vmatmul.mubr.f32.vlgmr.msra.gmra.mrb[0].mxu1 %v2529_v33  ;;  %16874 = vst [vmem:[#allocation181_spill] sm:$0xff] %v12980_v41  ;;  %v12986_v5 = vpack.c.bf16 %v794_v54, %v792_v28  ;;  %v791_v33 = vld [vmem:[%s16006_s4 + $0xe40] sm:$0xff]  ;;  %v1199_v28 = vld [vmem:[%s10684_s10 + $0x1f8] sm:$0xff] }
 0x1d1   : > { %7226 = vmatpush1.bf16.msra.mxu0 %v12957_v60  ;;  %8026 = vmatpush1.bf16.msra.mxu1 %v12957_v60  ;;  %v793_v60 = vld [vmem:[%s16006_s4 + $0xe50] sm:$0xff]  ;;  %v2580_v54 = vld [vmem:[%s10690_s13 + $0x1f8] sm:$0xff] }
 0x1d2   : > { %7228 = vmatprep.subr.bf16.mxu0 %v12962_v55  ;;  %8028 = vmatprep.subr.bf16.mxu1 %v12962_v55  ;;  %16875 = vst [vmem:[#allocation182_spill] sm:$0xff] %v12986_v5  ;;  %v13004_v55 = vpack.c.bf16 %v793_v60, %v791_v33  ;;  %v800_v60 = vld [vmem:[%s16006_s4 + $0xe88] sm:$0xff]  ;;  %v1224_v33 = vld [vmem:[%s10684_s10 + $0x2c0] sm:$0xff] }
 0x1d3   : > { %1912 = vmatprep.mubr.f32.mxu0 %v1174_v11  ;;  %3282 = vmatprep.mubr.f32.mxu1 %v2555_v56  ;;  %v797_v11 = vld [vmem:[%s16006_s4 + $0xe70] sm:$0xff]  ;;  %v802_v56 = vld [vmem:[%s16006_s4 + $0xe98] sm:$0xff] }
 0x1d4   : > { %1913 = vmatmul.mubr.f32.gmra.mrb[2].mxu0 %v1173_v40  ;;  %3283 = vmatmul.mubr.f32.gmra.mrb[2].mxu1 %v2554_v47  ;;  %16876 = vst [vmem:[#allocation183_spill] sm:$0xff] %v13004_v55  ;;  %v13010_v40 = vpack.c.bf16 %v798_v30, %v796_v36  ;;  %v795_v47 = vld [vmem:[%s16006_s4 + $0xe60] sm:$0xff] }
 0x1d5   : > { %7230 = vmatpush1.bf16.msra.mxu0 %v12980_v41  ;;  %8030 = vmatpush1.bf16.msra.mxu1 %v12980_v41  ;;  %v2605_v36 = vld [vmem:[%s10690_s13 + $0x2c0] sm:$0xff]  ;;  %v13028_v30 = vpack.c.bf16 %v797_v11, %v795_v47  ;;  %v2604_v41 = vld [vmem:[%s10690_s13 + $0x2b8] sm:$0xff]  ;;  %v1249_v11 = vld [vmem:[%s10684_s10 + $0x388] sm:$0xff] }
 0x1d6   : > { %7232 = vmatprep.subr.bf16.mxu0 %v12986_v5  ;;  %8032 = vmatprep.subr.bf16.mxu1 %v12986_v5  ;;  %16877 = vst [vmem:[#allocation184_spill] sm:$0xff] %v13010_v40  ;;  %v1223_v5 = vld [vmem:[%s10684_s10 + $0x2b8] sm:$0xff] }
 0x1d7   : > { %1918 = vmatprep.mubr.f32.mxu0 %v1199_v28  ;;  %3288 = vmatprep.mubr.f32.mxu1 %v2580_v54  ;;  %16878 = vst [vmem:[#allocation185_spill] sm:$0xff] %v13028_v30  ;;  %v801_v28 = vld [vmem:[%s16006_s4 + $0xe90] sm:$0xff]  ;;  %v804_v54 = vld [vmem:[%s16006_s4 + $0xea8] sm:$0xff]  ;;  %v806_v47 = vld [vmem:[%s16006_s4 + $0xeb8] sm:$0xff] }
 0x1d8   : > { %1919 = vmatmul.mubr.f32.gmra.mrb[4].mxu0 %v1198_v12  ;;  %3289 = vmatmul.mubr.f32.gmra.mrb[4].mxu1 %v2579_v10  ;;  %v13034_v12 = vpack.c.bf16 %v802_v56, %v800_v60  ;;  %v799_v10 = vld [vmem:[%s16006_s4 + $0xe80] sm:$0xff]  ;;  %v2630_v60 = vld [vmem:[%s10690_s13 + $0x388] sm:$0xff] }
 0x1d9   : > { %7234 = vmatpush1.bf16.msra.mxu0 %v13004_v55  ;;  %8034 = vmatpush1.bf16.msra.mxu1 %v13004_v55  ;;  %v13052_v56 = vpack.c.bf16 %v801_v28, %v799_v10  ;;  %v2629_v55 = vld [vmem:[%s10690_s13 + $0x380] sm:$0xff]  ;;  %v810_v10 = vld [vmem:[%s16006_s4 + $0xed8] sm:$0xff] }
 0x1da   : > { %7236 = vmatprep.subr.bf16.mxu0 %v13010_v40  ;;  %8036 = vmatprep.subr.bf16.mxu1 %v13010_v40  ;;  %16879 = vst [vmem:[#allocation186_spill] sm:$0xff] %v13034_v12  ;;  %v1248_v40 = vld [vmem:[%s10684_s10 + $0x380] sm:$0xff]  ;;  %v1151_v28 = vld [vmem:[%s10684_s10 + $0x78] sm:$0xff] }
 0x1db   : > { %1924 = vmatprep.mubr.f32.mxu0 %v1224_v33  ;;  %3294 = vmatprep.mubr.f32.mxu1 %v2605_v36  ;;  %16880 = vst [vmem:[#allocation187_spill] sm:$0xff] %v13052_v56  ;;  %v13058_v33 = vpack.c.bf16 %v806_v47, %v804_v54  ;;  %v808_v36 = vld [vmem:[%s16006_s4 + $0xec8] sm:$0xff]  ;;  %v2532_v54 = vld [vmem:[%s10690_s13 + $0x78] sm:$0xff] }
 0x1dc   : > { %1925 = vmatmul.mubr.f32.gmra.mrb[6].mxu0 %v1223_v5  ;;  %3295 = vmatmul.mubr.f32.gmra.mrb[6].mxu1 %v2604_v41  ;;  %v803_v41 = vld [vmem:[%s16006_s4 + $0xea0] sm:$0xff]  ;;  %v805_v5 = vld [vmem:[%s16006_s4 + $0xeb0] sm:$0xff] }
 0x1dd   : > { %7238 = vmatpush1.bf16.msra.mxu0 %v13028_v30  ;;  %8038 = vmatpush1.bf16.msra.mxu1 %v13028_v30  ;;  %16881 = vst [vmem:[#allocation188_spill] sm:$0xff] %v13058_v33  ;;  %v13076_v47 = vpack.c.bf16 %v805_v5, %v803_v41  ;;  %v2581_v30 = vld [vmem:[%s10690_s13 + $0x200] sm:$0xff] }
 0x1de   : > { %7240 = vmatprep.subr.bf16.mxu0 %v13034_v12  ;;  %8040 = vmatprep.subr.bf16.mxu1 %v13034_v12  ;;  %v13080_v12 = vpack.c.bf16 %v810_v10, %v808_v36  ;;  %v811_v36 = vld [vmem:[%s16006_s4 + $0xee0] sm:$0xff]  ;;  %v813_v10 = vld [vmem:[%s16006_s4 + $0xef0] sm:$0xff] }
 0x1df   : > { %1930 = vmatprep.mubr.f32.mxu0 %v1249_v11  ;;  %3300 = vmatprep.mubr.f32.mxu1 %v2630_v60  ;;  %16882 = vst [vmem:[#allocation189_spill] sm:$0xff] %v13076_v47  ;;  %v807_v11 = vld [vmem:[%s16006_s4 + $0xec0] sm:$0xff]  ;;  %v814_v60 = vld [vmem:[%s16006_s4 + $0xef8] sm:$0xff] }
 0x1e0   : > { %1931 = vmatmul.mubr.f32.gmra.mrb[8].mxu0 %v1248_v40  ;;  %3301 = vmatmul.mubr.f32.gmra.mrb[8].mxu1 %v2629_v55  ;;  %16883 = vst [vmem:[#allocation190_spill] sm:$0xff] %v13080_v12  ;;  %v809_v55 = vld [vmem:[%s16006_s4 + $0xed0] sm:$0xff]  ;;  %v812_v40 = vld [vmem:[%s16006_s4 + $0xee8] sm:$0xff] }
 0x1e1   : > { %7242 = vmatpush1.bf16.msra.mxu0 %v13052_v56  ;;  %8042 = vmatpush1.bf16.msra.mxu1 %v13052_v56  ;;  %v13096_v41 = vpack.c.bf16 %v809_v55, %v807_v11  ;;  %v13100_v5 = vpack.c.bf16 %v814_v60, %v812_v40  ;;  %v13116_v11 = vpack.c.bf16 %v813_v10, %v811_v36  ;;  %v815_v40 = vld [vmem:[%s16006_s4 + $0xf00] sm:$0xff]  ;;  %v817_v60 = vld [vmem:[%s16006_s4 + $0xf10] sm:$0xff]  ;;  %v822_v36 = vld [vmem:[%s16006_s4 + $0xf38] sm:$0xff] }
 0x1e2   : > { %7244 = vmatprep.subr.bf16.mxu0 %v13058_v33  ;;  %8044 = vmatprep.subr.bf16.mxu1 %v13058_v33  ;;  %v13136_v10 = vpack.c.bf16 %v817_v60, %v815_v40  ;;  %v826_v40 = vld [vmem:[%s16006_s4 + $0xf58] sm:$0xff]  ;;  %v1200_v56 = vld [vmem:[%s10684_s10 + $0x200] sm:$0xff] }
 0x1e3   : > { %2001 = vmatprep.mubr.f32.mxu0 %v1151_v28  ;;  %3371 = vmatprep.mubr.f32.mxu1 %v2532_v54  ;;  %16884 = vst [vmem:[#allocation191_spill] sm:$0xff] %v13096_v41  ;;  %16885 = vst [vmem:[#allocation192_spill] sm:$0xff] %v13100_v5  ;;  %v816_v28 = vld [vmem:[%s16006_s4 + $0xf08] sm:$0xff]  ;;  %v818_v54 = vld [vmem:[%s16006_s4 + $0xf18] sm:$0xff] }
 0x1e4   : > { %16886 = vst [vmem:[#allocation193_spill] sm:$0xff] %v13116_v11  ;;  %v13120_v55 = vpack.c.bf16 %v818_v54, %v816_v28  ;;  %16888 = vst [vmem:[#allocation195_spill] sm:$0xff] %v13136_v10  ;;  %v819_v54 = vld [vmem:[%s16006_s4 + $0xf20] sm:$0xff]  ;;  %v2556_v33 = vld [vmem:[%s10690_s13 + $0x138] sm:$0xff] }
 0x1e5   : > { %7246 = vmatpush1.bf16.msra.mxu0 %v13076_v47  ;;  %8046 = vmatpush1.bf16.msra.mxu1 %v13076_v47  ;;  %v1175_v47 = vld [vmem:[%s10684_s10 + $0x138] sm:$0xff] }
 0x1e6   : > { %7248 = vmatprep.subr.bf16.mxu0 %v13080_v12  ;;  %8048 = vmatprep.subr.bf16.mxu1 %v13080_v12  ;;  %16887 = vst [vmem:[#allocation194_spill] sm:$0xff] %v13120_v55  ;;  %v851_v12 = vld [vmem:[%s16006_s4 + $0x1020] sm:$0xff] }
 0x1e9   : > { %7250 = vmatpush1.bf16.msra.mxu0 %v13096_v41  ;;  %8050 = vmatpush1.bf16.msra.mxu1 %v13096_v41  ;;  %v820_v41 = vld [vmem:[%s16006_s4 + $0xf28] sm:$0xff] }
 0x1ea   : > { %7252 = vmatprep.subr.bf16.mxu0 %v13100_v5  ;;  %8052 = vmatprep.subr.bf16.mxu1 %v13100_v5  ;;  %v13140_v28 = vpack.c.bf16 %v822_v36, %v820_v41  ;;  %v821_v5 = vld [vmem:[%s16006_s4 + $0xf30] sm:$0xff]  ;;  %v823_v36 = vld [vmem:[%s16006_s4 + $0xf40] sm:$0xff] }
 0x1eb   : > { %v13156_v41 = vpack.c.bf16 %v821_v5, %v819_v54  ;;  %v830_v5 = vld [vmem:[%s16006_s4 + $0xf78] sm:$0xff] }
 0x1ec   : > { %16889 = vst [vmem:[#allocation196_spill] sm:$0xff] %v13140_v28 }
 0x1ed   : > { %7254 = vmatpush1.bf16.msra.mxu0 %v13116_v11  ;;  %8054 = vmatpush1.bf16.msra.mxu1 %v13116_v11  ;;  %v824_v11 = vld [vmem:[%s16006_s4 + $0xf48] sm:$0xff]  ;;  %16890 = vst [vmem:[#allocation197_spill] sm:$0xff] %v13156_v41 }
 0x1ee   : > { %7256 = vmatprep.subr.bf16.mxu0 %v13120_v55  ;;  %8056 = vmatprep.subr.bf16.mxu1 %v13120_v55  ;;  %v13160_v60 = vpack.c.bf16 %v826_v40, %v824_v11  ;;  %v825_v55 = vld [vmem:[%s16006_s4 + $0xf50] sm:$0xff]  ;;  %v827_v40 = vld [vmem:[%s16006_s4 + $0xf60] sm:$0xff] }
 0x1ef   : > { %v13176_v11 = vpack.c.bf16 %v825_v55, %v823_v36  ;;  %v834_v55 = vld [vmem:[%s16006_s4 + $0xf98] sm:$0xff] }
 0x1f0   : > { %16891 = vst [vmem:[#allocation198_spill] sm:$0xff] %v13160_v60 }
 0x1f1   : > { %7258 = vmatpush1.bf16.msra.mxu0 %v13136_v10  ;;  %8058 = vmatpush1.bf16.msra.mxu1 %v13136_v10  ;;  %v828_v10 = vld [vmem:[%s16006_s4 + $0xf68] sm:$0xff]  ;;  %16892 = vst [vmem:[#allocation199_spill] sm:$0xff] %v13176_v11 }
 0x1f2   : > { %7260 = vmatprep.subr.bf16.mxu0 %v13140_v28  ;;  %8060 = vmatprep.subr.bf16.mxu1 %v13140_v28  ;;  %v13180_v54 = vpack.c.bf16 %v830_v5, %v828_v10  ;;  %v829_v28 = vld [vmem:[%s16006_s4 + $0xf70] sm:$0xff]  ;;  %v831_v5 = vld [vmem:[%s16006_s4 + $0xf80] sm:$0xff] }
 0x1f3   : > { %v13196_v10 = vpack.c.bf16 %v829_v28, %v827_v40  ;;  %v838_v28 = vld [vmem:[%s16006_s4 + $0xfb8] sm:$0xff] }
 0x1f4   : > { %16893 = vst [vmem:[#allocation200_spill] sm:$0xff] %v13180_v54 }
 0x1f5   : > { %7262 = vmatpush1.bf16.msra.mxu0 %v13156_v41  ;;  %8062 = vmatpush1.bf16.msra.mxu1 %v13156_v41  ;;  %v832_v41 = vld [vmem:[%s16006_s4 + $0xf88] sm:$0xff]  ;;  %16894 = vst [vmem:[#allocation201_spill] sm:$0xff] %v13196_v10 }
 0x1f6   : > { %7264 = vmatprep.subr.bf16.mxu0 %v13160_v60  ;;  %8064 = vmatprep.subr.bf16.mxu1 %v13160_v60  ;;  %v13200_v36 = vpack.c.bf16 %v834_v55, %v832_v41  ;;  %v833_v60 = vld [vmem:[%s16006_s4 + $0xf90] sm:$0xff]  ;;  %v835_v55 = vld [vmem:[%s16006_s4 + $0xfa0] sm:$0xff] }
 0x1f7   : > { %v13216_v41 = vpack.c.bf16 %v833_v60, %v831_v5  ;;  %v842_v60 = vld [vmem:[%s16006_s4 + $0xfd8] sm:$0xff] }
 0x1f8   : > { %16895 = vst [vmem:[#allocation202_spill] sm:$0xff] %v13200_v36 }
 0x1f9   : > { %7266 = vmatpush1.bf16.msra.mxu0 %v13176_v11  ;;  %8066 = vmatpush1.bf16.msra.mxu1 %v13176_v11  ;;  %v836_v11 = vld [vmem:[%s16006_s4 + $0xfa8] sm:$0xff]  ;;  %16896 = vst [vmem:[#allocation203_spill] sm:$0xff] %v13216_v41 }
 0x1fa   : > { %7268 = vmatprep.subr.bf16.mxu0 %v13180_v54  ;;  %8068 = vmatprep.subr.bf16.mxu1 %v13180_v54  ;;  %v13220_v40 = vpack.c.bf16 %v838_v28, %v836_v11  ;;  %v837_v54 = vld [vmem:[%s16006_s4 + $0xfb0] sm:$0xff]  ;;  %v839_v28 = vld [vmem:[%s16006_s4 + $0xfc0] sm:$0xff] }
 0x1fb   : > { %v13236_v11 = vpack.c.bf16 %v837_v54, %v835_v55  ;;  %v846_v54 = vld [vmem:[%s16006_s4 + $0xff8] sm:$0xff] }
 0x1fc   : > { %16897 = vst [vmem:[#allocation204_spill] sm:$0xff] %v13220_v40 }
 0x1fd   : > { %7270 = vmatpush1.bf16.msra.mxu0 %v13196_v10  ;;  %8070 = vmatpush1.bf16.msra.mxu1 %v13196_v10  ;;  %v840_v10 = vld [vmem:[%s16006_s4 + $0xfc8] sm:$0xff]  ;;  %16898 = vst [vmem:[#allocation205_spill] sm:$0xff] %v13236_v11 }
 0x1fe   : > { %7272 = vmatprep.subr.bf16.mxu0 %v13200_v36  ;;  %8072 = vmatprep.subr.bf16.mxu1 %v13200_v36  ;;  %v13240_v5 = vpack.c.bf16 %v842_v60, %v840_v10  ;;  %v841_v36 = vld [vmem:[%s16006_s4 + $0xfd0] sm:$0xff]  ;;  %v843_v60 = vld [vmem:[%s16006_s4 + $0xfe0] sm:$0xff] }
 0x1ff   : > { %v13256_v10 = vpack.c.bf16 %v841_v36, %v839_v28  ;;  %v848_v36 = vld [vmem:[%s16006_s4 + $0x1008] sm:$0xff]  ;;  %v850_v28 = vld [vmem:[%s16006_s4 + $0x1018] sm:$0xff] }
 0x200   : > { %16899 = vst [vmem:[#allocation206_spill] sm:$0xff] %v13240_v5 }
 0x201   : > { %7274 = vmatpush1.bf16.msra.mxu0 %v13216_v41  ;;  %8074 = vmatpush1.bf16.msra.mxu1 %v13216_v41  ;;  %v844_v41 = vld [vmem:[%s16006_s4 + $0xfe8] sm:$0xff]  ;;  %16900 = vst [vmem:[#allocation207_spill] sm:$0xff] %v13256_v10 }
 0x202   : > { %7276 = vmatprep.subr.bf16.mxu0 %v13220_v40  ;;  %8076 = vmatprep.subr.bf16.mxu1 %v13220_v40  ;;  %v13260_v55 = vpack.c.bf16 %v846_v54, %v844_v41  ;;  %v845_v40 = vld [vmem:[%s16006_s4 + $0xff0] sm:$0xff]  ;;  %v13280_v54 = vpack.c.bf16 %v850_v28, %v848_v36 }
 0x203   : > { %v13276_v41 = vpack.c.bf16 %v845_v40, %v843_v60  ;;  %v854_v40 = vld [vmem:[%s16006_s4 + $0x1038] sm:$0xff]  ;;  %v1150_v60 = vld [vmem:[%s10684_s10 + $0x70] sm:$0xff] }
 0x204   : > { %16901 = vst [vmem:[#allocation208_spill] sm:$0xff] %v13260_v55  ;;  %16903 = vst [vmem:[#allocation210_spill] sm:$0xff] %v13280_v54  ;;  %v2531_v28 = vld [vmem:[%s10690_s13 + $0x70] sm:$0xff] }
 0x205   : > { %7278 = vmatpush1.bf16.msra.mxu0 %v13236_v11  ;;  %8078 = vmatpush1.bf16.msra.mxu1 %v13236_v11  ;;  %16902 = vst [vmem:[#allocation209_spill] sm:$0xff] %v13276_v41  ;;  %v849_v11 = vld [vmem:[%s16006_s4 + $0x1010] sm:$0xff] }
 0x206   : > { %7280 = vmatprep.subr.bf16.mxu0 %v13240_v5  ;;  %8080 = vmatprep.subr.bf16.mxu1 %v13240_v5  ;;  %v847_v5 = vld [vmem:[%s16006_s4 + $0x1000] sm:$0xff] }
 0x207   : > { %v13297_v36 = vpack.c.bf16 %v849_v11, %v847_v5  ;;  %v856_v11 = vld [vmem:[%s16006_s4 + $0x1048] sm:$0xff]  ;;  %v858_v5 = vld [vmem:[%s16006_s4 + $0x1058] sm:$0xff] }
 0x209   : > { %7282 = vmatpush1.bf16.msra.mxu0 %v13256_v10  ;;  %8082 = vmatpush1.bf16.msra.mxu1 %v13256_v10  ;;  %v852_v10 = vld [vmem:[%s16006_s4 + $0x1028] sm:$0xff]  ;;  %16904 = vst [vmem:[#allocation211_spill] sm:$0xff] %v13297_v36 }
 0x20a   : > { %7284 = vmatprep.subr.bf16.mxu0 %v13260_v55  ;;  %8084 = vmatprep.subr.bf16.mxu1 %v13260_v55  ;;  %v13302_v55 = vpack.c.bf16 %v854_v40, %v852_v10  ;;  %v1176_v10 = vld [vmem:[%s10684_s10 + $0x140] sm:$0xff] }
 0x20b   : > { %v2557_v40 = vld [vmem:[%s10690_s13 + $0x140] sm:$0xff] }
 0x20c   : > { %16905 = vst [vmem:[#allocation212_spill] sm:$0xff] %v13302_v55 }
 0x20d   : > { %7286 = vmatpush1.bf16.msra.mxu0 %v13276_v41  ;;  %8086 = vmatpush1.bf16.msra.mxu1 %v13276_v41  ;;  %v853_v41 = vld [vmem:[%s16006_s4 + $0x1030] sm:$0xff] }
 0x20e   : > { %7288 = vmatprep.subr.bf16.mxu0 %v13280_v54  ;;  %8088 = vmatprep.subr.bf16.mxu1 %v13280_v54  ;;  %v13320_v54 = vpack.c.bf16 %v853_v41, %v851_v12  ;;  %v860_v12 = vld [vmem:[%s16006_s4 + $0x1068] sm:$0xff]  ;;  %v862_v41 = vld [vmem:[%s16006_s4 + $0x1078] sm:$0xff] }
 0x210   : > { %2002 = vmatmul.mubr.f32.vlgmr.msra.gmra.mrb[0].mxu0 %v1150_v60  ;;  %3372 = vmatmul.mubr.f32.vlgmr.msra.gmra.mrb[0].mxu1 %v2531_v28  ;;  %16906 = vst [vmem:[#allocation213_spill] sm:$0xff] %v13320_v54  ;;  %v13326_v60 = vpack.c.bf16 %v858_v5, %v856_v11  ;;  %v855_v28 = vld [vmem:[%s16006_s4 + $0x1040] sm:$0xff]  ;;  %v1201_v11 = vld [vmem:[%s10684_s10 + $0x208] sm:$0xff] }
 0x211   : > { %7290 = vmatpush1.bf16.msra.mxu0 %v13297_v36  ;;  %8090 = vmatpush1.bf16.msra.mxu1 %v13297_v36  ;;  %v857_v36 = vld [vmem:[%s16006_s4 + $0x1050] sm:$0xff]  ;;  %v2582_v5 = vld [vmem:[%s10690_s13 + $0x208] sm:$0xff] }
 0x212   : > { %7292 = vmatprep.subr.bf16.mxu0 %v13302_v55  ;;  %8092 = vmatprep.subr.bf16.mxu1 %v13302_v55  ;;  %16907 = vst [vmem:[#allocation214_spill] sm:$0xff] %v13326_v60  ;;  %v13344_v55 = vpack.c.bf16 %v857_v36, %v855_v28  ;;  %v864_v36 = vld [vmem:[%s16006_s4 + $0x1088] sm:$0xff]  ;;  %v1226_v28 = vld [vmem:[%s10684_s10 + $0x2d0] sm:$0xff] }
 0x213   : > { %2007 = vmatprep.mubr.f32.mxu0 %v1176_v10  ;;  %3377 = vmatprep.mubr.f32.mxu1 %v2557_v40  ;;  %v861_v10 = vld [vmem:[%s16006_s4 + $0x1070] sm:$0xff]  ;;  %v866_v40 = vld [vmem:[%s16006_s4 + $0x1098] sm:$0xff] }
 0x214   : > { %2008 = vmatmul.mubr.f32.gmra.mrb[2].mxu0 %v1175_v47  ;;  %3378 = vmatmul.mubr.f32.gmra.mrb[2].mxu1 %v2556_v33  ;;  %16908 = vst [vmem:[#allocation215_spill] sm:$0xff] %v13344_v55  ;;  %v13350_v47 = vpack.c.bf16 %v862_v41, %v860_v12  ;;  %v859_v33 = vld [vmem:[%s16006_s4 + $0x1060] sm:$0xff]  ;;  %v2607_v12 = vld [vmem:[%s10690_s13 + $0x2d0] sm:$0xff] }
 0x215   : > { %7294 = vmatpush1.bf16.msra.mxu0 %v13320_v54  ;;  %8094 = vmatpush1.bf16.msra.mxu1 %v13320_v54  ;;  %v13368_v41 = vpack.c.bf16 %v861_v10, %v859_v33  ;;  %v2606_v54 = vld [vmem:[%s10690_s13 + $0x2c8] sm:$0xff]  ;;  %v870_v33 = vld [vmem:[%s16006_s4 + $0x10b8] sm:$0xff] }
 0x216   : > { %7296 = vmatprep.subr.bf16.mxu0 %v13326_v60  ;;  %8096 = vmatprep.subr.bf16.mxu1 %v13326_v60  ;;  %16909 = vst [vmem:[#allocation216_spill] sm:$0xff] %v13350_v47  ;;  %v1225_v60 = vld [vmem:[%s10684_s10 + $0x2c8] sm:$0xff]  ;;  %v1251_v10 = vld [vmem:[%s10684_s10 + $0x398] sm:$0xff] }
 0x217   : > { %2013 = vmatprep.mubr.f32.mxu0 %v1201_v11  ;;  %3383 = vmatprep.mubr.f32.mxu1 %v2582_v5  ;;  %16910 = vst [vmem:[#allocation217_spill] sm:$0xff] %v13368_v41  ;;  %v865_v11 = vld [vmem:[%s16006_s4 + $0x1090] sm:$0xff]  ;;  %v868_v5 = vld [vmem:[%s16006_s4 + $0x10a8] sm:$0xff] }
 0x218   : > { %2014 = vmatmul.mubr.f32.gmra.mrb[4].mxu0 %v1200_v56  ;;  %3384 = vmatmul.mubr.f32.gmra.mrb[4].mxu1 %v2581_v30  ;;  %v13374_v56 = vpack.c.bf16 %v866_v40, %v864_v36  ;;  %v863_v30 = vld [vmem:[%s16006_s4 + $0x1080] sm:$0xff]  ;;  %v2632_v36 = vld [vmem:[%s10690_s13 + $0x398] sm:$0xff] }
 0x219   : > { %7298 = vmatpush1.bf16.msra.mxu0 %v13344_v55  ;;  %8098 = vmatpush1.bf16.msra.mxu1 %v13344_v55  ;;  %v13392_v40 = vpack.c.bf16 %v865_v11, %v863_v30  ;;  %v2631_v55 = vld [vmem:[%s10690_s13 + $0x390] sm:$0xff]  ;;  %v874_v30 = vld [vmem:[%s16006_s4 + $0x10d8] sm:$0xff]  ;;  %v1153_v11 = vld [vmem:[%s10684_s10 + $0x88] sm:$0xff] }
 0x21a   : > { %7300 = vmatprep.subr.bf16.mxu0 %v13350_v47  ;;  %8100 = vmatprep.subr.bf16.mxu1 %v13350_v47  ;;  %16911 = vst [vmem:[#allocation218_spill] sm:$0xff] %v13374_v56  ;;  %v1250_v47 = vld [vmem:[%s10684_s10 + $0x390] sm:$0xff] }
 0x21b   : > { %2019 = vmatprep.mubr.f32.mxu0 %v1226_v28  ;;  %3389 = vmatprep.mubr.f32.mxu1 %v2607_v12  ;;  %16912 = vst [vmem:[#allocation219_spill] sm:$0xff] %v13392_v40  ;;  %v13398_v28 = vpack.c.bf16 %v870_v33, %v868_v5  ;;  %v872_v12 = vld [vmem:[%s16006_s4 + $0x10c8] sm:$0xff] }
 0x21c   : > { %2020 = vmatmul.mubr.f32.gmra.mrb[6].mxu0 %v1225_v60  ;;  %3390 = vmatmul.mubr.f32.gmra.mrb[6].mxu1 %v2606_v54  ;;  %v867_v54 = vld [vmem:[%s16006_s4 + $0x10a0] sm:$0xff]  ;;  %v869_v60 = vld [vmem:[%s16006_s4 + $0x10b0] sm:$0xff]  ;;  %v2534_v5 = vld [vmem:[%s10690_s13 + $0x88] sm:$0xff] }
 0x21d   : > { %7302 = vmatpush1.bf16.msra.mxu0 %v13368_v41  ;;  %8102 = vmatpush1.bf16.msra.mxu1 %v13368_v41  ;;  %16913 = vst [vmem:[#allocation220_spill] sm:$0xff] %v13398_v28  ;;  %v13416_v33 = vpack.c.bf16 %v869_v60, %v867_v54  ;;  %v2583_v41 = vld [vmem:[%s10690_s13 + $0x210] sm:$0xff] }
 0x21e   : > { %7304 = vmatprep.subr.bf16.mxu0 %v13374_v56  ;;  %8104 = vmatprep.subr.bf16.mxu1 %v13374_v56  ;;  %v13420_v56 = vpack.c.bf16 %v874_v30, %v872_v12  ;;  %v875_v12 = vld [vmem:[%s16006_s4 + $0x10e0] sm:$0xff]  ;;  %v877_v30 = vld [vmem:[%s16006_s4 + $0x10f0] sm:$0xff] }
 0x21f   : > { %2025 = vmatprep.mubr.f32.mxu0 %v1251_v10  ;;  %3395 = vmatprep.mubr.f32.mxu1 %v2632_v36  ;;  %16914 = vst [vmem:[#allocation221_spill] sm:$0xff] %v13416_v33  ;;  %v871_v10 = vld [vmem:[%s16006_s4 + $0x10c0] sm:$0xff]  ;;  %v878_v36 = vld [vmem:[%s16006_s4 + $0x10f8] sm:$0xff] }
 0x220   : > { %2026 = vmatmul.mubr.f32.gmra.mrb[8].mxu0 %v1250_v47  ;;  %3396 = vmatmul.mubr.f32.gmra.mrb[8].mxu1 %v2631_v55  ;;  %16915 = vst [vmem:[#allocation222_spill] sm:$0xff] %v13420_v56  ;;  %v873_v55 = vld [vmem:[%s16006_s4 + $0x10d0] sm:$0xff]  ;;  %v876_v47 = vld [vmem:[%s16006_s4 + $0x10e8] sm:$0xff] }
 0x221   : > { %7306 = vmatpush1.bf16.msra.mxu0 %v13392_v40  ;;  %8106 = vmatpush1.bf16.msra.mxu1 %v13392_v40  ;;  %v13436_v54 = vpack.c.bf16 %v873_v55, %v871_v10  ;;  %v13440_v60 = vpack.c.bf16 %v878_v36, %v876_v47  ;;  %v13456_v10 = vpack.c.bf16 %v877_v30, %v875_v12  ;;  %v879_v47 = vld [vmem:[%s16006_s4 + $0x1100] sm:$0xff]  ;;  %v881_v36 = vld [vmem:[%s16006_s4 + $0x1110] sm:$0xff]  ;;  %v886_v12 = vld [vmem:[%s16006_s4 + $0x1138] sm:$0xff] }
 0x222   : > { %7308 = vmatprep.subr.bf16.mxu0 %v13398_v28  ;;  %8108 = vmatprep.subr.bf16.mxu1 %v13398_v28  ;;  %v13476_v30 = vpack.c.bf16 %v881_v36, %v879_v47  ;;  %v890_v47 = vld [vmem:[%s16006_s4 + $0x1158] sm:$0xff]  ;;  %v2558_v28 = vld [vmem:[%s10690_s13 + $0x148] sm:$0xff]  ;;  %v1202_v40 = vld [vmem:[%s10684_s10 + $0x210] sm:$0xff] }
 0x223   : > { %2096 = vmatprep.mubr.f32.mxu0 %v1153_v11  ;;  %3466 = vmatprep.mubr.f32.mxu1 %v2534_v5  ;;  %16916 = vst [vmem:[#allocation223_spill] sm:$0xff] %v13436_v54  ;;  %16917 = vst [vmem:[#allocation224_spill] sm:$0xff] %v13440_v60  ;;  %v880_v11 = vld [vmem:[%s16006_s4 + $0x1108] sm:$0xff]  ;;  %v882_v5 = vld [vmem:[%s16006_s4 + $0x1118] sm:$0xff] }
 0x224   : > { %16918 = vst [vmem:[#allocation225_spill] sm:$0xff] %v13456_v10  ;;  %v13460_v55 = vpack.c.bf16 %v882_v5, %v880_v11  ;;  %16920 = vst [vmem:[#allocation227_spill] sm:$0xff] %v13476_v30  ;;  %v883_v5 = vld [vmem:[%s16006_s4 + $0x1120] sm:$0xff] }
 0x225   : > { %7310 = vmatpush1.bf16.msra.mxu0 %v13416_v33  ;;  %8110 = vmatpush1.bf16.msra.mxu1 %v13416_v33  ;;  %v1177_v33 = vld [vmem:[%s10684_s10 + $0x148] sm:$0xff] }
 0x226   : > { %7312 = vmatprep.subr.bf16.mxu0 %v13420_v56  ;;  %8112 = vmatprep.subr.bf16.mxu1 %v13420_v56  ;;  %16919 = vst [vmem:[#allocation226_spill] sm:$0xff] %v13460_v55  ;;  %v915_v56 = vld [vmem:[%s16006_s4 + $0x1220] sm:$0xff] }
 0x229   : > { %7314 = vmatpush1.bf16.msra.mxu0 %v13436_v54  ;;  %8114 = vmatpush1.bf16.msra.mxu1 %v13436_v54  ;;  %v884_v54 = vld [vmem:[%s16006_s4 + $0x1128] sm:$0xff] }
 0x22a   : > { %7316 = vmatprep.subr.bf16.mxu0 %v13440_v60  ;;  %8116 = vmatprep.subr.bf16.mxu1 %v13440_v60  ;;  %v13480_v11 = vpack.c.bf16 %v886_v12, %v884_v54  ;;  %v885_v60 = vld [vmem:[%s16006_s4 + $0x1130] sm:$0xff]  ;;  %v887_v12 = vld [vmem:[%s16006_s4 + $0x1140] sm:$0xff] }
 0x22b   : > { %v13496_v54 = vpack.c.bf16 %v885_v60, %v883_v5  ;;  %v894_v60 = vld [vmem:[%s16006_s4 + $0x1178] sm:$0xff] }
 0x22c   : > { %16921 = vst [vmem:[#allocation228_spill] sm:$0xff] %v13480_v11 }
 0x22d   : > { %7318 = vmatpush1.bf16.msra.mxu0 %v13456_v10  ;;  %8118 = vmatpush1.bf16.msra.mxu1 %v13456_v10  ;;  %v888_v10 = vld [vmem:[%s16006_s4 + $0x1148] sm:$0xff]  ;;  %16922 = vst [vmem:[#allocation229_spill] sm:$0xff] %v13496_v54 }
 0x22e   : > { %7320 = vmatprep.subr.bf16.mxu0 %v13460_v55  ;;  %8120 = vmatprep.subr.bf16.mxu1 %v13460_v55  ;;  %v13500_v36 = vpack.c.bf16 %v890_v47, %v888_v10  ;;  %v889_v55 = vld [vmem:[%s16006_s4 + $0x1150] sm:$0xff]  ;;  %v891_v47 = vld [vmem:[%s16006_s4 + $0x1160] sm:$0xff] }
 0x22f   : > { %v13516_v10 = vpack.c.bf16 %v889_v55, %v887_v12  ;;  %v898_v55 = vld [vmem:[%s16006_s4 + $0x1198] sm:$0xff] }
 0x230   : > { %16923 = vst [vmem:[#allocation230_spill] sm:$0xff] %v13500_v36 }
 0x231   : > { %7322 = vmatpush1.bf16.msra.mxu0 %v13476_v30  ;;  %8122 = vmatpush1.bf16.msra.mxu1 %v13476_v30  ;;  %v892_v30 = vld [vmem:[%s16006_s4 + $0x1168] sm:$0xff]  ;;  %16924 = vst [vmem:[#allocation231_spill] sm:$0xff] %v13516_v10 }
 0x232   : > { %7324 = vmatprep.subr.bf16.mxu0 %v13480_v11  ;;  %8124 = vmatprep.subr.bf16.mxu1 %v13480_v11  ;;  %v13520_v5 = vpack.c.bf16 %v894_v60, %v892_v30  ;;  %v893_v11 = vld [vmem:[%s16006_s4 + $0x1170] sm:$0xff]  ;;  %v895_v60 = vld [vmem:[%s16006_s4 + $0x1180] sm:$0xff] }
 0x233   : > { %v13536_v30 = vpack.c.bf16 %v893_v11, %v891_v47  ;;  %v902_v11 = vld [vmem:[%s16006_s4 + $0x11b8] sm:$0xff] }
 0x234   : > { %16925 = vst [vmem:[#allocation232_spill] sm:$0xff] %v13520_v5 }
 0x235   : > { %7326 = vmatpush1.bf16.msra.mxu0 %v13496_v54  ;;  %8126 = vmatpush1.bf16.msra.mxu1 %v13496_v54  ;;  %v896_v54 = vld [vmem:[%s16006_s4 + $0x1188] sm:$0xff]  ;;  %16926 = vst [vmem:[#allocation233_spill] sm:$0xff] %v13536_v30 }
 0x236   : > { %7328 = vmatprep.subr.bf16.mxu0 %v13500_v36  ;;  %8128 = vmatprep.subr.bf16.mxu1 %v13500_v36  ;;  %v13540_v12 = vpack.c.bf16 %v898_v55, %v896_v54  ;;  %v897_v36 = vld [vmem:[%s16006_s4 + $0x1190] sm:$0xff]  ;;  %v899_v55 = vld [vmem:[%s16006_s4 + $0x11a0] sm:$0xff] }
 0x237   : > { %v13556_v54 = vpack.c.bf16 %v897_v36, %v895_v60  ;;  %v906_v36 = vld [vmem:[%s16006_s4 + $0x11d8] sm:$0xff] }
 0x238   : > { %16927 = vst [vmem:[#allocation234_spill] sm:$0xff] %v13540_v12 }
 0x239   : > { %7330 = vmatpush1.bf16.msra.mxu0 %v13516_v10  ;;  %8130 = vmatpush1.bf16.msra.mxu1 %v13516_v10  ;;  %v900_v10 = vld [vmem:[%s16006_s4 + $0x11a8] sm:$0xff]  ;;  %16928 = vst [vmem:[#allocation235_spill] sm:$0xff] %v13556_v54 }
 0x23a   : > { %7332 = vmatprep.subr.bf16.mxu0 %v13520_v5  ;;  %8132 = vmatprep.subr.bf16.mxu1 %v13520_v5  ;;  %v13560_v47 = vpack.c.bf16 %v902_v11, %v900_v10  ;;  %v901_v5 = vld [vmem:[%s16006_s4 + $0x11b0] sm:$0xff]  ;;  %v903_v11 = vld [vmem:[%s16006_s4 + $0x11c0] sm:$0xff] }
 0x23b   : > { %v13576_v10 = vpack.c.bf16 %v901_v5, %v899_v55  ;;  %v910_v5 = vld [vmem:[%s16006_s4 + $0x11f8] sm:$0xff] }
 0x23c   : > { %16929 = vst [vmem:[#allocation236_spill] sm:$0xff] %v13560_v47 }
 0x23d   : > { %7334 = vmatpush1.bf16.msra.mxu0 %v13536_v30  ;;  %8134 = vmatpush1.bf16.msra.mxu1 %v13536_v30  ;;  %v904_v30 = vld [vmem:[%s16006_s4 + $0x11c8] sm:$0xff]  ;;  %16930 = vst [vmem:[#allocation237_spill] sm:$0xff] %v13576_v10 }
 0x23e   : > { %7336 = vmatprep.subr.bf16.mxu0 %v13540_v12  ;;  %8136 = vmatprep.subr.bf16.mxu1 %v13540_v12  ;;  %v13580_v60 = vpack.c.bf16 %v906_v36, %v904_v30  ;;  %v905_v12 = vld [vmem:[%s16006_s4 + $0x11d0] sm:$0xff]  ;;  %v907_v36 = vld [vmem:[%s16006_s4 + $0x11e0] sm:$0xff] }
 0x23f   : > { %v13596_v30 = vpack.c.bf16 %v905_v12, %v903_v11  ;;  %v912_v12 = vld [vmem:[%s16006_s4 + $0x1208] sm:$0xff]  ;;  %v914_v11 = vld [vmem:[%s16006_s4 + $0x1218] sm:$0xff] }
 0x240   : > { %16931 = vst [vmem:[#allocation238_spill] sm:$0xff] %v13580_v60 }
 0x241   : > { %7338 = vmatpush1.bf16.msra.mxu0 %v13556_v54  ;;  %8138 = vmatpush1.bf16.msra.mxu1 %v13556_v54  ;;  %v908_v54 = vld [vmem:[%s16006_s4 + $0x11e8] sm:$0xff]  ;;  %16932 = vst [vmem:[#allocation239_spill] sm:$0xff] %v13596_v30 }
 0x242   : > { %7340 = vmatprep.subr.bf16.mxu0 %v13560_v47  ;;  %8140 = vmatprep.subr.bf16.mxu1 %v13560_v47  ;;  %v13600_v55 = vpack.c.bf16 %v910_v5, %v908_v54  ;;  %v909_v47 = vld [vmem:[%s16006_s4 + $0x11f0] sm:$0xff]  ;;  %v13620_v5 = vpack.c.bf16 %v914_v11, %v912_v12  ;;  %v2533_v11 = vld [vmem:[%s10690_s13 + $0x80] sm:$0xff] }
 0x243   : > { %v13616_v54 = vpack.c.bf16 %v909_v47, %v907_v36  ;;  %v918_v47 = vld [vmem:[%s16006_s4 + $0x1238] sm:$0xff]  ;;  %v1152_v36 = vld [vmem:[%s10684_s10 + $0x80] sm:$0xff] }
 0x244   : > { %16933 = vst [vmem:[#allocation240_spill] sm:$0xff] %v13600_v55  ;;  %16935 = vst [vmem:[#allocation242_spill] sm:$0xff] %v13620_v5 }
 0x245   : > { %7342 = vmatpush1.bf16.msra.mxu0 %v13576_v10  ;;  %8142 = vmatpush1.bf16.msra.mxu1 %v13576_v10  ;;  %16934 = vst [vmem:[#allocation241_spill] sm:$0xff] %v13616_v54  ;;  %v913_v10 = vld [vmem:[%s16006_s4 + $0x1210] sm:$0xff] }
 0x246   : > { %7344 = vmatprep.subr.bf16.mxu0 %v13580_v60  ;;  %8144 = vmatprep.subr.bf16.mxu1 %v13580_v60  ;;  %v911_v60 = vld [vmem:[%s16006_s4 + $0x1200] sm:$0xff] }
 0x247   : > { %v13637_v12 = vpack.c.bf16 %v913_v10, %v911_v60  ;;  %v920_v10 = vld [vmem:[%s16006_s4 + $0x1248] sm:$0xff]  ;;  %v922_v60 = vld [vmem:[%s16006_s4 + $0x1258] sm:$0xff] }
 0x249   : > { %7346 = vmatpush1.bf16.msra.mxu0 %v13596_v30  ;;  %8146 = vmatpush1.bf16.msra.mxu1 %v13596_v30  ;;  %v916_v30 = vld [vmem:[%s16006_s4 + $0x1228] sm:$0xff]  ;;  %16936 = vst [vmem:[#allocation243_spill] sm:$0xff] %v13637_v12 }
 0x24a   : > { %7348 = vmatprep.subr.bf16.mxu0 %v13600_v55  ;;  %8148 = vmatprep.subr.bf16.mxu1 %v13600_v55  ;;  %v13642_v55 = vpack.c.bf16 %v918_v47, %v916_v30  ;;  %v1178_v30 = vld [vmem:[%s10684_s10 + $0x150] sm:$0xff] }
 0x24b   : > { %v2559_v47 = vld [vmem:[%s10690_s13 + $0x150] sm:$0xff] }
 0x24c   : > { %16937 = vst [vmem:[#allocation244_spill] sm:$0xff] %v13642_v55 }
 0x24d   : > { %7350 = vmatpush1.bf16.msra.mxu0 %v13616_v54  ;;  %8150 = vmatpush1.bf16.msra.mxu1 %v13616_v54  ;;  %v917_v54 = vld [vmem:[%s16006_s4 + $0x1230] sm:$0xff] }
 0x24e   : > { %7352 = vmatprep.subr.bf16.mxu0 %v13620_v5  ;;  %8152 = vmatprep.subr.bf16.mxu1 %v13620_v5  ;;  %v13660_v5 = vpack.c.bf16 %v917_v54, %v915_v56  ;;  %v924_v56 = vld [vmem:[%s16006_s4 + $0x1268] sm:$0xff]  ;;  %v926_v54 = vld [vmem:[%s16006_s4 + $0x1278] sm:$0xff] }
 0x250   : > { %2097 = vmatmul.mubr.f32.vlgmr.msra.gmra.mrb[0].mxu0 %v1152_v36  ;;  %3467 = vmatmul.mubr.f32.vlgmr.msra.gmra.mrb[0].mxu1 %v2533_v11  ;;  %16938 = vst [vmem:[#allocation245_spill] sm:$0xff] %v13660_v5  ;;  %v13666_v36 = vpack.c.bf16 %v922_v60, %v920_v10  ;;  %v919_v11 = vld [vmem:[%s16006_s4 + $0x1240] sm:$0xff]  ;;  %v1203_v10 = vld [vmem:[%s10684_s10 + $0x218] sm:$0xff] }
 0x251   : > { %7354 = vmatpush1.bf16.msra.mxu0 %v13637_v12  ;;  %8154 = vmatpush1.bf16.msra.mxu1 %v13637_v12  ;;  %v921_v12 = vld [vmem:[%s16006_s4 + $0x1250] sm:$0xff]  ;;  %v2584_v60 = vld [vmem:[%s10690_s13 + $0x218] sm:$0xff] }
 0x252   : > { %7356 = vmatprep.subr.bf16.mxu0 %v13642_v55  ;;  %8156 = vmatprep.subr.bf16.mxu1 %v13642_v55  ;;  %16939 = vst [vmem:[#allocation246_spill] sm:$0xff] %v13666_v36  ;;  %v13684_v55 = vpack.c.bf16 %v921_v12, %v919_v11  ;;  %v928_v12 = vld [vmem:[%s16006_s4 + $0x1288] sm:$0xff]  ;;  %v1228_v11 = vld [vmem:[%s10684_s10 + $0x2e0] sm:$0xff] }
 0x253   : > { %2102 = vmatprep.mubr.f32.mxu0 %v1178_v30  ;;  %3472 = vmatprep.mubr.f32.mxu1 %v2559_v47  ;;  %v925_v30 = vld [vmem:[%s16006_s4 + $0x1270] sm:$0xff]  ;;  %v930_v47 = vld [vmem:[%s16006_s4 + $0x1298] sm:$0xff] }
 0x254   : > { %2103 = vmatmul.mubr.f32.gmra.mrb[2].mxu0 %v1177_v33  ;;  %3473 = vmatmul.mubr.f32.gmra.mrb[2].mxu1 %v2558_v28  ;;  %16940 = vst [vmem:[#allocation247_spill] sm:$0xff] %v13684_v55  ;;  %v13690_v33 = vpack.c.bf16 %v926_v54, %v924_v56  ;;  %v923_v28 = vld [vmem:[%s16006_s4 + $0x1260] sm:$0xff] }
 0x255   : > { %7358 = vmatpush1.bf16.msra.mxu0 %v13660_v5  ;;  %8158 = vmatpush1.bf16.msra.mxu1 %v13660_v5  ;;  %v2609_v56 = vld [vmem:[%s10690_s13 + $0x2e0] sm:$0xff]  ;;  %v13708_v54 = vpack.c.bf16 %v925_v30, %v923_v28  ;;  %v2608_v5 = vld [vmem:[%s10690_s13 + $0x2d8] sm:$0xff]  ;;  %v1253_v30 = vld [vmem:[%s10684_s10 + $0x3a8] sm:$0xff] }
 0x256   : > { %7360 = vmatprep.subr.bf16.mxu0 %v13666_v36  ;;  %8160 = vmatprep.subr.bf16.mxu1 %v13666_v36  ;;  %16941 = vst [vmem:[#allocation248_spill] sm:$0xff] %v13690_v33  ;;  %v1227_v36 = vld [vmem:[%s10684_s10 + $0x2d8] sm:$0xff] }
 0x257   : > { %2108 = vmatprep.mubr.f32.mxu0 %v1203_v10  ;;  %3478 = vmatprep.mubr.f32.mxu1 %v2584_v60  ;;  %16942 = vst [vmem:[#allocation249_spill] sm:$0xff] %v13708_v54  ;;  %v929_v10 = vld [vmem:[%s16006_s4 + $0x1290] sm:$0xff]  ;;  %v932_v60 = vld [vmem:[%s16006_s4 + $0x12a8] sm:$0xff]  ;;  %v934_v28 = vld [vmem:[%s16006_s4 + $0x12b8] sm:$0xff] }
 0x258   : > { %2109 = vmatmul.mubr.f32.gmra.mrb[4].mxu0 %v1202_v40  ;;  %3479 = vmatmul.mubr.f32.gmra.mrb[4].mxu1 %v2583_v41  ;;  %v13714_v40 = vpack.c.bf16 %v930_v47, %v928_v12  ;;  %v927_v41 = vld [vmem:[%s16006_s4 + $0x1280] sm:$0xff]  ;;  %v2634_v12 = vld [vmem:[%s10690_s13 + $0x3a8] sm:$0xff] }
 0x259   : > { %7362 = vmatpush1.bf16.msra.mxu0 %v13684_v55  ;;  %8162 = vmatpush1.bf16.msra.mxu1 %v13684_v55  ;;  %v13732_v47 = vpack.c.bf16 %v929_v10, %v927_v41  ;;  %v2633_v55 = vld [vmem:[%s10690_s13 + $0x3a0] sm:$0xff]  ;;  %v938_v41 = vld [vmem:[%s16006_s4 + $0x12d8] sm:$0xff] }
 0x25a   : > { %7364 = vmatprep.subr.bf16.mxu0 %v13690_v33  ;;  %8164 = vmatprep.subr.bf16.mxu1 %v13690_v33  ;;  %16943 = vst [vmem:[#allocation250_spill] sm:$0xff] %v13714_v40  ;;  %v1252_v33 = vld [vmem:[%s10684_s10 + $0x3a0] sm:$0xff]  ;;  %v1155_v10 = vld [vmem:[%s10684_s10 + $0x98] sm:$0xff] }
 0x25b   : > { %2114 = vmatprep.mubr.f32.mxu0 %v1228_v11  ;;  %3484 = vmatprep.mubr.f32.mxu1 %v2609_v56  ;;  %16944 = vst [vmem:[#allocation251_spill] sm:$0xff] %v13732_v47  ;;  %v13738_v11 = vpack.c.bf16 %v934_v28, %v932_v60  ;;  %v936_v56 = vld [vmem:[%s16006_s4 + $0x12c8] sm:$0xff]  ;;  %v2536_v60 = vld [vmem:[%s10690_s13 + $0x98] sm:$0xff] }
 0x25c   : > { %2115 = vmatmul.mubr.f32.gmra.mrb[6].mxu0 %v1227_v36  ;;  %3485 = vmatmul.mubr.f32.gmra.mrb[6].mxu1 %v2608_v5  ;;  %v931_v5 = vld [vmem:[%s16006_s4 + $0x12a0] sm:$0xff]  ;;  %v933_v36 = vld [vmem:[%s16006_s4 + $0x12b0] sm:$0xff] }
 0x25d   : > { %7366 = vmatpush1.bf16.msra.mxu0 %v13708_v54  ;;  %8166 = vmatpush1.bf16.msra.mxu1 %v13708_v54  ;;  %16945 = vst [vmem:[#allocation252_spill] sm:$0xff] %v13738_v11  ;;  %v13756_v28 = vpack.c.bf16 %v933_v36, %v931_v5  ;;  %v2585_v54 = vld [vmem:[%s10690_s13 + $0x220] sm:$0xff] }
 0x25e   : > { %7368 = vmatprep.subr.bf16.mxu0 %v13714_v40  ;;  %8168 = vmatprep.subr.bf16.mxu1 %v13714_v40  ;;  %v13760_v40 = vpack.c.bf16 %v938_v41, %v936_v56  ;;  %v939_v56 = vld [vmem:[%s16006_s4 + $0x12e0] sm:$0xff]  ;;  %v941_v41 = vld [vmem:[%s16006_s4 + $0x12f0] sm:$0xff] }
 0x25f   : > { %2120 = vmatprep.mubr.f32.mxu0 %v1253_v30  ;;  %3490 = vmatprep.mubr.f32.mxu1 %v2634_v12  ;;  %16946 = vst [vmem:[#allocation253_spill] sm:$0xff] %v13756_v28  ;;  %v935_v30 = vld [vmem:[%s16006_s4 + $0x12c0] sm:$0xff]  ;;  %v942_v12 = vld [vmem:[%s16006_s4 + $0x12f8] sm:$0xff] }
 0x260   : > { %2121 = vmatmul.mubr.f32.gmra.mrb[8].mxu0 %v1252_v33  ;;  %3491 = vmatmul.mubr.f32.gmra.mrb[8].mxu1 %v2633_v55  ;;  %16947 = vst [vmem:[#allocation254_spill] sm:$0xff] %v13760_v40  ;;  %v937_v55 = vld [vmem:[%s16006_s4 + $0x12d0] sm:$0xff]  ;;  %v940_v33 = vld [vmem:[%s16006_s4 + $0x12e8] sm:$0xff] }
 0x261   : > { %7370 = vmatpush1.bf16.msra.mxu0 %v13732_v47  ;;  %8170 = vmatpush1.bf16.msra.mxu1 %v13732_v47  ;;  %v13776_v5 = vpack.c.bf16 %v937_v55, %v935_v30  ;;  %v13780_v36 = vpack.c.bf16 %v942_v12, %v940_v33  ;;  %v13796_v30 = vpack.c.bf16 %v941_v41, %v939_v56  ;;  %v943_v33 = vld [vmem:[%s16006_s4 + $0x1300] sm:$0xff]  ;;  %v945_v12 = vld [vmem:[%s16006_s4 + $0x1310] sm:$0xff]  ;;  %v950_v56 = vld [vmem:[%s16006_s4 + $0x1338] sm:$0xff] }
 0x262   : > { %7372 = vmatprep.subr.bf16.mxu0 %v13738_v11  ;;  %8172 = vmatprep.subr.bf16.mxu1 %v13738_v11  ;;  %v13816_v41 = vpack.c.bf16 %v945_v12, %v943_v33  ;;  %v954_v33 = vld [vmem:[%s16006_s4 + $0x1358] sm:$0xff]  ;;  %v1204_v47 = vld [vmem:[%s10684_s10 + $0x220] sm:$0xff] }
 0x263   : > { %2191 = vmatprep.mubr.f32.mxu0 %v1155_v10  ;;  %3561 = vmatprep.mubr.f32.mxu1 %v2536_v60  ;;  %16948 = vst [vmem:[#allocation255_spill] sm:$0xff] %v13776_v5  ;;  %16949 = vst [vmem:[#allocation256_spill] sm:$0xff] %v13780_v36  ;;  %v944_v10 = vld [vmem:[%s16006_s4 + $0x1308] sm:$0xff]  ;;  %v946_v60 = vld [vmem:[%s16006_s4 + $0x1318] sm:$0xff] }
 0x264   : > { %16950 = vst [vmem:[#allocation257_spill] sm:$0xff] %v13796_v30  ;;  %v13800_v55 = vpack.c.bf16 %v946_v60, %v944_v10  ;;  %16952 = vst [vmem:[#allocation259_spill] sm:$0xff] %v13816_v41  ;;  %v947_v60 = vld [vmem:[%s16006_s4 + $0x1320] sm:$0xff]  ;;  %v2560_v11 = vld [vmem:[%s10690_s13 + $0x158] sm:$0xff] }
 0x265   : > { %7374 = vmatpush1.bf16.msra.mxu0 %v13756_v28  ;;  %8174 = vmatpush1.bf16.msra.mxu1 %v13756_v28  ;;  %v1179_v28 = vld [vmem:[%s10684_s10 + $0x158] sm:$0xff] }
 0x266   : > { %7376 = vmatprep.subr.bf16.mxu0 %v13760_v40  ;;  %8176 = vmatprep.subr.bf16.mxu1 %v13760_v40  ;;  %16951 = vst [vmem:[#allocation258_spill] sm:$0xff] %v13800_v55  ;;  %v979_v40 = vld [vmem:[%s16006_s4 + $0x1420] sm:$0xff] }
 0x269   : > { %7378 = vmatpush1.bf16.msra.mxu0 %v13776_v5  ;;  %8178 = vmatpush1.bf16.msra.mxu1 %v13776_v5  ;;  %v948_v5 = vld [vmem:[%s16006_s4 + $0x1328] sm:$0xff] }
 0x26a   : > { %7380 = vmatprep.subr.bf16.mxu0 %v13780_v36  ;;  %8180 = vmatprep.subr.bf16.mxu1 %v13780_v36  ;;  %v13820_v10 = vpack.c.bf16 %v950_v56, %v948_v5  ;;  %v949_v36 = vld [vmem:[%s16006_s4 + $0x1330] sm:$0xff]  ;;  %v951_v56 = vld [vmem:[%s16006_s4 + $0x1340] sm:$0xff] }
 0x26b   : > { %v13836_v5 = vpack.c.bf16 %v949_v36, %v947_v60  ;;  %v958_v36 = vld [vmem:[%s16006_s4 + $0x1378] sm:$0xff] }
 0x26c   : > { %16953 = vst [vmem:[#allocation260_spill] sm:$0xff] %v13820_v10 }
 0x26d   : > { %7382 = vmatpush1.bf16.msra.mxu0 %v13796_v30  ;;  %8182 = vmatpush1.bf16.msra.mxu1 %v13796_v30  ;;  %v952_v30 = vld [vmem:[%s16006_s4 + $0x1348] sm:$0xff]  ;;  %16954 = vst [vmem:[#allocation261_spill] sm:$0xff] %v13836_v5 }
 0x26e   : > { %7384 = vmatprep.subr.bf16.mxu0 %v13800_v55  ;;  %8184 = vmatprep.subr.bf16.mxu1 %v13800_v55  ;;  %v13840_v12 = vpack.c.bf16 %v954_v33, %v952_v30  ;;  %v953_v55 = vld [vmem:[%s16006_s4 + $0x1350] sm:$0xff]  ;;  %v955_v33 = vld [vmem:[%s16006_s4 + $0x1360] sm:$0xff] }
 0x26f   : > { %v13856_v30 = vpack.c.bf16 %v953_v55, %v951_v56  ;;  %v962_v55 = vld [vmem:[%s16006_s4 + $0x1398] sm:$0xff] }
 0x270   : > { %16955 = vst [vmem:[#allocation262_spill] sm:$0xff] %v13840_v12 }
 0x271   : > { %7386 = vmatpush1.bf16.msra.mxu0 %v13816_v41  ;;  %8186 = vmatpush1.bf16.msra.mxu1 %v13816_v41  ;;  %v956_v41 = vld [vmem:[%s16006_s4 + $0x1368] sm:$0xff]  ;;  %16956 = vst [vmem:[#allocation263_spill] sm:$0xff] %v13856_v30 }
 0x272   : > { %7388 = vmatprep.subr.bf16.mxu0 %v13820_v10  ;;  %8188 = vmatprep.subr.bf16.mxu1 %v13820_v10  ;;  %v13860_v60 = vpack.c.bf16 %v958_v36, %v956_v41  ;;  %v957_v10 = vld [vmem:[%s16006_s4 + $0x1370] sm:$0xff]  ;;  %v959_v36 = vld [vmem:[%s16006_s4 + $0x1380] sm:$0xff] }
 0x273   : > { %v13876_v41 = vpack.c.bf16 %v957_v10, %v955_v33  ;;  %v966_v10 = vld [vmem:[%s16006_s4 + $0x13b8] sm:$0xff] }
 0x274   : > { %16957 = vst [vmem:[#allocation264_spill] sm:$0xff] %v13860_v60 }
 0x275   : > { %7390 = vmatpush1.bf16.msra.mxu0 %v13836_v5  ;;  %8190 = vmatpush1.bf16.msra.mxu1 %v13836_v5  ;;  %v960_v5 = vld [vmem:[%s16006_s4 + $0x1388] sm:$0xff]  ;;  %16958 = vst [vmem:[#allocation265_spill] sm:$0xff] %v13876_v41 }
 0x276   : > { %7392 = vmatprep.subr.bf16.mxu0 %v13840_v12  ;;  %8192 = vmatprep.subr.bf16.mxu1 %v13840_v12  ;;  %v13880_v56 = vpack.c.bf16 %v962_v55, %v960_v5  ;;  %v961_v12 = vld [vmem:[%s16006_s4 + $0x1390] sm:$0xff]  ;;  %v963_v55 = vld [vmem:[%s16006_s4 + $0x13a0] sm:$0xff] }
 0x277   : > { %v13896_v5 = vpack.c.bf16 %v961_v12, %v959_v36  ;;  %v970_v12 = vld [vmem:[%s16006_s4 + $0x13d8] sm:$0xff] }
 0x278   : > { %16959 = vst [vmem:[#allocation266_spill] sm:$0xff] %v13880_v56 }
 0x279   : > { %7394 = vmatpush1.bf16.msra.mxu0 %v13856_v30  ;;  %8194 = vmatpush1.bf16.msra.mxu1 %v13856_v30  ;;  %v964_v30 = vld [vmem:[%s16006_s4 + $0x13a8] sm:$0xff]  ;;  %16960 = vst [vmem:[#allocation267_spill] sm:$0xff] %v13896_v5 }
 0x27a   : > { %7396 = vmatprep.subr.bf16.mxu0 %v13860_v60  ;;  %8196 = vmatprep.subr.bf16.mxu1 %v13860_v60  ;;  %v13900_v33 = vpack.c.bf16 %v966_v10, %v964_v30  ;;  %v965_v60 = vld [vmem:[%s16006_s4 + $0x13b0] sm:$0xff]  ;;  %v967_v10 = vld [vmem:[%s16006_s4 + $0x13c0] sm:$0xff] }
 0x27b   : > { %v13916_v30 = vpack.c.bf16 %v965_v60, %v963_v55  ;;  %v974_v60 = vld [vmem:[%s16006_s4 + $0x13f8] sm:$0xff] }
 0x27c   : > { %16961 = vst [vmem:[#allocation268_spill] sm:$0xff] %v13900_v33 }
 0x27d   : > { %7398 = vmatpush1.bf16.msra.mxu0 %v13876_v41  ;;  %8198 = vmatpush1.bf16.msra.mxu1 %v13876_v41  ;;  %v968_v41 = vld [vmem:[%s16006_s4 + $0x13c8] sm:$0xff]  ;;  %16962 = vst [vmem:[#allocation269_spill] sm:$0xff] %v13916_v30 }
 0x27e   : > { %7400 = vmatprep.subr.bf16.mxu0 %v13880_v56  ;;  %8200 = vmatprep.subr.bf16.mxu1 %v13880_v56  ;;  %v13920_v36 = vpack.c.bf16 %v970_v12, %v968_v41  ;;  %v969_v56 = vld [vmem:[%s16006_s4 + $0x13d0] sm:$0xff]  ;;  %v971_v12 = vld [vmem:[%s16006_s4 + $0x13e0] sm:$0xff] }
 0x27f   : > { %v13936_v41 = vpack.c.bf16 %v969_v56, %v967_v10  ;;  %v976_v56 = vld [vmem:[%s16006_s4 + $0x1408] sm:$0xff]  ;;  %v978_v10 = vld [vmem:[%s16006_s4 + $0x1418] sm:$0xff] }
 0x280   : > { %16963 = vst [vmem:[#allocation270_spill] sm:$0xff] %v13920_v36 }
 0x281   : > { %7402 = vmatpush1.bf16.msra.mxu0 %v13896_v5  ;;  %8202 = vmatpush1.bf16.msra.mxu1 %v13896_v5  ;;  %v972_v5 = vld [vmem:[%s16006_s4 + $0x13e8] sm:$0xff]  ;;  %16964 = vst [vmem:[#allocation271_spill] sm:$0xff] %v13936_v41 }
 0x282   : > { %7404 = vmatprep.subr.bf16.mxu0 %v13900_v33  ;;  %8204 = vmatprep.subr.bf16.mxu1 %v13900_v33  ;;  %v13940_v55 = vpack.c.bf16 %v974_v60, %v972_v5  ;;  %v973_v33 = vld [vmem:[%s16006_s4 + $0x13f0] sm:$0xff]  ;;  %v13960_v60 = vpack.c.bf16 %v978_v10, %v976_v56 }
 0x283   : > { %v13956_v5 = vpack.c.bf16 %v973_v33, %v971_v12  ;;  %v982_v33 = vld [vmem:[%s16006_s4 + $0x1438] sm:$0xff]  ;;  %v1154_v12 = vld [vmem:[%s10684_s10 + $0x90] sm:$0xff] }
 0x284   : > { %16965 = vst [vmem:[#allocation272_spill] sm:$0xff] %v13940_v55  ;;  %16967 = vst [vmem:[#allocation274_spill] sm:$0xff] %v13960_v60  ;;  %v2535_v10 = vld [vmem:[%s10690_s13 + $0x90] sm:$0xff] }
 0x285   : > { %7406 = vmatpush1.bf16.msra.mxu0 %v13916_v30  ;;  %8206 = vmatpush1.bf16.msra.mxu1 %v13916_v30  ;;  %16966 = vst [vmem:[#allocation273_spill] sm:$0xff] %v13956_v5  ;;  %v977_v30 = vld [vmem:[%s16006_s4 + $0x1410] sm:$0xff] }
 0x286   : > { %7408 = vmatprep.subr.bf16.mxu0 %v13920_v36  ;;  %8208 = vmatprep.subr.bf16.mxu1 %v13920_v36  ;;  %v975_v36 = vld [vmem:[%s16006_s4 + $0x1400] sm:$0xff] }
 0x287   : > { %v13977_v56 = vpack.c.bf16 %v977_v30, %v975_v36  ;;  %v984_v30 = vld [vmem:[%s16006_s4 + $0x1448] sm:$0xff]  ;;  %v986_v36 = vld [vmem:[%s16006_s4 + $0x1458] sm:$0xff] }
 0x289   : > { %7410 = vmatpush1.bf16.msra.mxu0 %v13936_v41  ;;  %8210 = vmatpush1.bf16.msra.mxu1 %v13936_v41  ;;  %v980_v41 = vld [vmem:[%s16006_s4 + $0x1428] sm:$0xff]  ;;  %16968 = vst [vmem:[#allocation275_spill] sm:$0xff] %v13977_v56 }
 0x28a   : > { %7412 = vmatprep.subr.bf16.mxu0 %v13940_v55  ;;  %8212 = vmatprep.subr.bf16.mxu1 %v13940_v55  ;;  %v13982_v55 = vpack.c.bf16 %v982_v33, %v980_v41  ;;  %v1180_v41 = vld [vmem:[%s10684_s10 + $0x160] sm:$0xff] }
 0x28b   : > { %v2561_v33 = vld [vmem:[%s10690_s13 + $0x160] sm:$0xff] }
 0x28c   : > { %16969 = vst [vmem:[#allocation276_spill] sm:$0xff] %v13982_v55 }
 0x28d   : > { %7414 = vmatpush1.bf16.msra.mxu0 %v13956_v5  ;;  %8214 = vmatpush1.bf16.msra.mxu1 %v13956_v5  ;;  %v981_v5 = vld [vmem:[%s16006_s4 + $0x1430] sm:$0xff] }
 0x28e   : > { %7416 = vmatprep.subr.bf16.mxu0 %v13960_v60  ;;  %8216 = vmatprep.subr.bf16.mxu1 %v13960_v60  ;;  %v14000_v60 = vpack.c.bf16 %v981_v5, %v979_v40  ;;  %v988_v40 = vld [vmem:[%s16006_s4 + $0x1468] sm:$0xff]  ;;  %v990_v5 = vld [vmem:[%s16006_s4 + $0x1478] sm:$0xff] }
 0x290   : > { %2192 = vmatmul.mubr.f32.vlgmr.msra.gmra.mrb[0].mxu0 %v1154_v12  ;;  %3562 = vmatmul.mubr.f32.vlgmr.msra.gmra.mrb[0].mxu1 %v2535_v10  ;;  %16970 = vst [vmem:[#allocation277_spill] sm:$0xff] %v14000_v60  ;;  %v14006_v12 = vpack.c.bf16 %v986_v36, %v984_v30  ;;  %v983_v10 = vld [vmem:[%s16006_s4 + $0x1440] sm:$0xff]  ;;  %v1205_v30 = vld [vmem:[%s10684_s10 + $0x228] sm:$0xff] }
 0x291   : > { %7418 = vmatpush1.bf16.msra.mxu0 %v13977_v56  ;;  %8218 = vmatpush1.bf16.msra.mxu1 %v13977_v56  ;;  %v985_v56 = vld [vmem:[%s16006_s4 + $0x1450] sm:$0xff]  ;;  %v2586_v36 = vld [vmem:[%s10690_s13 + $0x228] sm:$0xff] }
 0x292   : > { %7420 = vmatprep.subr.bf16.mxu0 %v13982_v55  ;;  %8220 = vmatprep.subr.bf16.mxu1 %v13982_v55  ;;  %16971 = vst [vmem:[#allocation278_spill] sm:$0xff] %v14006_v12  ;;  %v14024_v55 = vpack.c.bf16 %v985_v56, %v983_v10  ;;  %v992_v56 = vld [vmem:[%s16006_s4 + $0x1488] sm:$0xff]  ;;  %v1230_v10 = vld [vmem:[%s10684_s10 + $0x2f0] sm:$0xff] }
 0x293   : > { %2197 = vmatprep.mubr.f32.mxu0 %v1180_v41  ;;  %3567 = vmatprep.mubr.f32.mxu1 %v2561_v33  ;;  %v989_v41 = vld [vmem:[%s16006_s4 + $0x1470] sm:$0xff]  ;;  %v994_v33 = vld [vmem:[%s16006_s4 + $0x1498] sm:$0xff] }
 0x294   : > { %2198 = vmatmul.mubr.f32.gmra.mrb[2].mxu0 %v1179_v28  ;;  %3568 = vmatmul.mubr.f32.gmra.mrb[2].mxu1 %v2560_v11  ;;  %16972 = vst [vmem:[#allocation279_spill] sm:$0xff] %v14024_v55  ;;  %v14030_v28 = vpack.c.bf16 %v990_v5, %v988_v40  ;;  %v987_v11 = vld [vmem:[%s16006_s4 + $0x1460] sm:$0xff]  ;;  %v2611_v40 = vld [vmem:[%s10690_s13 + $0x2f0] sm:$0xff] }
 0x295   : > { %7422 = vmatpush1.bf16.msra.mxu0 %v14000_v60  ;;  %8222 = vmatpush1.bf16.msra.mxu1 %v14000_v60  ;;  %v14048_v5 = vpack.c.bf16 %v989_v41, %v987_v11  ;;  %v2610_v60 = vld [vmem:[%s10690_s13 + $0x2e8] sm:$0xff]  ;;  %v998_v11 = vld [vmem:[%s16006_s4 + $0x14b8] sm:$0xff] }
 0x296   : > { %7424 = vmatprep.subr.bf16.mxu0 %v14006_v12  ;;  %8224 = vmatprep.subr.bf16.mxu1 %v14006_v12  ;;  %16973 = vst [vmem:[#allocation280_spill] sm:$0xff] %v14030_v28  ;;  %v1229_v12 = vld [vmem:[%s10684_s10 + $0x2e8] sm:$0xff]  ;;  %v1255_v41 = vld [vmem:[%s10684_s10 + $0x3b8] sm:$0xff] }
 0x297   : > { %2203 = vmatprep.mubr.f32.mxu0 %v1205_v30  ;;  %3573 = vmatprep.mubr.f32.mxu1 %v2586_v36  ;;  %16974 = vst [vmem:[#allocation281_spill] sm:$0xff] %v14048_v5  ;;  %v993_v30 = vld [vmem:[%s16006_s4 + $0x1490] sm:$0xff]  ;;  %v996_v36 = vld [vmem:[%s16006_s4 + $0x14a8] sm:$0xff] }
 0x298   : > { %2204 = vmatmul.mubr.f32.gmra.mrb[4].mxu0 %v1204_v47  ;;  %3574 = vmatmul.mubr.f32.gmra.mrb[4].mxu1 %v2585_v54  ;;  %v14054_v47 = vpack.c.bf16 %v994_v33, %v992_v56  ;;  %v991_v54 = vld [vmem:[%s16006_s4 + $0x1480] sm:$0xff]  ;;  %v2636_v56 = vld [vmem:[%s10690_s13 + $0x3b8] sm:$0xff] }
 0x299   : > { %7426 = vmatpush1.bf16.msra.mxu0 %v14024_v55  ;;  %8226 = vmatpush1.bf16.msra.mxu1 %v14024_v55  ;;  %v14072_v33 = vpack.c.bf16 %v993_v30, %v991_v54  ;;  %v2635_v55 = vld [vmem:[%s10690_s13 + $0x3b0] sm:$0xff]  ;;  %v1002_v54 = vld [vmem:[%s16006_s4 + $0x14d8] sm:$0xff]  ;;  %v1157_v30 = vld [vmem:[%s10684_s10 + $0xa8] sm:$0xff] }
 0x29a   : > { %7428 = vmatprep.subr.bf16.mxu0 %v14030_v28  ;;  %8228 = vmatprep.subr.bf16.mxu1 %v14030_v28  ;;  %16975 = vst [vmem:[#allocation282_spill] sm:$0xff] %v14054_v47  ;;  %v1254_v28 = vld [vmem:[%s10684_s10 + $0x3b0] sm:$0xff] }
 0x29b   : > { %2209 = vmatprep.mubr.f32.mxu0 %v1230_v10  ;;  %3579 = vmatprep.mubr.f32.mxu1 %v2611_v40  ;;  %16976 = vst [vmem:[#allocation283_spill] sm:$0xff] %v14072_v33  ;;  %v14078_v10 = vpack.c.bf16 %v998_v11, %v996_v36  ;;  %v1000_v40 = vld [vmem:[%s16006_s4 + $0x14c8] sm:$0xff] }
 0x29c   : > { %2210 = vmatmul.mubr.f32.gmra.mrb[6].mxu0 %v1229_v12  ;;  %3580 = vmatmul.mubr.f32.gmra.mrb[6].mxu1 %v2610_v60  ;;  %v995_v60 = vld [vmem:[%s16006_s4 + $0x14a0] sm:$0xff]  ;;  %v997_v12 = vld [vmem:[%s16006_s4 + $0x14b0] sm:$0xff]  ;;  %v2538_v36 = vld [vmem:[%s10690_s13 + $0xa8] sm:$0xff] }
 0x29d   : > { %7430 = vmatpush1.bf16.msra.mxu0 %v14048_v5  ;;  %8230 = vmatpush1.bf16.msra.mxu1 %v14048_v5  ;;  %16977 = vst [vmem:[#allocation284_spill] sm:$0xff] %v14078_v10  ;;  %v14096_v11 = vpack.c.bf16 %v997_v12, %v995_v60  ;;  %v2587_v5 = vld [vmem:[%s10690_s13 + $0x230] sm:$0xff] }
 0x29e   : > { %7432 = vmatprep.subr.bf16.mxu0 %v14054_v47  ;;  %8232 = vmatprep.subr.bf16.mxu1 %v14054_v47  ;;  %v14100_v47 = vpack.c.bf16 %v1002_v54, %v1000_v40  ;;  %v1003_v40 = vld [vmem:[%s16006_s4 + $0x14e0] sm:$0xff]  ;;  %v1005_v54 = vld [vmem:[%s16006_s4 + $0x14f0] sm:$0xff] }
 0x29f   : > { %2215 = vmatprep.mubr.f32.mxu0 %v1255_v41  ;;  %3585 = vmatprep.mubr.f32.mxu1 %v2636_v56  ;;  %16978 = vst [vmem:[#allocation285_spill] sm:$0xff] %v14096_v11  ;;  %v999_v41 = vld [vmem:[%s16006_s4 + $0x14c0] sm:$0xff]  ;;  %v1006_v56 = vld [vmem:[%s16006_s4 + $0x14f8] sm:$0xff] }
 0x2a0   : > { %2216 = vmatmul.mubr.f32.gmra.mrb[8].mxu0 %v1254_v28  ;;  %3586 = vmatmul.mubr.f32.gmra.mrb[8].mxu1 %v2635_v55  ;;  %16979 = vst [vmem:[#allocation286_spill] sm:$0xff] %v14100_v47  ;;  %v1001_v55 = vld [vmem:[%s16006_s4 + $0x14d0] sm:$0xff]  ;;  %v1004_v28 = vld [vmem:[%s16006_s4 + $0x14e8] sm:$0xff] }
 0x2a1   : > { %7434 = vmatpush1.bf16.msra.mxu0 %v14072_v33  ;;  %8234 = vmatpush1.bf16.msra.mxu1 %v14072_v33  ;;  %v14116_v60 = vpack.c.bf16 %v1001_v55, %v999_v41  ;;  %v14120_v12 = vpack.c.bf16 %v1006_v56, %v1004_v28  ;;  %v14136_v41 = vpack.c.bf16 %v1005_v54, %v1003_v40  ;;  %v1007_v28 = vld [vmem:[%s16006_s4 + $0x1500] sm:$0xff]  ;;  %v1009_v56 = vld [vmem:[%s16006_s4 + $0x1510] sm:$0xff]  ;;  %v1014_v40 = vld [vmem:[%s16006_s4 + $0x1538] sm:$0xff] }
 0x2a2   : > { %7436 = vmatprep.subr.bf16.mxu0 %v14078_v10  ;;  %8236 = vmatprep.subr.bf16.mxu1 %v14078_v10  ;;  %v14156_v54 = vpack.c.bf16 %v1009_v56, %v1007_v28  ;;  %v1018_v28 = vld [vmem:[%s16006_s4 + $0x1558] sm:$0xff]  ;;  %v2562_v10 = vld [vmem:[%s10690_s13 + $0x168] sm:$0xff]  ;;  %v1206_v33 = vld [vmem:[%s10684_s10 + $0x230] sm:$0xff] }
 0x2a3   : > { %2286 = vmatprep.mubr.f32.mxu0 %v1157_v30  ;;  %3656 = vmatprep.mubr.f32.mxu1 %v2538_v36  ;;  %16980 = vst [vmem:[#allocation287_spill] sm:$0xff] %v14116_v60  ;;  %16981 = vst [vmem:[#allocation288_spill] sm:$0xff] %v14120_v12  ;;  %v1008_v30 = vld [vmem:[%s16006_s4 + $0x1508] sm:$0xff]  ;;  %v1010_v36 = vld [vmem:[%s16006_s4 + $0x1518] sm:$0xff] }
 0x2a4   : > { %16982 = vst [vmem:[#allocation289_spill] sm:$0xff] %v14136_v41  ;;  %v14140_v55 = vpack.c.bf16 %v1010_v36, %v1008_v30  ;;  %16984 = vst [vmem:[#allocation291_spill] sm:$0xff] %v14156_v54  ;;  %v1011_v36 = vld [vmem:[%s16006_s4 + $0x1520] sm:$0xff] }
 0x2a5   : > { %7438 = vmatpush1.bf16.msra.mxu0 %v14096_v11  ;;  %8238 = vmatpush1.bf16.msra.mxu1 %v14096_v11  ;;  %v1181_v11 = vld [vmem:[%s10684_s10 + $0x168] sm:$0xff] }
 0x2a6   : > { %7440 = vmatprep.subr.bf16.mxu0 %v14100_v47  ;;  %8240 = vmatprep.subr.bf16.mxu1 %v14100_v47  ;;  %16983 = vst [vmem:[#allocation290_spill] sm:$0xff] %v14140_v55  ;;  %v1043_v47 = vld [vmem:[%s16006_s4 + $0x1620] sm:$0xff] }
 0x2a9   : > { %7442 = vmatpush1.bf16.msra.mxu0 %v14116_v60  ;;  %8242 = vmatpush1.bf16.msra.mxu1 %v14116_v60  ;;  %v1012_v60 = vld [vmem:[%s16006_s4 + $0x1528] sm:$0xff] }
 0x2aa   : > { %7444 = vmatprep.subr.bf16.mxu0 %v14120_v12  ;;  %8244 = vmatprep.subr.bf16.mxu1 %v14120_v12  ;;  %v14160_v30 = vpack.c.bf16 %v1014_v40, %v1012_v60  ;;  %v1013_v12 = vld [vmem:[%s16006_s4 + $0x1530] sm:$0xff]  ;;  %v1015_v40 = vld [vmem:[%s16006_s4 + $0x1540] sm:$0xff] }
 0x2ab   : > { %v14176_v60 = vpack.c.bf16 %v1013_v12, %v1011_v36  ;;  %v1022_v12 = vld [vmem:[%s16006_s4 + $0x1578] sm:$0xff] }
 0x2ac   : > { %16985 = vst [vmem:[#allocation292_spill] sm:$0xff] %v14160_v30 }
 0x2ad   : > { %7446 = vmatpush1.bf16.msra.mxu0 %v14136_v41  ;;  %8246 = vmatpush1.bf16.msra.mxu1 %v14136_v41  ;;  %v1016_v41 = vld [vmem:[%s16006_s4 + $0x1548] sm:$0xff]  ;;  %16986 = vst [vmem:[#allocation293_spill] sm:$0xff] %v14176_v60 }
 0x2ae   : > { %7448 = vmatprep.subr.bf16.mxu0 %v14140_v55  ;;  %8248 = vmatprep.subr.bf16.mxu1 %v14140_v55  ;;  %v14180_v56 = vpack.c.bf16 %v1018_v28, %v1016_v41  ;;  %v1017_v55 = vld [vmem:[%s16006_s4 + $0x1550] sm:$0xff]  ;;  %v1019_v28 = vld [vmem:[%s16006_s4 + $0x1560] sm:$0xff] }
 0x2af   : > { %v14196_v41 = vpack.c.bf16 %v1017_v55, %v1015_v40  ;;  %v1026_v55 = vld [vmem:[%s16006_s4 + $0x1598] sm:$0xff] }
 0x2b0   : > { %16987 = vst [vmem:[#allocation294_spill] sm:$0xff] %v14180_v56 }
 0x2b1   : > { %7450 = vmatpush1.bf16.msra.mxu0 %v14156_v54  ;;  %8250 = vmatpush1.bf16.msra.mxu1 %v14156_v54  ;;  %v1020_v54 = vld [vmem:[%s16006_s4 + $0x1568] sm:$0xff]  ;;  %16988 = vst [vmem:[#allocation295_spill] sm:$0xff] %v14196_v41 }
 0x2b2   : > { %7452 = vmatprep.subr.bf16.mxu0 %v14160_v30  ;;  %8252 = vmatprep.subr.bf16.mxu1 %v14160_v30  ;;  %v14200_v36 = vpack.c.bf16 %v1022_v12, %v1020_v54  ;;  %v1021_v30 = vld [vmem:[%s16006_s4 + $0x1570] sm:$0xff]  ;;  %v1023_v12 = vld [vmem:[%s16006_s4 + $0x1580] sm:$0xff] }
 0x2b3   : > { %v14216_v54 = vpack.c.bf16 %v1021_v30, %v1019_v28  ;;  %v1030_v30 = vld [vmem:[%s16006_s4 + $0x15b8] sm:$0xff] }
 0x2b4   : > { %16989 = vst [vmem:[#allocation296_spill] sm:$0xff] %v14200_v36 }
 0x2b5   : > { %7454 = vmatpush1.bf16.msra.mxu0 %v14176_v60  ;;  %8254 = vmatpush1.bf16.msra.mxu1 %v14176_v60  ;;  %v1024_v60 = vld [vmem:[%s16006_s4 + $0x1588] sm:$0xff]  ;;  %16990 = vst [vmem:[#allocation297_spill] sm:$0xff] %v14216_v54 }
 0x2b6   : > { %7456 = vmatprep.subr.bf16.mxu0 %v14180_v56  ;;  %8256 = vmatprep.subr.bf16.mxu1 %v14180_v56  ;;  %v14220_v40 = vpack.c.bf16 %v1026_v55, %v1024_v60  ;;  %v1025_v56 = vld [vmem:[%s16006_s4 + $0x1590] sm:$0xff]  ;;  %v1027_v55 = vld [vmem:[%s16006_s4 + $0x15a0] sm:$0xff] }
 0x2b7   : > { %v14236_v60 = vpack.c.bf16 %v1025_v56, %v1023_v12  ;;  %v1034_v56 = vld [vmem:[%s16006_s4 + $0x15d8] sm:$0xff] }
 0x2b8   : > { %16991 = vst [vmem:[#allocation298_spill] sm:$0xff] %v14220_v40 }
 0x2b9   : > { %7458 = vmatpush1.bf16.msra.mxu0 %v14196_v41  ;;  %8258 = vmatpush1.bf16.msra.mxu1 %v14196_v41  ;;  %v1028_v41 = vld [vmem:[%s16006_s4 + $0x15a8] sm:$0xff]  ;;  %16992 = vst [vmem:[#allocation299_spill] sm:$0xff] %v14236_v60 }
 0x2ba   : > { %7460 = vmatprep.subr.bf16.mxu0 %v14200_v36  ;;  %8260 = vmatprep.subr.bf16.mxu1 %v14200_v36  ;;  %v14240_v28 = vpack.c.bf16 %v1030_v30, %v1028_v41  ;;  %v1029_v36 = vld [vmem:[%s16006_s4 + $0x15b0] sm:$0xff]  ;;  %v1031_v30 = vld [vmem:[%s16006_s4 + $0x15c0] sm:$0xff] }
 0x2bb   : > { %v14256_v41 = vpack.c.bf16 %v1029_v36, %v1027_v55  ;;  %v1038_v36 = vld [vmem:[%s16006_s4 + $0x15f8] sm:$0xff] }
 0x2bc   : > { %16993 = vst [vmem:[#allocation300_spill] sm:$0xff] %v14240_v28 }
 0x2bd   : > { %7462 = vmatpush1.bf16.msra.mxu0 %v14216_v54  ;;  %8262 = vmatpush1.bf16.msra.mxu1 %v14216_v54  ;;  %v1032_v54 = vld [vmem:[%s16006_s4 + $0x15c8] sm:$0xff]  ;;  %16994 = vst [vmem:[#allocation301_spill] sm:$0xff] %v14256_v41 }
 0x2be   : > { %7464 = vmatprep.subr.bf16.mxu0 %v14220_v40  ;;  %8264 = vmatprep.subr.bf16.mxu1 %v14220_v40  ;;  %v14260_v12 = vpack.c.bf16 %v1034_v56, %v1032_v54  ;;  %v1033_v40 = vld [vmem:[%s16006_s4 + $0x15d0] sm:$0xff]  ;;  %v1035_v56 = vld [vmem:[%s16006_s4 + $0x15e0] sm:$0xff] }
 0x2bf   : > { %v14276_v54 = vpack.c.bf16 %v1033_v40, %v1031_v30  ;;  %v1040_v40 = vld [vmem:[%s16006_s4 + $0x1608] sm:$0xff]  ;;  %v1042_v30 = vld [vmem:[%s16006_s4 + $0x1618] sm:$0xff] }
 0x2c0   : > { %16995 = vst [vmem:[#allocation302_spill] sm:$0xff] %v14260_v12 }
 0x2c1   : > { %7466 = vmatpush1.bf16.msra.mxu0 %v14236_v60  ;;  %8266 = vmatpush1.bf16.msra.mxu1 %v14236_v60  ;;  %v1036_v60 = vld [vmem:[%s16006_s4 + $0x15e8] sm:$0xff]  ;;  %16996 = vst [vmem:[#allocation303_spill] sm:$0xff] %v14276_v54 }
 0x2c2   : > { %7468 = vmatprep.subr.bf16.mxu0 %v14240_v28  ;;  %8268 = vmatprep.subr.bf16.mxu1 %v14240_v28  ;;  %v14280_v55 = vpack.c.bf16 %v1038_v36, %v1036_v60  ;;  %v1037_v28 = vld [vmem:[%s16006_s4 + $0x15f0] sm:$0xff]  ;;  %v14300_v36 = vpack.c.bf16 %v1042_v30, %v1040_v40  ;;  %v2537_v30 = vld [vmem:[%s10690_s13 + $0xa0] sm:$0xff] }
 0x2c3   : > { %v14296_v60 = vpack.c.bf16 %v1037_v28, %v1035_v56  ;;  %v1046_v28 = vld [vmem:[%s16006_s4 + $0x1638] sm:$0xff]  ;;  %v1156_v56 = vld [vmem:[%s10684_s10 + $0xa0] sm:$0xff] }
 0x2c4   : > { %16997 = vst [vmem:[#allocation304_spill] sm:$0xff] %v14280_v55  ;;  %16999 = vst [vmem:[#allocation306_spill] sm:$0xff] %v14300_v36 }
 0x2c5   : > { %7470 = vmatpush1.bf16.msra.mxu0 %v14256_v41  ;;  %8270 = vmatpush1.bf16.msra.mxu1 %v14256_v41  ;;  %16998 = vst [vmem:[#allocation305_spill] sm:$0xff] %v14296_v60  ;;  %v1041_v41 = vld [vmem:[%s16006_s4 + $0x1610] sm:$0xff] }
 0x2c6   : > { %7472 = vmatprep.subr.bf16.mxu0 %v14260_v12  ;;  %8272 = vmatprep.subr.bf16.mxu1 %v14260_v12  ;;  %v1039_v12 = vld [vmem:[%s16006_s4 + $0x1600] sm:$0xff] }
 0x2c7   : > { %v14317_v40 = vpack.c.bf16 %v1041_v41, %v1039_v12  ;;  %v1048_v41 = vld [vmem:[%s16006_s4 + $0x1648] sm:$0xff]  ;;  %v1050_v12 = vld [vmem:[%s16006_s4 + $0x1658] sm:$0xff] }
 0x2c9   : > { %7474 = vmatpush1.bf16.msra.mxu0 %v14276_v54  ;;  %8274 = vmatpush1.bf16.msra.mxu1 %v14276_v54  ;;  %v1044_v54 = vld [vmem:[%s16006_s4 + $0x1628] sm:$0xff]  ;;  %17000 = vst [vmem:[#allocation307_spill] sm:$0xff] %v14317_v40 }
 0x2ca   : > { %7476 = vmatprep.subr.bf16.mxu0 %v14280_v55  ;;  %8276 = vmatprep.subr.bf16.mxu1 %v14280_v55  ;;  %v14322_v55 = vpack.c.bf16 %v1046_v28, %v1044_v54  ;;  %v1182_v54 = vld [vmem:[%s10684_s10 + $0x170] sm:$0xff] }
 0x2cb   : > { %v2563_v28 = vld [vmem:[%s10690_s13 + $0x170] sm:$0xff] }
 0x2cc   : > { %17001 = vst [vmem:[#allocation308_spill] sm:$0xff] %v14322_v55 }
 0x2cd   : > { %7478 = vmatpush1.bf16.msra.mxu0 %v14296_v60  ;;  %8278 = vmatpush1.bf16.msra.mxu1 %v14296_v60  ;;  %v1045_v60 = vld [vmem:[%s16006_s4 + $0x1630] sm:$0xff] }
 0x2ce   : > { %7480 = vmatprep.subr.bf16.mxu0 %v14300_v36  ;;  %8280 = vmatprep.subr.bf16.mxu1 %v14300_v36  ;;  %v14340_v36 = vpack.c.bf16 %v1045_v60, %v1043_v47  ;;  %v1052_v47 = vld [vmem:[%s16006_s4 + $0x1668] sm:$0xff]  ;;  %v1054_v60 = vld [vmem:[%s16006_s4 + $0x1678] sm:$0xff] }
 0x2d0   : > { %2287 = vmatmul.mubr.f32.vlgmr.msra.gmra.mrb[0].mxu0 %v1156_v56  ;;  %3657 = vmatmul.mubr.f32.vlgmr.msra.gmra.mrb[0].mxu1 %v2537_v30  ;;  %17002 = vst [vmem:[#allocation309_spill] sm:$0xff] %v14340_v36  ;;  %v14346_v56 = vpack.c.bf16 %v1050_v12, %v1048_v41  ;;  %v1047_v30 = vld [vmem:[%s16006_s4 + $0x1640] sm:$0xff]  ;;  %v1207_v41 = vld [vmem:[%s10684_s10 + $0x238] sm:$0xff] }
 0x2d1   : > { %7482 = vmatpush1.bf16.msra.mxu0 %v14317_v40  ;;  %8282 = vmatpush1.bf16.msra.mxu1 %v14317_v40  ;;  %v1049_v40 = vld [vmem:[%s16006_s4 + $0x1650] sm:$0xff]  ;;  %v2588_v12 = vld [vmem:[%s10690_s13 + $0x238] sm:$0xff] }
 0x2d2   : > { %7484 = vmatprep.subr.bf16.mxu0 %v14322_v55  ;;  %8284 = vmatprep.subr.bf16.mxu1 %v14322_v55  ;;  %17003 = vst [vmem:[#allocation310_spill] sm:$0xff] %v14346_v56  ;;  %v14364_v55 = vpack.c.bf16 %v1049_v40, %v1047_v30  ;;  %v1056_v40 = vld [vmem:[%s16006_s4 + $0x1688] sm:$0xff]  ;;  %v1232_v30 = vld [vmem:[%s10684_s10 + $0x300] sm:$0xff] }
 0x2d3   : > { %2292 = vmatprep.mubr.f32.mxu0 %v1182_v54  ;;  %3662 = vmatprep.mubr.f32.mxu1 %v2563_v28  ;;  %v1053_v54 = vld [vmem:[%s16006_s4 + $0x1670] sm:$0xff]  ;;  %v1058_v28 = vld [vmem:[%s16006_s4 + $0x1698] sm:$0xff] }
 0x2d4   : > { %2293 = vmatmul.mubr.f32.gmra.mrb[2].mxu0 %v1181_v11  ;;  %3663 = vmatmul.mubr.f32.gmra.mrb[2].mxu1 %v2562_v10  ;;  %17004 = vst [vmem:[#allocation311_spill] sm:$0xff] %v14364_v55  ;;  %v14370_v11 = vpack.c.bf16 %v1054_v60, %v1052_v47  ;;  %v1051_v10 = vld [vmem:[%s16006_s4 + $0x1660] sm:$0xff] }
 0x2d5   : > { %7486 = vmatpush1.bf16.msra.mxu0 %v14340_v36  ;;  %8286 = vmatpush1.bf16.msra.mxu1 %v14340_v36  ;;  %v2613_v47 = vld [vmem:[%s10690_s13 + $0x300] sm:$0xff]  ;;  %v14388_v60 = vpack.c.bf16 %v1053_v54, %v1051_v10  ;;  %v2612_v36 = vld [vmem:[%s10690_s13 + $0x2f8] sm:$0xff]  ;;  %v1257_v54 = vld [vmem:[%s10684_s10 + $0x3c8] sm:$0xff] }
 0x2d6   : > { %7488 = vmatprep.subr.bf16.mxu0 %v14346_v56  ;;  %8288 = vmatprep.subr.bf16.mxu1 %v14346_v56  ;;  %17005 = vst [vmem:[#allocation312_spill] sm:$0xff] %v14370_v11  ;;  %v1231_v56 = vld [vmem:[%s10684_s10 + $0x2f8] sm:$0xff] }
 0x2d7   : > { %2298 = vmatprep.mubr.f32.mxu0 %v1207_v41  ;;  %3668 = vmatprep.mubr.f32.mxu1 %v2588_v12  ;;  %17006 = vst [vmem:[#allocation313_spill] sm:$0xff] %v14388_v60  ;;  %v1057_v41 = vld [vmem:[%s16006_s4 + $0x1690] sm:$0xff]  ;;  %v1060_v12 = vld [vmem:[%s16006_s4 + $0x16a8] sm:$0xff]  ;;  %v1062_v10 = vld [vmem:[%s16006_s4 + $0x16b8] sm:$0xff] }
 0x2d8   : > { %2299 = vmatmul.mubr.f32.gmra.mrb[4].mxu0 %v1206_v33  ;;  %3669 = vmatmul.mubr.f32.gmra.mrb[4].mxu1 %v2587_v5  ;;  %v14394_v33 = vpack.c.bf16 %v1058_v28, %v1056_v40  ;;  %v1055_v5 = vld [vmem:[%s16006_s4 + $0x1680] sm:$0xff]  ;;  %v2638_v40 = vld [vmem:[%s10690_s13 + $0x3c8] sm:$0xff] }
 0x2d9   : > { %7490 = vmatpush1.bf16.msra.mxu0 %v14364_v55  ;;  %8290 = vmatpush1.bf16.msra.mxu1 %v14364_v55  ;;  %v14412_v28 = vpack.c.bf16 %v1057_v41, %v1055_v5  ;;  %v2637_v55 = vld [vmem:[%s10690_s13 + $0x3c0] sm:$0xff]  ;;  %v1066_v5 = vld [vmem:[%s16006_s4 + $0x16d8] sm:$0xff] }
 0x2da   : > { %7492 = vmatprep.subr.bf16.mxu0 %v14370_v11  ;;  %8292 = vmatprep.subr.bf16.mxu1 %v14370_v11  ;;  %17007 = vst [vmem:[#allocation314_spill] sm:$0xff] %v14394_v33  ;;  %v1256_v11 = vld [vmem:[%s10684_s10 + $0x3c0] sm:$0xff]  ;;  %v1159_v41 = vld [vmem:[%s10684_s10 + $0xb8] sm:$0xff] }
 0x2db   : > { %2304 = vmatprep.mubr.f32.mxu0 %v1232_v30  ;;  %3674 = vmatprep.mubr.f32.mxu1 %v2613_v47  ;;  %17008 = vst [vmem:[#allocation315_spill] sm:$0xff] %v14412_v28  ;;  %v14418_v30 = vpack.c.bf16 %v1062_v10, %v1060_v12  ;;  %v1064_v47 = vld [vmem:[%s16006_s4 + $0x16c8] sm:$0xff]  ;;  %v2540_v12 = vld [vmem:[%s10690_s13 + $0xb8] sm:$0xff] }
 0x2dc   : > { %2305 = vmatmul.mubr.f32.gmra.mrb[6].mxu0 %v1231_v56  ;;  %3675 = vmatmul.mubr.f32.gmra.mrb[6].mxu1 %v2612_v36  ;;  %v1059_v36 = vld [vmem:[%s16006_s4 + $0x16a0] sm:$0xff]  ;;  %v1061_v56 = vld [vmem:[%s16006_s4 + $0x16b0] sm:$0xff] }
 0x2dd   : > { %7494 = vmatpush1.bf16.msra.mxu0 %v14388_v60  ;;  %8294 = vmatpush1.bf16.msra.mxu1 %v14388_v60  ;;  %17009 = vst [vmem:[#allocation316_spill] sm:$0xff] %v14418_v30  ;;  %v14436_v10 = vpack.c.bf16 %v1061_v56, %v1059_v36  ;;  %v2589_v60 = vld [vmem:[%s10690_s13 + $0x240] sm:$0xff] }
 0x2de   : > { %7496 = vmatprep.subr.bf16.mxu0 %v14394_v33  ;;  %8296 = vmatprep.subr.bf16.mxu1 %v14394_v33  ;;  %v14440_v33 = vpack.c.bf16 %v1066_v5, %v1064_v47  ;;  %v1067_v47 = vld [vmem:[%s16006_s4 + $0x16e0] sm:$0xff]  ;;  %v1069_v5 = vld [vmem:[%s16006_s4 + $0x16f0] sm:$0xff] }
 0x2df   : > { %2310 = vmatprep.mubr.f32.mxu0 %v1257_v54  ;;  %3680 = vmatprep.mubr.f32.mxu1 %v2638_v40  ;;  %17010 = vst [vmem:[#allocation317_spill] sm:$0xff] %v14436_v10  ;;  %v1063_v54 = vld [vmem:[%s16006_s4 + $0x16c0] sm:$0xff]  ;;  %v1070_v40 = vld [vmem:[%s16006_s4 + $0x16f8] sm:$0xff] }
 0x2e0   : > { %2311 = vmatmul.mubr.f32.gmra.mrb[8].mxu0 %v1256_v11  ;;  %3681 = vmatmul.mubr.f32.gmra.mrb[8].mxu1 %v2637_v55  ;;  %17011 = vst [vmem:[#allocation318_spill] sm:$0xff] %v14440_v33  ;;  %v1065_v55 = vld [vmem:[%s16006_s4 + $0x16d0] sm:$0xff]  ;;  %v1068_v11 = vld [vmem:[%s16006_s4 + $0x16e8] sm:$0xff] }
 0x2e1   : > { %7498 = vmatpush1.bf16.msra.mxu0 %v14412_v28  ;;  %8298 = vmatpush1.bf16.msra.mxu1 %v14412_v28  ;;  %v14456_v36 = vpack.c.bf16 %v1065_v55, %v1063_v54  ;;  %v14460_v56 = vpack.c.bf16 %v1070_v40, %v1068_v11  ;;  %v14476_v54 = vpack.c.bf16 %v1069_v5, %v1067_v47  ;;  %v1071_v11 = vld [vmem:[%s16006_s4 + $0x1700] sm:$0xff]  ;;  %v1073_v40 = vld [vmem:[%s16006_s4 + $0x1710] sm:$0xff]  ;;  %v1078_v47 = vld [vmem:[%s16006_s4 + $0x1738] sm:$0xff] }
 0x2e2   : > { %7500 = vmatprep.subr.bf16.mxu0 %v14418_v30  ;;  %8300 = vmatprep.subr.bf16.mxu1 %v14418_v30  ;;  %v14496_v5 = vpack.c.bf16 %v1073_v40, %v1071_v11  ;;  %v1082_v11 = vld [vmem:[%s16006_s4 + $0x1758] sm:$0xff]  ;;  %v1208_v28 = vld [vmem:[%s10684_s10 + $0x240] sm:$0xff] }
 0x2e3   : > { %2381 = vmatprep.mubr.f32.mxu0 %v1159_v41  ;;  %3751 = vmatprep.mubr.f32.mxu1 %v2540_v12  ;;  %17012 = vst [vmem:[#allocation319_spill] sm:$0xff] %v14456_v36  ;;  %17013 = vst [vmem:[#allocation320_spill] sm:$0xff] %v14460_v56  ;;  %v1072_v41 = vld [vmem:[%s16006_s4 + $0x1708] sm:$0xff]  ;;  %v1074_v12 = vld [vmem:[%s16006_s4 + $0x1718] sm:$0xff] }
 0x2e4   : > { %17014 = vst [vmem:[#allocation321_spill] sm:$0xff] %v14476_v54  ;;  %v14480_v55 = vpack.c.bf16 %v1074_v12, %v1072_v41  ;;  %17016 = vst [vmem:[#allocation323_spill] sm:$0xff] %v14496_v5  ;;  %v1075_v12 = vld [vmem:[%s16006_s4 + $0x1720] sm:$0xff]  ;;  %v2564_v30 = vld [vmem:[%s10690_s13 + $0x178] sm:$0xff] }
 0x2e5   : > { %7502 = vmatpush1.bf16.msra.mxu0 %v14436_v10  ;;  %8302 = vmatpush1.bf16.msra.mxu1 %v14436_v10  ;;  %v1183_v10 = vld [vmem:[%s10684_s10 + $0x178] sm:$0xff] }
 0x2e6   : > { %7504 = vmatprep.subr.bf16.mxu0 %v14440_v33  ;;  %8304 = vmatprep.subr.bf16.mxu1 %v14440_v33  ;;  %17015 = vst [vmem:[#allocation322_spill] sm:$0xff] %v14480_v55  ;;  %v1107_v33 = vld [vmem:[%s16006_s4 + $0x1820] sm:$0xff] }
 0x2e9   : > { %7506 = vmatpush1.bf16.msra.mxu0 %v14456_v36  ;;  %8306 = vmatpush1.bf16.msra.mxu1 %v14456_v36  ;;  %v1076_v36 = vld [vmem:[%s16006_s4 + $0x1728] sm:$0xff] }
 0x2ea   : > { %7508 = vmatprep.subr.bf16.mxu0 %v14460_v56  ;;  %8308 = vmatprep.subr.bf16.mxu1 %v14460_v56  ;;  %v14500_v41 = vpack.c.bf16 %v1078_v47, %v1076_v36  ;;  %v1077_v56 = vld [vmem:[%s16006_s4 + $0x1730] sm:$0xff]  ;;  %v1079_v47 = vld [vmem:[%s16006_s4 + $0x1740] sm:$0xff] }
 0x2eb   : > { %v14516_v36 = vpack.c.bf16 %v1077_v56, %v1075_v12  ;;  %v1086_v56 = vld [vmem:[%s16006_s4 + $0x1778] sm:$0xff] }
 0x2ec   : > { %17017 = vst [vmem:[#allocation324_spill] sm:$0xff] %v14500_v41 }
 0x2ed   : > { %7510 = vmatpush1.bf16.msra.mxu0 %v14476_v54  ;;  %8310 = vmatpush1.bf16.msra.mxu1 %v14476_v54  ;;  %v1080_v54 = vld [vmem:[%s16006_s4 + $0x1748] sm:$0xff]  ;;  %17018 = vst [vmem:[#allocation325_spill] sm:$0xff] %v14516_v36 }
 0x2ee   : > { %7512 = vmatprep.subr.bf16.mxu0 %v14480_v55  ;;  %8312 = vmatprep.subr.bf16.mxu1 %v14480_v55  ;;  %v14520_v40 = vpack.c.bf16 %v1082_v11, %v1080_v54  ;;  %v1081_v55 = vld [vmem:[%s16006_s4 + $0x1750] sm:$0xff]  ;;  %v1083_v11 = vld [vmem:[%s16006_s4 + $0x1760] sm:$0xff] }
 0x2ef   : > { %v14536_v54 = vpack.c.bf16 %v1081_v55, %v1079_v47  ;;  %v1090_v55 = vld [vmem:[%s16006_s4 + $0x1798] sm:$0xff] }
 0x2f0   : > { %17019 = vst [vmem:[#allocation326_spill] sm:$0xff] %v14520_v40 }
 0x2f1   : > { %7514 = vmatpush1.bf16.msra.mxu0 %v14496_v5  ;;  %8314 = vmatpush1.bf16.msra.mxu1 %v14496_v5  ;;  %v1084_v5 = vld [vmem:[%s16006_s4 + $0x1768] sm:$0xff]  ;;  %17020 = vst [vmem:[#allocation327_spill] sm:$0xff] %v14536_v54 }
 0x2f2   : > { %7516 = vmatprep.subr.bf16.mxu0 %v14500_v41  ;;  %8316 = vmatprep.subr.bf16.mxu1 %v14500_v41  ;;  %v14540_v12 = vpack.c.bf16 %v1086_v56, %v1084_v5  ;;  %v1085_v41 = vld [vmem:[%s16006_s4 + $0x1770] sm:$0xff]  ;;  %v1087_v56 = vld [vmem:[%s16006_s4 + $0x1780] sm:$0xff] }
 0x2f3   : > { %v14556_v5 = vpack.c.bf16 %v1085_v41, %v1083_v11  ;;  %v1094_v41 = vld [vmem:[%s16006_s4 + $0x17b8] sm:$0xff] }
 0x2f4   : > { %17021 = vst [vmem:[#allocation328_spill] sm:$0xff] %v14540_v12 }
 0x2f5   : > { %7518 = vmatpush1.bf16.msra.mxu0 %v14516_v36  ;;  %8318 = vmatpush1.bf16.msra.mxu1 %v14516_v36  ;;  %v1088_v36 = vld [vmem:[%s16006_s4 + $0x1788] sm:$0xff]  ;;  %17022 = vst [vmem:[#allocation329_spill] sm:$0xff] %v14556_v5 }
 0x2f6   : > { %7520 = vmatprep.subr.bf16.mxu0 %v14520_v40  ;;  %8320 = vmatprep.subr.bf16.mxu1 %v14520_v40  ;;  %v14560_v47 = vpack.c.bf16 %v1090_v55, %v1088_v36  ;;  %v1089_v40 = vld [vmem:[%s16006_s4 + $0x1790] sm:$0xff]  ;;  %v1091_v55 = vld [vmem:[%s16006_s4 + $0x17a0] sm:$0xff] }
 0x2f7   : > { %v14576_v36 = vpack.c.bf16 %v1089_v40, %v1087_v56  ;;  %v1098_v40 = vld [vmem:[%s16006_s4 + $0x17d8] sm:$0xff] }
 0x2f8   : > { %17023 = vst [vmem:[#allocation330_spill] sm:$0xff] %v14560_v47 }
 0x2f9   : > { %7522 = vmatpush1.bf16.msra.mxu0 %v14536_v54  ;;  %8322 = vmatpush1.bf16.msra.mxu1 %v14536_v54  ;;  %v1092_v54 = vld [vmem:[%s16006_s4 + $0x17a8] sm:$0xff]  ;;  %17024 = vst [vmem:[#allocation331_spill] sm:$0xff] %v14576_v36 }
 0x2fa   : > { %7524 = vmatprep.subr.bf16.mxu0 %v14540_v12  ;;  %8324 = vmatprep.subr.bf16.mxu1 %v14540_v12  ;;  %v14580_v11 = vpack.c.bf16 %v1094_v41, %v1092_v54  ;;  %v1093_v12 = vld [vmem:[%s16006_s4 + $0x17b0] sm:$0xff]  ;;  %v1095_v41 = vld [vmem:[%s16006_s4 + $0x17c0] sm:$0xff] }
 0x2fb   : > { %v14596_v54 = vpack.c.bf16 %v1093_v12, %v1091_v55  ;;  %v1102_v12 = vld [vmem:[%s16006_s4 + $0x17f8] sm:$0xff] }
 0x2fc   : > { %17025 = vst [vmem:[#allocation332_spill] sm:$0xff] %v14580_v11 }
 0x2fd   : > { %7526 = vmatpush1.bf16.msra.mxu0 %v14556_v5  ;;  %8326 = vmatpush1.bf16.msra.mxu1 %v14556_v5  ;;  %v1096_v5 = vld [vmem:[%s16006_s4 + $0x17c8] sm:$0xff]  ;;  %17026 = vst [vmem:[#allocation333_spill] sm:$0xff] %v14596_v54 }
 0x2fe   : > { %7528 = vmatprep.subr.bf16.mxu0 %v14560_v47  ;;  %8328 = vmatprep.subr.bf16.mxu1 %v14560_v47  ;;  %v14600_v56 = vpack.c.bf16 %v1098_v40, %v1096_v5  ;;  %v1097_v47 = vld [vmem:[%s16006_s4 + $0x17d0] sm:$0xff]  ;;  %v1099_v40 = vld [vmem:[%s16006_s4 + $0x17e0] sm:$0xff] }
 0x2ff   : > { %v14616_v5 = vpack.c.bf16 %v1097_v47, %v1095_v41  ;;  %v1104_v47 = vld [vmem:[%s16006_s4 + $0x1808] sm:$0xff]  ;;  %v1106_v41 = vld [vmem:[%s16006_s4 + $0x1818] sm:$0xff] }
 0x300   : > { %17027 = vst [vmem:[#allocation334_spill] sm:$0xff] %v14600_v56 }
 0x301   : > { %7530 = vmatpush1.bf16.msra.mxu0 %v14576_v36  ;;  %8330 = vmatpush1.bf16.msra.mxu1 %v14576_v36  ;;  %v1100_v36 = vld [vmem:[%s16006_s4 + $0x17e8] sm:$0xff]  ;;  %17028 = vst [vmem:[#allocation335_spill] sm:$0xff] %v14616_v5 }
 0x302   : > { %7532 = vmatprep.subr.bf16.mxu0 %v14580_v11  ;;  %8332 = vmatprep.subr.bf16.mxu1 %v14580_v11  ;;  %v14620_v55 = vpack.c.bf16 %v1102_v12, %v1100_v36  ;;  %v1101_v11 = vld [vmem:[%s16006_s4 + $0x17f0] sm:$0xff]  ;;  %v14640_v12 = vpack.c.bf16 %v1106_v41, %v1104_v47 }
 0x303   : > { %v14636_v36 = vpack.c.bf16 %v1101_v11, %v1099_v40  ;;  %v1110_v11 = vld [vmem:[%s16006_s4 + $0x1838] sm:$0xff]  ;;  %v1158_v40 = vld [vmem:[%s10684_s10 + $0xb0] sm:$0xff] }
 0x304   : > { %17029 = vst [vmem:[#allocation336_spill] sm:$0xff] %v14620_v55  ;;  %17031 = vst [vmem:[#allocation338_spill] sm:$0xff] %v14640_v12  ;;  %v2539_v41 = vld [vmem:[%s10690_s13 + $0xb0] sm:$0xff] }
 0x305   : > { %7534 = vmatpush1.bf16.msra.mxu0 %v14596_v54  ;;  %8334 = vmatpush1.bf16.msra.mxu1 %v14596_v54  ;;  %17030 = vst [vmem:[#allocation337_spill] sm:$0xff] %v14636_v36  ;;  %v1105_v54 = vld [vmem:[%s16006_s4 + $0x1810] sm:$0xff] }
 0x306   : > { %7536 = vmatprep.subr.bf16.mxu0 %v14600_v56  ;;  %8336 = vmatprep.subr.bf16.mxu1 %v14600_v56  ;;  %v1103_v56 = vld [vmem:[%s16006_s4 + $0x1800] sm:$0xff] }
 0x307   : > { %v14657_v47 = vpack.c.bf16 %v1105_v54, %v1103_v56  ;;  %v1112_v54 = vld [vmem:[%s16006_s4 + $0x1848] sm:$0xff]  ;;  %v1114_v56 = vld [vmem:[%s16006_s4 + $0x1858] sm:$0xff] }
 0x309   : > { %7538 = vmatpush1.bf16.msra.mxu0 %v14616_v5  ;;  %8338 = vmatpush1.bf16.msra.mxu1 %v14616_v5  ;;  %v1108_v5 = vld [vmem:[%s16006_s4 + $0x1828] sm:$0xff]  ;;  %17032 = vst [vmem:[#allocation339_spill] sm:$0xff] %v14657_v47 }
 0x30a   : > { %7540 = vmatprep.subr.bf16.mxu0 %v14620_v55  ;;  %8340 = vmatprep.subr.bf16.mxu1 %v14620_v55  ;;  %v14662_v55 = vpack.c.bf16 %v1110_v11, %v1108_v5  ;;  %v1184_v5 = vld [vmem:[%s10684_s10 + $0x180] sm:$0xff] }
 0x30b   : > { %v2565_v11 = vld [vmem:[%s10690_s13 + $0x180] sm:$0xff] }
 0x30c   : > { %17033 = vst [vmem:[#allocation340_spill] sm:$0xff] %v14662_v55 }
 0x30d   : > { %7542 = vmatpush1.bf16.msra.mxu0 %v14636_v36  ;;  %8342 = vmatpush1.bf16.msra.mxu1 %v14636_v36  ;;  %v1109_v36 = vld [vmem:[%s16006_s4 + $0x1830] sm:$0xff] }
 0x30e   : > { %7544 = vmatprep.subr.bf16.mxu0 %v14640_v12  ;;  %8344 = vmatprep.subr.bf16.mxu1 %v14640_v12  ;;  %v14680_v12 = vpack.c.bf16 %v1109_v36, %v1107_v33  ;;  %v1116_v33 = vld [vmem:[%s16006_s4 + $0x1868] sm:$0xff]  ;;  %v1118_v36 = vld [vmem:[%s16006_s4 + $0x1878] sm:$0xff] }
 0x310   : > { %2382 = vmatmul.mubr.f32.vlgmr.msra.gmra.mrb[0].mxu0 %v1158_v40  ;;  %3752 = vmatmul.mubr.f32.vlgmr.msra.gmra.mrb[0].mxu1 %v2539_v41  ;;  %17034 = vst [vmem:[#allocation341_spill] sm:$0xff] %v14680_v12  ;;  %v14686_v40 = vpack.c.bf16 %v1114_v56, %v1112_v54  ;;  %v1111_v41 = vld [vmem:[%s16006_s4 + $0x1840] sm:$0xff]  ;;  %v1209_v54 = vld [vmem:[%s10684_s10 + $0x248] sm:$0xff] }
 0x311   : > { %7546 = vmatpush1.bf16.msra.mxu0 %v14657_v47  ;;  %8346 = vmatpush1.bf16.msra.mxu1 %v14657_v47  ;;  %v1113_v47 = vld [vmem:[%s16006_s4 + $0x1850] sm:$0xff]  ;;  %v2590_v56 = vld [vmem:[%s10690_s13 + $0x248] sm:$0xff] }
 0x312   : > { %7548 = vmatprep.subr.bf16.mxu0 %v14662_v55  ;;  %8348 = vmatprep.subr.bf16.mxu1 %v14662_v55  ;;  %17035 = vst [vmem:[#allocation342_spill] sm:$0xff] %v14686_v40  ;;  %v14704_v55 = vpack.c.bf16 %v1113_v47, %v1111_v41  ;;  %v1120_v47 = vld [vmem:[%s16006_s4 + $0x1888] sm:$0xff]  ;;  %v1234_v41 = vld [vmem:[%s10684_s10 + $0x310] sm:$0xff] }
 0x313   : > { %2387 = vmatprep.mubr.f32.mxu0 %v1184_v5  ;;  %3757 = vmatprep.mubr.f32.mxu1 %v2565_v11  ;;  %v1117_v5 = vld [vmem:[%s16006_s4 + $0x1870] sm:$0xff]  ;;  %v1122_v11 = vld [vmem:[%s16006_s4 + $0x1898] sm:$0xff] }
 0x314   : > { %2388 = vmatmul.mubr.f32.gmra.mrb[2].mxu0 %v1183_v10  ;;  %3758 = vmatmul.mubr.f32.gmra.mrb[2].mxu1 %v2564_v30  ;;  %17036 = vst [vmem:[#allocation343_spill] sm:$0xff] %v14704_v55  ;;  %v14710_v10 = vpack.c.bf16 %v1118_v36, %v1116_v33  ;;  %v1115_v30 = vld [vmem:[%s16006_s4 + $0x1860] sm:$0xff]  ;;  %v2615_v33 = vld [vmem:[%s10690_s13 + $0x310] sm:$0xff] }
 0x315   : > { %7550 = vmatpush1.bf16.msra.mxu0 %v14680_v12  ;;  %8350 = vmatpush1.bf16.msra.mxu1 %v14680_v12  ;;  %v14728_v36 = vpack.c.bf16 %v1117_v5, %v1115_v30  ;;  %v2614_v12 = vld [vmem:[%s10690_s13 + $0x308] sm:$0xff]  ;;  %v1126_v30 = vld [vmem:[%s16006_s4 + $0x18b8] sm:$0xff] }
 0x316   : > { %7552 = vmatprep.subr.bf16.mxu0 %v14686_v40  ;;  %8352 = vmatprep.subr.bf16.mxu1 %v14686_v40  ;;  %17037 = vst [vmem:[#allocation344_spill] sm:$0xff] %v14710_v10  ;;  %v1233_v40 = vld [vmem:[%s10684_s10 + $0x308] sm:$0xff]  ;;  %v1259_v5 = vld [vmem:[%s10684_s10 + $0x3d8] sm:$0xff] }
 0x317   : > { %2393 = vmatprep.mubr.f32.mxu0 %v1209_v54  ;;  %3763 = vmatprep.mubr.f32.mxu1 %v2590_v56  ;;  %v1121_v54 = vld [vmem:[%s16006_s4 + $0x1890] sm:$0xff]  ;;  %v1124_v56 = vld [vmem:[%s16006_s4 + $0x18a8] sm:$0xff] }
 0x318   : > { %2394 = vmatmul.mubr.f32.gmra.mrb[4].mxu0 %v1208_v28  ;;  %3764 = vmatmul.mubr.f32.gmra.mrb[4].mxu1 %v2589_v60  ;;  %v14734_v28 = vpack.c.bf16 %v1122_v11, %v1120_v47  ;;  %v1119_v60 = vld [vmem:[%s16006_s4 + $0x1880] sm:$0xff]  ;;  %v2640_v47 = vld [vmem:[%s10690_s13 + $0x3d8] sm:$0xff]  ;;  %v14758_v23 = vpack.c.bf16 %v1126_v30, %v1124_v56 }
 0x319   : > { %7554 = vmatpush1.bf16.msra.mxu0 %v14704_v55  ;;  %8354 = vmatpush1.bf16.msra.mxu1 %v14704_v55  ;;  %v14752_v11 = vpack.c.bf16 %v1121_v54, %v1119_v60  ;;  %v2639_v55 = vld [vmem:[%s10690_s13 + $0x3d0] sm:$0xff]  ;;  %v1127_v56 = vld [vmem:[%s16006_s4 + $0x18c0] sm:$0xff]  ;;  %v1134_v30 = vld [vmem:[%s16006_s4 + $0x18f8] sm:$0xff] }
 0x31a   : > { %7556 = vmatprep.subr.bf16.mxu0 %v14710_v10  ;;  %8356 = vmatprep.subr.bf16.mxu1 %v14710_v10  ;;  %v1258_v10 = vld [vmem:[%s10684_s10 + $0x3d0] sm:$0xff] }
 0x31b   : > { %2399 = vmatprep.mubr.f32.mxu0 %v1234_v41  ;;  %3769 = vmatprep.mubr.f32.mxu1 %v2615_v33  ;;  %v1128_v41 = vld [vmem:[%s16006_s4 + $0x18c8] sm:$0xff]  ;;  %v1130_v33 = vld [vmem:[%s16006_s4 + $0x18d8] sm:$0xff] }
 0x31c   : > { %2400 = vmatmul.mubr.f32.gmra.mrb[6].mxu0 %v1233_v40  ;;  %3770 = vmatmul.mubr.f32.gmra.mrb[6].mxu1 %v2614_v12  ;;  %v1123_v12 = vld [vmem:[%s16006_s4 + $0x18a0] sm:$0xff]  ;;  %v1125_v40 = vld [vmem:[%s16006_s4 + $0x18b0] sm:$0xff]  ;;  %v14778_v54 = vpack.c.bf16 %v1130_v33, %v1128_v41 }
 0x31d   : > { %7558 = vmatpush1.bf16.msra.mxu0 %v14728_v36  ;;  %8358 = vmatpush1.bf16.msra.mxu1 %v14728_v36  ;;  %v14774_v60 = vpack.c.bf16 %v1125_v40, %v1123_v12  ;;  %v1131_v40 = vld [vmem:[%s16006_s4 + $0x18e0] sm:$0xff]  ;;  %v1133_v41 = vld [vmem:[%s16006_s4 + $0x18f0] sm:$0xff] }
 0x31e   : > { %7560 = vmatprep.subr.bf16.mxu0 %v14734_v28  ;;  %8360 = vmatprep.subr.bf16.mxu1 %v14734_v28  ;;  %v14810_v33 = vpack.c.bf16 %v1133_v41, %v1131_v40  ;;  %v2641_v40 = vld [vmem:[%s10690_s13 + $0x3e0] sm:$0xff]  ;;  %v17055_v41 = vld [vmem:[#allocation19_spill] sm:$0xff] }
 0x31f   : > { %2405 = vmatprep.mubr.f32.mxu0 %v1259_v5  ;;  %3775 = vmatprep.mubr.f32.mxu1 %v2640_v47  ;;  %v10513_v5 = vmov 0.0  }
 0x320   : > { %2406 = vmatmul.mubr.f32.gmra.mrb[8].mxu0 %v1258_v10  ;;  %3776 = vmatmul.mubr.f32.gmra.mrb[8].mxu1 %v2639_v55  ;;  %v1129_v55 = vld [vmem:[%s16006_s4 + $0x18d0] sm:$0xff]  ;;  %v1132_v10 = vld [vmem:[%s16006_s4 + $0x18e8] sm:$0xff] }
 0x321   : > { %7562 = vmatpush1.bf16.msra.mxu0 %v14752_v11  ;;  %8362 = vmatpush1.bf16.msra.mxu1 %v14752_v11  ;;  %v14796_v47 = vpack.c.bf16 %v1129_v55, %v1127_v56  ;;  %v14800_v12 = vpack.c.bf16 %v1134_v30, %v1132_v10  ;;  %v1160_v56 = vld [vmem:[%s10684_s10 + $0xc0] sm:$0xff]  ;;  %v1185_v10 = vld [vmem:[%s10684_s10 + $0x188] sm:$0xff] }
 0x322   : > { %7564 = vmatprep.subr.bf16.mxu0 %v14758_v23  ;;  %8364 = vmatprep.subr.bf16.mxu1 %v14758_v23  ;;  %v2541_v55 = vld [vmem:[%s10690_s13 + $0xc0] sm:$0xff]  ;;  %v2566_v30 = vld [vmem:[%s10690_s13 + $0x188] sm:$0xff] }
 0x323   : > { %2476 = vmatprep.mubr.f32.mxu0 %v10513_v5  ;;  %3846 = vmatprep.mubr.f32.mxu1 %v10513_v5 }
 0x325   : > { %7566 = vmatpush1.bf16.msra.mxu0 %v14774_v60  ;;  %8366 = vmatpush1.bf16.msra.mxu1 %v14774_v60 }
 0x326   : > { %7568 = vmatprep.subr.bf16.mxu0 %v14778_v54  ;;  %8368 = vmatprep.subr.bf16.mxu1 %v14778_v54 }
 0x329   : > { %7570 = vmatpush1.bf16.msra.mxu0 %v14796_v47  ;;  %8370 = vmatpush1.bf16.msra.mxu1 %v14796_v47 }
 0x32a   : > { %7572 = vmatprep.subr.bf16.mxu0 %v14800_v12  ;;  %8372 = vmatprep.subr.bf16.mxu1 %v14800_v12 }
 0x32d   : > { %7574 = vmatpush1.bf16.msra.mxu0 %v14810_v33  ;;  %8374 = vmatpush1.bf16.msra.mxu1 %v14810_v33 }
 0x32e   : > { %8376 = vmatprep.subr.bf16.mxu0 %v10566_v3  ;;  %9176 = vmatprep.subr.bf16.mxu1 %v10566_v3  ;;  %v1210_v3 = vld [vmem:[%s10684_s10 + $0x250] sm:$0xff] }
 0x330   : > { %2477 = vmatmul.mubr.f32.vlgmr.msra.gmra.mrb[0].mxu0 %v1160_v56  ;;  %3847 = vmatmul.mubr.f32.vlgmr.msra.gmra.mrb[0].mxu1 %v2541_v55  ;;  %v3924_v56 = vld [vmem:[%s14852_s28 + $0xd8] sm:$0xff] }
 0x331   : > { %8378 = vmatpush1.bf16.msra.mxu0 %v10577_v7  ;;  %9178 = vmatpush1.bf16.msra.mxu1 %v10577_v7  ;;  %v2591_v7 = vld [vmem:[%s10690_s13 + $0x250] sm:$0xff]  ;;  %v5304_v55 = vld [vmem:[%s14858_s7 + $0xd8] sm:$0xff] }
 0x332   : > { %2482 = vmatprep.mubr.f32.mxu0 %v10513_v5  ;;  %3852 = vmatprep.mubr.f32.mxu1 %v10513_v5 }
 0x333   : > { %8380 = vmatprep.subr.bf16.mxu0 %v10579_v8  ;;  %9180 = vmatprep.subr.bf16.mxu1 %v10579_v8  ;;  %v1235_v8 = vld [vmem:[%s10684_s10 + $0x318] sm:$0xff] }
 0x334   : > { %2483 = vmatmul.mubr.f32.gmra.mrb[2].mxu0 %v1185_v10  ;;  %3853 = vmatmul.mubr.f32.gmra.mrb[2].mxu1 %v2566_v30  ;;  %v17056_v10 = vld [vmem:[#allocation20_spill] sm:$0xff]  ;;  %v3950_v30 = vld [vmem:[%s14852_s28 + $0x1a8] sm:$0xff] }
 0x335   : > { %8382 = vmatpush1.bf16.msra.mxu0 %v10597_v13  ;;  %9182 = vmatpush1.bf16.msra.mxu1 %v10597_v13  ;;  %v2616_v13 = vld [vmem:[%s10690_s13 + $0x318] sm:$0xff]  ;;  %s6774_s13 = sshll.u32 %s17382_s17, 4 }
 0x336   : > { %2488 = vmatprep.mubr.f32.mxu0 %v10513_v5  ;;  %3858 = vmatprep.mubr.f32.mxu1 %v10513_v5  ;;  %s15964_s11 = scalar_lea.vmem %s16008_s6, %s6774_s13 }
 0x337   : > { %8384 = vmatprep.subr.bf16.mxu0 %v10601_v14  ;;  %9184 = vmatprep.subr.bf16.mxu1 %v10601_v14  ;;  %v1260_v14 = vld [vmem:[%s10684_s10 + $0x3e0] sm:$0xff] }
 0x338   : > { %2489 = vmatmul.mubr.f32.gmra.mrb[4].mxu0 %v1210_v3  ;;  %3859 = vmatmul.mubr.f32.gmra.mrb[4].mxu1 %v2591_v7  ;;  %v5330_v3 = vld [vmem:[%s14858_s7 + $0x1a8] sm:$0xff]  ;;  %v17057_v7 = vld [vmem:[#allocation21_spill] sm:$0xff] }
 0x339   : > { %8386 = vmatpush1.bf16.msra.mxu0 %v10617_v19  ;;  %9186 = vmatpush1.bf16.msra.mxu1 %v10617_v19  ;;  %v3898_v19 = vld [vmem:[%s14852_s28 + $0x8] sm:$0xff] }
 0x33a   : > { %2494 = vmatprep.mubr.f32.mxu0 %v10513_v5  ;;  %3864 = vmatprep.mubr.f32.mxu1 %v10513_v5 }
 0x33b   : > { %8388 = vmatprep.subr.bf16.mxu0 %v10621_v20  ;;  %9188 = vmatprep.subr.bf16.mxu1 %v10621_v20  ;;  %v5278_v20 = vld [vmem:[%s14858_s7 + $0x8] sm:$0xff] }
 0x33c   : > { %2495 = vmatmul.mubr.f32.gmra.mrb[6].mxu0 %v1235_v8  ;;  %3865 = vmatmul.mubr.f32.gmra.mrb[6].mxu1 %v2616_v13  ;;  %v3949_v8 = vld [vmem:[%s14852_s28 + $0x1a0] sm:$0xff] }
 0x33d   : > { %8390 = vmatpush1.bf16.msra.mxu0 %v10639_v25  ;;  %9190 = vmatpush1.bf16.msra.mxu1 %v10639_v25  ;;  %v3897_v25 = vld [vmem:[%s14852_s28] sm:$0xff] }
 0x33e   : > { %2500 = vmatprep.mubr.f32.mxu0 %v10513_v5  ;;  %3870 = vmatprep.mubr.f32.mxu1 %v10513_v5  ;;  %v5329_v13 = vld [vmem:[%s14858_s7 + $0x1a0] sm:$0xff] }
 0x33f   : > { %8392 = vmatprep.subr.bf16.mxu0 %v10643_v26  ;;  %9192 = vmatprep.subr.bf16.mxu1 %v10643_v26  ;;  %v5277_v26 = vld [vmem:[%s14858_s7] sm:$0xff] }
 0x340   : > { %2501 = vmatmul.mubr.f32.gmra.mrb[8].mxu0 %v1260_v14  ;;  %3871 = vmatmul.mubr.f32.gmra.mrb[8].mxu1 %v2641_v40  ;;  %v17058_v14 = vld [vmem:[#allocation22_spill] sm:$0xff]  ;;  %v3975_v40 = vld [vmem:[%s14852_s28 + $0x270] sm:$0xff] }
 0x341   : > { %8394 = vmatpush1.bf16.msra.mxu0 %v10662_v31  ;;  %9194 = vmatpush1.bf16.msra.mxu1 %v10662_v31  ;;  %v3923_v31 = vld [vmem:[%s14852_s28 + $0xd0] sm:$0xff] }
 0x342   : > { %8396 = vmatprep.subr.bf16.mxu0 %v10666_v32  ;;  %9196 = vmatprep.subr.bf16.mxu1 %v10666_v32  ;;  %v5303_v32 = vld [vmem:[%s14858_s7 + $0xd0] sm:$0xff] }
 0x343   : > { %4086 = vmatprep.mubr.f32.mxu0 %v3898_v19  ;;  %5466 = vmatprep.mubr.f32.mxu1 %v5278_v20  ;;  %v5355_v19 = vld [vmem:[%s14858_s7 + $0x270] sm:$0xff]  ;;  %v17059_v20 = vld [vmem:[#allocation23_spill] sm:$0xff] }
 0x345   : > { %8398 = vmatpush1.bf16.msra.mxu0 %v10694_v37  ;;  %9198 = vmatpush1.bf16.msra.mxu1 %v10694_v37  ;;  %v3922_v37 = vld [vmem:[%s14852_s28 + $0xc8] sm:$0xff] }
 0x346   : > { %8400 = vmatprep.subr.bf16.mxu0 %v10698_v38  ;;  %9200 = vmatprep.subr.bf16.mxu1 %v10698_v38  ;;  %v5302_v38 = vld [vmem:[%s14858_s7 + $0xc8] sm:$0xff] }
 0x349   : > { %8402 = vmatpush1.bf16.msra.mxu0 %v10716_v45  ;;  %9202 = vmatpush1.bf16.msra.mxu1 %v10716_v45  ;;  %v3948_v45 = vld [vmem:[%s14852_s28 + $0x198] sm:$0xff] }
 0x34a   : > { %8404 = vmatprep.subr.bf16.mxu0 %v10720_v46  ;;  %9204 = vmatprep.subr.bf16.mxu1 %v10720_v46  ;;  %v5328_v46 = vld [vmem:[%s14858_s7 + $0x198] sm:$0xff] }
 0x34d   : > { %8406 = vmatpush1.bf16.msra.mxu0 %v10736_v51  ;;  %9206 = vmatpush1.bf16.msra.mxu1 %v10736_v51  ;;  %v3947_v51 = vld [vmem:[%s14852_s28 + $0x190] sm:$0xff] }
 0x34e   : > { %8408 = vmatprep.subr.bf16.mxu0 %v10740_v52  ;;  %9208 = vmatprep.subr.bf16.mxu1 %v10740_v52  ;;  %v5327_v52 = vld [vmem:[%s14858_s7 + $0x190] sm:$0xff] }
 0x351   : > { %8410 = vmatpush1.bf16.msra.mxu0 %v10756_v57  ;;  %9210 = vmatpush1.bf16.msra.mxu1 %v10756_v57  ;;  %v3973_v57 = vld [vmem:[%s14852_s28 + $0x260] sm:$0xff] }
 0x352   : > { %8412 = vmatprep.subr.bf16.mxu0 %v10760_v58  ;;  %9212 = vmatprep.subr.bf16.mxu1 %v10760_v58  ;;  %v5353_v58 = vld [vmem:[%s14858_s7 + $0x260] sm:$0xff] }
 0x355   : > { %8414 = vmatpush1.bf16.msra.mxu0 %v10776_v63  ;;  %9214 = vmatpush1.bf16.msra.mxu1 %v10776_v63  ;;  %v3972_v63 = vld [vmem:[%s14852_s28 + $0x258] sm:$0xff] }
 0x356   : > { %8416 = vmatprep.subr.bf16.mxu0 %v10780_v0  ;;  %9216 = vmatprep.subr.bf16.mxu1 %v10780_v0  ;;  %v5352_v0 = vld [vmem:[%s14858_s7 + $0x258] sm:$0xff] }
 0x359   : > { %8418 = vmatpush1.bf16.msra.mxu0 %v10796_v6  ;;  %9218 = vmatpush1.bf16.msra.mxu1 %v10796_v6  ;;  %v3998_v6 = vld [vmem:[%s14852_s28 + $0x328] sm:$0xff] }
 0x35a   : > { %8420 = vmatprep.subr.bf16.mxu0 %v10800_v9  ;;  %9220 = vmatprep.subr.bf16.mxu1 %v10800_v9  ;;  %v5378_v9 = vld [vmem:[%s14858_s7 + $0x328] sm:$0xff] }
 0x35d   : > { %8422 = vmatpush1.bf16.msra.mxu0 %v10816_v16  ;;  %9222 = vmatpush1.bf16.msra.mxu1 %v10816_v16  ;;  %v3997_v16 = vld [vmem:[%s14852_s28 + $0x320] sm:$0xff] }
 0x35e   : > { %8424 = vmatprep.subr.bf16.mxu0 %v10820_v17  ;;  %9224 = vmatprep.subr.bf16.mxu1 %v10820_v17  ;;  %v5377_v17 = vld [vmem:[%s14858_s7 + $0x320] sm:$0xff] }
 0x361   : > { %8426 = vmatpush1.bf16.msra.mxu0 %v10836_v24  ;;  %9226 = vmatpush1.bf16.msra.mxu1 %v10836_v24  ;;  %v3900_v24 = vld [vmem:[%s14852_s28 + $0x18] sm:$0xff] }
 0x362   : > { %8428 = vmatprep.subr.bf16.mxu0 %v10840_v27  ;;  %9228 = vmatprep.subr.bf16.mxu1 %v10840_v27  ;;  %v5280_v27 = vld [vmem:[%s14858_s7 + $0x18] sm:$0xff] }
 0x365   : > { %8430 = vmatpush1.bf16.msra.mxu0 %v10856_v34  ;;  %9230 = vmatpush1.bf16.msra.mxu1 %v10856_v34  ;;  %v17038_v34 = vld [vmem:[#allocation2_spill] sm:$0xff] }
 0x366   : > { %8432 = vmatprep.subr.bf16.mxu0 %v10860_v35  ;;  %9232 = vmatprep.subr.bf16.mxu1 %v10860_v35  ;;  %v17039_v35 = vld [vmem:[#allocation3_spill] sm:$0xff] }
 0x369   : > { %8434 = vmatpush1.bf16.msra.mxu0 %v10876_v42  ;;  %9234 = vmatpush1.bf16.msra.mxu1 %v10876_v42  ;;  %v17040_v42 = vld [vmem:[#allocation4_spill] sm:$0xff] }
 0x36a   : > { %8436 = vmatprep.subr.bf16.mxu0 %v10880_v43  ;;  %9236 = vmatprep.subr.bf16.mxu1 %v10880_v43  ;;  %v17041_v43 = vld [vmem:[#allocation5_spill] sm:$0xff] }
 0x36d   : > { %8438 = vmatpush1.bf16.msra.mxu0 %v10896_v50  ;;  %9238 = vmatpush1.bf16.msra.mxu1 %v10896_v50  ;;  %v17042_v50 = vld [vmem:[#allocation6_spill] sm:$0xff] }
 0x36e   : > { %8440 = vmatprep.subr.bf16.mxu0 %v10900_v53  ;;  %9240 = vmatprep.subr.bf16.mxu1 %v10900_v53  ;;  %v17043_v53 = vld [vmem:[#allocation7_spill] sm:$0xff] }
 0x370   : > { %4087 = vmatmul.mubr.f32.vlgmr.msra.gmra.mrb[10].mxu0 %v3897_v25  ;;  %5467 = vmatmul.mubr.f32.vlgmr.msra.gmra.mrb[10].mxu1 %v5277_v26  ;;  %v3974_v25 = vld [vmem:[%s14852_s28 + $0x268] sm:$0xff] }
 0x371   : > { %8442 = vmatpush1.bf16.msra.mxu0 %v10917_v61  ;;  %9242 = vmatpush1.bf16.msra.mxu1 %v10917_v61  ;;  %v17044_v61 = vld [vmem:[#allocation8_spill] sm:$0xff]  ;;  %v5354_v26 = vld [vmem:[%s14858_s7 + $0x268] sm:$0xff] }
 0x372   : > { %8444 = vmatprep.subr.bf16.mxu0 %v10922_v1  ;;  %9244 = vmatprep.subr.bf16.mxu1 %v10922_v1  ;;  %v17045_v1 = vld [vmem:[#allocation9_spill] sm:$0xff] }
 0x373   : > { %4092 = vmatprep.mubr.f32.mxu0 %v3923_v31  ;;  %5472 = vmatprep.mubr.f32.mxu1 %v5303_v32  ;;  %v17060_v31 = vld [vmem:[#allocation24_spill] sm:$0xff]  ;;  %v4000_v32 = vld [vmem:[%s14852_s28 + $0x338] sm:$0xff] }
 0x374   : > { %4093 = vmatmul.mubr.f32.gmra.mrb[12].mxu0 %v3922_v37  ;;  %5473 = vmatmul.mubr.f32.gmra.mrb[12].mxu1 %v5302_v38  ;;  %v5380_v37 = vld [vmem:[%s14858_s7 + $0x338] sm:$0xff] }
 0x375   : > { %8446 = vmatpush1.bf16.msra.mxu0 %v10940_v15  ;;  %9246 = vmatpush1.bf16.msra.mxu1 %v10940_v15  ;;  %v17046_v15 = vld [vmem:[#allocation10_spill] sm:$0xff]  ;;  %v17061_v38 = vld [vmem:[#allocation25_spill] sm:$0xff] }
 0x376   : > { %8448 = vmatprep.subr.bf16.mxu0 %v10946_v22  ;;  %9248 = vmatprep.subr.bf16.mxu1 %v10946_v22  ;;  %v17047_v22 = vld [vmem:[#allocation11_spill] sm:$0xff] }
 0x377   : > { %4098 = vmatprep.mubr.f32.mxu0 %v3948_v45  ;;  %5478 = vmatprep.mubr.f32.mxu1 %v5328_v46  ;;  %v3999_v45 = vld [vmem:[%s14852_s28 + $0x330] sm:$0xff] }
 0x378   : > { %4099 = vmatmul.mubr.f32.gmra.mrb[14].mxu0 %v3947_v51  ;;  %5479 = vmatmul.mubr.f32.gmra.mrb[14].mxu1 %v5327_v52  ;;  %v5379_v46 = vld [vmem:[%s14858_s7 + $0x330] sm:$0xff]  ;;  %v17062_v51 = vld [vmem:[#allocation26_spill] sm:$0xff]  ;;  %v3902_v52 = vld [vmem:[%s14852_s28 + $0x28] sm:$0xff] }
 0x379   : > { %8450 = vmatpush1.bf16.msra.mxu0 %v10964_v39  ;;  %9250 = vmatpush1.bf16.msra.mxu1 %v10964_v39  ;;  %v17048_v39 = vld [vmem:[#allocation12_spill] sm:$0xff] }
 0x37a   : > { %8452 = vmatprep.subr.bf16.mxu0 %v10970_v44  ;;  %9252 = vmatprep.subr.bf16.mxu1 %v10970_v44  ;;  %v17049_v44 = vld [vmem:[#allocation13_spill] sm:$0xff] }
 0x37b   : > { %4104 = vmatprep.mubr.f32.mxu0 %v3973_v57  ;;  %5484 = vmatprep.mubr.f32.mxu1 %v5353_v58  ;;  %v5282_v57 = vld [vmem:[%s14858_s7 + $0x28] sm:$0xff] }
 0x37c   : > { %4105 = vmatmul.mubr.f32.gmra.mrb[16].mxu0 %v3972_v63  ;;  %5485 = vmatmul.mubr.f32.gmra.mrb[16].mxu1 %v5352_v0  ;;  %v17063_v58 = vld [vmem:[#allocation27_spill] sm:$0xff]  ;;  %v17064_v63 = vld [vmem:[#allocation28_spill] sm:$0xff]  ;;  %v17065_v0 = vld [vmem:[#allocation29_spill] sm:$0xff] }
 0x37d   : > { %8454 = vmatpush1.bf16.msra.mxu0 %v10988_v59  ;;  %9254 = vmatpush1.bf16.msra.mxu1 %v10988_v59  ;;  %v17050_v59 = vld [vmem:[#allocation14_spill] sm:$0xff] }
 0x37e   : > { %8456 = vmatprep.subr.bf16.mxu0 %v10994_v2  ;;  %9256 = vmatprep.subr.bf16.mxu1 %v10994_v2  ;;  %v17051_v2 = vld [vmem:[#allocation15_spill] sm:$0xff] }
 0x37f   : > { %4110 = vmatprep.mubr.f32.mxu0 %v3998_v6  ;;  %5490 = vmatprep.mubr.f32.mxu1 %v5378_v9  ;;  %v17066_v6 = vld [vmem:[#allocation30_spill] sm:$0xff]  ;;  %v17067_v9 = vld [vmem:[#allocation31_spill] sm:$0xff] }
 0x380   : > { %4111 = vmatmul.mubr.f32.gmra.mrb[18].mxu0 %v3997_v16  ;;  %5491 = vmatmul.mubr.f32.gmra.mrb[18].mxu1 %v5377_v17  ;;  %v17068_v16 = vld [vmem:[#allocation32_spill] sm:$0xff]  ;;  %v17069_v17 = vld [vmem:[#allocation33_spill] sm:$0xff] }
 0x381   : > { %8458 = vmatpush1.bf16.msra.mxu0 %v11012_v21  ;;  %9258 = vmatpush1.bf16.msra.mxu1 %v11012_v21  ;;  %v17052_v21 = vld [vmem:[#allocation16_spill] sm:$0xff] }
 0x382   : > { %8460 = vmatprep.subr.bf16.mxu0 %v11018_v29  ;;  %9260 = vmatprep.subr.bf16.mxu1 %v11018_v29  ;;  %v17053_v29 = vld [vmem:[#allocation17_spill] sm:$0xff] }
 0x383   : > { %4181 = vmatprep.mubr.f32.mxu0 %v3900_v24  ;;  %5561 = vmatprep.mubr.f32.mxu1 %v5280_v27  ;;  %v17070_v24 = vld [vmem:[#allocation34_spill] sm:$0xff]  ;;  %v17071_v27 = vld [vmem:[#allocation35_spill] sm:$0xff] }
 0x385   : > { %8462 = vmatpush1.bf16.msra.mxu0 %v11036_v48  ;;  %9262 = vmatpush1.bf16.msra.mxu1 %v11036_v48  ;;  %v3899_v48 = vld [vmem:[%s14852_s28 + $0x10] sm:$0xff] }
 0x386   : > { %8464 = vmatprep.subr.bf16.mxu0 %v11040_v49  ;;  %9264 = vmatprep.subr.bf16.mxu1 %v11040_v49  ;;  %v5279_v49 = vld [vmem:[%s14858_s7 + $0x10] sm:$0xff] }
 0x389   : > { %8466 = vmatpush1.bf16.msra.mxu0 %v11056_v62  ;;  %9266 = vmatpush1.bf16.msra.mxu1 %v11056_v62  ;;  %v17054_v62 = vld [vmem:[#allocation18_spill] sm:$0xff] }
 0x38a   : > { %8468 = vmatprep.subr.bf16.mxu0 %v11060_v4  ;;  %9268 = vmatprep.subr.bf16.mxu1 %v11060_v4  ;;  %v3925_v4 = vld [vmem:[%s14852_s28 + $0xe0] sm:$0xff] }
 0x38d   : > { %8470 = vmatpush1.bf16.msra.mxu0 %v11076_v18  ;;  %9270 = vmatpush1.bf16.msra.mxu1 %v11076_v18  ;;  %v5305_v18 = vld [vmem:[%s14858_s7 + $0xe0] sm:$0xff] }
 0x38e   : > { %8472 = vmatprep.subr.bf16.mxu0 %v17038_v34  ;;  %9272 = vmatprep.subr.bf16.mxu1 %v17038_v34  ;;  %v17072_v34 = vld [vmem:[#allocation36_spill] sm:$0xff] }
 0x391   : > { %8474 = vmatpush1.bf16.msra.mxu0 %v17039_v35  ;;  %9274 = vmatpush1.bf16.msra.mxu1 %v17039_v35  ;;  %v17073_v35 = vld [vmem:[#allocation37_spill] sm:$0xff] }
 0x392   : > { %8476 = vmatprep.subr.bf16.mxu0 %v17040_v42  ;;  %9276 = vmatprep.subr.bf16.mxu1 %v17040_v42  ;;  %v17074_v42 = vld [vmem:[#allocation38_spill] sm:$0xff] }
 0x395   : > { %8478 = vmatpush1.bf16.msra.mxu0 %v17041_v43  ;;  %9278 = vmatpush1.bf16.msra.mxu1 %v17041_v43  ;;  %v17075_v43 = vld [vmem:[#allocation39_spill] sm:$0xff] }
 0x396   : > { %8480 = vmatprep.subr.bf16.mxu0 %v17042_v50  ;;  %9280 = vmatprep.subr.bf16.mxu1 %v17042_v50  ;;  %v17076_v50 = vld [vmem:[#allocation40_spill] sm:$0xff] }
 0x399   : > { %8482 = vmatpush1.bf16.msra.mxu0 %v17043_v53  ;;  %9282 = vmatpush1.bf16.msra.mxu1 %v17043_v53  ;;  %v17077_v53 = vld [vmem:[#allocation41_spill] sm:$0xff] }
 0x39a   : > { %8484 = vmatprep.subr.bf16.mxu0 %v17044_v61  ;;  %9284 = vmatprep.subr.bf16.mxu1 %v17044_v61  ;;  %v17078_v61 = vld [vmem:[#allocation42_spill] sm:$0xff] }
 0x39d   : > { %8486 = vmatpush1.bf16.msra.mxu0 %v17045_v1  ;;  %9286 = vmatpush1.bf16.msra.mxu1 %v17045_v1  ;;  %v17079_v1 = vld [vmem:[#allocation43_spill] sm:$0xff] }
 0x39e   : > { %8488 = vmatprep.subr.bf16.mxu0 %v17046_v15  ;;  %9288 = vmatprep.subr.bf16.mxu1 %v17046_v15  ;;  %v17080_v15 = vld [vmem:[#allocation44_spill] sm:$0xff] }
 0x3a1   : > { %8490 = vmatpush1.bf16.msra.mxu0 %v17047_v22  ;;  %9290 = vmatpush1.bf16.msra.mxu1 %v17047_v22  ;;  %v17081_v22 = vld [vmem:[#allocation45_spill] sm:$0xff] }
 0x3a2   : > { %8492 = vmatprep.subr.bf16.mxu0 %v17048_v39  ;;  %9292 = vmatprep.subr.bf16.mxu1 %v17048_v39  ;;  %v17082_v39 = vld [vmem:[#allocation46_spill] sm:$0xff] }
 0x3a5   : > { %8494 = vmatpush1.bf16.msra.mxu0 %v17049_v44  ;;  %9294 = vmatpush1.bf16.msra.mxu1 %v17049_v44  ;;  %v17083_v44 = vld [vmem:[#allocation47_spill] sm:$0xff] }
 0x3a6   : > { %8496 = vmatprep.subr.bf16.mxu0 %v17050_v59  ;;  %9296 = vmatprep.subr.bf16.mxu1 %v17050_v59  ;;  %v17084_v59 = vld [vmem:[#allocation48_spill] sm:$0xff] }
 0x3a9   : > { %8498 = vmatpush1.bf16.msra.mxu0 %v17051_v2  ;;  %9298 = vmatpush1.bf16.msra.mxu1 %v17051_v2  ;;  %v17085_v2 = vld [vmem:[#allocation49_spill] sm:$0xff] }
 0x3aa   : > { %8500 = vmatprep.subr.bf16.mxu0 %v17052_v21  ;;  %9300 = vmatprep.subr.bf16.mxu1 %v17052_v21  ;;  %v3901_v21 = vld [vmem:[%s14852_s28 + $0x20] sm:$0xff] }
 0x3ad   : > { %8502 = vmatpush1.bf16.msra.mxu0 %v17053_v29  ;;  %9302 = vmatpush1.bf16.msra.mxu1 %v17053_v29  ;;  %v5281_v29 = vld [vmem:[%s14858_s7 + $0x20] sm:$0xff] }
 0x3ae   : > { %8504 = vmatprep.subr.bf16.mxu0 %v17054_v62  ;;  %9304 = vmatprep.subr.bf16.mxu1 %v17054_v62  ;;  %v5307_v62 = vld [vmem:[%s14858_s7 + $0xf0] sm:$0xff] }
 0x3b0   : > { %4182 = vmatmul.mubr.f32.vlgmr.msra.gmra.mrb[10].mxu0 %v3899_v48  ;;  %5562 = vmatmul.mubr.f32.vlgmr.msra.gmra.mrb[10].mxu1 %v5279_v49  ;;  %v17086_v48 = vld [vmem:[#allocation50_spill] sm:$0xff]  ;;  %v3927_v49 = vld [vmem:[%s14852_s28 + $0xf0] sm:$0xff] }
 0x3b1   : > { %8506 = vmatpush1.bf16.msra.mxu0 %v17055_v41  ;;  %9306 = vmatpush1.bf16.msra.mxu1 %v17055_v41  ;;  %v5306_v41 = vld [vmem:[%s14858_s7 + $0xe8] sm:$0xff] }
 0x3b2   : > { %8508 = vmatprep.subr.bf16.mxu0 %v17056_v10  ;;  %9308 = vmatprep.subr.bf16.mxu1 %v17056_v10  ;;  %v3952_v10 = vld [vmem:[%s14852_s28 + $0x1b8] sm:$0xff] }
 0x3b3   : > { %4187 = vmatprep.mubr.f32.mxu0 %v3925_v4  ;;  %5567 = vmatprep.mubr.f32.mxu1 %v5305_v18  ;;  %v17087_v4 = vld [vmem:[#allocation51_spill] sm:$0xff] }
 0x3b4   : > { %4188 = vmatmul.mubr.f32.gmra.mrb[12].mxu0 %v3924_v56  ;;  %5568 = vmatmul.mubr.f32.gmra.mrb[12].mxu1 %v5304_v55  ;;  %v3926_v18 = vld [vmem:[%s14852_s28 + $0xe8] sm:$0xff]  ;;  %v17088_v56 = vld [vmem:[#allocation52_spill] sm:$0xff]  ;;  %v1262_v55 = vlaneseq }
 0x3b5   : > { %8510 = vmatpush1.bf16.msra.mxu0 %v17057_v7  ;;  %9310 = vmatpush1.bf16.msra.mxu1 %v17057_v7  ;;  %v3951_v7 = vld [vmem:[%s14852_s28 + $0x1b0] sm:$0xff] }
 0x3b6   : > { %8512 = vmatprep.subr.bf16.mxu0 %v17058_v14  ;;  %9312 = vmatprep.subr.bf16.mxu1 %v17058_v14  ;;  %v1263_v14 = vshrl.u32 %v1262_v55, 7 }
 0x3b7   : > { %4193 = vmatprep.mubr.f32.mxu0 %v3950_v30  ;;  %5573 = vmatprep.mubr.f32.mxu1 %v5330_v3  ;;  %v5332_v30 = vld [vmem:[%s14858_s7 + $0x1b8] sm:$0xff] }
 0x3b8   : > { %4194 = vmatmul.mubr.f32.gmra.mrb[14].mxu0 %v3949_v8  ;;  %5574 = vmatmul.mubr.f32.gmra.mrb[14].mxu1 %v5329_v13  ;;  %v17089_v3 = vld [vmem:[#allocation53_spill] sm:$0xff]  ;;  %v5331_v8 = vld [vmem:[%s14858_s7 + $0x1b0] sm:$0xff]  ;;  %v17090_v13 = vld [vmem:[#allocation54_spill] sm:$0xff] }
 0x3b9   : > { %8514 = vmatpush1.bf16.msra.mxu0 %v17059_v20  ;;  %9314 = vmatpush1.bf16.msra.mxu1 %v17059_v20  ;;  %v17091_v20 = vld [vmem:[#allocation55_spill] sm:$0xff] }
 0x3ba   : > { %8516 = vmatprep.subr.bf16.mxu0 %v17060_v31  ;;  %9316 = vmatprep.subr.bf16.mxu1 %v17060_v31  ;;  %v17092_v31 = vld [vmem:[#allocation56_spill] sm:$0xff] }
 0x3bb   : > { %4199 = vmatprep.mubr.f32.mxu0 %v3975_v40  ;;  %5579 = vmatprep.mubr.f32.mxu1 %v5355_v19  ;;  %v3977_v40 = vld [vmem:[%s14852_s28 + $0x280] sm:$0xff] }
 0x3bc   : > { %4200 = vmatmul.mubr.f32.gmra.mrb[16].mxu0 %v3974_v25  ;;  %5580 = vmatmul.mubr.f32.gmra.mrb[16].mxu1 %v5354_v26  ;;  %v5357_v19 = vld [vmem:[%s14858_s7 + $0x280] sm:$0xff]  ;;  %v3976_v25 = vld [vmem:[%s14852_s28 + $0x278] sm:$0xff] }
 0x3bd   : > { %8518 = vmatpush1.bf16.msra.mxu0 %v17061_v38  ;;  %9318 = vmatpush1.bf16.msra.mxu1 %v17061_v38  ;;  %v5356_v26 = vld [vmem:[%s14858_s7 + $0x278] sm:$0xff]  ;;  %v5382_v38 = vld [vmem:[%s14858_s7 + $0x348] sm:$0xff] }
 0x3be   : > { %8520 = vmatprep.subr.bf16.mxu0 %v17062_v51  ;;  %9320 = vmatprep.subr.bf16.mxu1 %v17062_v51  ;;  %v1268_v51 = vsub.s32 1, %v1263_v14 }
 0x3bf   : > { %4205 = vmatprep.mubr.f32.mxu0 %v4000_v32  ;;  %5585 = vmatprep.mubr.f32.mxu1 %v5380_v37  ;;  %v1264_v32 = vsub.s32 0, %v1263_v14  ;;  %v4002_v37 = vld [vmem:[%s14852_s28 + $0x348] sm:$0xff] }
 0x3c0   : > { %4206 = vmatmul.mubr.f32.gmra.mrb[18].mxu0 %v3999_v45  ;;  %5586 = vmatmul.mubr.f32.gmra.mrb[18].mxu1 %v5379_v46  ;;  %v17093_v45 = vld [vmem:[#allocation57_spill] sm:$0xff]  ;;  %v1135_v46 = vld [vmem:[%s16007_s5] sm:$0x3] }
 0x3c1   : > { %8522 = vmatpush1.bf16.msra.mxu0 %v17063_v58  ;;  %9322 = vmatpush1.bf16.msra.mxu1 %v17063_v58  ;;  %v17094_v58 = vld [vmem:[#allocation58_spill] sm:$0xff] }
 0x3c2   : > { %8524 = vmatprep.subr.bf16.mxu0 %v17064_v63  ;;  %9324 = vmatprep.subr.bf16.mxu1 %v17064_v63  ;;  %v15119_v63 = vrot.slane %v1135_v46, %v1264_v32 }
 0x3c3   : > { %4276 = vmatprep.mubr.f32.mxu0 %v3902_v52  ;;  %5656 = vmatprep.mubr.f32.mxu1 %v5282_v57  ;;  %v4001_v52 = vld [vmem:[%s14852_s28 + $0x340] sm:$0xff] }
 0x3c4   : > { %v5381_v57 = vld [vmem:[%s14858_s7 + $0x340] sm:$0xff] }
 0x3c5   : > { %8526 = vmatpush1.bf16.msra.mxu0 %v17065_v0  ;;  %9326 = vmatpush1.bf16.msra.mxu1 %v17065_v0  ;;  %v3904_v0 = vld [vmem:[%s14852_s28 + $0x38] sm:$0xff] }
 0x3c6   : > { %8528 = vmatprep.subr.bf16.mxu0 %v17066_v6  ;;  %9328 = vmatprep.subr.bf16.mxu1 %v17066_v6  ;;  %v5284_v6 = vld [vmem:[%s14858_s7 + $0x38] sm:$0xff] }
 0x3c9   : > { %8530 = vmatpush1.bf16.msra.mxu0 %v17067_v9  ;;  %9330 = vmatpush1.bf16.msra.mxu1 %v17067_v9  ;;  %v17095_v9 = vld [vmem:[#allocation59_spill] sm:$0xff] }
 0x3ca   : > { %8532 = vmatprep.subr.bf16.mxu0 %v17068_v16  ;;  %9332 = vmatprep.subr.bf16.mxu1 %v17068_v16  ;;  %v15125_v16 = vrot.slane %v1135_v46, %v1268_v51  ;;  %v17102_v46 = vld [vmem:[#allocation66_spill] sm:$0xff] }
 0x3cd   : > { %8534 = vmatpush1.bf16.msra.mxu0 %v17069_v17  ;;  %9334 = vmatpush1.bf16.msra.mxu1 %v17069_v17  ;;  %v17096_v17 = vld [vmem:[#allocation60_spill] sm:$0xff] }
 0x3ce   : > { %8536 = vmatprep.subr.bf16.mxu0 %v17070_v24  ;;  %9336 = vmatprep.subr.bf16.mxu1 %v17070_v24 }
 0x3d1   : > { %8538 = vmatpush1.bf16.msra.mxu0 %v17071_v27  ;;  %9338 = vmatpush1.bf16.msra.mxu1 %v17071_v27 }
 0x3d2   : > { %8540 = vmatprep.subr.bf16.mxu0 %v17072_v34  ;;  %9340 = vmatprep.subr.bf16.mxu1 %v17072_v34 }
 0x3d5   : > { %8542 = vmatpush1.bf16.msra.mxu0 %v17073_v35  ;;  %9342 = vmatpush1.bf16.msra.mxu1 %v17073_v35 }
 0x3d6   : > { %8544 = vmatprep.subr.bf16.mxu0 %v17074_v42  ;;  %9344 = vmatprep.subr.bf16.mxu1 %v17074_v42 }
 0x3d9   : > { %8546 = vmatpush1.bf16.msra.mxu0 %v17075_v43  ;;  %9346 = vmatpush1.bf16.msra.mxu1 %v17075_v43 }
 0x3da   : > { %8548 = vmatprep.subr.bf16.mxu0 %v17076_v50  ;;  %9348 = vmatprep.subr.bf16.mxu1 %v17076_v50 }
 0x3dd   : > { %8550 = vmatpush1.bf16.msra.mxu0 %v17077_v53  ;;  %9350 = vmatpush1.bf16.msra.mxu1 %v17077_v53 }
 0x3de   : > { %8552 = vmatprep.subr.bf16.mxu0 %v17078_v61  ;;  %9352 = vmatprep.subr.bf16.mxu1 %v17078_v61  ;;  %v17097_v61 = vld [vmem:[#allocation61_spill] sm:$0xff] }
 0x3e1   : > { %8554 = vmatpush1.bf16.msra.mxu0 %v17079_v1  ;;  %9354 = vmatpush1.bf16.msra.mxu1 %v17079_v1 }
 0x3e2   : > { %8556 = vmatprep.subr.bf16.mxu0 %v17080_v15  ;;  %9356 = vmatprep.subr.bf16.mxu1 %v17080_v15 }
 0x3e5   : > { %8558 = vmatpush1.bf16.msra.mxu0 %v17081_v22  ;;  %9358 = vmatpush1.bf16.msra.mxu1 %v17081_v22  ;;  %v17098_v22 = vld [vmem:[#allocation62_spill] sm:$0xff] }
 0x3e6   : > { %8560 = vmatprep.subr.bf16.mxu0 %v17082_v39  ;;  %9360 = vmatprep.subr.bf16.mxu1 %v17082_v39 }
 0x3e9   : > { %8562 = vmatpush1.bf16.msra.mxu0 %v17083_v44  ;;  %9362 = vmatpush1.bf16.msra.mxu1 %v17083_v44 }
 0x3ea   : > { %8564 = vmatprep.subr.bf16.mxu0 %v17084_v59  ;;  %9364 = vmatprep.subr.bf16.mxu1 %v17084_v59 }
 0x3ed   : > { %8566 = vmatpush1.bf16.msra.mxu0 %v17085_v2  ;;  %9366 = vmatpush1.bf16.msra.mxu1 %v17085_v2 }
 0x3ee   : > { %8568 = vmatprep.subr.bf16.mxu0 %v17086_v48  ;;  %9368 = vmatprep.subr.bf16.mxu1 %v17086_v48 }
 0x3f0   : > { %4277 = vmatmul.mubr.f32.vlgmr.msra.gmra.mrb[10].mxu0 %v3901_v21  ;;  %5657 = vmatmul.mubr.f32.vlgmr.msra.gmra.mrb[10].mxu1 %v5281_v29 }
 0x3f1   : > { %8570 = vmatpush1.bf16.msra.mxu0 %v17087_v4  ;;  %9370 = vmatpush1.bf16.msra.mxu1 %v17087_v4 }
 0x3f2   : > { %8572 = vmatprep.subr.bf16.mxu0 %v17088_v56  ;;  %9372 = vmatprep.subr.bf16.mxu1 %v17088_v56  ;;  %v17099_v56 = vld [vmem:[#allocation63_spill] sm:$0xff] }
 0x3f3   : > { %4282 = vmatprep.mubr.f32.mxu0 %v3927_v49  ;;  %5662 = vmatprep.mubr.f32.mxu1 %v5307_v62 }
 0x3f4   : > { %4283 = vmatmul.mubr.f32.gmra.mrb[12].mxu0 %v3926_v18  ;;  %5663 = vmatmul.mubr.f32.gmra.mrb[12].mxu1 %v5306_v41 }
 0x3f5   : > { %8574 = vmatpush1.bf16.msra.mxu0 %v17089_v3  ;;  %9374 = vmatpush1.bf16.msra.mxu1 %v17089_v3 }
 0x3f6   : > { %8576 = vmatprep.subr.bf16.mxu0 %v17090_v13  ;;  %9376 = vmatprep.subr.bf16.mxu1 %v17090_v13 }
 0x3f7   : > { %4288 = vmatprep.mubr.f32.mxu0 %v3952_v10  ;;  %5668 = vmatprep.mubr.f32.mxu1 %v5332_v30  ;;  %v17100_v30 = vld [vmem:[#allocation64_spill] sm:$0xff] }
 0x3f8   : > { %4289 = vmatmul.mubr.f32.gmra.mrb[14].mxu0 %v3951_v7  ;;  %5669 = vmatmul.mubr.f32.gmra.mrb[14].mxu1 %v5331_v8 }
 0x3f9   : > { %8578 = vmatpush1.bf16.msra.mxu0 %v17091_v20  ;;  %9378 = vmatpush1.bf16.msra.mxu1 %v17091_v20 }
 0x3fa   : > { %8580 = vmatprep.subr.bf16.mxu0 %v17092_v31  ;;  %9380 = vmatprep.subr.bf16.mxu1 %v17092_v31 }
 0x3fb   : > { %4294 = vmatprep.mubr.f32.mxu0 %v3977_v40  ;;  %5674 = vmatprep.mubr.f32.mxu1 %v5357_v19 }
 0x3fc   : > { %4295 = vmatmul.mubr.f32.gmra.mrb[16].mxu0 %v3976_v25  ;;  %5675 = vmatmul.mubr.f32.gmra.mrb[16].mxu1 %v5356_v26 }
 0x3fd   : > { %8582 = vmatpush1.bf16.msra.mxu0 %v17093_v45  ;;  %9382 = vmatpush1.bf16.msra.mxu1 %v17093_v45 }
 0x3fe   : > { %8584 = vmatprep.subr.bf16.mxu0 %v17094_v58  ;;  %9384 = vmatprep.subr.bf16.mxu1 %v17094_v58 }
 0x3ff   : > { %4300 = vmatprep.mubr.f32.mxu0 %v4002_v37  ;;  %5680 = vmatprep.mubr.f32.mxu1 %v5382_v38  ;;  %v17101_v37 = vld [vmem:[#allocation65_spill] sm:$0xff] }
 0x400   : > { %4301 = vmatmul.mubr.f32.gmra.mrb[18].mxu0 %v4001_v52  ;;  %5681 = vmatmul.mubr.f32.gmra.mrb[18].mxu1 %v5381_v57 }
 0x401   : > { %8586 = vmatpush1.bf16.msra.mxu0 %v17095_v9  ;;  %9386 = vmatpush1.bf16.msra.mxu1 %v17095_v9 }
 0x402   : > { %8588 = vmatprep.subr.bf16.mxu0 %v17096_v17  ;;  %9388 = vmatprep.subr.bf16.mxu1 %v17096_v17 }
 0x403   : > { %v2478_v24 = vpop.f32.mrb[0].mxu0  ;;  %v3848_v27 = vpop.f32.mrb[0].mxu1  ;;  %4371 = vmatprep.mubr.f32.mxu0 %v3904_v0  ;;  %5751 = vmatprep.mubr.f32.mxu1 %v5284_v6 }
 0x404   : > { %v9975_v34 = vadd.f32 %v2478_v24, %v15119_v63  ;;  %v9985_v35 = vadd.f32 %v3848_v27, %v15119_v63  ;;  %v2480_v42 = vpop.f32.mrb[1].mxu0  ;;  %v3850_v43 = vpop.f32.mrb[1].mxu1 }
 0x405   : > { %v9976_v50 = vadd.f32 %v2480_v42, %v15125_v16  ;;  %v9986_v53 = vadd.f32 %v3850_v43, %v15125_v16  ;;  %8590 = vmatpush1.bf16.msra.mxu0 %v17097_v61  ;;  %9390 = vmatpush1.bf16.msra.mxu1 %v17097_v61  ;;  %v17103_v42 = vld [vmem:[#allocation67_spill] sm:$0xff] }
 0x406   : > { %v2507_v1 = vmax.f32 %v9975_v34, 0.0  ;;  %v3877_v15 = vmax.f32 %v9985_v35, 0.0  ;;  %8592 = vmatprep.subr.bf16.mxu0 %v17098_v22  ;;  %9392 = vmatprep.subr.bf16.mxu1 %v17098_v22 }
 0x407   : > { %v2508_v39 = vmax.f32 %v9976_v50, 0.0  ;;  %v3878_v44 = vmax.f32 %v9986_v53, 0.0  ;;  %v2484_v59 = vpop.f32.mrb[2].mxu0  ;;  %v3854_v2 = vpop.f32.mrb[2].mxu1  ;;  %v17104_v53 = vld [vmem:[#allocation68_spill] sm:$0xff] }
 0x408   : > { %v15137_v21 = vmax.f32 %v2507_v1, %v3877_v15  ;;  %v9977_v29 = vadd.f32 %v2484_v59, %v15119_v63  ;;  %v9987_v48 = vadd.f32 %v3854_v2, %v15119_v63  ;;  %v2486_v49 = vpop.f32.mrb[3].mxu0  ;;  %v3856_v62 = vpop.f32.mrb[3].mxu1 }
 0x409   : > { %v15141_v4 = vmax.f32 %v2508_v39, %v3878_v44  ;;  %v9978_v18 = vadd.f32 %v2486_v49, %v15125_v16  ;;  %v9988_v41 = vadd.f32 %v3856_v62, %v15125_v16  ;;  %8594 = vmatpush1.bf16.msra.mxu0 %v17099_v56  ;;  %9394 = vmatpush1.bf16.msra.mxu1 %v17099_v56 }
 0x40a   : > { %v2509_v55 = vmax.f32 %v9977_v29, 0.0  ;;  %v3879_v10 = vmax.f32 %v9987_v48, 0.0  ;;  %8596 = vmatprep.subr.bf16.mxu0 %v17100_v30  ;;  %9396 = vmatprep.subr.bf16.mxu1 %v17100_v30 }
 0x40b   : > { %v2510_v3 = vmax.f32 %v9978_v18, 0.0  ;;  %v3880_v7 = vmax.f32 %v9988_v41, 0.0  ;;  %v2490_v8 = vpop.f32.mrb[4].mxu0  ;;  %v3860_v13 = vpop.f32.mrb[4].mxu1  ;;  %v17105_v18 = vld [vmem:[#allocation69_spill] sm:$0xff] }
 0x40c   : > { %v15149_v14 = vmax.f32 %v2509_v55, %v3879_v10  ;;  %v9979_v40 = vadd.f32 %v2490_v8, %v15119_v63  ;;  %v9989_v19 = vadd.f32 %v3860_v13, %v15119_v63  ;;  %v2492_v20 = vpop.f32.mrb[5].mxu0  ;;  %v3862_v25 = vpop.f32.mrb[5].mxu1  ;;  %v17106_v55 = vld [vmem:[#allocation70_spill] sm:$0xff]  ;;  %v17107_v8 = vld [vmem:[#allocation71_spill] sm:$0xff]  ;;  %v17108_v13 = vld [vmem:[#allocation72_spill] sm:$0xff] }
 0x40d   : > { %v15153_v26 = vmax.f32 %v2510_v3, %v3880_v7  ;;  %v9980_v31 = vadd.f32 %v2492_v20, %v15125_v16  ;;  %v9990_v32 = vadd.f32 %v3862_v25, %v15125_v16  ;;  %8598 = vmatpush1.bf16.msra.mxu0 %v17101_v37  ;;  %9398 = vmatpush1.bf16.msra.mxu1 %v17101_v37  ;;  %v17111_v20 = vld [vmem:[#allocation75_spill] sm:$0xff]  ;;  %v17112_v25 = vld [vmem:[#allocation76_spill] sm:$0xff] }
 0x40e   : > { %v2511_v38 = vmax.f32 %v9979_v40, 0.0  ;;  %v3881_v45 = vmax.f32 %v9989_v19, 0.0  ;;  %8600 = vmatprep.subr.bf16.mxu0 %v17102_v46  ;;  %9400 = vmatprep.subr.bf16.mxu1 %v17102_v46  ;;  %v17109_v40 = vld [vmem:[#allocation73_spill] sm:$0xff]  ;;  %v17110_v19 = vld [vmem:[#allocation74_spill] sm:$0xff]  ;;  %v17115_v37 = vld [vmem:[#allocation79_spill] sm:$0xff] }
 0x40f   : > { %v2512_v51 = vmax.f32 %v9980_v31, 0.0  ;;  %v3882_v52 = vmax.f32 %v9990_v32, 0.0  ;;  %v2496_v57 = vpop.f32.mrb[6].mxu0  ;;  %v3866_v58 = vpop.f32.mrb[6].mxu1  ;;  %v17113_v31 = vld [vmem:[#allocation77_spill] sm:$0xff]  ;;  %v17114_v32 = vld [vmem:[#allocation78_spill] sm:$0xff] }
 0x410   : > { %v15161_v0 = vmax.f32 %v2511_v38, %v3881_v45  ;;  %v9981_v6 = vadd.f32 %v2496_v57, %v15119_v63  ;;  %v9991_v9 = vadd.f32 %v3866_v58, %v15119_v63  ;;  %v2498_v17 = vpop.f32.mrb[7].mxu0  ;;  %v3868_v24 = vpop.f32.mrb[7].mxu1  ;;  %v17116_v38 = vld [vmem:[#allocation80_spill] sm:$0xff]  ;;  %v17117_v45 = vld [vmem:[#allocation81_spill] sm:$0xff]  ;;  %v3929_v57 = vld [vmem:[%s14852_s28 + $0x100] sm:$0xff] }
 0x411   : > { %v15165_v27 = vmax.f32 %v2512_v51, %v3882_v52  ;;  %v9982_v34 = vadd.f32 %v2498_v17, %v15125_v16  ;;  %v9992_v35 = vadd.f32 %v3868_v24, %v15125_v16  ;;  %8602 = vmatpush1.bf16.msra.mxu0 %v17103_v42  ;;  %9402 = vmatpush1.bf16.msra.mxu1 %v17103_v42  ;;  %v3903_v46 = vld [vmem:[%s14852_s28 + $0x30] sm:$0xff]  ;;  %v17118_v52 = vld [vmem:[#allocation82_spill] sm:$0xff]  ;;  %v5308_v17 = vld [vmem:[%s14858_s7 + $0xf8] sm:$0xff] }
 0x412   : > { %v2513_v43 = vmax.f32 %v9981_v6, 0.0  ;;  %v3883_v50 = vmax.f32 %v9991_v9, 0.0  ;;  %8604 = vmatprep.subr.bf16.mxu0 %v17104_v53  ;;  %9404 = vmatprep.subr.bf16.mxu1 %v17104_v53  ;;  %v5283_v51 = vld [vmem:[%s14858_s7 + $0x30] sm:$0xff]  ;;  %v5309_v58 = vld [vmem:[%s14858_s7 + $0x100] sm:$0xff]  ;;  %v17119_v6 = vld [vmem:[#allocation83_spill] sm:$0xff] }
 0x413   : > { %v2514_v61 = vmax.f32 %v9982_v34, 0.0  ;;  %v3884_v1 = vmax.f32 %v9992_v35, 0.0  ;;  %v2502_v15 = vpop.f32.mrb[8].mxu0  ;;  %v3872_v22 = vpop.f32.mrb[8].mxu1  ;;  %v3928_v9 = vld [vmem:[%s14852_s28 + $0xf8] sm:$0xff]  ;;  %v17120_v24 = vld [vmem:[#allocation84_spill] sm:$0xff] }
 0x414   : > { %v15173_v39 = vmax.f32 %v2513_v43, %v3883_v50  ;;  %v9983_v44 = vadd.f32 %v2502_v15, %v15119_v63  ;;  %v9993_v59 = vadd.f32 %v3872_v22, %v15119_v63  ;;  %v2504_v2 = vpop.f32.mrb[9].mxu0  ;;  %v3874_v29 = vpop.f32.mrb[9].mxu1  ;;  %v3954_v34 = vld [vmem:[%s14852_s28 + $0x1c8] sm:$0xff]  ;;  %v17121_v42 = vld [vmem:[#allocation85_spill] sm:$0xff]  ;;  %v3953_v43 = vld [vmem:[%s14852_s28 + $0x1c0] sm:$0xff] }
 0x415   : > { %v15177_v48 = vmax.f32 %v2514_v61, %v3884_v1  ;;  %v9984_v49 = vadd.f32 %v2504_v2, %v15125_v16  ;;  %v9994_v62 = vadd.f32 %v3874_v29, %v15125_v16  ;;  %8606 = vmatpush1.bf16.msra.mxu0 %v17105_v18  ;;  %9406 = vmatpush1.bf16.msra.mxu1 %v17105_v18  ;;  %v5334_v35 = vld [vmem:[%s14858_s7 + $0x1c8] sm:$0xff]  ;;  %v5333_v50 = vld [vmem:[%s14858_s7 + $0x1c0] sm:$0xff]  ;;  %v3979_v61 = vld [vmem:[%s14852_s28 + $0x290] sm:$0xff] }
 0x416   : > { %v2515_v41 = vmax.f32 %v9983_v44, 0.0  ;;  %v3885_v56 = vmax.f32 %v9993_v59, 0.0  ;;  %8608 = vmatprep.subr.bf16.mxu0 %v17106_v55  ;;  %9408 = vmatprep.subr.bf16.mxu1 %v17106_v55  ;;  %v17122_v53 = vld [vmem:[#allocation86_spill] sm:$0xff]  ;;  %v5359_v1 = vld [vmem:[%s14858_s7 + $0x290] sm:$0xff]  ;;  %v17123_v15 = vld [vmem:[#allocation87_spill] sm:$0xff] }
 0x417   : > { %v2516_v10 = vmax.f32 %v9984_v49, 0.0  ;;  %v3886_v30 = vmax.f32 %v9994_v62, 0.0  ;;  %v3978_v22 = vld [vmem:[%s14852_s28 + $0x288] sm:$0xff]  ;;  %v17124_v59 = vld [vmem:[#allocation88_spill] sm:$0xff]  ;;  %v4004_v2 = vld [vmem:[%s14852_s28 + $0x358] sm:$0xff] }
 0x418   : > { %v15185_v3 = vmax.f32 %v2515_v41, %v3885_v56  ;;  %v5358_v44 = vld [vmem:[%s14858_s7 + $0x288] sm:$0xff]  ;;  %v5384_v29 = vld [vmem:[%s14858_s7 + $0x358] sm:$0xff]  ;;  %v4003_v62 = vld [vmem:[%s14852_s28 + $0x350] sm:$0xff] }
 0x419   : > { %v15187_v7 = vmax.f32 %v2516_v10, %v3886_v30  ;;  %8610 = vmatpush1.bf16.msra.mxu0 %v17107_v8  ;;  %9410 = vmatpush1.bf16.msra.mxu1 %v17107_v8  ;;  %v17125_v49 = vld [vmem:[#allocation89_spill] sm:$0xff]  ;;  %v5383_v18 = vld [vmem:[%s14858_s7 + $0x350] sm:$0xff]  ;;  %v17126_v41 = vld [vmem:[#allocation90_spill] sm:$0xff] }
 0x41a   : > { %8612 = vmatprep.subr.bf16.mxu0 %v17108_v13  ;;  %9412 = vmatprep.subr.bf16.mxu1 %v17108_v13  ;;  %v3906_v56 = vld [vmem:[%s14852_s28 + $0x48] sm:$0xff]  ;;  %v17128_v30 = vld [vmem:[#allocation92_spill] sm:$0xff]  ;;  %v17129_v8 = vld [vmem:[#allocation93_spill] sm:$0xff] }
 0x41b   : > { %v5286_v55 = vld [vmem:[%s14858_s7 + $0x48] sm:$0xff]  ;;  %v17130_v13 = vld [vmem:[#allocation94_spill] sm:$0xff] }
 0x41c   : > { %v17127_v10 = vld [vmem:[#allocation91_spill] sm:$0xff] }
 0x41d   : > { %8614 = vmatpush1.bf16.msra.mxu0 %v17109_v40  ;;  %9414 = vmatpush1.bf16.msra.mxu1 %v17109_v40  ;;  %v17131_v40 = vld [vmem:[#allocation95_spill] sm:$0xff] }
 0x41e   : > { %8616 = vmatprep.subr.bf16.mxu0 %v17110_v19  ;;  %9416 = vmatprep.subr.bf16.mxu1 %v17110_v19  ;;  %v17132_v19 = vld [vmem:[#allocation96_spill] sm:$0xff] }
 0x421   : > { %8618 = vmatpush1.bf16.msra.mxu0 %v17111_v20  ;;  %9418 = vmatpush1.bf16.msra.mxu1 %v17111_v20  ;;  %v17133_v20 = vld [vmem:[#allocation97_spill] sm:$0xff] }
 0x422   : > { %8620 = vmatprep.subr.bf16.mxu0 %v17112_v25  ;;  %9420 = vmatprep.subr.bf16.mxu1 %v17112_v25  ;;  %v17134_v25 = vld [vmem:[#allocation98_spill] sm:$0xff] }
 0x425   : > { %8622 = vmatpush1.bf16.msra.mxu0 %v17113_v31  ;;  %9422 = vmatpush1.bf16.msra.mxu1 %v17113_v31  ;;  %v17135_v31 = vld [vmem:[#allocation99_spill] sm:$0xff] }
 0x426   : > { %8624 = vmatprep.subr.bf16.mxu0 %v17114_v32  ;;  %9424 = vmatprep.subr.bf16.mxu1 %v17114_v32  ;;  %v17136_v32 = vld [vmem:[#allocation100_spill] sm:$0xff] }
 0x429   : > { %8626 = vmatpush1.bf16.msra.mxu0 %v17115_v37  ;;  %9426 = vmatpush1.bf16.msra.mxu1 %v17115_v37  ;;  %v17137_v37 = vld [vmem:[#allocation101_spill] sm:$0xff] }
 0x42a   : > { %8628 = vmatprep.subr.bf16.mxu0 %v17116_v38  ;;  %9428 = vmatprep.subr.bf16.mxu1 %v17116_v38  ;;  %v17138_v38 = vld [vmem:[#allocation102_spill] sm:$0xff] }
 0x42d   : > { %8630 = vmatpush1.bf16.msra.mxu0 %v17117_v45  ;;  %9430 = vmatpush1.bf16.msra.mxu1 %v17117_v45  ;;  %v17139_v45 = vld [vmem:[#allocation103_spill] sm:$0xff] }
 0x42e   : > { %8632 = vmatprep.subr.bf16.mxu0 %v17118_v52  ;;  %9432 = vmatprep.subr.bf16.mxu1 %v17118_v52  ;;  %v17142_v52 = vld [vmem:[#allocation106_spill] sm:$0xff] }
 0x430   : > { %4372 = vmatmul.mubr.f32.vlgmr.msra.gmra.mrb[10].mxu0 %v3903_v46  ;;  %5752 = vmatmul.mubr.f32.vlgmr.msra.gmra.mrb[10].mxu1 %v5283_v51  ;;  %v17140_v46 = vld [vmem:[#allocation104_spill] sm:$0xff]  ;;  %v17141_v51 = vld [vmem:[#allocation105_spill] sm:$0xff] }
 0x431   : > { %8634 = vmatpush1.bf16.msra.mxu0 %v17119_v6  ;;  %9434 = vmatpush1.bf16.msra.mxu1 %v17119_v6  ;;  %v17145_v6 = vld [vmem:[#allocation109_spill] sm:$0xff] }
 0x432   : > { %8636 = vmatprep.subr.bf16.mxu0 %v17120_v24  ;;  %9436 = vmatprep.subr.bf16.mxu1 %v17120_v24  ;;  %v17148_v24 = vld [vmem:[#allocation112_spill] sm:$0xff] }
 0x433   : > { %4377 = vmatprep.mubr.f32.mxu0 %v3929_v57  ;;  %5757 = vmatprep.mubr.f32.mxu1 %v5309_v58  ;;  %v17143_v57 = vld [vmem:[#allocation107_spill] sm:$0xff]  ;;  %v17144_v58 = vld [vmem:[#allocation108_spill] sm:$0xff] }
 0x434   : > { %4378 = vmatmul.mubr.f32.gmra.mrb[12].mxu0 %v3928_v9  ;;  %5758 = vmatmul.mubr.f32.gmra.mrb[12].mxu1 %v5308_v17  ;;  %v17146_v9 = vld [vmem:[#allocation110_spill] sm:$0xff]  ;;  %v17147_v17 = vld [vmem:[#allocation111_spill] sm:$0xff] }
 0x435   : > { %8638 = vmatpush1.bf16.msra.mxu0 %v17121_v42  ;;  %9438 = vmatpush1.bf16.msra.mxu1 %v17121_v42  ;;  %v5285_v42 = vld [vmem:[%s14858_s7 + $0x40] sm:$0xff] }
 0x436   : > { %8640 = vmatprep.subr.bf16.mxu0 %v17122_v53  ;;  %9440 = vmatprep.subr.bf16.mxu1 %v17122_v53  ;;  %v5311_v53 = vld [vmem:[%s14858_s7 + $0x110] sm:$0xff] }
 0x437   : > { %4383 = vmatprep.mubr.f32.mxu0 %v3954_v34  ;;  %5763 = vmatprep.mubr.f32.mxu1 %v5334_v35  ;;  %v17149_v34 = vld [vmem:[#allocation113_spill] sm:$0xff]  ;;  %v3905_v35 = vld [vmem:[%s14852_s28 + $0x40] sm:$0xff] }
 0x438   : > { %4384 = vmatmul.mubr.f32.gmra.mrb[14].mxu0 %v3953_v43  ;;  %5764 = vmatmul.mubr.f32.gmra.mrb[14].mxu1 %v5333_v50  ;;  %v17150_v43 = vld [vmem:[#allocation114_spill] sm:$0xff]  ;;  %v3931_v50 = vld [vmem:[%s14852_s28 + $0x110] sm:$0xff] }
 0x439   : > { %8642 = vmatpush1.bf16.msra.mxu0 %v17123_v15  ;;  %9442 = vmatpush1.bf16.msra.mxu1 %v17123_v15  ;;  %v5310_v15 = vld [vmem:[%s14858_s7 + $0x108] sm:$0xff] }
 0x43a   : > { %8644 = vmatprep.subr.bf16.mxu0 %v17124_v59  ;;  %9444 = vmatprep.subr.bf16.mxu1 %v17124_v59  ;;  %v5336_v59 = vld [vmem:[%s14858_s7 + $0x1d8] sm:$0xff] }
 0x43b   : > { %4389 = vmatprep.mubr.f32.mxu0 %v3979_v61  ;;  %5769 = vmatprep.mubr.f32.mxu1 %v5359_v1  ;;  %v17151_v61 = vld [vmem:[#allocation115_spill] sm:$0xff] }
 0x43c   : > { %4390 = vmatmul.mubr.f32.gmra.mrb[16].mxu0 %v3978_v22  ;;  %5770 = vmatmul.mubr.f32.gmra.mrb[16].mxu1 %v5358_v44  ;;  %v3930_v1 = vld [vmem:[%s14852_s28 + $0x108] sm:$0xff]  ;;  %v17152_v22 = vld [vmem:[#allocation116_spill] sm:$0xff]  ;;  %v3956_v44 = vld [vmem:[%s14852_s28 + $0x1d8] sm:$0xff] }
 0x43d   : > { %8646 = vmatpush1.bf16.msra.mxu0 %v17125_v49  ;;  %9446 = vmatpush1.bf16.msra.mxu1 %v17125_v49  ;;  %v5335_v49 = vld [vmem:[%s14858_s7 + $0x1d0] sm:$0xff] }
 0x43e   : > { %8648 = vmatprep.subr.bf16.mxu0 %v17126_v41  ;;  %9448 = vmatprep.subr.bf16.mxu1 %v17126_v41  ;;  %v5361_v41 = vld [vmem:[%s14858_s7 + $0x2a0] sm:$0xff] }
 0x43f   : > { %4395 = vmatprep.mubr.f32.mxu0 %v4004_v2  ;;  %5775 = vmatprep.mubr.f32.mxu1 %v5384_v29  ;;  %v17153_v2 = vld [vmem:[#allocation117_spill] sm:$0xff]  ;;  %v3955_v29 = vld [vmem:[%s14852_s28 + $0x1d0] sm:$0xff] }
 0x440   : > { %4396 = vmatmul.mubr.f32.gmra.mrb[18].mxu0 %v4003_v62  ;;  %5776 = vmatmul.mubr.f32.gmra.mrb[18].mxu1 %v5383_v18  ;;  %v17154_v62 = vld [vmem:[#allocation118_spill] sm:$0xff] }
 0x441   : > { %8650 = vmatpush1.bf16.msra.mxu0 %v17127_v10  ;;  %9450 = vmatpush1.bf16.msra.mxu1 %v17127_v10  ;;  %v3981_v18 = vld [vmem:[%s14852_s28 + $0x2a0] sm:$0xff]  ;;  %v5360_v10 = vld [vmem:[%s14858_s7 + $0x298] sm:$0xff] }
 0x442   : > { %8652 = vmatprep.subr.bf16.mxu0 %v17128_v30  ;;  %9452 = vmatprep.subr.bf16.mxu1 %v17128_v30  ;;  %v17156_v30 = vld [vmem:[#allocation120_spill] sm:$0xff] }
 0x443   : > { %4466 = vmatprep.mubr.f32.mxu0 %v3906_v56  ;;  %5846 = vmatprep.mubr.f32.mxu1 %v5286_v55  ;;  %v17155_v56 = vld [vmem:[#allocation119_spill] sm:$0xff]  ;;  %v3980_v55 = vld [vmem:[%s14852_s28 + $0x298] sm:$0xff] }
 0x445   : > { %8654 = vmatpush1.bf16.msra.mxu0 %v17129_v8  ;;  %9454 = vmatpush1.bf16.msra.mxu1 %v17129_v8  ;;  %v4006_v8 = vld [vmem:[%s14852_s28 + $0x368] sm:$0xff] }
 0x446   : > { %8656 = vmatprep.subr.bf16.mxu0 %v17130_v13  ;;  %9456 = vmatprep.subr.bf16.mxu1 %v17130_v13  ;;  %v5386_v13 = vld [vmem:[%s14858_s7 + $0x368] sm:$0xff] }
 0x449   : > { %8658 = vmatpush1.bf16.msra.mxu0 %v17131_v40  ;;  %9458 = vmatpush1.bf16.msra.mxu1 %v17131_v40  ;;  %v17157_v40 = vld [vmem:[#allocation121_spill] sm:$0xff] }
 0x44a   : > { %8660 = vmatprep.subr.bf16.mxu0 %v17132_v19  ;;  %9460 = vmatprep.subr.bf16.mxu1 %v17132_v19  ;;  %v4005_v19 = vld [vmem:[%s14852_s28 + $0x360] sm:$0xff] }
 0x44d   : > { %8662 = vmatpush1.bf16.msra.mxu0 %v17133_v20  ;;  %9462 = vmatpush1.bf16.msra.mxu1 %v17133_v20  ;;  %v5385_v20 = vld [vmem:[%s14858_s7 + $0x360] sm:$0xff] }
 0x44e   : > { %8664 = vmatprep.subr.bf16.mxu0 %v17134_v25  ;;  %9464 = vmatprep.subr.bf16.mxu1 %v17134_v25  ;;  %v17158_v25 = vld [vmem:[#allocation122_spill] sm:$0xff] }
 0x451   : > { %8666 = vmatpush1.bf16.msra.mxu0 %v17135_v31  ;;  %9466 = vmatpush1.bf16.msra.mxu1 %v17135_v31  ;;  %v3908_v31 = vld [vmem:[%s14852_s28 + $0x58] sm:$0xff] }
 0x452   : > { %8668 = vmatprep.subr.bf16.mxu0 %v17136_v32  ;;  %9468 = vmatprep.subr.bf16.mxu1 %v17136_v32  ;;  %v5288_v32 = vld [vmem:[%s14858_s7 + $0x58] sm:$0xff] }
 0x455   : > { %8670 = vmatpush1.bf16.msra.mxu0 %v17137_v37  ;;  %9470 = vmatpush1.bf16.msra.mxu1 %v17137_v37  ;;  %v17159_v37 = vld [vmem:[#allocation123_spill] sm:$0xff] }
 0x456   : > { %8672 = vmatprep.subr.bf16.mxu0 %v17138_v38  ;;  %9472 = vmatprep.subr.bf16.mxu1 %v17138_v38  ;;  %v17160_v38 = vld [vmem:[#allocation124_spill] sm:$0xff] }
 0x459   : > { %8674 = vmatpush1.bf16.msra.mxu0 %v17139_v45  ;;  %9474 = vmatpush1.bf16.msra.mxu1 %v17139_v45  ;;  %v17161_v45 = vld [vmem:[#allocation125_spill] sm:$0xff] }
 0x45a   : > { %8676 = vmatprep.subr.bf16.mxu0 %v17140_v46  ;;  %9476 = vmatprep.subr.bf16.mxu1 %v17140_v46  ;;  %v17162_v46 = vld [vmem:[#allocation126_spill] sm:$0xff] }
 0x45d   : > { %8678 = vmatpush1.bf16.msra.mxu0 %v17141_v51  ;;  %9478 = vmatpush1.bf16.msra.mxu1 %v17141_v51  ;;  %v17163_v51 = vld [vmem:[#allocation127_spill] sm:$0xff] }
 0x45e   : > { %8680 = vmatprep.subr.bf16.mxu0 %v17142_v52  ;;  %9480 = vmatprep.subr.bf16.mxu1 %v17142_v52  ;;  %v17164_v52 = vld [vmem:[#allocation128_spill] sm:$0xff] }
 0x461   : > { %8682 = vmatpush1.bf16.msra.mxu0 %v17143_v57  ;;  %9482 = vmatpush1.bf16.msra.mxu1 %v17143_v57  ;;  %v17165_v57 = vld [vmem:[#allocation129_spill] sm:$0xff] }
 0x462   : > { %8684 = vmatprep.subr.bf16.mxu0 %v17144_v58  ;;  %9484 = vmatprep.subr.bf16.mxu1 %v17144_v58  ;;  %v17166_v58 = vld [vmem:[#allocation130_spill] sm:$0xff] }
 0x465   : > { %8686 = vmatpush1.bf16.msra.mxu0 %v17145_v6  ;;  %9486 = vmatpush1.bf16.msra.mxu1 %v17145_v6  ;;  %v17167_v6 = vld [vmem:[#allocation131_spill] sm:$0xff] }
 0x466   : > { %8688 = vmatprep.subr.bf16.mxu0 %v17146_v9  ;;  %9488 = vmatprep.subr.bf16.mxu1 %v17146_v9  ;;  %v17168_v9 = vld [vmem:[#allocation132_spill] sm:$0xff] }
 0x469   : > { %8690 = vmatpush1.bf16.msra.mxu0 %v17147_v17  ;;  %9490 = vmatpush1.bf16.msra.mxu1 %v17147_v17  ;;  %v17169_v17 = vld [vmem:[#allocation133_spill] sm:$0xff] }
 0x46a   : > { %8692 = vmatprep.subr.bf16.mxu0 %v17148_v24  ;;  %9492 = vmatprep.subr.bf16.mxu1 %v17148_v24  ;;  %v17170_v24 = vld [vmem:[#allocation134_spill] sm:$0xff] }
 0x46d   : > { %8694 = vmatpush1.bf16.msra.mxu0 %v17149_v34  ;;  %9494 = vmatpush1.bf16.msra.mxu1 %v17149_v34  ;;  %v17171_v34 = vld [vmem:[#allocation135_spill] sm:$0xff] }
 0x46e   : > { %8696 = vmatprep.subr.bf16.mxu0 %v17150_v43  ;;  %9496 = vmatprep.subr.bf16.mxu1 %v17150_v43  ;;  %v17174_v43 = vld [vmem:[#allocation138_spill] sm:$0xff] }
 0x470   : > { %4467 = vmatmul.mubr.f32.vlgmr.msra.gmra.mrb[10].mxu0 %v3905_v35  ;;  %5847 = vmatmul.mubr.f32.vlgmr.msra.gmra.mrb[10].mxu1 %v5285_v42  ;;  %v17172_v35 = vld [vmem:[#allocation136_spill] sm:$0xff]  ;;  %v17173_v42 = vld [vmem:[#allocation137_spill] sm:$0xff] }
 0x471   : > { %8698 = vmatpush1.bf16.msra.mxu0 %v17151_v61  ;;  %9498 = vmatpush1.bf16.msra.mxu1 %v17151_v61  ;;  %v17177_v61 = vld [vmem:[#allocation141_spill] sm:$0xff] }
 0x472   : > { %8700 = vmatprep.subr.bf16.mxu0 %v17152_v22  ;;  %9500 = vmatprep.subr.bf16.mxu1 %v17152_v22  ;;  %v17180_v22 = vld [vmem:[#allocation144_spill] sm:$0xff] }
 0x473   : > { %4472 = vmatprep.mubr.f32.mxu0 %v3931_v50  ;;  %5852 = vmatprep.mubr.f32.mxu1 %v5311_v53  ;;  %v17175_v50 = vld [vmem:[#allocation139_spill] sm:$0xff]  ;;  %v17176_v53 = vld [vmem:[#allocation140_spill] sm:$0xff] }
 0x474   : > { %4473 = vmatmul.mubr.f32.gmra.mrb[12].mxu0 %v3930_v1  ;;  %5853 = vmatmul.mubr.f32.gmra.mrb[12].mxu1 %v5310_v15  ;;  %v17178_v1 = vld [vmem:[#allocation142_spill] sm:$0xff]  ;;  %v17179_v15 = vld [vmem:[#allocation143_spill] sm:$0xff] }
 0x475   : > { %8702 = vmatpush1.bf16.msra.mxu0 %v17153_v2  ;;  %9502 = vmatpush1.bf16.msra.mxu1 %v17153_v2  ;;  %v5287_v2 = vld [vmem:[%s14858_s7 + $0x50] sm:$0xff] }
 0x476   : > { %8704 = vmatprep.subr.bf16.mxu0 %v17154_v62  ;;  %9504 = vmatprep.subr.bf16.mxu1 %v17154_v62  ;;  %v5313_v62 = vld [vmem:[%s14858_s7 + $0x120] sm:$0xff] }
 0x477   : > { %4478 = vmatprep.mubr.f32.mxu0 %v3956_v44  ;;  %5858 = vmatprep.mubr.f32.mxu1 %v5336_v59  ;;  %v17181_v44 = vld [vmem:[#allocation145_spill] sm:$0xff]  ;;  %v3907_v59 = vld [vmem:[%s14852_s28 + $0x50] sm:$0xff] }
 0x478   : > { %4479 = vmatmul.mubr.f32.gmra.mrb[14].mxu0 %v3955_v29  ;;  %5859 = vmatmul.mubr.f32.gmra.mrb[14].mxu1 %v5335_v49  ;;  %v17182_v29 = vld [vmem:[#allocation146_spill] sm:$0xff] }
 0x479   : > { %8706 = vmatpush1.bf16.msra.mxu0 %v17155_v56  ;;  %9506 = vmatpush1.bf16.msra.mxu1 %v17155_v56  ;;  %v3933_v49 = vld [vmem:[%s14852_s28 + $0x120] sm:$0xff]  ;;  %v5312_v56 = vld [vmem:[%s14858_s7 + $0x118] sm:$0xff] }
 0x47a   : > { %8708 = vmatprep.subr.bf16.mxu0 %v17156_v30  ;;  %9508 = vmatprep.subr.bf16.mxu1 %v17156_v30  ;;  %v5338_v30 = vld [vmem:[%s14858_s7 + $0x1e8] sm:$0xff] }
 0x47b   : > { %4484 = vmatprep.mubr.f32.mxu0 %v3981_v18  ;;  %5864 = vmatprep.mubr.f32.mxu1 %v5361_v41  ;;  %v17183_v18 = vld [vmem:[#allocation147_spill] sm:$0xff]  ;;  %v3932_v41 = vld [vmem:[%s14852_s28 + $0x118] sm:$0xff] }
 0x47c   : > { %4485 = vmatmul.mubr.f32.gmra.mrb[16].mxu0 %v3980_v55  ;;  %5865 = vmatmul.mubr.f32.gmra.mrb[16].mxu1 %v5360_v10  ;;  %v17184_v55 = vld [vmem:[#allocation148_spill] sm:$0xff]  ;;  %v3958_v10 = vld [vmem:[%s14852_s28 + $0x1e8] sm:$0xff] }
 0x47d   : > { %8710 = vmatpush1.bf16.msra.mxu0 %v17157_v40  ;;  %9510 = vmatpush1.bf16.msra.mxu1 %v17157_v40  ;;  %v5337_v40 = vld [vmem:[%s14858_s7 + $0x1e0] sm:$0xff] }
 0x47e   : > { %8712 = vmatprep.subr.bf16.mxu0 %v17158_v25  ;;  %9512 = vmatprep.subr.bf16.mxu1 %v17158_v25  ;;  %v5363_v25 = vld [vmem:[%s14858_s7 + $0x2b0] sm:$0xff] }
 0x47f   : > { %4490 = vmatprep.mubr.f32.mxu0 %v4006_v8  ;;  %5870 = vmatprep.mubr.f32.mxu1 %v5386_v13  ;;  %v17185_v8 = vld [vmem:[#allocation149_spill] sm:$0xff]  ;;  %v3957_v13 = vld [vmem:[%s14852_s28 + $0x1e0] sm:$0xff] }
 0x480   : > { %4491 = vmatmul.mubr.f32.gmra.mrb[18].mxu0 %v4005_v19  ;;  %5871 = vmatmul.mubr.f32.gmra.mrb[18].mxu1 %v5385_v20  ;;  %v17186_v19 = vld [vmem:[#allocation150_spill] sm:$0xff]  ;;  %v3983_v20 = vld [vmem:[%s14852_s28 + $0x2b0] sm:$0xff] }
 0x481   : > { %8714 = vmatpush1.bf16.msra.mxu0 %v17159_v37  ;;  %9514 = vmatpush1.bf16.msra.mxu1 %v17159_v37  ;;  %v5362_v37 = vld [vmem:[%s14858_s7 + $0x2a8] sm:$0xff] }
 0x482   : > { %8716 = vmatprep.subr.bf16.mxu0 %v17160_v38  ;;  %9516 = vmatprep.subr.bf16.mxu1 %v17160_v38  ;;  %v17188_v38 = vld [vmem:[#allocation152_spill] sm:$0xff] }
 0x483   : > { %4561 = vmatprep.mubr.f32.mxu0 %v3908_v31  ;;  %5941 = vmatprep.mubr.f32.mxu1 %v5288_v32  ;;  %v17187_v31 = vld [vmem:[#allocation151_spill] sm:$0xff] }
 0x484   : > { %v3982_v32 = vld [vmem:[%s14852_s28 + $0x2a8] sm:$0xff] }
 0x485   : > { %8718 = vmatpush1.bf16.msra.mxu0 %v17161_v45  ;;  %9518 = vmatpush1.bf16.msra.mxu1 %v17161_v45  ;;  %v4008_v45 = vld [vmem:[%s14852_s28 + $0x378] sm:$0xff] }
 0x486   : > { %8720 = vmatprep.subr.bf16.mxu0 %v17162_v46  ;;  %9520 = vmatprep.subr.bf16.mxu1 %v17162_v46  ;;  %v5388_v46 = vld [vmem:[%s14858_s7 + $0x378] sm:$0xff] }
 0x489   : > { %8722 = vmatpush1.bf16.msra.mxu0 %v17163_v51  ;;  %9522 = vmatpush1.bf16.msra.mxu1 %v17163_v51  ;;  %v17189_v51 = vld [vmem:[#allocation153_spill] sm:$0xff] }
 0x48a   : > { %8724 = vmatprep.subr.bf16.mxu0 %v17164_v52  ;;  %9524 = vmatprep.subr.bf16.mxu1 %v17164_v52  ;;  %v4007_v52 = vld [vmem:[%s14852_s28 + $0x370] sm:$0xff] }
 0x48d   : > { %8726 = vmatpush1.bf16.msra.mxu0 %v17165_v57  ;;  %9526 = vmatpush1.bf16.msra.mxu1 %v17165_v57  ;;  %v5387_v57 = vld [vmem:[%s14858_s7 + $0x370] sm:$0xff] }
 0x48e   : > { %8728 = vmatprep.subr.bf16.mxu0 %v17166_v58  ;;  %9528 = vmatprep.subr.bf16.mxu1 %v17166_v58  ;;  %v17190_v58 = vld [vmem:[#allocation154_spill] sm:$0xff] }
 0x491   : > { %8730 = vmatpush1.bf16.msra.mxu0 %v17167_v6  ;;  %9530 = vmatpush1.bf16.msra.mxu1 %v17167_v6  ;;  %v3910_v6 = vld [vmem:[%s14852_s28 + $0x68] sm:$0xff] }
 0x492   : > { %8732 = vmatprep.subr.bf16.mxu0 %v17168_v9  ;;  %9532 = vmatprep.subr.bf16.mxu1 %v17168_v9  ;;  %v5290_v9 = vld [vmem:[%s14858_s7 + $0x68] sm:$0xff] }
 0x495   : > { %8734 = vmatpush1.bf16.msra.mxu0 %v17169_v17  ;;  %9534 = vmatpush1.bf16.msra.mxu1 %v17169_v17  ;;  %v17191_v17 = vld [vmem:[#allocation155_spill] sm:$0xff] }
 0x496   : > { %8736 = vmatprep.subr.bf16.mxu0 %v17170_v24  ;;  %9536 = vmatprep.subr.bf16.mxu1 %v17170_v24  ;;  %v17192_v24 = vld [vmem:[#allocation156_spill] sm:$0xff] }
 0x499   : > { %8738 = vmatpush1.bf16.msra.mxu0 %v17171_v34  ;;  %9538 = vmatpush1.bf16.msra.mxu1 %v17171_v34  ;;  %v17193_v34 = vld [vmem:[#allocation157_spill] sm:$0xff] }
 0x49a   : > { %8740 = vmatprep.subr.bf16.mxu0 %v17172_v35  ;;  %9540 = vmatprep.subr.bf16.mxu1 %v17172_v35  ;;  %v17194_v35 = vld [vmem:[#allocation158_spill] sm:$0xff] }
 0x49d   : > { %8742 = vmatpush1.bf16.msra.mxu0 %v17173_v42  ;;  %9542 = vmatpush1.bf16.msra.mxu1 %v17173_v42  ;;  %v17195_v42 = vld [vmem:[#allocation159_spill] sm:$0xff] }
 0x49e   : > { %8744 = vmatprep.subr.bf16.mxu0 %v17174_v43  ;;  %9544 = vmatprep.subr.bf16.mxu1 %v17174_v43  ;;  %v17196_v43 = vld [vmem:[#allocation160_spill] sm:$0xff] }
 0x4a1   : > { %8746 = vmatpush1.bf16.msra.mxu0 %v17175_v50  ;;  %9546 = vmatpush1.bf16.msra.mxu1 %v17175_v50  ;;  %v17197_v50 = vld [vmem:[#allocation161_spill] sm:$0xff] }
 0x4a2   : > { %8748 = vmatprep.subr.bf16.mxu0 %v17176_v53  ;;  %9548 = vmatprep.subr.bf16.mxu1 %v17176_v53  ;;  %v17198_v53 = vld [vmem:[#allocation162_spill] sm:$0xff] }
 0x4a5   : > { %8750 = vmatpush1.bf16.msra.mxu0 %v17177_v61  ;;  %9550 = vmatpush1.bf16.msra.mxu1 %v17177_v61  ;;  %v17199_v61 = vld [vmem:[#allocation163_spill] sm:$0xff] }
 0x4a6   : > { %8752 = vmatprep.subr.bf16.mxu0 %v17178_v1  ;;  %9552 = vmatprep.subr.bf16.mxu1 %v17178_v1  ;;  %v17200_v1 = vld [vmem:[#allocation164_spill] sm:$0xff] }
 0x4a9   : > { %8754 = vmatpush1.bf16.msra.mxu0 %v17179_v15  ;;  %9554 = vmatpush1.bf16.msra.mxu1 %v17179_v15  ;;  %v17201_v15 = vld [vmem:[#allocation165_spill] sm:$0xff] }
 0x4aa   : > { %8756 = vmatprep.subr.bf16.mxu0 %v17180_v22  ;;  %9556 = vmatprep.subr.bf16.mxu1 %v17180_v22  ;;  %v17202_v22 = vld [vmem:[#allocation166_spill] sm:$0xff] }
 0x4ad   : > { %8758 = vmatpush1.bf16.msra.mxu0 %v17181_v44  ;;  %9558 = vmatpush1.bf16.msra.mxu1 %v17181_v44  ;;  %v17203_v44 = vld [vmem:[#allocation167_spill] sm:$0xff] }
 0x4ae   : > { %8760 = vmatprep.subr.bf16.mxu0 %v17182_v29  ;;  %9560 = vmatprep.subr.bf16.mxu1 %v17182_v29  ;;  %v17206_v29 = vld [vmem:[#allocation170_spill] sm:$0xff] }
 0x4b0   : > { %4562 = vmatmul.mubr.f32.vlgmr.msra.gmra.mrb[10].mxu0 %v3907_v59  ;;  %5942 = vmatmul.mubr.f32.vlgmr.msra.gmra.mrb[10].mxu1 %v5287_v2  ;;  %v17204_v59 = vld [vmem:[#allocation168_spill] sm:$0xff]  ;;  %v17205_v2 = vld [vmem:[#allocation169_spill] sm:$0xff] }
 0x4b1   : > { %8762 = vmatpush1.bf16.msra.mxu0 %v17183_v18  ;;  %9562 = vmatpush1.bf16.msra.mxu1 %v17183_v18  ;;  %v17209_v18 = vld [vmem:[#allocation173_spill] sm:$0xff] }
 0x4b2   : > { %8764 = vmatprep.subr.bf16.mxu0 %v17184_v55  ;;  %9564 = vmatprep.subr.bf16.mxu1 %v17184_v55  ;;  %v17212_v55 = vld [vmem:[#allocation176_spill] sm:$0xff] }
 0x4b3   : > { %4567 = vmatprep.mubr.f32.mxu0 %v3933_v49  ;;  %5947 = vmatprep.mubr.f32.mxu1 %v5313_v62  ;;  %v17207_v49 = vld [vmem:[#allocation171_spill] sm:$0xff]  ;;  %v17208_v62 = vld [vmem:[#allocation172_spill] sm:$0xff] }
 0x4b4   : > { %4568 = vmatmul.mubr.f32.gmra.mrb[12].mxu0 %v3932_v41  ;;  %5948 = vmatmul.mubr.f32.gmra.mrb[12].mxu1 %v5312_v56  ;;  %v17210_v41 = vld [vmem:[#allocation174_spill] sm:$0xff]  ;;  %v17211_v56 = vld [vmem:[#allocation175_spill] sm:$0xff] }
 0x4b5   : > { %8766 = vmatpush1.bf16.msra.mxu0 %v17185_v8  ;;  %9566 = vmatpush1.bf16.msra.mxu1 %v17185_v8  ;;  %v5289_v8 = vld [vmem:[%s14858_s7 + $0x60] sm:$0xff] }
 0x4b6   : > { %8768 = vmatprep.subr.bf16.mxu0 %v17186_v19  ;;  %9568 = vmatprep.subr.bf16.mxu1 %v17186_v19  ;;  %v5315_v19 = vld [vmem:[%s14858_s7 + $0x130] sm:$0xff] }
 0x4b7   : > { %4573 = vmatprep.mubr.f32.mxu0 %v3958_v10  ;;  %5953 = vmatprep.mubr.f32.mxu1 %v5338_v30  ;;  %v17213_v10 = vld [vmem:[#allocation177_spill] sm:$0xff]  ;;  %v3909_v30 = vld [vmem:[%s14852_s28 + $0x60] sm:$0xff] }
 0x4b8   : > { %4574 = vmatmul.mubr.f32.gmra.mrb[14].mxu0 %v3957_v13  ;;  %5954 = vmatmul.mubr.f32.gmra.mrb[14].mxu1 %v5337_v40  ;;  %v17214_v13 = vld [vmem:[#allocation178_spill] sm:$0xff]  ;;  %v3935_v40 = vld [vmem:[%s14852_s28 + $0x130] sm:$0xff] }
 0x4b9   : > { %8770 = vmatpush1.bf16.msra.mxu0 %v17187_v31  ;;  %9570 = vmatpush1.bf16.msra.mxu1 %v17187_v31  ;;  %v5314_v31 = vld [vmem:[%s14858_s7 + $0x128] sm:$0xff] }
 0x4ba   : > { %8772 = vmatprep.subr.bf16.mxu0 %v17188_v38  ;;  %9572 = vmatprep.subr.bf16.mxu1 %v17188_v38  ;;  %v5340_v38 = vld [vmem:[%s14858_s7 + $0x1f8] sm:$0xff] }
 0x4bb   : > { %4579 = vmatprep.mubr.f32.mxu0 %v3983_v20  ;;  %5959 = vmatprep.mubr.f32.mxu1 %v5363_v25  ;;  %v17215_v20 = vld [vmem:[#allocation179_spill] sm:$0xff] }
 0x4bc   : > { %4580 = vmatmul.mubr.f32.gmra.mrb[16].mxu0 %v3982_v32  ;;  %5960 = vmatmul.mubr.f32.gmra.mrb[16].mxu1 %v5362_v37  ;;  %v3934_v25 = vld [vmem:[%s14852_s28 + $0x128] sm:$0xff]  ;;  %v17216_v32 = vld [vmem:[#allocation180_spill] sm:$0xff]  ;;  %v3960_v37 = vld [vmem:[%s14852_s28 + $0x1f8] sm:$0xff] }
 0x4bd   : > { %8774 = vmatpush1.bf16.msra.mxu0 %v17189_v51  ;;  %9574 = vmatpush1.bf16.msra.mxu1 %v17189_v51  ;;  %v5339_v51 = vld [vmem:[%s14858_s7 + $0x1f0] sm:$0xff] }
 0x4be   : > { %8776 = vmatprep.subr.bf16.mxu0 %v17190_v58  ;;  %9576 = vmatprep.subr.bf16.mxu1 %v17190_v58  ;;  %v5365_v58 = vld [vmem:[%s14858_s7 + $0x2c0] sm:$0xff] }
 0x4bf   : > { %4585 = vmatprep.mubr.f32.mxu0 %v4008_v45  ;;  %5965 = vmatprep.mubr.f32.mxu1 %v5388_v46  ;;  %v17217_v45 = vld [vmem:[#allocation181_spill] sm:$0xff]  ;;  %v3959_v46 = vld [vmem:[%s14852_s28 + $0x1f0] sm:$0xff] }
 0x4c0   : > { %4586 = vmatmul.mubr.f32.gmra.mrb[18].mxu0 %v4007_v52  ;;  %5966 = vmatmul.mubr.f32.gmra.mrb[18].mxu1 %v5387_v57  ;;  %v17218_v52 = vld [vmem:[#allocation182_spill] sm:$0xff] }
 0x4c1   : > { %8778 = vmatpush1.bf16.msra.mxu0 %v17191_v17  ;;  %9578 = vmatpush1.bf16.msra.mxu1 %v17191_v17  ;;  %v3985_v57 = vld [vmem:[%s14852_s28 + $0x2c0] sm:$0xff]  ;;  %v5364_v17 = vld [vmem:[%s14858_s7 + $0x2b8] sm:$0xff] }
 0x4c2   : > { %8780 = vmatprep.subr.bf16.mxu0 %v17192_v24  ;;  %9580 = vmatprep.subr.bf16.mxu1 %v17192_v24  ;;  %v17220_v24 = vld [vmem:[#allocation184_spill] sm:$0xff] }
 0x4c3   : > { %4656 = vmatprep.mubr.f32.mxu0 %v3910_v6  ;;  %6036 = vmatprep.mubr.f32.mxu1 %v5290_v9  ;;  %v17219_v6 = vld [vmem:[#allocation183_spill] sm:$0xff]  ;;  %v3984_v9 = vld [vmem:[%s14852_s28 + $0x2b8] sm:$0xff] }
 0x4c5   : > { %8782 = vmatpush1.bf16.msra.mxu0 %v17193_v34  ;;  %9582 = vmatpush1.bf16.msra.mxu1 %v17193_v34  ;;  %v4010_v34 = vld [vmem:[%s14852_s28 + $0x388] sm:$0xff] }
 0x4c6   : > { %8784 = vmatprep.subr.bf16.mxu0 %v17194_v35  ;;  %9584 = vmatprep.subr.bf16.mxu1 %v17194_v35  ;;  %v5390_v35 = vld [vmem:[%s14858_s7 + $0x388] sm:$0xff] }
 0x4c9   : > { %8786 = vmatpush1.bf16.msra.mxu0 %v17195_v42  ;;  %9586 = vmatpush1.bf16.msra.mxu1 %v17195_v42  ;;  %v17221_v42 = vld [vmem:[#allocation185_spill] sm:$0xff] }
 0x4ca   : > { %8788 = vmatprep.subr.bf16.mxu0 %v17196_v43  ;;  %9588 = vmatprep.subr.bf16.mxu1 %v17196_v43  ;;  %v4009_v43 = vld [vmem:[%s14852_s28 + $0x380] sm:$0xff] }
 0x4cd   : > { %8790 = vmatpush1.bf16.msra.mxu0 %v17197_v50  ;;  %9590 = vmatpush1.bf16.msra.mxu1 %v17197_v50  ;;  %v5389_v50 = vld [vmem:[%s14858_s7 + $0x380] sm:$0xff] }
 0x4ce   : > { %8792 = vmatprep.subr.bf16.mxu0 %v17198_v53  ;;  %9592 = vmatprep.subr.bf16.mxu1 %v17198_v53  ;;  %v17222_v53 = vld [vmem:[#allocation186_spill] sm:$0xff] }
 0x4d1   : > { %8794 = vmatpush1.bf16.msra.mxu0 %v17199_v61  ;;  %9594 = vmatpush1.bf16.msra.mxu1 %v17199_v61  ;;  %v3912_v61 = vld [vmem:[%s14852_s28 + $0x78] sm:$0xff] }
 0x4d2   : > { %8796 = vmatprep.subr.bf16.mxu0 %v17200_v1  ;;  %9596 = vmatprep.subr.bf16.mxu1 %v17200_v1  ;;  %v5292_v1 = vld [vmem:[%s14858_s7 + $0x78] sm:$0xff] }
 0x4d5   : > { %8798 = vmatpush1.bf16.msra.mxu0 %v17201_v15  ;;  %9598 = vmatpush1.bf16.msra.mxu1 %v17201_v15  ;;  %v17223_v15 = vld [vmem:[#allocation187_spill] sm:$0xff] }
 0x4d6   : > { %8800 = vmatprep.subr.bf16.mxu0 %v17202_v22  ;;  %9600 = vmatprep.subr.bf16.mxu1 %v17202_v22  ;;  %v17224_v22 = vld [vmem:[#allocation188_spill] sm:$0xff] }
 0x4d9   : > { %8802 = vmatpush1.bf16.msra.mxu0 %v17203_v44  ;;  %9602 = vmatpush1.bf16.msra.mxu1 %v17203_v44  ;;  %v17225_v44 = vld [vmem:[#allocation189_spill] sm:$0xff] }
 0x4da   : > { %8804 = vmatprep.subr.bf16.mxu0 %v17204_v59  ;;  %9604 = vmatprep.subr.bf16.mxu1 %v17204_v59  ;;  %v17226_v59 = vld [vmem:[#allocation190_spill] sm:$0xff] }
 0x4dd   : > { %8806 = vmatpush1.bf16.msra.mxu0 %v17205_v2  ;;  %9606 = vmatpush1.bf16.msra.mxu1 %v17205_v2  ;;  %v17227_v2 = vld [vmem:[#allocation191_spill] sm:$0xff] }
 0x4de   : > { %8808 = vmatprep.subr.bf16.mxu0 %v17206_v29  ;;  %9608 = vmatprep.subr.bf16.mxu1 %v17206_v29  ;;  %v17228_v29 = vld [vmem:[#allocation192_spill] sm:$0xff] }
 0x4e1   : > { %8810 = vmatpush1.bf16.msra.mxu0 %v17207_v49  ;;  %9610 = vmatpush1.bf16.msra.mxu1 %v17207_v49  ;;  %v17229_v49 = vld [vmem:[#allocation193_spill] sm:$0xff] }
 0x4e2   : > { %8812 = vmatprep.subr.bf16.mxu0 %v17208_v62  ;;  %9612 = vmatprep.subr.bf16.mxu1 %v17208_v62  ;;  %v17230_v62 = vld [vmem:[#allocation194_spill] sm:$0xff] }
 0x4e5   : > { %8814 = vmatpush1.bf16.msra.mxu0 %v17209_v18  ;;  %9614 = vmatpush1.bf16.msra.mxu1 %v17209_v18  ;;  %v17231_v18 = vld [vmem:[#allocation195_spill] sm:$0xff] }
 0x4e6   : > { %8816 = vmatprep.subr.bf16.mxu0 %v17210_v41  ;;  %9616 = vmatprep.subr.bf16.mxu1 %v17210_v41  ;;  %v17232_v41 = vld [vmem:[#allocation196_spill] sm:$0xff] }
 0x4e9   : > { %8818 = vmatpush1.bf16.msra.mxu0 %v17211_v56  ;;  %9618 = vmatpush1.bf16.msra.mxu1 %v17211_v56  ;;  %v17233_v56 = vld [vmem:[#allocation197_spill] sm:$0xff] }
 0x4ea   : > { %8820 = vmatprep.subr.bf16.mxu0 %v17212_v55  ;;  %9620 = vmatprep.subr.bf16.mxu1 %v17212_v55  ;;  %v17234_v55 = vld [vmem:[#allocation198_spill] sm:$0xff] }
 0x4ed   : > { %8822 = vmatpush1.bf16.msra.mxu0 %v17213_v10  ;;  %9622 = vmatpush1.bf16.msra.mxu1 %v17213_v10  ;;  %v17235_v10 = vld [vmem:[#allocation199_spill] sm:$0xff] }
 0x4ee   : > { %8824 = vmatprep.subr.bf16.mxu0 %v17214_v13  ;;  %9624 = vmatprep.subr.bf16.mxu1 %v17214_v13  ;;  %v17238_v13 = vld [vmem:[#allocation202_spill] sm:$0xff] }
 0x4f0   : > { %4657 = vmatmul.mubr.f32.vlgmr.msra.gmra.mrb[10].mxu0 %v3909_v30  ;;  %6037 = vmatmul.mubr.f32.vlgmr.msra.gmra.mrb[10].mxu1 %v5289_v8  ;;  %v17236_v30 = vld [vmem:[#allocation200_spill] sm:$0xff]  ;;  %v17237_v8 = vld [vmem:[#allocation201_spill] sm:$0xff] }
 0x4f1   : > { %8826 = vmatpush1.bf16.msra.mxu0 %v17215_v20  ;;  %9626 = vmatpush1.bf16.msra.mxu1 %v17215_v20  ;;  %v17241_v20 = vld [vmem:[#allocation205_spill] sm:$0xff] }
 0x4f2   : > { %8828 = vmatprep.subr.bf16.mxu0 %v17216_v32  ;;  %9628 = vmatprep.subr.bf16.mxu1 %v17216_v32  ;;  %v17244_v32 = vld [vmem:[#allocation208_spill] sm:$0xff] }
 0x4f3   : > { %4662 = vmatprep.mubr.f32.mxu0 %v3935_v40  ;;  %6042 = vmatprep.mubr.f32.mxu1 %v5315_v19  ;;  %v17239_v40 = vld [vmem:[#allocation203_spill] sm:$0xff]  ;;  %v17240_v19 = vld [vmem:[#allocation204_spill] sm:$0xff] }
 0x4f4   : > { %4663 = vmatmul.mubr.f32.gmra.mrb[12].mxu0 %v3934_v25  ;;  %6043 = vmatmul.mubr.f32.gmra.mrb[12].mxu1 %v5314_v31  ;;  %v17242_v25 = vld [vmem:[#allocation206_spill] sm:$0xff]  ;;  %v17243_v31 = vld [vmem:[#allocation207_spill] sm:$0xff] }
 0x4f5   : > { %8830 = vmatpush1.bf16.msra.mxu0 %v17217_v45  ;;  %9630 = vmatpush1.bf16.msra.mxu1 %v17217_v45  ;;  %v5291_v45 = vld [vmem:[%s14858_s7 + $0x70] sm:$0xff] }
 0x4f6   : > { %8832 = vmatprep.subr.bf16.mxu0 %v17218_v52  ;;  %9632 = vmatprep.subr.bf16.mxu1 %v17218_v52  ;;  %v5317_v52 = vld [vmem:[%s14858_s7 + $0x140] sm:$0xff] }
 0x4f7   : > { %4668 = vmatprep.mubr.f32.mxu0 %v3960_v37  ;;  %6048 = vmatprep.mubr.f32.mxu1 %v5340_v38  ;;  %v17245_v37 = vld [vmem:[#allocation209_spill] sm:$0xff]  ;;  %v3911_v38 = vld [vmem:[%s14852_s28 + $0x70] sm:$0xff] }
 0x4f8   : > { %4669 = vmatmul.mubr.f32.gmra.mrb[14].mxu0 %v3959_v46  ;;  %6049 = vmatmul.mubr.f32.gmra.mrb[14].mxu1 %v5339_v51  ;;  %v17246_v46 = vld [vmem:[#allocation210_spill] sm:$0xff] }
 0x4f9   : > { %8834 = vmatpush1.bf16.msra.mxu0 %v17219_v6  ;;  %9634 = vmatpush1.bf16.msra.mxu1 %v17219_v6  ;;  %v3937_v51 = vld [vmem:[%s14852_s28 + $0x140] sm:$0xff]  ;;  %v5316_v6 = vld [vmem:[%s14858_s7 + $0x138] sm:$0xff] }
 0x4fa   : > { %8836 = vmatprep.subr.bf16.mxu0 %v17220_v24  ;;  %9636 = vmatprep.subr.bf16.mxu1 %v17220_v24  ;;  %v5342_v24 = vld [vmem:[%s14858_s7 + $0x208] sm:$0xff] }
 0x4fb   : > { %4674 = vmatprep.mubr.f32.mxu0 %v3985_v57  ;;  %6054 = vmatprep.mubr.f32.mxu1 %v5365_v58  ;;  %v17247_v57 = vld [vmem:[#allocation211_spill] sm:$0xff]  ;;  %v3936_v58 = vld [vmem:[%s14852_s28 + $0x138] sm:$0xff] }
 0x4fc   : > { %4675 = vmatmul.mubr.f32.gmra.mrb[16].mxu0 %v3984_v9  ;;  %6055 = vmatmul.mubr.f32.gmra.mrb[16].mxu1 %v5364_v17  ;;  %v17248_v9 = vld [vmem:[#allocation212_spill] sm:$0xff]  ;;  %v3962_v17 = vld [vmem:[%s14852_s28 + $0x208] sm:$0xff] }
 0x4fd   : > { %8838 = vmatpush1.bf16.msra.mxu0 %v17221_v42  ;;  %9638 = vmatpush1.bf16.msra.mxu1 %v17221_v42  ;;  %v5341_v42 = vld [vmem:[%s14858_s7 + $0x200] sm:$0xff] }
 0x4fe   : > { %8840 = vmatprep.subr.bf16.mxu0 %v17222_v53  ;;  %9640 = vmatprep.subr.bf16.mxu1 %v17222_v53  ;;  %v5367_v53 = vld [vmem:[%s14858_s7 + $0x2d0] sm:$0xff] }
 0x4ff   : > { %4680 = vmatprep.mubr.f32.mxu0 %v4010_v34  ;;  %6060 = vmatprep.mubr.f32.mxu1 %v5390_v35  ;;  %v17249_v34 = vld [vmem:[#allocation213_spill] sm:$0xff]  ;;  %v3961_v35 = vld [vmem:[%s14852_s28 + $0x200] sm:$0xff] }
 0x500   : > { %4681 = vmatmul.mubr.f32.gmra.mrb[18].mxu0 %v4009_v43  ;;  %6061 = vmatmul.mubr.f32.gmra.mrb[18].mxu1 %v5389_v50  ;;  %v17250_v43 = vld [vmem:[#allocation214_spill] sm:$0xff]  ;;  %v3987_v50 = vld [vmem:[%s14852_s28 + $0x2d0] sm:$0xff] }
 0x501   : > { %8842 = vmatpush1.bf16.msra.mxu0 %v17223_v15  ;;  %9642 = vmatpush1.bf16.msra.mxu1 %v17223_v15  ;;  %v5366_v15 = vld [vmem:[%s14858_s7 + $0x2c8] sm:$0xff] }
 0x502   : > { %8844 = vmatprep.subr.bf16.mxu0 %v17224_v22  ;;  %9644 = vmatprep.subr.bf16.mxu1 %v17224_v22  ;;  %v17252_v22 = vld [vmem:[#allocation216_spill] sm:$0xff] }
 0x503   : > { %4751 = vmatprep.mubr.f32.mxu0 %v3912_v61  ;;  %6131 = vmatprep.mubr.f32.mxu1 %v5292_v1  ;;  %v17251_v61 = vld [vmem:[#allocation215_spill] sm:$0xff] }
 0x504   : > { %v3986_v1 = vld [vmem:[%s14852_s28 + $0x2c8] sm:$0xff] }
 0x505   : > { %8846 = vmatpush1.bf16.msra.mxu0 %v17225_v44  ;;  %9646 = vmatpush1.bf16.msra.mxu1 %v17225_v44  ;;  %v4012_v44 = vld [vmem:[%s14852_s28 + $0x398] sm:$0xff] }
 0x506   : > { %8848 = vmatprep.subr.bf16.mxu0 %v17226_v59  ;;  %9648 = vmatprep.subr.bf16.mxu1 %v17226_v59  ;;  %v5392_v59 = vld [vmem:[%s14858_s7 + $0x398] sm:$0xff] }
 0x509   : > { %8850 = vmatpush1.bf16.msra.mxu0 %v17227_v2  ;;  %9650 = vmatpush1.bf16.msra.mxu1 %v17227_v2  ;;  %v17253_v2 = vld [vmem:[#allocation217_spill] sm:$0xff] }
 0x50a   : > { %8852 = vmatprep.subr.bf16.mxu0 %v17228_v29  ;;  %9652 = vmatprep.subr.bf16.mxu1 %v17228_v29  ;;  %v4011_v29 = vld [vmem:[%s14852_s28 + $0x390] sm:$0xff] }
 0x50d   : > { %8854 = vmatpush1.bf16.msra.mxu0 %v17229_v49  ;;  %9654 = vmatpush1.bf16.msra.mxu1 %v17229_v49  ;;  %v5391_v49 = vld [vmem:[%s14858_s7 + $0x390] sm:$0xff] }
 0x50e   : > { %8856 = vmatprep.subr.bf16.mxu0 %v17230_v62  ;;  %9656 = vmatprep.subr.bf16.mxu1 %v17230_v62  ;;  %v17254_v62 = vld [vmem:[#allocation218_spill] sm:$0xff] }
 0x511   : > { %8858 = vmatpush1.bf16.msra.mxu0 %v17231_v18  ;;  %9658 = vmatpush1.bf16.msra.mxu1 %v17231_v18  ;;  %v3914_v18 = vld [vmem:[%s14852_s28 + $0x88] sm:$0xff] }
 0x512   : > { %8860 = vmatprep.subr.bf16.mxu0 %v17232_v41  ;;  %9660 = vmatprep.subr.bf16.mxu1 %v17232_v41  ;;  %v5294_v41 = vld [vmem:[%s14858_s7 + $0x88] sm:$0xff] }
 0x515   : > { %8862 = vmatpush1.bf16.msra.mxu0 %v17233_v56  ;;  %9662 = vmatpush1.bf16.msra.mxu1 %v17233_v56  ;;  %v17255_v56 = vld [vmem:[#allocation219_spill] sm:$0xff] }
 0x516   : > { %8864 = vmatprep.subr.bf16.mxu0 %v17234_v55  ;;  %9664 = vmatprep.subr.bf16.mxu1 %v17234_v55  ;;  %v17256_v55 = vld [vmem:[#allocation220_spill] sm:$0xff] }
 0x519   : > { %8866 = vmatpush1.bf16.msra.mxu0 %v17235_v10  ;;  %9666 = vmatpush1.bf16.msra.mxu1 %v17235_v10  ;;  %v17257_v10 = vld [vmem:[#allocation221_spill] sm:$0xff] }
 0x51a   : > { %8868 = vmatprep.subr.bf16.mxu0 %v17236_v30  ;;  %9668 = vmatprep.subr.bf16.mxu1 %v17236_v30  ;;  %v17258_v30 = vld [vmem:[#allocation222_spill] sm:$0xff] }
 0x51d   : > { %8870 = vmatpush1.bf16.msra.mxu0 %v17237_v8  ;;  %9670 = vmatpush1.bf16.msra.mxu1 %v17237_v8  ;;  %v17259_v8 = vld [vmem:[#allocation223_spill] sm:$0xff] }
 0x51e   : > { %8872 = vmatprep.subr.bf16.mxu0 %v17238_v13  ;;  %9672 = vmatprep.subr.bf16.mxu1 %v17238_v13  ;;  %v17260_v13 = vld [vmem:[#allocation224_spill] sm:$0xff] }
 0x521   : > { %8874 = vmatpush1.bf16.msra.mxu0 %v17239_v40  ;;  %9674 = vmatpush1.bf16.msra.mxu1 %v17239_v40  ;;  %v17261_v40 = vld [vmem:[#allocation225_spill] sm:$0xff] }
 0x522   : > { %8876 = vmatprep.subr.bf16.mxu0 %v17240_v19  ;;  %9676 = vmatprep.subr.bf16.mxu1 %v17240_v19  ;;  %v17262_v19 = vld [vmem:[#allocation226_spill] sm:$0xff] }
 0x525   : > { %8878 = vmatpush1.bf16.msra.mxu0 %v17241_v20  ;;  %9678 = vmatpush1.bf16.msra.mxu1 %v17241_v20  ;;  %v17263_v20 = vld [vmem:[#allocation227_spill] sm:$0xff] }
 0x526   : > { %8880 = vmatprep.subr.bf16.mxu0 %v17242_v25  ;;  %9680 = vmatprep.subr.bf16.mxu1 %v17242_v25  ;;  %v17264_v25 = vld [vmem:[#allocation228_spill] sm:$0xff] }
 0x529   : > { %8882 = vmatpush1.bf16.msra.mxu0 %v17243_v31  ;;  %9682 = vmatpush1.bf16.msra.mxu1 %v17243_v31  ;;  %v17265_v31 = vld [vmem:[#allocation229_spill] sm:$0xff] }
 0x52a   : > { %8884 = vmatprep.subr.bf16.mxu0 %v17244_v32  ;;  %9684 = vmatprep.subr.bf16.mxu1 %v17244_v32  ;;  %v17266_v32 = vld [vmem:[#allocation230_spill] sm:$0xff] }
 0x52d   : > { %8886 = vmatpush1.bf16.msra.mxu0 %v17245_v37  ;;  %9686 = vmatpush1.bf16.msra.mxu1 %v17245_v37  ;;  %v17267_v37 = vld [vmem:[#allocation231_spill] sm:$0xff] }
 0x52e   : > { %8888 = vmatprep.subr.bf16.mxu0 %v17246_v46  ;;  %9688 = vmatprep.subr.bf16.mxu1 %v17246_v46  ;;  %v17270_v46 = vld [vmem:[#allocation234_spill] sm:$0xff] }
 0x530   : > { %4752 = vmatmul.mubr.f32.vlgmr.msra.gmra.mrb[10].mxu0 %v3911_v38  ;;  %6132 = vmatmul.mubr.f32.vlgmr.msra.gmra.mrb[10].mxu1 %v5291_v45  ;;  %v17268_v38 = vld [vmem:[#allocation232_spill] sm:$0xff]  ;;  %v17269_v45 = vld [vmem:[#allocation233_spill] sm:$0xff] }
 0x531   : > { %8890 = vmatpush1.bf16.msra.mxu0 %v17247_v57  ;;  %9690 = vmatpush1.bf16.msra.mxu1 %v17247_v57  ;;  %v17273_v57 = vld [vmem:[#allocation237_spill] sm:$0xff] }
 0x532   : > { %8892 = vmatprep.subr.bf16.mxu0 %v17248_v9  ;;  %9692 = vmatprep.subr.bf16.mxu1 %v17248_v9  ;;  %v17276_v9 = vld [vmem:[#allocation240_spill] sm:$0xff] }
 0x533   : > { %4757 = vmatprep.mubr.f32.mxu0 %v3937_v51  ;;  %6137 = vmatprep.mubr.f32.mxu1 %v5317_v52  ;;  %v17271_v51 = vld [vmem:[#allocation235_spill] sm:$0xff]  ;;  %v17272_v52 = vld [vmem:[#allocation236_spill] sm:$0xff] }
 0x534   : > { %4758 = vmatmul.mubr.f32.gmra.mrb[12].mxu0 %v3936_v58  ;;  %6138 = vmatmul.mubr.f32.gmra.mrb[12].mxu1 %v5316_v6  ;;  %v17274_v58 = vld [vmem:[#allocation238_spill] sm:$0xff]  ;;  %v17275_v6 = vld [vmem:[#allocation239_spill] sm:$0xff] }
 0x535   : > { %8894 = vmatpush1.bf16.msra.mxu0 %v17249_v34  ;;  %9694 = vmatpush1.bf16.msra.mxu1 %v17249_v34  ;;  %v5293_v34 = vld [vmem:[%s14858_s7 + $0x80] sm:$0xff] }
 0x536   : > { %8896 = vmatprep.subr.bf16.mxu0 %v17250_v43  ;;  %9696 = vmatprep.subr.bf16.mxu1 %v17250_v43  ;;  %v5319_v43 = vld [vmem:[%s14858_s7 + $0x150] sm:$0xff] }
 0x537   : > { %4763 = vmatprep.mubr.f32.mxu0 %v3962_v17  ;;  %6143 = vmatprep.mubr.f32.mxu1 %v5342_v24  ;;  %v17277_v17 = vld [vmem:[#allocation241_spill] sm:$0xff]  ;;  %v3913_v24 = vld [vmem:[%s14852_s28 + $0x80] sm:$0xff] }
 0x538   : > { %4764 = vmatmul.mubr.f32.gmra.mrb[14].mxu0 %v3961_v35  ;;  %6144 = vmatmul.mubr.f32.gmra.mrb[14].mxu1 %v5341_v42  ;;  %v17278_v35 = vld [vmem:[#allocation242_spill] sm:$0xff]  ;;  %v3939_v42 = vld [vmem:[%s14852_s28 + $0x150] sm:$0xff] }
 0x539   : > { %8898 = vmatpush1.bf16.msra.mxu0 %v17251_v61  ;;  %9698 = vmatpush1.bf16.msra.mxu1 %v17251_v61  ;;  %v5318_v61 = vld [vmem:[%s14858_s7 + $0x148] sm:$0xff] }
 0x53a   : > { %8900 = vmatprep.subr.bf16.mxu0 %v17252_v22  ;;  %9700 = vmatprep.subr.bf16.mxu1 %v17252_v22  ;;  %v5344_v22 = vld [vmem:[%s14858_s7 + $0x218] sm:$0xff] }
 0x53b   : > { %4769 = vmatprep.mubr.f32.mxu0 %v3987_v50  ;;  %6149 = vmatprep.mubr.f32.mxu1 %v5367_v53  ;;  %v17279_v50 = vld [vmem:[#allocation243_spill] sm:$0xff] }
 0x53c   : > { %4770 = vmatmul.mubr.f32.gmra.mrb[16].mxu0 %v3986_v1  ;;  %6150 = vmatmul.mubr.f32.gmra.mrb[16].mxu1 %v5366_v15  ;;  %v3938_v53 = vld [vmem:[%s14852_s28 + $0x148] sm:$0xff]  ;;  %v17280_v1 = vld [vmem:[#allocation244_spill] sm:$0xff]  ;;  %v3964_v15 = vld [vmem:[%s14852_s28 + $0x218] sm:$0xff] }
 0x53d   : > { %8902 = vmatpush1.bf16.msra.mxu0 %v17253_v2  ;;  %9702 = vmatpush1.bf16.msra.mxu1 %v17253_v2  ;;  %v5343_v2 = vld [vmem:[%s14858_s7 + $0x210] sm:$0xff] }
 0x53e   : > { %8904 = vmatprep.subr.bf16.mxu0 %v17254_v62  ;;  %9704 = vmatprep.subr.bf16.mxu1 %v17254_v62  ;;  %v5369_v62 = vld [vmem:[%s14858_s7 + $0x2e0] sm:$0xff] }
 0x53f   : > { %4775 = vmatprep.mubr.f32.mxu0 %v4012_v44  ;;  %6155 = vmatprep.mubr.f32.mxu1 %v5392_v59  ;;  %v17281_v44 = vld [vmem:[#allocation245_spill] sm:$0xff]  ;;  %v3963_v59 = vld [vmem:[%s14852_s28 + $0x210] sm:$0xff] }
 0x540   : > { %4776 = vmatmul.mubr.f32.gmra.mrb[18].mxu0 %v4011_v29  ;;  %6156 = vmatmul.mubr.f32.gmra.mrb[18].mxu1 %v5391_v49  ;;  %v17282_v29 = vld [vmem:[#allocation246_spill] sm:$0xff] }
 0x541   : > { %8906 = vmatpush1.bf16.msra.mxu0 %v17255_v56  ;;  %9706 = vmatpush1.bf16.msra.mxu1 %v17255_v56  ;;  %v3989_v49 = vld [vmem:[%s14852_s28 + $0x2e0] sm:$0xff]  ;;  %v5368_v56 = vld [vmem:[%s14858_s7 + $0x2d8] sm:$0xff] }
 0x542   : > { %8908 = vmatprep.subr.bf16.mxu0 %v17256_v55  ;;  %9708 = vmatprep.subr.bf16.mxu1 %v17256_v55  ;;  %v17284_v55 = vld [vmem:[#allocation248_spill] sm:$0xff] }
 0x543   : > { %4846 = vmatprep.mubr.f32.mxu0 %v3914_v18  ;;  %6226 = vmatprep.mubr.f32.mxu1 %v5294_v41  ;;  %v17283_v18 = vld [vmem:[#allocation247_spill] sm:$0xff]  ;;  %v3988_v41 = vld [vmem:[%s14852_s28 + $0x2d8] sm:$0xff] }
 0x545   : > { %8910 = vmatpush1.bf16.msra.mxu0 %v17257_v10  ;;  %9710 = vmatpush1.bf16.msra.mxu1 %v17257_v10  ;;  %v4014_v10 = vld [vmem:[%s14852_s28 + $0x3a8] sm:$0xff] }
 0x546   : > { %8912 = vmatprep.subr.bf16.mxu0 %v17258_v30  ;;  %9712 = vmatprep.subr.bf16.mxu1 %v17258_v30  ;;  %v5394_v30 = vld [vmem:[%s14858_s7 + $0x3a8] sm:$0xff] }
 0x549   : > { %8914 = vmatpush1.bf16.msra.mxu0 %v17259_v8  ;;  %9714 = vmatpush1.bf16.msra.mxu1 %v17259_v8  ;;  %v17285_v8 = vld [vmem:[#allocation249_spill] sm:$0xff] }
 0x54a   : > { %8916 = vmatprep.subr.bf16.mxu0 %v17260_v13  ;;  %9716 = vmatprep.subr.bf16.mxu1 %v17260_v13  ;;  %v4013_v13 = vld [vmem:[%s14852_s28 + $0x3a0] sm:$0xff] }
 0x54d   : > { %8918 = vmatpush1.bf16.msra.mxu0 %v17261_v40  ;;  %9718 = vmatpush1.bf16.msra.mxu1 %v17261_v40  ;;  %v5393_v40 = vld [vmem:[%s14858_s7 + $0x3a0] sm:$0xff] }
 0x54e   : > { %8920 = vmatprep.subr.bf16.mxu0 %v17262_v19  ;;  %9720 = vmatprep.subr.bf16.mxu1 %v17262_v19  ;;  %v17286_v19 = vld [vmem:[#allocation250_spill] sm:$0xff] }
 0x551   : > { %8922 = vmatpush1.bf16.msra.mxu0 %v17263_v20  ;;  %9722 = vmatpush1.bf16.msra.mxu1 %v17263_v20  ;;  %v3916_v20 = vld [vmem:[%s14852_s28 + $0x98] sm:$0xff] }
 0x552   : > { %8924 = vmatprep.subr.bf16.mxu0 %v17264_v25  ;;  %9724 = vmatprep.subr.bf16.mxu1 %v17264_v25  ;;  %v5296_v25 = vld [vmem:[%s14858_s7 + $0x98] sm:$0xff] }
 0x555   : > { %8926 = vmatpush1.bf16.msra.mxu0 %v17265_v31  ;;  %9726 = vmatpush1.bf16.msra.mxu1 %v17265_v31  ;;  %v17287_v31 = vld [vmem:[#allocation251_spill] sm:$0xff] }
 0x556   : > { %8928 = vmatprep.subr.bf16.mxu0 %v17266_v32  ;;  %9728 = vmatprep.subr.bf16.mxu1 %v17266_v32  ;;  %v17288_v32 = vld [vmem:[#allocation252_spill] sm:$0xff] }
 0x559   : > { %8930 = vmatpush1.bf16.msra.mxu0 %v17267_v37  ;;  %9730 = vmatpush1.bf16.msra.mxu1 %v17267_v37  ;;  %v17289_v37 = vld [vmem:[#allocation253_spill] sm:$0xff] }
 0x55a   : > { %8932 = vmatprep.subr.bf16.mxu0 %v17268_v38  ;;  %9732 = vmatprep.subr.bf16.mxu1 %v17268_v38  ;;  %v17290_v38 = vld [vmem:[#allocation254_spill] sm:$0xff] }
 0x55d   : > { %8934 = vmatpush1.bf16.msra.mxu0 %v17269_v45  ;;  %9734 = vmatpush1.bf16.msra.mxu1 %v17269_v45  ;;  %v17291_v45 = vld [vmem:[#allocation255_spill] sm:$0xff] }
 0x55e   : > { %8936 = vmatprep.subr.bf16.mxu0 %v17270_v46  ;;  %9736 = vmatprep.subr.bf16.mxu1 %v17270_v46  ;;  %v17292_v46 = vld [vmem:[#allocation256_spill] sm:$0xff] }
 0x561   : > { %8938 = vmatpush1.bf16.msra.mxu0 %v17271_v51  ;;  %9738 = vmatpush1.bf16.msra.mxu1 %v17271_v51  ;;  %v17293_v51 = vld [vmem:[#allocation257_spill] sm:$0xff] }
 0x562   : > { %8940 = vmatprep.subr.bf16.mxu0 %v17272_v52  ;;  %9740 = vmatprep.subr.bf16.mxu1 %v17272_v52  ;;  %v17294_v52 = vld [vmem:[#allocation258_spill] sm:$0xff] }
 0x565   : > { %8942 = vmatpush1.bf16.msra.mxu0 %v17273_v57  ;;  %9742 = vmatpush1.bf16.msra.mxu1 %v17273_v57  ;;  %v17295_v57 = vld [vmem:[#allocation259_spill] sm:$0xff] }
 0x566   : > { %8944 = vmatprep.subr.bf16.mxu0 %v17274_v58  ;;  %9744 = vmatprep.subr.bf16.mxu1 %v17274_v58  ;;  %v17296_v58 = vld [vmem:[#allocation260_spill] sm:$0xff] }
 0x569   : > { %8946 = vmatpush1.bf16.msra.mxu0 %v17275_v6  ;;  %9746 = vmatpush1.bf16.msra.mxu1 %v17275_v6  ;;  %v17297_v6 = vld [vmem:[#allocation261_spill] sm:$0xff] }
 0x56a   : > { %8948 = vmatprep.subr.bf16.mxu0 %v17276_v9  ;;  %9748 = vmatprep.subr.bf16.mxu1 %v17276_v9  ;;  %v17298_v9 = vld [vmem:[#allocation262_spill] sm:$0xff] }
 0x56d   : > { %8950 = vmatpush1.bf16.msra.mxu0 %v17277_v17  ;;  %9750 = vmatpush1.bf16.msra.mxu1 %v17277_v17  ;;  %v17299_v17 = vld [vmem:[#allocation263_spill] sm:$0xff] }
 0x56e   : > { %8952 = vmatprep.subr.bf16.mxu0 %v17278_v35  ;;  %9752 = vmatprep.subr.bf16.mxu1 %v17278_v35  ;;  %v17302_v35 = vld [vmem:[#allocation266_spill] sm:$0xff] }
 0x570   : > { %4847 = vmatmul.mubr.f32.vlgmr.msra.gmra.mrb[10].mxu0 %v3913_v24  ;;  %6227 = vmatmul.mubr.f32.vlgmr.msra.gmra.mrb[10].mxu1 %v5293_v34  ;;  %v17300_v24 = vld [vmem:[#allocation264_spill] sm:$0xff]  ;;  %v17301_v34 = vld [vmem:[#allocation265_spill] sm:$0xff] }
 0x571   : > { %8954 = vmatpush1.bf16.msra.mxu0 %v17279_v50  ;;  %9754 = vmatpush1.bf16.msra.mxu1 %v17279_v50  ;;  %v17305_v50 = vld [vmem:[#allocation269_spill] sm:$0xff] }
 0x572   : > { %8956 = vmatprep.subr.bf16.mxu0 %v17280_v1  ;;  %9756 = vmatprep.subr.bf16.mxu1 %v17280_v1  ;;  %v17308_v1 = vld [vmem:[#allocation272_spill] sm:$0xff] }
 0x573   : > { %4852 = vmatprep.mubr.f32.mxu0 %v3939_v42  ;;  %6232 = vmatprep.mubr.f32.mxu1 %v5319_v43  ;;  %v17303_v42 = vld [vmem:[#allocation267_spill] sm:$0xff]  ;;  %v17304_v43 = vld [vmem:[#allocation268_spill] sm:$0xff] }
 0x574   : > { %4853 = vmatmul.mubr.f32.gmra.mrb[12].mxu0 %v3938_v53  ;;  %6233 = vmatmul.mubr.f32.gmra.mrb[12].mxu1 %v5318_v61  ;;  %v17306_v53 = vld [vmem:[#allocation270_spill] sm:$0xff]  ;;  %v17307_v61 = vld [vmem:[#allocation271_spill] sm:$0xff] }
 0x575   : > { %8958 = vmatpush1.bf16.msra.mxu0 %v17281_v44  ;;  %9758 = vmatpush1.bf16.msra.mxu1 %v17281_v44  ;;  %v5295_v44 = vld [vmem:[%s14858_s7 + $0x90] sm:$0xff] }
 0x576   : > { %8960 = vmatprep.subr.bf16.mxu0 %v17282_v29  ;;  %9760 = vmatprep.subr.bf16.mxu1 %v17282_v29  ;;  %v5321_v29 = vld [vmem:[%s14858_s7 + $0x160] sm:$0xff] }
 0x577   : > { %4858 = vmatprep.mubr.f32.mxu0 %v3964_v15  ;;  %6238 = vmatprep.mubr.f32.mxu1 %v5344_v22  ;;  %v17309_v15 = vld [vmem:[#allocation273_spill] sm:$0xff]  ;;  %v3915_v22 = vld [vmem:[%s14852_s28 + $0x90] sm:$0xff] }
 0x578   : > { %4859 = vmatmul.mubr.f32.gmra.mrb[14].mxu0 %v3963_v59  ;;  %6239 = vmatmul.mubr.f32.gmra.mrb[14].mxu1 %v5343_v2  ;;  %v17310_v59 = vld [vmem:[#allocation274_spill] sm:$0xff] }
 0x579   : > { %8962 = vmatpush1.bf16.msra.mxu0 %v17283_v18  ;;  %9762 = vmatpush1.bf16.msra.mxu1 %v17283_v18  ;;  %v3941_v2 = vld [vmem:[%s14852_s28 + $0x160] sm:$0xff]  ;;  %v5320_v18 = vld [vmem:[%s14858_s7 + $0x158] sm:$0xff] }
 0x57a   : > { %8964 = vmatprep.subr.bf16.mxu0 %v17284_v55  ;;  %9764 = vmatprep.subr.bf16.mxu1 %v17284_v55  ;;  %v5346_v55 = vld [vmem:[%s14858_s7 + $0x228] sm:$0xff] }
 0x57b   : > { %4864 = vmatprep.mubr.f32.mxu0 %v3989_v49  ;;  %6244 = vmatprep.mubr.f32.mxu1 %v5369_v62  ;;  %v17311_v49 = vld [vmem:[#allocation275_spill] sm:$0xff]  ;;  %v3940_v62 = vld [vmem:[%s14852_s28 + $0x158] sm:$0xff] }
 0x57c   : > { %4865 = vmatmul.mubr.f32.gmra.mrb[16].mxu0 %v3988_v41  ;;  %6245 = vmatmul.mubr.f32.gmra.mrb[16].mxu1 %v5368_v56  ;;  %v17312_v41 = vld [vmem:[#allocation276_spill] sm:$0xff]  ;;  %v3966_v56 = vld [vmem:[%s14852_s28 + $0x228] sm:$0xff] }
 0x57d   : > { %8966 = vmatpush1.bf16.msra.mxu0 %v17285_v8  ;;  %9766 = vmatpush1.bf16.msra.mxu1 %v17285_v8  ;;  %v5345_v8 = vld [vmem:[%s14858_s7 + $0x220] sm:$0xff] }
 0x57e   : > { %8968 = vmatprep.subr.bf16.mxu0 %v17286_v19  ;;  %9768 = vmatprep.subr.bf16.mxu1 %v17286_v19  ;;  %v5371_v19 = vld [vmem:[%s14858_s7 + $0x2f0] sm:$0xff] }
 0x57f   : > { %4870 = vmatprep.mubr.f32.mxu0 %v4014_v10  ;;  %6250 = vmatprep.mubr.f32.mxu1 %v5394_v30  ;;  %v17313_v10 = vld [vmem:[#allocation277_spill] sm:$0xff]  ;;  %v3965_v30 = vld [vmem:[%s14852_s28 + $0x220] sm:$0xff] }
 0x580   : > { %4871 = vmatmul.mubr.f32.gmra.mrb[18].mxu0 %v4013_v13  ;;  %6251 = vmatmul.mubr.f32.gmra.mrb[18].mxu1 %v5393_v40  ;;  %v17314_v13 = vld [vmem:[#allocation278_spill] sm:$0xff]  ;;  %v3991_v40 = vld [vmem:[%s14852_s28 + $0x2f0] sm:$0xff] }
 0x581   : > { %8970 = vmatpush1.bf16.msra.mxu0 %v17287_v31  ;;  %9770 = vmatpush1.bf16.msra.mxu1 %v17287_v31  ;;  %v5370_v31 = vld [vmem:[%s14858_s7 + $0x2e8] sm:$0xff] }
 0x582   : > { %8972 = vmatprep.subr.bf16.mxu0 %v17288_v32  ;;  %9772 = vmatprep.subr.bf16.mxu1 %v17288_v32  ;;  %v17316_v32 = vld [vmem:[#allocation280_spill] sm:$0xff] }
 0x583   : > { %4941 = vmatprep.mubr.f32.mxu0 %v3916_v20  ;;  %6321 = vmatprep.mubr.f32.mxu1 %v5296_v25  ;;  %v17315_v20 = vld [vmem:[#allocation279_spill] sm:$0xff] }
 0x584   : > { %v3990_v25 = vld [vmem:[%s14852_s28 + $0x2e8] sm:$0xff] }
 0x585   : > { %8974 = vmatpush1.bf16.msra.mxu0 %v17289_v37  ;;  %9774 = vmatpush1.bf16.msra.mxu1 %v17289_v37  ;;  %v4016_v37 = vld [vmem:[%s14852_s28 + $0x3b8] sm:$0xff] }
 0x586   : > { %8976 = vmatprep.subr.bf16.mxu0 %v17290_v38  ;;  %9776 = vmatprep.subr.bf16.mxu1 %v17290_v38  ;;  %v5396_v38 = vld [vmem:[%s14858_s7 + $0x3b8] sm:$0xff] }
 0x589   : > { %8978 = vmatpush1.bf16.msra.mxu0 %v17291_v45  ;;  %9778 = vmatpush1.bf16.msra.mxu1 %v17291_v45  ;;  %v17317_v45 = vld [vmem:[#allocation281_spill] sm:$0xff] }
 0x58a   : > { %8980 = vmatprep.subr.bf16.mxu0 %v17292_v46  ;;  %9780 = vmatprep.subr.bf16.mxu1 %v17292_v46  ;;  %v4015_v46 = vld [vmem:[%s14852_s28 + $0x3b0] sm:$0xff] }
 0x58d   : > { %8982 = vmatpush1.bf16.msra.mxu0 %v17293_v51  ;;  %9782 = vmatpush1.bf16.msra.mxu1 %v17293_v51  ;;  %v5395_v51 = vld [vmem:[%s14858_s7 + $0x3b0] sm:$0xff] }
 0x58e   : > { %8984 = vmatprep.subr.bf16.mxu0 %v17294_v52  ;;  %9784 = vmatprep.subr.bf16.mxu1 %v17294_v52  ;;  %v17318_v52 = vld [vmem:[#allocation282_spill] sm:$0xff] }
 0x591   : > { %8986 = vmatpush1.bf16.msra.mxu0 %v17295_v57  ;;  %9786 = vmatpush1.bf16.msra.mxu1 %v17295_v57  ;;  %v3918_v57 = vld [vmem:[%s14852_s28 + $0xa8] sm:$0xff] }
 0x592   : > { %8988 = vmatprep.subr.bf16.mxu0 %v17296_v58  ;;  %9788 = vmatprep.subr.bf16.mxu1 %v17296_v58  ;;  %v5298_v58 = vld [vmem:[%s14858_s7 + $0xa8] sm:$0xff] }
 0x595   : > { %8990 = vmatpush1.bf16.msra.mxu0 %v17297_v6  ;;  %9790 = vmatpush1.bf16.msra.mxu1 %v17297_v6  ;;  %v17319_v6 = vld [vmem:[#allocation283_spill] sm:$0xff] }
 0x596   : > { %8992 = vmatprep.subr.bf16.mxu0 %v17298_v9  ;;  %9792 = vmatprep.subr.bf16.mxu1 %v17298_v9  ;;  %v17320_v9 = vld [vmem:[#allocation284_spill] sm:$0xff] }
 0x599   : > { %8994 = vmatpush1.bf16.msra.mxu0 %v17299_v17  ;;  %9794 = vmatpush1.bf16.msra.mxu1 %v17299_v17  ;;  %v17321_v17 = vld [vmem:[#allocation285_spill] sm:$0xff] }
 0x59a   : > { %8996 = vmatprep.subr.bf16.mxu0 %v17300_v24  ;;  %9796 = vmatprep.subr.bf16.mxu1 %v17300_v24  ;;  %v17322_v24 = vld [vmem:[#allocation286_spill] sm:$0xff] }
 0x59d   : > { %8998 = vmatpush1.bf16.msra.mxu0 %v17301_v34  ;;  %9798 = vmatpush1.bf16.msra.mxu1 %v17301_v34  ;;  %v17323_v34 = vld [vmem:[#allocation287_spill] sm:$0xff] }
 0x59e   : > { %9000 = vmatprep.subr.bf16.mxu0 %v17302_v35  ;;  %9800 = vmatprep.subr.bf16.mxu1 %v17302_v35  ;;  %v17324_v35 = vld [vmem:[#allocation288_spill] sm:$0xff] }
 0x5a1   : > { %9002 = vmatpush1.bf16.msra.mxu0 %v17303_v42  ;;  %9802 = vmatpush1.bf16.msra.mxu1 %v17303_v42  ;;  %v17325_v42 = vld [vmem:[#allocation289_spill] sm:$0xff] }
 0x5a2   : > { %9004 = vmatprep.subr.bf16.mxu0 %v17304_v43  ;;  %9804 = vmatprep.subr.bf16.mxu1 %v17304_v43  ;;  %v17326_v43 = vld [vmem:[#allocation290_spill] sm:$0xff] }
 0x5a5   : > { %9006 = vmatpush1.bf16.msra.mxu0 %v17305_v50  ;;  %9806 = vmatpush1.bf16.msra.mxu1 %v17305_v50  ;;  %v17327_v50 = vld [vmem:[#allocation291_spill] sm:$0xff] }
 0x5a6   : > { %9008 = vmatprep.subr.bf16.mxu0 %v17306_v53  ;;  %9808 = vmatprep.subr.bf16.mxu1 %v17306_v53  ;;  %v17328_v53 = vld [vmem:[#allocation292_spill] sm:$0xff] }
 0x5a9   : > { %9010 = vmatpush1.bf16.msra.mxu0 %v17307_v61  ;;  %9810 = vmatpush1.bf16.msra.mxu1 %v17307_v61  ;;  %v17329_v61 = vld [vmem:[#allocation293_spill] sm:$0xff] }
 0x5aa   : > { %9012 = vmatprep.subr.bf16.mxu0 %v17308_v1  ;;  %9812 = vmatprep.subr.bf16.mxu1 %v17308_v1  ;;  %v17330_v1 = vld [vmem:[#allocation294_spill] sm:$0xff] }
 0x5ad   : > { %9014 = vmatpush1.bf16.msra.mxu0 %v17309_v15  ;;  %9814 = vmatpush1.bf16.msra.mxu1 %v17309_v15  ;;  %v17331_v15 = vld [vmem:[#allocation295_spill] sm:$0xff] }
 0x5ae   : > { %9016 = vmatprep.subr.bf16.mxu0 %v17310_v59  ;;  %9816 = vmatprep.subr.bf16.mxu1 %v17310_v59  ;;  %v17334_v59 = vld [vmem:[#allocation298_spill] sm:$0xff] }
 0x5b0   : > { %4942 = vmatmul.mubr.f32.vlgmr.msra.gmra.mrb[10].mxu0 %v3915_v22  ;;  %6322 = vmatmul.mubr.f32.vlgmr.msra.gmra.mrb[10].mxu1 %v5295_v44  ;;  %v17332_v22 = vld [vmem:[#allocation296_spill] sm:$0xff]  ;;  %v17333_v44 = vld [vmem:[#allocation297_spill] sm:$0xff] }
 0x5b1   : > { %9018 = vmatpush1.bf16.msra.mxu0 %v17311_v49  ;;  %9818 = vmatpush1.bf16.msra.mxu1 %v17311_v49  ;;  %v17337_v49 = vld [vmem:[#allocation301_spill] sm:$0xff] }
 0x5b2   : > { %9020 = vmatprep.subr.bf16.mxu0 %v17312_v41  ;;  %9820 = vmatprep.subr.bf16.mxu1 %v17312_v41  ;;  %v17340_v41 = vld [vmem:[#allocation304_spill] sm:$0xff] }
 0x5b3   : > { %4947 = vmatprep.mubr.f32.mxu0 %v3941_v2  ;;  %6327 = vmatprep.mubr.f32.mxu1 %v5321_v29  ;;  %v17335_v2 = vld [vmem:[#allocation299_spill] sm:$0xff]  ;;  %v17336_v29 = vld [vmem:[#allocation300_spill] sm:$0xff] }
 0x5b4   : > { %4948 = vmatmul.mubr.f32.gmra.mrb[12].mxu0 %v3940_v62  ;;  %6328 = vmatmul.mubr.f32.gmra.mrb[12].mxu1 %v5320_v18  ;;  %v17338_v62 = vld [vmem:[#allocation302_spill] sm:$0xff]  ;;  %v17339_v18 = vld [vmem:[#allocation303_spill] sm:$0xff] }
 0x5b5   : > { %9022 = vmatpush1.bf16.msra.mxu0 %v17313_v10  ;;  %9822 = vmatpush1.bf16.msra.mxu1 %v17313_v10  ;;  %v5297_v10 = vld [vmem:[%s14858_s7 + $0xa0] sm:$0xff] }
 0x5b6   : > { %9024 = vmatprep.subr.bf16.mxu0 %v17314_v13  ;;  %9824 = vmatprep.subr.bf16.mxu1 %v17314_v13  ;;  %v5323_v13 = vld [vmem:[%s14858_s7 + $0x170] sm:$0xff] }
 0x5b7   : > { %4953 = vmatprep.mubr.f32.mxu0 %v3966_v56  ;;  %6333 = vmatprep.mubr.f32.mxu1 %v5346_v55  ;;  %v17341_v56 = vld [vmem:[#allocation305_spill] sm:$0xff]  ;;  %v3917_v55 = vld [vmem:[%s14852_s28 + $0xa0] sm:$0xff] }
 0x5b8   : > { %4954 = vmatmul.mubr.f32.gmra.mrb[14].mxu0 %v3965_v30  ;;  %6334 = vmatmul.mubr.f32.gmra.mrb[14].mxu1 %v5345_v8  ;;  %v17342_v30 = vld [vmem:[#allocation306_spill] sm:$0xff]  ;;  %v3943_v8 = vld [vmem:[%s14852_s28 + $0x170] sm:$0xff] }
 0x5b9   : > { %9026 = vmatpush1.bf16.msra.mxu0 %v17315_v20  ;;  %9826 = vmatpush1.bf16.msra.mxu1 %v17315_v20  ;;  %v5322_v20 = vld [vmem:[%s14858_s7 + $0x168] sm:$0xff] }
 0x5ba   : > { %9028 = vmatprep.subr.bf16.mxu0 %v17316_v32  ;;  %9828 = vmatprep.subr.bf16.mxu1 %v17316_v32  ;;  %v5348_v32 = vld [vmem:[%s14858_s7 + $0x238] sm:$0xff] }
 0x5bb   : > { %4959 = vmatprep.mubr.f32.mxu0 %v3991_v40  ;;  %6339 = vmatprep.mubr.f32.mxu1 %v5371_v19  ;;  %v17343_v40 = vld [vmem:[#allocation307_spill] sm:$0xff] }
 0x5bc   : > { %4960 = vmatmul.mubr.f32.gmra.mrb[16].mxu0 %v3990_v25  ;;  %6340 = vmatmul.mubr.f32.gmra.mrb[16].mxu1 %v5370_v31  ;;  %v3942_v19 = vld [vmem:[%s14852_s28 + $0x168] sm:$0xff]  ;;  %v17344_v25 = vld [vmem:[#allocation308_spill] sm:$0xff]  ;;  %v3968_v31 = vld [vmem:[%s14852_s28 + $0x238] sm:$0xff] }
 0x5bd   : > { %9030 = vmatpush1.bf16.msra.mxu0 %v17317_v45  ;;  %9830 = vmatpush1.bf16.msra.mxu1 %v17317_v45  ;;  %v5347_v45 = vld [vmem:[%s14858_s7 + $0x230] sm:$0xff] }
 0x5be   : > { %9032 = vmatprep.subr.bf16.mxu0 %v17318_v52  ;;  %9832 = vmatprep.subr.bf16.mxu1 %v17318_v52  ;;  %v5373_v52 = vld [vmem:[%s14858_s7 + $0x300] sm:$0xff] }
 0x5bf   : > { %4965 = vmatprep.mubr.f32.mxu0 %v4016_v37  ;;  %6345 = vmatprep.mubr.f32.mxu1 %v5396_v38  ;;  %v17345_v37 = vld [vmem:[#allocation309_spill] sm:$0xff]  ;;  %v3967_v38 = vld [vmem:[%s14852_s28 + $0x230] sm:$0xff] }
 0x5c0   : > { %4966 = vmatmul.mubr.f32.gmra.mrb[18].mxu0 %v4015_v46  ;;  %6346 = vmatmul.mubr.f32.gmra.mrb[18].mxu1 %v5395_v51  ;;  %v17346_v46 = vld [vmem:[#allocation310_spill] sm:$0xff] }
 0x5c1   : > { %9034 = vmatpush1.bf16.msra.mxu0 %v17319_v6  ;;  %9834 = vmatpush1.bf16.msra.mxu1 %v17319_v6  ;;  %v3993_v51 = vld [vmem:[%s14852_s28 + $0x300] sm:$0xff]  ;;  %v5372_v6 = vld [vmem:[%s14858_s7 + $0x2f8] sm:$0xff] }
 0x5c2   : > { %9036 = vmatprep.subr.bf16.mxu0 %v17320_v9  ;;  %9836 = vmatprep.subr.bf16.mxu1 %v17320_v9  ;;  %v17348_v9 = vld [vmem:[#allocation312_spill] sm:$0xff] }
 0x5c3   : > { %5036 = vmatprep.mubr.f32.mxu0 %v3918_v57  ;;  %6416 = vmatprep.mubr.f32.mxu1 %v5298_v58  ;;  %v17347_v57 = vld [vmem:[#allocation311_spill] sm:$0xff]  ;;  %v3992_v58 = vld [vmem:[%s14852_s28 + $0x2f8] sm:$0xff] }
 0x5c5   : > { %9038 = vmatpush1.bf16.msra.mxu0 %v17321_v17  ;;  %9838 = vmatpush1.bf16.msra.mxu1 %v17321_v17  ;;  %v4018_v17 = vld [vmem:[%s14852_s28 + $0x3c8] sm:$0xff] }
 0x5c6   : > { %9040 = vmatprep.subr.bf16.mxu0 %v17322_v24  ;;  %9840 = vmatprep.subr.bf16.mxu1 %v17322_v24  ;;  %v5398_v24 = vld [vmem:[%s14858_s7 + $0x3c8] sm:$0xff] }
 0x5c9   : > { %9042 = vmatpush1.bf16.msra.mxu0 %v17323_v34  ;;  %9842 = vmatpush1.bf16.msra.mxu1 %v17323_v34  ;;  %v17349_v34 = vld [vmem:[#allocation313_spill] sm:$0xff] }
 0x5ca   : > { %9044 = vmatprep.subr.bf16.mxu0 %v17324_v35  ;;  %9844 = vmatprep.subr.bf16.mxu1 %v17324_v35  ;;  %v4017_v35 = vld [vmem:[%s14852_s28 + $0x3c0] sm:$0xff] }
 0x5cd   : > { %9046 = vmatpush1.bf16.msra.mxu0 %v17325_v42  ;;  %9846 = vmatpush1.bf16.msra.mxu1 %v17325_v42  ;;  %v5397_v42 = vld [vmem:[%s14858_s7 + $0x3c0] sm:$0xff] }
 0x5ce   : > { %9048 = vmatprep.subr.bf16.mxu0 %v17326_v43  ;;  %9848 = vmatprep.subr.bf16.mxu1 %v17326_v43  ;;  %v17350_v43 = vld [vmem:[#allocation314_spill] sm:$0xff] }
 0x5d1   : > { %9050 = vmatpush1.bf16.msra.mxu0 %v17327_v50  ;;  %9850 = vmatpush1.bf16.msra.mxu1 %v17327_v50  ;;  %v3920_v50 = vld [vmem:[%s14852_s28 + $0xb8] sm:$0xff] }
 0x5d2   : > { %9052 = vmatprep.subr.bf16.mxu0 %v17328_v53  ;;  %9852 = vmatprep.subr.bf16.mxu1 %v17328_v53  ;;  %v5300_v53 = vld [vmem:[%s14858_s7 + $0xb8] sm:$0xff] }
 0x5d5   : > { %9054 = vmatpush1.bf16.msra.mxu0 %v17329_v61  ;;  %9854 = vmatpush1.bf16.msra.mxu1 %v17329_v61  ;;  %v17351_v61 = vld [vmem:[#allocation315_spill] sm:$0xff] }
 0x5d6   : > { %9056 = vmatprep.subr.bf16.mxu0 %v17330_v1  ;;  %9856 = vmatprep.subr.bf16.mxu1 %v17330_v1  ;;  %v17352_v1 = vld [vmem:[#allocation316_spill] sm:$0xff] }
 0x5d9   : > { %9058 = vmatpush1.bf16.msra.mxu0 %v17331_v15  ;;  %9858 = vmatpush1.bf16.msra.mxu1 %v17331_v15  ;;  %v17353_v15 = vld [vmem:[#allocation317_spill] sm:$0xff] }
 0x5da   : > { %9060 = vmatprep.subr.bf16.mxu0 %v17332_v22  ;;  %9860 = vmatprep.subr.bf16.mxu1 %v17332_v22  ;;  %v17354_v22 = vld [vmem:[#allocation318_spill] sm:$0xff] }
 0x5dd   : > { %9062 = vmatpush1.bf16.msra.mxu0 %v17333_v44  ;;  %9862 = vmatpush1.bf16.msra.mxu1 %v17333_v44  ;;  %v17355_v44 = vld [vmem:[#allocation319_spill] sm:$0xff] }
 0x5de   : > { %9064 = vmatprep.subr.bf16.mxu0 %v17334_v59  ;;  %9864 = vmatprep.subr.bf16.mxu1 %v17334_v59  ;;  %v17356_v59 = vld [vmem:[#allocation320_spill] sm:$0xff] }
 0x5e1   : > { %9066 = vmatpush1.bf16.msra.mxu0 %v17335_v2  ;;  %9866 = vmatpush1.bf16.msra.mxu1 %v17335_v2  ;;  %v17357_v2 = vld [vmem:[#allocation321_spill] sm:$0xff] }
 0x5e2   : > { %9068 = vmatprep.subr.bf16.mxu0 %v17336_v29  ;;  %9868 = vmatprep.subr.bf16.mxu1 %v17336_v29  ;;  %v17358_v29 = vld [vmem:[#allocation322_spill] sm:$0xff] }
 0x5e5   : > { %9070 = vmatpush1.bf16.msra.mxu0 %v17337_v49  ;;  %9870 = vmatpush1.bf16.msra.mxu1 %v17337_v49  ;;  %v17359_v49 = vld [vmem:[#allocation323_spill] sm:$0xff] }
 0x5e6   : > { %9072 = vmatprep.subr.bf16.mxu0 %v17338_v62  ;;  %9872 = vmatprep.subr.bf16.mxu1 %v17338_v62  ;;  %v17360_v62 = vld [vmem:[#allocation324_spill] sm:$0xff] }
 0x5e9   : > { %9074 = vmatpush1.bf16.msra.mxu0 %v17339_v18  ;;  %9874 = vmatpush1.bf16.msra.mxu1 %v17339_v18  ;;  %v17361_v18 = vld [vmem:[#allocation325_spill] sm:$0xff] }
 0x5ea   : > { %9076 = vmatprep.subr.bf16.mxu0 %v17340_v41  ;;  %9876 = vmatprep.subr.bf16.mxu1 %v17340_v41  ;;  %v17362_v41 = vld [vmem:[#allocation326_spill] sm:$0xff] }
 0x5ed   : > { %9078 = vmatpush1.bf16.msra.mxu0 %v17341_v56  ;;  %9878 = vmatpush1.bf16.msra.mxu1 %v17341_v56  ;;  %v17363_v56 = vld [vmem:[#allocation327_spill] sm:$0xff] }
 0x5ee   : > { %9080 = vmatprep.subr.bf16.mxu0 %v17342_v30  ;;  %9880 = vmatprep.subr.bf16.mxu1 %v17342_v30  ;;  %v17366_v30 = vld [vmem:[#allocation330_spill] sm:$0xff] }
 0x5f0   : > { %5037 = vmatmul.mubr.f32.vlgmr.msra.gmra.mrb[10].mxu0 %v3917_v55  ;;  %6417 = vmatmul.mubr.f32.vlgmr.msra.gmra.mrb[10].mxu1 %v5297_v10  ;;  %v17364_v55 = vld [vmem:[#allocation328_spill] sm:$0xff]  ;;  %v17365_v10 = vld [vmem:[#allocation329_spill] sm:$0xff] }
 0x5f1   : > { %9082 = vmatpush1.bf16.msra.mxu0 %v17343_v40  ;;  %9882 = vmatpush1.bf16.msra.mxu1 %v17343_v40  ;;  %v17369_v40 = vld [vmem:[#allocation333_spill] sm:$0xff] }
 0x5f2   : > { %9084 = vmatprep.subr.bf16.mxu0 %v17344_v25  ;;  %9884 = vmatprep.subr.bf16.mxu1 %v17344_v25  ;;  %v17372_v25 = vld [vmem:[#allocation336_spill] sm:$0xff] }
 0x5f3   : > { %5042 = vmatprep.mubr.f32.mxu0 %v3943_v8  ;;  %6422 = vmatprep.mubr.f32.mxu1 %v5323_v13  ;;  %v17367_v8 = vld [vmem:[#allocation331_spill] sm:$0xff]  ;;  %v17368_v13 = vld [vmem:[#allocation332_spill] sm:$0xff] }
 0x5f4   : > { %5043 = vmatmul.mubr.f32.gmra.mrb[12].mxu0 %v3942_v19  ;;  %6423 = vmatmul.mubr.f32.gmra.mrb[12].mxu1 %v5322_v20  ;;  %v17370_v19 = vld [vmem:[#allocation334_spill] sm:$0xff]  ;;  %v17371_v20 = vld [vmem:[#allocation335_spill] sm:$0xff] }
 0x5f5   : > { %9086 = vmatpush1.bf16.msra.mxu0 %v17345_v37  ;;  %9886 = vmatpush1.bf16.msra.mxu1 %v17345_v37  ;;  %v5299_v37 = vld [vmem:[%s14858_s7 + $0xb0] sm:$0xff] }
 0x5f6   : > { %9088 = vmatprep.subr.bf16.mxu0 %v17346_v46  ;;  %9888 = vmatprep.subr.bf16.mxu1 %v17346_v46  ;;  %v5325_v46 = vld [vmem:[%s14858_s7 + $0x180] sm:$0xff] }
 0x5f7   : > { %5048 = vmatprep.mubr.f32.mxu0 %v3968_v31  ;;  %6428 = vmatprep.mubr.f32.mxu1 %v5348_v32  ;;  %v17373_v31 = vld [vmem:[#allocation337_spill] sm:$0xff]  ;;  %v3919_v32 = vld [vmem:[%s14852_s28 + $0xb0] sm:$0xff] }
 0x5f8   : > { %5049 = vmatmul.mubr.f32.gmra.mrb[14].mxu0 %v3967_v38  ;;  %6429 = vmatmul.mubr.f32.gmra.mrb[14].mxu1 %v5347_v45  ;;  %v17374_v38 = vld [vmem:[#allocation338_spill] sm:$0xff] }
 0x5f9   : > { %9090 = vmatpush1.bf16.msra.mxu0 %v17347_v57  ;;  %9890 = vmatpush1.bf16.msra.mxu1 %v17347_v57  ;;  %v3945_v45 = vld [vmem:[%s14852_s28 + $0x180] sm:$0xff]  ;;  %v5324_v57 = vld [vmem:[%s14858_s7 + $0x178] sm:$0xff] }
 0x5fa   : > { %9092 = vmatprep.subr.bf16.mxu0 %v17348_v9  ;;  %9892 = vmatprep.subr.bf16.mxu1 %v17348_v9  ;;  %v5350_v9 = vld [vmem:[%s14858_s7 + $0x248] sm:$0xff] }
 0x5fb   : > { %5054 = vmatprep.mubr.f32.mxu0 %v3993_v51  ;;  %6434 = vmatprep.mubr.f32.mxu1 %v5373_v52  ;;  %v17375_v51 = vld [vmem:[#allocation339_spill] sm:$0xff]  ;;  %v3944_v52 = vld [vmem:[%s14852_s28 + $0x178] sm:$0xff] }
 0x5fc   : > { %5055 = vmatmul.mubr.f32.gmra.mrb[16].mxu0 %v3992_v58  ;;  %6435 = vmatmul.mubr.f32.gmra.mrb[16].mxu1 %v5372_v6  ;;  %v17376_v58 = vld [vmem:[#allocation340_spill] sm:$0xff]  ;;  %v3970_v6 = vld [vmem:[%s14852_s28 + $0x248] sm:$0xff] }
 0x5fd   : > { %9094 = vmatpush1.bf16.msra.mxu0 %v17349_v34  ;;  %9894 = vmatpush1.bf16.msra.mxu1 %v17349_v34  ;;  %v5349_v34 = vld [vmem:[%s14858_s7 + $0x240] sm:$0xff] }
 0x5fe   : > { %9096 = vmatprep.subr.bf16.mxu0 %v17350_v43  ;;  %9896 = vmatprep.subr.bf16.mxu1 %v17350_v43  ;;  %v5375_v43 = vld [vmem:[%s14858_s7 + $0x310] sm:$0xff] }
 0x5ff   : > { %5060 = vmatprep.mubr.f32.mxu0 %v4018_v17  ;;  %6440 = vmatprep.mubr.f32.mxu1 %v5398_v24  ;;  %v17377_v17 = vld [vmem:[#allocation341_spill] sm:$0xff]  ;;  %v3969_v24 = vld [vmem:[%s14852_s28 + $0x240] sm:$0xff] }
 0x600   : > { %5061 = vmatmul.mubr.f32.gmra.mrb[18].mxu0 %v4017_v35  ;;  %6441 = vmatmul.mubr.f32.gmra.mrb[18].mxu1 %v5397_v42  ;;  %v17378_v35 = vld [vmem:[#allocation342_spill] sm:$0xff]  ;;  %v3995_v42 = vld [vmem:[%s14852_s28 + $0x310] sm:$0xff] }
 0x601   : > { %9098 = vmatpush1.bf16.msra.mxu0 %v17351_v61  ;;  %9898 = vmatpush1.bf16.msra.mxu1 %v17351_v61  ;;  %v5374_v61 = vld [vmem:[%s14858_s7 + $0x308] sm:$0xff] }
 0x602   : > { %9100 = vmatprep.subr.bf16.mxu0 %v17352_v1  ;;  %9900 = vmatprep.subr.bf16.mxu1 %v17352_v1  ;;  %v17380_v1 = vld [vmem:[#allocation344_spill] sm:$0xff] }
 0x603   : > { %5131 = vmatprep.mubr.f32.mxu0 %v3920_v50  ;;  %6511 = vmatprep.mubr.f32.mxu1 %v5300_v53  ;;  %v17379_v50 = vld [vmem:[#allocation343_spill] sm:$0xff] }
 0x604   : > { %v3994_v53 = vld [vmem:[%s14852_s28 + $0x308] sm:$0xff] }
 0x605   : > { %9102 = vmatpush1.bf16.msra.mxu0 %v17353_v15  ;;  %9902 = vmatpush1.bf16.msra.mxu1 %v17353_v15  ;;  %v4020_v15 = vld [vmem:[%s14852_s28 + $0x3d8] sm:$0xff] }
 0x606   : > { %9104 = vmatprep.subr.bf16.mxu0 %v17354_v22  ;;  %9904 = vmatprep.subr.bf16.mxu1 %v17354_v22  ;;  %v5400_v22 = vld [vmem:[%s14858_s7 + $0x3d8] sm:$0xff] }
 0x609   : > { %9106 = vmatpush1.bf16.msra.mxu0 %v17355_v44  ;;  %9906 = vmatpush1.bf16.msra.mxu1 %v17355_v44  ;;  %v4019_v44 = vld [vmem:[%s14852_s28 + $0x3d0] sm:$0xff] }
 0x60a   : > { %9108 = vmatprep.subr.bf16.mxu0 %v17356_v59  ;;  %9908 = vmatprep.subr.bf16.mxu1 %v17356_v59  ;;  %v5399_v59 = vld [vmem:[%s14858_s7 + $0x3d0] sm:$0xff] }
 0x60d   : > { %9110 = vmatpush1.bf16.msra.mxu0 %v17357_v2  ;;  %9910 = vmatpush1.bf16.msra.mxu1 %v17357_v2  ;;  %v5401_v2 = vld [vmem:[%s14858_s7 + $0x3e0] sm:$0xff] }
 0x60e   : > { %9112 = vmatprep.subr.bf16.mxu0 %v17358_v29  ;;  %9912 = vmatprep.subr.bf16.mxu1 %v17358_v29 }
 0x611   : > { %9114 = vmatpush1.bf16.msra.mxu0 %v17359_v49  ;;  %9914 = vmatpush1.bf16.msra.mxu1 %v17359_v49 }
 0x612   : > { %9116 = vmatprep.subr.bf16.mxu0 %v17360_v62  ;;  %9916 = vmatprep.subr.bf16.mxu1 %v17360_v62 }
 0x615   : > { %9118 = vmatpush1.bf16.msra.mxu0 %v17361_v18  ;;  %9918 = vmatpush1.bf16.msra.mxu1 %v17361_v18 }
 0x616   : > { %9120 = vmatprep.subr.bf16.mxu0 %v17362_v41  ;;  %9920 = vmatprep.subr.bf16.mxu1 %v17362_v41 }
 0x619   : > { %9122 = vmatpush1.bf16.msra.mxu0 %v17363_v56  ;;  %9922 = vmatpush1.bf16.msra.mxu1 %v17363_v56 }
 0x61a   : > { %9124 = vmatprep.subr.bf16.mxu0 %v17364_v55  ;;  %9924 = vmatprep.subr.bf16.mxu1 %v17364_v55 }
 0x61d   : > { %9126 = vmatpush1.bf16.msra.mxu0 %v17365_v10  ;;  %9926 = vmatpush1.bf16.msra.mxu1 %v17365_v10 }
 0x61e   : > { %9128 = vmatprep.subr.bf16.mxu0 %v17366_v30  ;;  %9928 = vmatprep.subr.bf16.mxu1 %v17366_v30 }
 0x621   : > { %9130 = vmatpush1.bf16.msra.mxu0 %v17367_v8  ;;  %9930 = vmatpush1.bf16.msra.mxu1 %v17367_v8 }
 0x622   : > { %9132 = vmatprep.subr.bf16.mxu0 %v17368_v13  ;;  %9932 = vmatprep.subr.bf16.mxu1 %v17368_v13 }
 0x625   : > { %9134 = vmatpush1.bf16.msra.mxu0 %v17369_v40  ;;  %9934 = vmatpush1.bf16.msra.mxu1 %v17369_v40 }
 0x626   : > { %9136 = vmatprep.subr.bf16.mxu0 %v17370_v19  ;;  %9936 = vmatprep.subr.bf16.mxu1 %v17370_v19 }
 0x629   : > { %9138 = vmatpush1.bf16.msra.mxu0 %v17371_v20  ;;  %9938 = vmatpush1.bf16.msra.mxu1 %v17371_v20 }
 0x62a   : > { %9140 = vmatprep.subr.bf16.mxu0 %v17372_v25  ;;  %9940 = vmatprep.subr.bf16.mxu1 %v17372_v25 }
 0x62d   : > { %9142 = vmatpush1.bf16.msra.mxu0 %v17373_v31  ;;  %9942 = vmatpush1.bf16.msra.mxu1 %v17373_v31 }
 0x62e   : > { %9144 = vmatprep.subr.bf16.mxu0 %v17374_v38  ;;  %9944 = vmatprep.subr.bf16.mxu1 %v17374_v38 }
 0x630   : > { %5132 = vmatmul.mubr.f32.vlgmr.msra.gmra.mrb[10].mxu0 %v3919_v32  ;;  %6512 = vmatmul.mubr.f32.vlgmr.msra.gmra.mrb[10].mxu1 %v5299_v37 }
 0x631   : > { %9146 = vmatpush1.bf16.msra.mxu0 %v17375_v51  ;;  %9946 = vmatpush1.bf16.msra.mxu1 %v17375_v51 }
 0x632   : > { %9148 = vmatprep.subr.bf16.mxu0 %v17376_v58  ;;  %9948 = vmatprep.subr.bf16.mxu1 %v17376_v58 }
 0x633   : > { %5137 = vmatprep.mubr.f32.mxu0 %v3945_v45  ;;  %6517 = vmatprep.mubr.f32.mxu1 %v5325_v46 }
 0x634   : > { %5138 = vmatmul.mubr.f32.gmra.mrb[12].mxu0 %v3944_v52  ;;  %6518 = vmatmul.mubr.f32.gmra.mrb[12].mxu1 %v5324_v57 }
 0x635   : > { %9150 = vmatpush1.bf16.msra.mxu0 %v17377_v17  ;;  %9950 = vmatpush1.bf16.msra.mxu1 %v17377_v17 }
 0x636   : > { %9152 = vmatprep.subr.bf16.mxu0 %v17378_v35  ;;  %9952 = vmatprep.subr.bf16.mxu1 %v17378_v35 }
 0x637   : > { %5143 = vmatprep.mubr.f32.mxu0 %v3970_v6  ;;  %6523 = vmatprep.mubr.f32.mxu1 %v5350_v9 }
 0x638   : > { %5144 = vmatmul.mubr.f32.gmra.mrb[14].mxu0 %v3969_v24  ;;  %6524 = vmatmul.mubr.f32.gmra.mrb[14].mxu1 %v5349_v34 }
 0x639   : > { %9154 = vmatpush1.bf16.msra.mxu0 %v17379_v50  ;;  %9954 = vmatpush1.bf16.msra.mxu1 %v17379_v50 }
 0x63a   : > { %9156 = vmatprep.subr.bf16.mxu0 %v17380_v1  ;;  %9956 = vmatprep.subr.bf16.mxu1 %v17380_v1 }
 0x63b   : > { %5149 = vmatprep.mubr.f32.mxu0 %v3995_v42  ;;  %6529 = vmatprep.mubr.f32.mxu1 %v5375_v43 }
 0x63c   : > { %5150 = vmatmul.mubr.f32.gmra.mrb[16].mxu0 %v3994_v53  ;;  %6530 = vmatmul.mubr.f32.gmra.mrb[16].mxu1 %v5374_v61 }
 0x63d   : > { %9158 = vmatpush1.bf16.msra.mxu0 %v14728_v36  ;;  %9958 = vmatpush1.bf16.msra.mxu1 %v14728_v36  ;;  %v5301_v36 = vld [vmem:[%s14858_s7 + $0xc0] sm:$0xff] }
 0x63e   : > { %9160 = vmatprep.subr.bf16.mxu0 %v14734_v28  ;;  %9960 = vmatprep.subr.bf16.mxu1 %v14734_v28  ;;  %v3946_v28 = vld [vmem:[%s14852_s28 + $0x188] sm:$0xff] }
 0x63f   : > { %5155 = vmatprep.mubr.f32.mxu0 %v4020_v15  ;;  %6535 = vmatprep.mubr.f32.mxu1 %v5400_v22 }
 0x640   : > { %5156 = vmatmul.mubr.f32.gmra.mrb[18].mxu0 %v4019_v44  ;;  %6536 = vmatmul.mubr.f32.gmra.mrb[18].mxu1 %v5399_v59 }
 0x641   : > { %9162 = vmatpush1.bf16.msra.mxu0 %v14752_v11  ;;  %9962 = vmatpush1.bf16.msra.mxu1 %v14752_v11  ;;  %v5326_v11 = vld [vmem:[%s14858_s7 + $0x188] sm:$0xff] }
 0x642   : > { %9164 = vmatprep.subr.bf16.mxu0 %v14758_v23  ;;  %9964 = vmatprep.subr.bf16.mxu1 %v14758_v23  ;;  %v3921_v23 = vld [vmem:[%s14852_s28 + $0xc0] sm:$0xff] }
 0x643   : > { %5226 = vmatprep.mubr.f32.mxu0 %v10513_v5  ;;  %6606 = vmatprep.mubr.f32.mxu1 %v10513_v5 }
 0x645   : > { %9166 = vmatpush1.bf16.msra.mxu0 %v14774_v60  ;;  %9966 = vmatpush1.bf16.msra.mxu1 %v14774_v60  ;;  %v3971_v60 = vld [vmem:[%s14852_s28 + $0x250] sm:$0xff] }
 0x646   : > { %9168 = vmatprep.subr.bf16.mxu0 %v14778_v54  ;;  %9968 = vmatprep.subr.bf16.mxu1 %v14778_v54  ;;  %v5351_v54 = vld [vmem:[%s14858_s7 + $0x250] sm:$0xff] }
 0x649   : > { %9170 = vmatpush1.bf16.msra.mxu0 %v14796_v47  ;;  %9970 = vmatpush1.bf16.msra.mxu1 %v14796_v47  ;;  %v3996_v47 = vld [vmem:[%s14852_s28 + $0x318] sm:$0xff] }
 0x64a   : > { %9172 = vmatprep.subr.bf16.mxu0 %v14800_v12  ;;  %9972 = vmatprep.subr.bf16.mxu1 %v14800_v12  ;;  %v5376_v12 = vld [vmem:[%s14858_s7 + $0x318] sm:$0xff] }
 0x64d   : > { %9174 = vmatpush1.bf16.msra.mxu0 %v14810_v33  ;;  %9974 = vmatpush1.bf16.msra.mxu1 %v14810_v33  ;;  %v4021_v33 = vld [vmem:[%s14852_s28 + $0x3e0] sm:$0xff] }
 0x650   : > { %5227 = vmatmul.mubr.f32.vlgmr.msra.gmra.mrb[10].mxu0 %v3921_v23  ;;  %6607 = vmatmul.mubr.f32.vlgmr.msra.gmra.mrb[10].mxu1 %v5301_v36 }
 0x651   : > { %5232 = vmatprep.mubr.f32.mxu0 %v10513_v5  ;;  %6612 = vmatprep.mubr.f32.mxu1 %v10513_v5 }
 0x654   : > { %5233 = vmatmul.mubr.f32.gmra.mrb[12].mxu0 %v3946_v28  ;;  %6613 = vmatmul.mubr.f32.gmra.mrb[12].mxu1 %v5326_v11 }
 0x655   : > { %5238 = vmatprep.mubr.f32.mxu0 %v10513_v5  ;;  %6618 = vmatprep.mubr.f32.mxu1 %v10513_v5 }
 0x658   : > { %5239 = vmatmul.mubr.f32.gmra.mrb[14].mxu0 %v3971_v60  ;;  %6619 = vmatmul.mubr.f32.gmra.mrb[14].mxu1 %v5351_v54 }
 0x659   : > { %5244 = vmatprep.mubr.f32.mxu0 %v10513_v5  ;;  %6624 = vmatprep.mubr.f32.mxu1 %v10513_v5 }
 0x65c   : > { %5245 = vmatmul.mubr.f32.gmra.mrb[16].mxu0 %v3996_v47  ;;  %6625 = vmatmul.mubr.f32.gmra.mrb[16].mxu1 %v5376_v12 }
 0x65d   : > { %5250 = vmatprep.mubr.f32.mxu0 %v10513_v5  ;;  %6630 = vmatprep.mubr.f32.mxu1 %v10513_v5 }
 0x660   : > { %5251 = vmatmul.mubr.f32.gmra.mrb[18].mxu0 %v4021_v33  ;;  %6631 = vmatmul.mubr.f32.gmra.mrb[18].mxu1 %v5401_v2 }
 0x723   : > { %v5228_v29 = vpop.f32.mrb[10].mxu0  ;;  %v6608_v49 = vpop.f32.mrb[10].mxu1 }
 0x724   : > { %v9995_v62 = vadd.f32 %v5228_v29, %v15119_v63  ;;  %v10005_v18 = vadd.f32 %v6608_v49, %v15119_v63  ;;  %v5230_v41 = vpop.f32.mrb[11].mxu0  ;;  %v6610_v56 = vpop.f32.mrb[11].mxu1 }
 0x725   : > { %v9996_v55 = vadd.f32 %v5230_v41, %v15125_v16  ;;  %v10006_v10 = vadd.f32 %v6610_v56, %v15125_v16 }
 0x726   : > { %v5257_v30 = vmax.f32 %v9995_v62, 0.0  ;;  %v6637_v19 = vmax.f32 %v10005_v18, 0.0 }
 0x727   : > { %v5258_v8 = vmax.f32 %v9996_v55, 0.0  ;;  %v5234_v5 = vpop.f32.mrb[12].mxu0  ;;  %v6614_v13 = vpop.f32.mrb[12].mxu1  ;;  %v6638_v38 = vmax.f32 %v10006_v10, 0.0 }
 0x728   : > { %v5267_v40 = vmax.f32 %v15137_v21, %v5257_v30  ;;  %v9997_v20 = vadd.f32 %v5234_v5, %v15119_v63  ;;  %v10007_v25 = vadd.f32 %v6614_v13, %v15119_v63  ;;  %v5236_v31 = vpop.f32.mrb[13].mxu0  ;;  %v6616_v32 = vpop.f32.mrb[13].mxu1 }
 0x729   : > { %v5268_v37 = vmax.f32 %v15141_v4, %v5258_v8  ;;  %v9998_v45 = vadd.f32 %v5236_v31, %v15125_v16  ;;  %v10008_v21 = vadd.f32 %v6616_v32, %v15125_v16 }
 0x72a   : > { %v6647_v46 = vmax.f32 %v5267_v40, %v6637_v19  ;;  %v5259_v51 = vmax.f32 %v9997_v20, 0.0  ;;  %v6639_v17 = vmax.f32 %v10007_v25, 0.0 }
 0x72b   : > { %v6648_v52 = vmax.f32 %v5268_v37, %v6638_v38  ;;  %v5260_v57 = vmax.f32 %v9998_v45, 0.0  ;;  %v5240_v58 = vpop.f32.mrb[14].mxu0  ;;  %v6620_v6 = vpop.f32.mrb[14].mxu1  ;;  %v6640_v43 = vmax.f32 %v10008_v21, 0.0 }
 0x72c   : > { %6657 = vst [vmem:[%s15964_s11] sm:$0xff] %v6647_v46  ;;  %v5269_v9 = vmax.f32 %v15149_v14, %v5259_v51  ;;  %v9999_v24 = vadd.f32 %v5240_v58, %v15119_v63  ;;  %v10009_v4 = vadd.f32 %v6620_v6, %v15119_v63  ;;  %v5242_v34 = vpop.f32.mrb[15].mxu0  ;;  %v6622_v35 = vpop.f32.mrb[15].mxu1 }
 0x72d   : > { %6658 = vst [vmem:[%s15964_s11 + $0x8] sm:$0xff] %v6648_v52  ;;  %v5270_v42 = vmax.f32 %v15153_v26, %v5260_v57  ;;  %v10000_v50 = vadd.f32 %v5242_v34, %v15125_v16  ;;  %v10010_v53 = vadd.f32 %v6622_v35, %v15125_v16 }
 0x72e   : > { %v6649_v61 = vmax.f32 %v5269_v9, %v6639_v17  ;;  %v5261_v1 = vmax.f32 %v9999_v24, 0.0  ;;  %v6641_v23 = vmax.f32 %v10009_v4, 0.0 }
 0x72f   : > { %v6650_v14 = vmax.f32 %v5270_v42, %v6640_v43  ;;  %v5262_v15 = vmax.f32 %v10000_v50, 0.0  ;;  %v5246_v22 = vpop.f32.mrb[16].mxu0  ;;  %v6626_v44 = vpop.f32.mrb[16].mxu1  ;;  %v6642_v54 = vmax.f32 %v10010_v53, 0.0 }
 0x730   : > { %6659 = vst [vmem:[%s15964_s11 + $0x10] sm:$0xff] %v6649_v61  ;;  %v5271_v59 = vmax.f32 %v15161_v0, %v5261_v1  ;;  %v10001_v36 = vadd.f32 %v5246_v22, %v15119_v63  ;;  %v10011_v26 = vadd.f32 %v6626_v44, %v15119_v63  ;;  %v5248_v28 = vpop.f32.mrb[17].mxu0  ;;  %v6628_v11 = vpop.f32.mrb[17].mxu1 }
 0x731   : > { %6660 = vst [vmem:[%s15964_s11 + $0x18] sm:$0xff] %v6650_v14  ;;  %v5272_v60 = vmax.f32 %v15165_v27, %v5262_v15  ;;  %v10002_v47 = vadd.f32 %v5248_v28, %v15125_v16  ;;  %v10012_v12 = vadd.f32 %v6628_v11, %v15125_v16 }
 0x732   : > { %v6651_v33 = vmax.f32 %v5271_v59, %v6641_v23  ;;  %v5263_v2 = vmax.f32 %v10001_v36, 0.0  ;;  %v6643_v41 = vmax.f32 %v10011_v26, 0.0 }
 0x733   : > { %v6652_v0 = vmax.f32 %v5272_v60, %v6642_v54  ;;  %v5264_v29 = vmax.f32 %v10002_v47, 0.0  ;;  %v5252_v49 = vpop.f32.mrb[18].mxu0  ;;  %v6632_v62 = vpop.f32.mrb[18].mxu1  ;;  %v6644_v8 = vmax.f32 %v10012_v12, 0.0 }
 0x734   : > { %6661 = vst [vmem:[%s15964_s11 + $0x20] sm:$0xff] %v6651_v33  ;;  %v5273_v18 = vmax.f32 %v15173_v39, %v5263_v2  ;;  %v10003_v56 = vadd.f32 %v5252_v49, %v15119_v63  ;;  %v10013_v27 = vadd.f32 %v6632_v62, %v15119_v63  ;;  %v5254_v55 = vpop.f32.mrb[19].mxu0  ;;  %v6634_v10 = vpop.f32.mrb[19].mxu1 }
 0x735   : > { %6662 = vst [vmem:[%s15964_s11 + $0x28] sm:$0xff] %v6652_v0  ;;  %v5274_v30 = vmax.f32 %v15177_v48, %v5264_v29  ;;  %v10004_v5 = vadd.f32 %v5254_v55, %v15125_v16  ;;  %v10014_v13 = vadd.f32 %v6634_v10, %v15125_v16 }
 0x736   : > { %v6653_v40 = vmax.f32 %v5273_v18, %v6643_v41  ;;  %v5265_v39 = vmax.f32 %v10003_v56, 0.0  ;;  %v6645_v63 = vmax.f32 %v10013_v27, 0.0 }
 0x737   : > { %v6654_v19 = vmax.f32 %v5274_v30, %v6644_v8  ;;  %v5266_v20 = vmax.f32 %v10004_v5, 0.0  ;;  %v6646_v32 = vmax.f32 %v10014_v13, 0.0 }
 0x738   : > { %6663 = vst [vmem:[%s15964_s11 + $0x30] sm:$0xff] %v6653_v40  ;;  %v5275_v25 = vmax.f32 %v15185_v3, %v5265_v39 }
 0x739   : > { %6664 = vst [vmem:[%s15964_s11 + $0x38] sm:$0xff] %v6654_v19  ;;  %v5276_v31 = vmax.f32 %v15187_v7, %v5266_v20 }
 0x73a   : > { %v6655_v48 = vmax.f32 %v5275_v25, %v6645_v63 }
 0x73b   : > { %v6656_v37 = vmax.f32 %v5276_v31, %v6646_v32 }
 0x73c   : > { %6665 = vst [vmem:[%s15964_s11 + $0x40] sm:$0xff] %v6655_v48 }
 0x73d   : > { %6666 = vst [vmem:[%s15964_s11 + $0x48] sm:$0xff] %v6656_v37 }
 0x73e PF: > { %s16_s21 = sadd.s32 1, %s10511_s21  }
 0x73f   : > { %p13_p4 = scmp.ge.s32.totalorder %s16_s21, 4  }
 0x741   :  { %15 = sbr.rel (!%p13_p4) target bundleno = 1 (0x1), region = 83 }

</bundles_post_ra>
